<compile_context>
chip_gen: v6e
topology: v6e:2x2x1
jax: 0.10.0
libtpu: 0.0.40
codegen_flags: <defaults>
</compile_context>

<pallas_src>
import functools

import numpy as np
import jax
import jax.numpy as jnp
from jax import lax
from jax.experimental import pallas as pl
from jax.experimental.pallas import tpu as pltpu

C_IMG = 32    # image-encoder output channels  (img_ft: (N, 32, 5, 5))
HID = 128     # LSTM hidden size (h_0 is (2, N, 128) in the reference)
E_TXT = 32    # caption embedding size fed to the LSTM
SPA = 5       # feature-map spatial size (att_ft.reshape(N, -1, 5, 5))

VMEM_SPEC = pl.BlockSpec(memory_space=pltpu.MemorySpace.VMEM)


# --------------------------------------------------------------------------
# The single fused kernel
# --------------------------------------------------------------------------
def _teacgan_kernel(xcols_ref, cap_ref,
                    encw_ref, encb_ref,
                    wih1_ref, whh1_ref, b1_ref,
                    wih2_ref, whh2_ref, b2_ref,
                    pw_ref, pb_ref,
                    shift_ref, r1w_ref, r1b_ref, r2w_ref, r2b_ref,
                    decw_ref, decb_ref,
                    cap_out_ref, dec_out_ref,
                    y1_sc, conc_sc,
                    *, n_batch, seq_len):
    f32 = jnp.float32
    N, T, H = n_batch, seq_len, HID
    S = SPA * SPA
    C = C_IMG

    # ---------------- image encoder: strided conv == one matmul ----------
    # img_t[c, n*S + h*SPA + w] == img_ft[n, c, h, w]
    img_t = jnp.maximum(
        jnp.dot(encw_ref[...], xcols_ref[...], preferred_element_type=f32)
        + encb_ref[...], 0.0)                                    # (C, N*S)
    conc_sc[0:C, :] = img_t                                      # top half of concat_ft

    # ---------------- 2-layer LSTM (PyTorch gate order i,f,g,o) ----------
    def run_lstm_layer(gates_x, whh_ref, store_fn):
        h = jnp.zeros((N, H), f32)                               # h_0 = 0
        c = jnp.zeros((N, H), f32)                               # c_0 = 0
        for t in range(T):                                       # static unroll
            g = gates_x[t * N:(t + 1) * N, :] + jnp.dot(
                h, whh_ref[...], preferred_element_type=f32)     # (N, 4H)
            i_g = jax.nn.sigmoid(g[:, 0:H])
            f_g = jax.nn.sigmoid(g[:, H:2 * H])
            c_g = jnp.tanh(g[:, 2 * H:3 * H])
            o_g = jax.nn.sigmoid(g[:, 3 * H:4 * H])
            c = f_g * c + i_g * c_g
            h = o_g * jnp.tanh(c)
            store_fn(t, h)

    # layer 1: input projection hoisted out of the recurrence
    gx1 = jnp.dot(cap_ref[...], wih1_ref[...],
                  preferred_element_type=f32) + b1_ref[...]      # (T*N, 4H)

    def store_l1(t, h):                                          # time-major scratch
        y1_sc[t * N:(t + 1) * N, :] = h

    run_lstm_layer(gx1, whh1_ref, store_l1)

    # layer 2
    gx2 = jnp.dot(y1_sc[...], wih2_ref[...],
                  preferred_element_type=f32) + b2_ref[...]      # (T*N, 4H)

    def store_l2(t, h):                                          # batch-major output
        for n in range(N):
            r = n * T + t
            cap_out_ref[r:r + 1, :] = h[n:n + 1, :]

    run_lstm_layer(gx2, whh2_ref, store_l2)

    # ---------------- attention: projection + bmm + softmax(dim=0) + bmm --
    pw = pw_ref[...]                                             # (H, S)
    pb = pb_ref[...]                                             # (1, S)
    w_proj, scores = [], []
    for n in range(N):
        cap_n = cap_out_ref[n * T:(n + 1) * T, :]                # (T, H)
        w_n = jnp.dot(cap_n, pw, preferred_element_type=f32) + pb  # (T, S)
        v_n = conc_sc[0:C, n * S:(n + 1) * S]                    # (C, S)
        # match_score_n = V_n @ W_n^T : contract the spatial axis of both.
        ms_n = lax.dot_general(v_n, w_n, (((1,), (1,)), ((), ())),
                               preferred_element_type=f32)       # (C, T)
        w_proj.append(w_n)
        scores.append(ms_n)

    # Softmax over the BATCH dimension (dim=0), exactly as in the reference.
    m = scores[0]
    for n in range(1, N):
        m = jnp.maximum(m, scores[n])
    exps = [jnp.exp(s - m) for s in scores]
    denom = exps[0]
    for n in range(1, N):
        denom = denom + exps[n]
    inv = pl.reciprocal(denom, approx=True)

    for n in range(N):
        a_n = exps[n] * inv                                      # (C, T)  = A_n
        att_n = jnp.dot(a_n, w_proj[n], preferred_element_type=f32)  # (C, S)
        conc_sc[C:2 * C, n * S:(n + 1) * S] = att_n              # bottom half

    # ---------------- residual 3x3 conv blocks ----------------------------
    # conv(X)[co, r] = sum_k W_k[co, :] @ (X @ S_k)[:, r] + b[co]
    # where S_k is a precomputed 0/1 spatial shift+mask ("same" padding) matrix.
    def conv3x3(x, w_ref, b_ref):
        acc = None
        for k in range(9):
            xs = x if k == 4 else jnp.dot(x, shift_ref[k],
                                          preferred_element_type=f32)
            term = jnp.dot(w_ref[k], xs, preferred_element_type=f32)
            acc = term if acc is None else acc + term
        return acc + b_ref[...]

    conc = conc_sc[...]                                          # (2C, N*S)
    res1 = jnp.maximum(conv3x3(conc, r1w_ref, r1b_ref) + conc, 0.0)
    res2 = jnp.maximum(conv3x3(res1, r2w_ref, r2b_ref) + res1, 0.0)

    # ---------------- decoder: ConvTranspose(k=4, s=4) == matmul + tanh ---
    dec_out_ref[...] = jnp.tanh(
        jnp.dot(decw_ref[...], res2, preferred_element_type=f32)
        + decb_ref[...])                                         # (48, N*S)


# --------------------------------------------------------------------------
# Parameters (deterministic synthetic init, torch layouts)
# --------------------------------------------------------------------------
def init_params(key):
    keys = jax.random.split(key, 16)

    def nrm(k, shape, scale=0.05):
        return jax.random.normal(k, shape, jnp.float32) * scale

    p = {}
    p['enc_w'] = nrm(keys[0], (C_IMG, 3, 4, 4))             # Conv2d(3,32,4,s=4)
    p['enc_b'] = nrm(keys[1], (C_IMG,))
    p['lstm'] = []
    in_sz = E_TXT
    for l in range(2):                                      # 2-layer LSTM
        kk = jax.random.split(keys[2 + l], 4)
        p['lstm'].append(dict(
            w_ih=nrm(kk[0], (4 * HID, in_sz)),
            w_hh=nrm(kk[1], (4 * HID, HID)),
            b_ih=nrm(kk[2], (4 * HID,)),
            b_hh=nrm(kk[3], (4 * HID,)),
        ))
        in_sz = HID
    p['proj_w'] = nrm(keys[4], (SPA * SPA, HID))            # Linear(128, 25)
    p['proj_b'] = nrm(keys[5], (SPA * SPA,))
    p['res1_w'] = nrm(keys[6], (2 * C_IMG, 2 * C_IMG, 3, 3))
    p['res1_b'] = nrm(keys[7], (2 * C_IMG,))
    p['res2_w'] = nrm(keys[8], (2 * C_IMG, 2 * C_IMG, 3, 3))
    p['res2_b'] = nrm(keys[9], (2 * C_IMG,))
    p['dec_w'] = nrm(keys[10], (2 * C_IMG, 3, 4, 4))        # ConvT(64,3,4,s=4)
    p['dec_b'] = nrm(keys[11], (3,))
    return p


def _shift_matrices(n, h, w):
    """shift[k, src, dst] = 1 iff col `dst` reads col `src` for 3x3 tap k ('same' pad)."""
    r = n * h * w
    s = np.zeros((9, r, r), np.float32)
    for di in range(3):
        for dj in range(3):
            k = di * 3 + dj
            for b in range(n):
                for y in range(h):
                    for x in range(w):
                        ys, xs = y + di - 1, x + dj - 1
                        if 0 <= ys < h and 0 <= xs < w:
                            dst = (b * h + y) * w + x
                            src = (b * h + ys) * w + xs
                            s[k, src, dst] = 1.0
    return jnp.asarray(s)


def prepare_params(p, n_batch):
    """Re-layout torch-style params into kernel matmul layouts (done once)."""
    l1, l2 = p['lstm']
    kp = {
        'enc_w': p['enc_w'].reshape(C_IMG, 3 * 16),               # (32, 48)
        'enc_b': p['enc_b'].reshape(C_IMG, 1),
        'wih1': l1['w_ih'].T,                                     # (E, 4H)
        'whh1': l1['w_hh'].T,                                     # (H, 4H)
        'b1': (l1['b_ih'] + l1['b_hh']).reshape(1, 4 * HID),
        'wih2': l2['w_ih'].T,
        'whh2': l2['w_hh'].T,
        'b2': (l2['b_ih'] + l2['b_hh']).reshape(1, 4 * HID),
        'proj_w': p['proj_w'].T,                                  # (H, 25)
        'proj_b': p['proj_b'].reshape(1, SPA * SPA),
        # per-tap (co, ci) weight matrices, k = di*3 + dj
        'r1_w': p['res1_w'].transpose(2, 3, 0, 1).reshape(9, 2 * C_IMG, 2 * C_IMG),
        'r1_b': p['res1_b'].reshape(2 * C_IMG, 1),
        'r2_w': p['res2_w'].transpose(2, 3, 0, 1).reshape(9, 2 * C_IMG, 2 * C_IMG),
        'r2_b': p['res2_b'].reshape(2 * C_IMG, 1),
        # ConvT weight (in, out, kh, kw) -> rows (out*16 + kh*4 + kw), cols in
        'dec_w': p['dec_w'].transpose(1, 2, 3, 0).reshape(3 * 16, 2 * C_IMG),
        'dec_b': jnp.repeat(p['dec_b'], 16).reshape(3 * 16, 1),
        'shift': _shift_matrices(n_batch, SPA, SPA),              # (9, R, R)
    }
    return kp


# --------------------------------------------------------------------------
# Forward (mirrors TEACGAN.forward) — one pallas_call + tiny I/O relayouts
# --------------------------------------------------------------------------
def teacgan_forward(image, caption, kp, *, n_batch, seq_len):
    N, T = n_batch, seq_len
    S = SPA * SPA
    R = N * S

    # channel-major im2col of the k=4/s=4 encoder conv:
    #   rows = (ci, kh, kw), cols = (n, oh, ow)
    xcols_t = (image.reshape(N, 3, SPA, 4, SPA, 4)
               .transpose(1, 3, 5, 0, 2, 4)
               .reshape(3 * 16, R))
    # caption in time-major row layout (t, n) for the hoisted input projection
    cap_tm = jnp.transpose(caption, (1, 0, 2)).reshape(T * N, E_TXT)

    kernel = functools.partial(_teacgan_kernel, n_batch=N, seq_len=T)
    cap_out, dec_out = pl.pallas_call(
        kernel,
        out_shape=(jax.ShapeDtypeStruct((N * T, HID), jnp.float32),
                   jax.ShapeDtypeStruct((3 * 16, R), jnp.float32)),
        in_specs=[VMEM_SPEC] * 19,
        out_specs=(VMEM_SPEC, VMEM_SPEC),
        scratch_shapes=[pltpu.VMEM((T * N, HID), jnp.float32),     # LSTM layer-1 outs
                        pltpu.VMEM((2 * C_IMG, R), jnp.float32)],  # concat_ft
    )(xcols_t, cap_tm,
      kp['enc_w'], kp['enc_b'],
      kp['wih1'], kp['whh1'], kp['b1'],
      kp['wih2'], kp['whh2'], kp['b2'],
      kp['proj_w'], kp['proj_b'],
      kp['shift'], kp['r1_w'], kp['r1_b'], kp['r2_w'], kp['r2_b'],
      kp['dec_w'], kp['dec_b'])

    caption_ft = cap_out.reshape(N, T, HID)                       # batch-major already
    # block-scatter of the stride-4 ConvTranspose output
    image_hat = (dec_out.reshape(3, 4, 4, N, SPA, SPA)
                 .transpose(3, 0, 4, 1, 5, 2)
                 .reshape(N, 3, 4 * SPA, 4 * SPA))                # (N, 3, 20, 20)
    return image_hat, caption_ft


if __name__ == "__main__":
    N, T = 2, 8
    key = jax.random.PRNGKey(0)
    k_img, k_cap, k_par = jax.random.split(key, 3)
    image = jax.random.normal(k_img, (N, 3, 20, 20), jnp.float32)   # NCHW
    caption = jax.random.normal(k_cap, (N, T, E_TXT), jnp.float32)  # embedded text
    params = init_params(k_par)
    kparams = prepare_params(params, N)                             # one-time relayout

    fwd = jax.jit(functools.partial(teacgan_forward, n_batch=N, seq_len=T))
    image_hat, caption_ft = fwd(image, caption, kparams)
    jax.block_until_ready((image_hat, caption_ft))

    assert image_hat.shape == (N, 3, 20, 20), image_hat.shape
    assert caption_ft.shape == (N, T, HID), caption_ft.shape
    assert jnp.all(jnp.isfinite(image_hat)) and jnp.all(jnp.isfinite(caption_ft))
    print("KERNEL_OK")
</pallas_src>

<mosaic_0001>
module attributes {stable_mosaic.version = 11 : i64} {
  func.func @_teacgan_kernel(%arg0: memref<48x50xf32, #tpu.memory_space<vmem>>, %arg1: memref<16x32xf32, #tpu.memory_space<vmem>>, %arg2: memref<32x48xf32, #tpu.memory_space<vmem>>, %arg3: memref<32x1xf32, #tpu.memory_space<vmem>>, %arg4: memref<32x512xf32, #tpu.memory_space<vmem>>, %arg5: memref<128x512xf32, #tpu.memory_space<vmem>>, %arg6: memref<1x512xf32, #tpu.memory_space<vmem>>, %arg7: memref<128x512xf32, #tpu.memory_space<vmem>>, %arg8: memref<128x512xf32, #tpu.memory_space<vmem>>, %arg9: memref<1x512xf32, #tpu.memory_space<vmem>>, %arg10: memref<128x25xf32, #tpu.memory_space<vmem>>, %arg11: memref<1x25xf32, #tpu.memory_space<vmem>>, %arg12: memref<9x50x50xf32, #tpu.memory_space<vmem>>, %arg13: memref<9x64x64xf32, #tpu.memory_space<vmem>>, %arg14: memref<64x1xf32, #tpu.memory_space<vmem>>, %arg15: memref<9x64x64xf32, #tpu.memory_space<vmem>>, %arg16: memref<64x1xf32, #tpu.memory_space<vmem>>, %arg17: memref<48x64xf32, #tpu.memory_space<vmem>>, %arg18: memref<48x1xf32, #tpu.memory_space<vmem>>, %arg19: memref<16x128xf32, #tpu.memory_space<vmem>>, %arg20: memref<48x50xf32, #tpu.memory_space<vmem>>, %arg21: memref<16x128xf32, #tpu.memory_space<vmem>>, %arg22: memref<64x50xf32, #tpu.memory_space<vmem>>) attributes {dimension_semantics = [], scalar_prefetch = 0 : i64, scratch_operands = 2 : i64, tpu.core_type = #tpu.core_type<tc>} {
    %c0 = arith.constant 0 : index
    %c0_0 = arith.constant 0 : index
    %0 = vector.load %arg2[%c0, %c0_0] : memref<32x48xf32, #tpu.memory_space<vmem>>, vector<32x48xf32>
    %c0_1 = arith.constant 0 : index
    %c0_2 = arith.constant 0 : index
    %1 = vector.load %arg0[%c0_1, %c0_2] : memref<48x50xf32, #tpu.memory_space<vmem>>, vector<48x50xf32>
    %cst = arith.constant dense<0.000000e+00> : vector<32x50xf32>
    %2 = tpu.matmul %0, %1, %cst {dimension_numbers = #tpu.dot_dimension_numbers<[1], [0], [0], [1], [0, 0, 1, 1], [], []>} : vector<32x48xf32>, vector<48x50xf32>, vector<32x50xf32> -> vector<32x50xf32>
    %c0_3 = arith.constant 0 : index
    %c0_4 = arith.constant 0 : index
    %3 = vector.load %arg3[%c0_3, %c0_4] : memref<32x1xf32, #tpu.memory_space<vmem>>, vector<32x1xf32>
    %4 = vector.broadcast %3 : vector<32x1xf32> to vector<32x50xf32>
    %5 = arith.addf %2, %4 : vector<32x50xf32>
    %cst_5 = arith.constant 0.000000e+00 : f32
    %6 = vector.broadcast %cst_5 : f32 to vector<32x50xf32>
    %7 = arith.maximumf %5, %6 : vector<32x50xf32>
    %c0_6 = arith.constant 0 : index
    %c0_7 = arith.constant 0 : index
    %8 = vector.load %arg22[%c0_6, %c0_7] : memref<64x50xf32, #tpu.memory_space<vmem>>, vector<32x50xf32>
    tpu.vector_store %arg22[%c0_6, %c0_7], %7 {strides = array<i32>} : memref<64x50xf32, #tpu.memory_space<vmem>>, vector<32x50xf32>,
    %c0_8 = arith.constant 0 : index
    %c0_9 = arith.constant 0 : index
    %9 = vector.load %arg1[%c0_8, %c0_9] : memref<16x32xf32, #tpu.memory_space<vmem>>, vector<16x32xf32>
    %c0_10 = arith.constant 0 : index
    %c0_11 = arith.constant 0 : index
    %10 = vector.load %arg4[%c0_10, %c0_11] : memref<32x512xf32, #tpu.memory_space<vmem>>, vector<32x512xf32>
    %cst_12 = arith.constant dense<0.000000e+00> : vector<16x512xf32>
    %11 = tpu.matmul %9, %10, %cst_12 {dimension_numbers = #tpu.dot_dimension_numbers<[1], [0], [0], [1], [0, 0, 1, 1], [], []>} : vector<16x32xf32>, vector<32x512xf32>, vector<16x512xf32> -> vector<16x512xf32>
    %c0_13 = arith.constant 0 : index
    %c0_14 = arith.constant 0 : index
    %12 = vector.load %arg6[%c0_13, %c0_14] : memref<1x512xf32, #tpu.memory_space<vmem>>, vector<1x512xf32>
    %13 = vector.broadcast %12 : vector<1x512xf32> to vector<16x512xf32>
    %14 = arith.addf %11, %13 : vector<16x512xf32>
    %cst_15 = arith.constant 0.000000e+00 : f32
    %15 = vector.broadcast %cst_15 : f32 to vector<2x128xf32>
    %cst_16 = arith.constant 0.000000e+00 : f32
    %16 = vector.broadcast %cst_16 : f32 to vector<2x128xf32>
    %17 = vector.extract_strided_slice %14 {offsets = [0, 0], sizes = [2, 512], strides = [1, 1]} : vector<16x512xf32> to vector<2x512xf32>
    %c0_17 = arith.constant 0 : index
    %c0_18 = arith.constant 0 : index
    %18 = vector.load %arg5[%c0_17, %c0_18] : memref<128x512xf32, #tpu.memory_space<vmem>>, vector<128x512xf32>
    %cst_19 = arith.constant dense<0.000000e+00> : vector<2x512xf32>
    %19 = tpu.matmul %15, %18, %cst_19 {dimension_numbers = #tpu.dot_dimension_numbers<[1], [0], [0], [1], [0, 0, 1, 1], [], []>} : vector<2x128xf32>, vector<128x512xf32>, vector<2x512xf32> -> vector<2x512xf32>
    %20 = arith.addf %17, %19 : vector<2x512xf32>
    %21 = vector.extract_strided_slice %20 {offsets = [0, 0], sizes = [2, 128], strides = [1, 1]} : vector<2x512xf32> to vector<2x128xf32>
    %22 = arith.negf %21 : vector<2x128xf32>
    %23 = math.exp %22 : vector<2x128xf32>
    %cst_20 = arith.constant 1.000000e+00 : f32
    %24 = vector.broadcast %cst_20 : f32 to vector<2x128xf32>
    %25 = arith.addf %24, %23 : vector<2x128xf32>
    %26 = arith.divf %24, %25 : vector<2x128xf32>
    %27 = vector.extract_strided_slice %20 {offsets = [0, 128], sizes = [2, 128], strides = [1, 1]} : vector<2x512xf32> to vector<2x128xf32>
    %28 = arith.negf %27 : vector<2x128xf32>
    %29 = math.exp %28 : vector<2x128xf32>
    %cst_21 = arith.constant 1.000000e+00 : f32
    %30 = vector.broadcast %cst_21 : f32 to vector<2x128xf32>
    %31 = arith.addf %30, %29 : vector<2x128xf32>
    %32 = arith.divf %30, %31 : vector<2x128xf32>
    %33 = vector.extract_strided_slice %20 {offsets = [0, 256], sizes = [2, 128], strides = [1, 1]} : vector<2x512xf32> to vector<2x128xf32>
    %34 = math.tanh %33 : vector<2x128xf32>
    %35 = vector.extract_strided_slice %20 {offsets = [0, 384], sizes = [2, 128], strides = [1, 1]} : vector<2x512xf32> to vector<2x128xf32>
    %36 = arith.negf %35 : vector<2x128xf32>
    %37 = math.exp %36 : vector<2x128xf32>
    %cst_22 = arith.constant 1.000000e+00 : f32
    %38 = vector.broadcast %cst_22 : f32 to vector<2x128xf32>
    %39 = arith.addf %38, %37 : vector<2x128xf32>
    %40 = arith.divf %38, %39 : vector<2x128xf32>
    %41 = arith.mulf %32, %16 : vector<2x128xf32>
    %42 = arith.mulf %26, %34 : vector<2x128xf32>
    %43 = arith.addf %41, %42 : vector<2x128xf32>
    %44 = math.tanh %43 : vector<2x128xf32>
    %45 = arith.mulf %40, %44 : vector<2x128xf32>
    %c0_23 = arith.constant 0 : index
    %c0_24 = arith.constant 0 : index
    %46 = vector.load %arg21[%c0_23, %c0_24] : memref<16x128xf32, #tpu.memory_space<vmem>>, vector<2x128xf32>
    tpu.vector_store %arg21[%c0_23, %c0_24], %45 {strides = array<i32>} : memref<16x128xf32, #tpu.memory_space<vmem>>, vector<2x128xf32>,
    %47 = vector.extract_strided_slice %14 {offsets = [2, 0], sizes = [2, 512], strides = [1, 1]} : vector<16x512xf32> to vector<2x512xf32>
    %c0_25 = arith.constant 0 : index
    %c0_26 = arith.constant 0 : index
    %48 = vector.load %arg5[%c0_25, %c0_26] : memref<128x512xf32, #tpu.memory_space<vmem>>, vector<128x512xf32>
    %cst_27 = arith.constant dense<0.000000e+00> : vector<2x512xf32>
    %49 = tpu.matmul %45, %48, %cst_27 {dimension_numbers = #tpu.dot_dimension_numbers<[1], [0], [0], [1], [0, 0, 1, 1], [], []>} : vector<2x128xf32>, vector<128x512xf32>, vector<2x512xf32> -> vector<2x512xf32>
    %50 = arith.addf %47, %49 : vector<2x512xf32>
    %51 = vector.extract_strided_slice %50 {offsets = [0, 0], sizes = [2, 128], strides = [1, 1]} : vector<2x512xf32> to vector<2x128xf32>
    %52 = arith.negf %51 : vector<2x128xf32>
    %53 = math.exp %52 : vector<2x128xf32>
    %cst_28 = arith.constant 1.000000e+00 : f32
    %54 = vector.broadcast %cst_28 : f32 to vector<2x128xf32>
    %55 = arith.addf %54, %53 : vector<2x128xf32>
    %56 = arith.divf %54, %55 : vector<2x128xf32>
    %57 = vector.extract_strided_slice %50 {offsets = [0, 128], sizes = [2, 128], strides = [1, 1]} : vector<2x512xf32> to vector<2x128xf32>
    %58 = arith.negf %57 : vector<2x128xf32>
    %59 = math.exp %58 : vector<2x128xf32>
    %cst_29 = arith.constant 1.000000e+00 : f32
    %60 = vector.broadcast %cst_29 : f32 to vector<2x128xf32>
    %61 = arith.addf %60, %59 : vector<2x128xf32>
    %62 = arith.divf %60, %61 : vector<2x128xf32>
    %63 = vector.extract_strided_slice %50 {offsets = [0, 256], sizes = [2, 128], strides = [1, 1]} : vector<2x512xf32> to vector<2x128xf32>
    %64 = math.tanh %63 : vector<2x128xf32>
    %65 = vector.extract_strided_slice %50 {offsets = [0, 384], sizes = [2, 128], strides = [1, 1]} : vector<2x512xf32> to vector<2x128xf32>
    %66 = arith.negf %65 : vector<2x128xf32>
    %67 = math.exp %66 : vector<2x128xf32>
    %cst_30 = arith.constant 1.000000e+00 : f32
    %68 = vector.broadcast %cst_30 : f32 to vector<2x128xf32>
    %69 = arith.addf %68, %67 : vector<2x128xf32>
    %70 = arith.divf %68, %69 : vector<2x128xf32>
    %71 = arith.mulf %62, %43 : vector<2x128xf32>
    %72 = arith.mulf %56, %64 : vector<2x128xf32>
    %73 = arith.addf %71, %72 : vector<2x128xf32>
    %74 = math.tanh %73 : vector<2x128xf32>
    %75 = arith.mulf %70, %74 : vector<2x128xf32>
    %c2 = arith.constant 2 : index
    %c0_31 = arith.constant 0 : index
    %76 = vector.load %arg21[%c2, %c0_31] : memref<16x128xf32, #tpu.memory_space<vmem>>, vector<2x128xf32>
    tpu.vector_store %arg21[%c2, %c0_31], %75 {strides = array<i32>} : memref<16x128xf32, #tpu.memory_space<vmem>>, vector<2x128xf32>,
    %77 = vector.extract_strided_slice %14 {offsets = [4, 0], sizes = [2, 512], strides = [1, 1]} : vector<16x512xf32> to vector<2x512xf32>
    %c0_32 = arith.constant 0 : index
    %c0_33 = arith.constant 0 : index
    %78 = vector.load %arg5[%c0_32, %c0_33] : memref<128x512xf32, #tpu.memory_space<vmem>>, vector<128x512xf32>
    %cst_34 = arith.constant dense<0.000000e+00> : vector<2x512xf32>
    %79 = tpu.matmul %75, %78, %cst_34 {dimension_numbers = #tpu.dot_dimension_numbers<[1], [0], [0], [1], [0, 0, 1, 1], [], []>} : vector<2x128xf32>, vector<128x512xf32>, vector<2x512xf32> -> vector<2x512xf32>
    %80 = arith.addf %77, %79 : vector<2x512xf32>
    %81 = vector.extract_strided_slice %80 {offsets = [0, 0], sizes = [2, 128], strides = [1, 1]} : vector<2x512xf32> to vector<2x128xf32>
    %82 = arith.negf %81 : vector<2x128xf32>
    %83 = math.exp %82 : vector<2x128xf32>
    %cst_35 = arith.constant 1.000000e+00 : f32
    %84 = vector.broadcast %cst_35 : f32 to vector<2x128xf32>
    %85 = arith.addf %84, %83 : vector<2x128xf32>
    %86 = arith.divf %84, %85 : vector<2x128xf32>
    %87 = vector.extract_strided_slice %80 {offsets = [0, 128], sizes = [2, 128], strides = [1, 1]} : vector<2x512xf32> to vector<2x128xf32>
    %88 = arith.negf %87 : vector<2x128xf32>
    %89 = math.exp %88 : vector<2x128xf32>
    %cst_36 = arith.constant 1.000000e+00 : f32
    %90 = vector.broadcast %cst_36 : f32 to vector<2x128xf32>
    %91 = arith.addf %90, %89 : vector<2x128xf32>
    %92 = arith.divf %90, %91 : vector<2x128xf32>
    %93 = vector.extract_strided_slice %80 {offsets = [0, 256], sizes = [2, 128], strides = [1, 1]} : vector<2x512xf32> to vector<2x128xf32>
    %94 = math.tanh %93 : vector<2x128xf32>
    %95 = vector.extract_strided_slice %80 {offsets = [0, 384], sizes = [2, 128], strides = [1, 1]} : vector<2x512xf32> to vector<2x128xf32>
    %96 = arith.negf %95 : vector<2x128xf32>
    %97 = math.exp %96 : vector<2x128xf32>
    %cst_37 = arith.constant 1.000000e+00 : f32
    %98 = vector.broadcast %cst_37 : f32 to vector<2x128xf32>
    %99 = arith.addf %98, %97 : vector<2x128xf32>
    %100 = arith.divf %98, %99 : vector<2x128xf32>
    %101 = arith.mulf %92, %73 : vector<2x128xf32>
    %102 = arith.mulf %86, %94 : vector<2x128xf32>
    %103 = arith.addf %101, %102 : vector<2x128xf32>
    %104 = math.tanh %103 : vector<2x128xf32>
    %105 = arith.mulf %100, %104 : vector<2x128xf32>
    %c4 = arith.constant 4 : index
    %c0_38 = arith.constant 0 : index
    %106 = vector.load %arg21[%c4, %c0_38] : memref<16x128xf32, #tpu.memory_space<vmem>>, vector<2x128xf32>
    tpu.vector_store %arg21[%c4, %c0_38], %105 {strides = array<i32>} : memref<16x128xf32, #tpu.memory_space<vmem>>, vector<2x128xf32>,
    %107 = vector.extract_strided_slice %14 {offsets = [6, 0], sizes = [2, 512], strides = [1, 1]} : vector<16x512xf32> to vector<2x512xf32>
    %c0_39 = arith.constant 0 : index
    %c0_40 = arith.constant 0 : index
    %108 = vector.load %arg5[%c0_39, %c0_40] : memref<128x512xf32, #tpu.memory_space<vmem>>, vector<128x512xf32>
    %cst_41 = arith.constant dense<0.000000e+00> : vector<2x512xf32>
    %109 = tpu.matmul %105, %108, %cst_41 {dimension_numbers = #tpu.dot_dimension_numbers<[1], [0], [0], [1], [0, 0, 1, 1], [], []>} : vector<2x128xf32>, vector<128x512xf32>, vector<2x512xf32> -> vector<2x512xf32>
    %110 = arith.addf %107, %109 : vector<2x512xf32>
    %111 = vector.extract_strided_slice %110 {offsets = [0, 0], sizes = [2, 128], strides = [1, 1]} : vector<2x512xf32> to vector<2x128xf32>
    %112 = arith.negf %111 : vector<2x128xf32>
    %113 = math.exp %112 : vector<2x128xf32>
    %cst_42 = arith.constant 1.000000e+00 : f32
    %114 = vector.broadcast %cst_42 : f32 to vector<2x128xf32>
    %115 = arith.addf %114, %113 : vector<2x128xf32>
    %116 = arith.divf %114, %115 : vector<2x128xf32>
    %117 = vector.extract_strided_slice %110 {offsets = [0, 128], sizes = [2, 128], strides = [1, 1]} : vector<2x512xf32> to vector<2x128xf32>
    %118 = arith.negf %117 : vector<2x128xf32>
    %119 = math.exp %118 : vector<2x128xf32>
    %cst_43 = arith.constant 1.000000e+00 : f32
    %120 = vector.broadcast %cst_43 : f32 to vector<2x128xf32>
    %121 = arith.addf %120, %119 : vector<2x128xf32>
    %122 = arith.divf %120, %121 : vector<2x128xf32>
    %123 = vector.extract_strided_slice %110 {offsets = [0, 256], sizes = [2, 128], strides = [1, 1]} : vector<2x512xf32> to vector<2x128xf32>
    %124 = math.tanh %123 : vector<2x128xf32>
    %125 = vector.extract_strided_slice %110 {offsets = [0, 384], sizes = [2, 128], strides = [1, 1]} : vector<2x512xf32> to vector<2x128xf32>
    %126 = arith.negf %125 : vector<2x128xf32>
    %127 = math.exp %126 : vector<2x128xf32>
    %cst_44 = arith.constant 1.000000e+00 : f32
    %128 = vector.broadcast %cst_44 : f32 to vector<2x128xf32>
    %129 = arith.addf %128, %127 : vector<2x128xf32>
    %130 = arith.divf %128, %129 : vector<2x128xf32>
    %131 = arith.mulf %122, %103 : vector<2x128xf32>
    %132 = arith.mulf %116, %124 : vector<2x128xf32>
    %133 = arith.addf %131, %132 : vector<2x128xf32>
    %134 = math.tanh %133 : vector<2x128xf32>
    %135 = arith.mulf %130, %134 : vector<2x128xf32>
    %c6 = arith.constant 6 : index
    %c0_45 = arith.constant 0 : index
    %136 = vector.load %arg21[%c6, %c0_45] : memref<16x128xf32, #tpu.memory_space<vmem>>, vector<2x128xf32>
    tpu.vector_store %arg21[%c6, %c0_45], %135 {strides = array<i32>} : memref<16x128xf32, #tpu.memory_space<vmem>>, vector<2x128xf32>,
    %137 = vector.extract_strided_slice %14 {offsets = [8, 0], sizes = [2, 512], strides = [1, 1]} : vector<16x512xf32> to vector<2x512xf32>
    %c0_46 = arith.constant 0 : index
    %c0_47 = arith.constant 0 : index
    %138 = vector.load %arg5[%c0_46, %c0_47] : memref<128x512xf32, #tpu.memory_space<vmem>>, vector<128x512xf32>
    %cst_48 = arith.constant dense<0.000000e+00> : vector<2x512xf32>
    %139 = tpu.matmul %135, %138, %cst_48 {dimension_numbers = #tpu.dot_dimension_numbers<[1], [0], [0], [1], [0, 0, 1, 1], [], []>} : vector<2x128xf32>, vector<128x512xf32>, vector<2x512xf32> -> vector<2x512xf32>
    %140 = arith.addf %137, %139 : vector<2x512xf32>
    %141 = vector.extract_strided_slice %140 {offsets = [0, 0], sizes = [2, 128], strides = [1, 1]} : vector<2x512xf32> to vector<2x128xf32>
    %142 = arith.negf %141 : vector<2x128xf32>
    %143 = math.exp %142 : vector<2x128xf32>
    %cst_49 = arith.constant 1.000000e+00 : f32
    %144 = vector.broadcast %cst_49 : f32 to vector<2x128xf32>
    %145 = arith.addf %144, %143 : vector<2x128xf32>
    %146 = arith.divf %144, %145 : vector<2x128xf32>
    %147 = vector.extract_strided_slice %140 {offsets = [0, 128], sizes = [2, 128], strides = [1, 1]} : vector<2x512xf32> to vector<2x128xf32>
    %148 = arith.negf %147 : vector<2x128xf32>
    %149 = math.exp %148 : vector<2x128xf32>
    %cst_50 = arith.constant 1.000000e+00 : f32
    %150 = vector.broadcast %cst_50 : f32 to vector<2x128xf32>
    %151 = arith.addf %150, %149 : vector<2x128xf32>
    %152 = arith.divf %150, %151 : vector<2x128xf32>
    %153 = vector.extract_strided_slice %140 {offsets = [0, 256], sizes = [2, 128], strides = [1, 1]} : vector<2x512xf32> to vector<2x128xf32>
    %154 = math.tanh %153 : vector<2x128xf32>
    %155 = vector.extract_strided_slice %140 {offsets = [0, 384], sizes = [2, 128], strides = [1, 1]} : vector<2x512xf32> to vector<2x128xf32>
    %156 = arith.negf %155 : vector<2x128xf32>
    %157 = math.exp %156 : vector<2x128xf32>
    %cst_51 = arith.constant 1.000000e+00 : f32
    %158 = vector.broadcast %cst_51 : f32 to vector<2x128xf32>
    %159 = arith.addf %158, %157 : vector<2x128xf32>
    %160 = arith.divf %158, %159 : vector<2x128xf32>
    %161 = arith.mulf %152, %133 : vector<2x128xf32>
    %162 = arith.mulf %146, %154 : vector<2x128xf32>
    %163 = arith.addf %161, %162 : vector<2x128xf32>
    %164 = math.tanh %163 : vector<2x128xf32>
    %165 = arith.mulf %160, %164 : vector<2x128xf32>
    %c8 = arith.constant 8 : index
    %c0_52 = arith.constant 0 : index
    %166 = vector.load %arg21[%c8, %c0_52] : memref<16x128xf32, #tpu.memory_space<vmem>>, vector<2x128xf32>
    tpu.vector_store %arg21[%c8, %c0_52], %165 {strides = array<i32>} : memref<16x128xf32, #tpu.memory_space<vmem>>, vector<2x128xf32>,
    %167 = vector.extract_strided_slice %14 {offsets = [10, 0], sizes = [2, 512], strides = [1, 1]} : vector<16x512xf32> to vector<2x512xf32>
    %c0_53 = arith.constant 0 : index
    %c0_54 = arith.constant 0 : index
    %168 = vector.load %arg5[%c0_53, %c0_54] : memref<128x512xf32, #tpu.memory_space<vmem>>, vector<128x512xf32>
    %cst_55 = arith.constant dense<0.000000e+00> : vector<2x512xf32>
    %169 = tpu.matmul %165, %168, %cst_55 {dimension_numbers = #tpu.dot_dimension_numbers<[1], [0], [0], [1], [0, 0, 1, 1], [], []>} : vector<2x128xf32>, vector<128x512xf32>, vector<2x512xf32> -> vector<2x512xf32>
    %170 = arith.addf %167, %169 : vector<2x512xf32>
    %171 = vector.extract_strided_slice %170 {offsets = [0, 0], sizes = [2, 128], strides = [1, 1]} : vector<2x512xf32> to vector<2x128xf32>
    %172 = arith.negf %171 : vector<2x128xf32>
    %173 = math.exp %172 : vector<2x128xf32>
    %cst_56 = arith.constant 1.000000e+00 : f32
    %174 = vector.broadcast %cst_56 : f32 to vector<2x128xf32>
    %175 = arith.addf %174, %173 : vector<2x128xf32>
    %176 = arith.divf %174, %175 : vector<2x128xf32>
    %177 = vector.extract_strided_slice %170 {offsets = [0, 128], sizes = [2, 128], strides = [1, 1]} : vector<2x512xf32> to vector<2x128xf32>
    %178 = arith.negf %177 : vector<2x128xf32>
    %179 = math.exp %178 : vector<2x128xf32>
    %cst_57 = arith.constant 1.000000e+00 : f32
    %180 = vector.broadcast %cst_57 : f32 to vector<2x128xf32>
    %181 = arith.addf %180, %179 : vector<2x128xf32>
    %182 = arith.divf %180, %181 : vector<2x128xf32>
    %183 = vector.extract_strided_slice %170 {offsets = [0, 256], sizes = [2, 128], strides = [1, 1]} : vector<2x512xf32> to vector<2x128xf32>
    %184 = math.tanh %183 : vector<2x128xf32>
    %185 = vector.extract_strided_slice %170 {offsets = [0, 384], sizes = [2, 128], strides = [1, 1]} : vector<2x512xf32> to vector<2x128xf32>
    %186 = arith.negf %185 : vector<2x128xf32>
    %187 = math.exp %186 : vector<2x128xf32>
    %cst_58 = arith.constant 1.000000e+00 : f32
    %188 = vector.broadcast %cst_58 : f32 to vector<2x128xf32>
    %189 = arith.addf %188, %187 : vector<2x128xf32>
    %190 = arith.divf %188, %189 : vector<2x128xf32>
    %191 = arith.mulf %182, %163 : vector<2x128xf32>
    %192 = arith.mulf %176, %184 : vector<2x128xf32>
    %193 = arith.addf %191, %192 : vector<2x128xf32>
    %194 = math.tanh %193 : vector<2x128xf32>
    %195 = arith.mulf %190, %194 : vector<2x128xf32>
    %c10 = arith.constant 10 : index
    %c0_59 = arith.constant 0 : index
    %196 = vector.load %arg21[%c10, %c0_59] : memref<16x128xf32, #tpu.memory_space<vmem>>, vector<2x128xf32>
    tpu.vector_store %arg21[%c10, %c0_59], %195 {strides = array<i32>} : memref<16x128xf32, #tpu.memory_space<vmem>>, vector<2x128xf32>,
    %197 = vector.extract_strided_slice %14 {offsets = [12, 0], sizes = [2, 512], strides = [1, 1]} : vector<16x512xf32> to vector<2x512xf32>
    %c0_60 = arith.constant 0 : index
    %c0_61 = arith.constant 0 : index
    %198 = vector.load %arg5[%c0_60, %c0_61] : memref<128x512xf32, #tpu.memory_space<vmem>>, vector<128x512xf32>
    %cst_62 = arith.constant dense<0.000000e+00> : vector<2x512xf32>
    %199 = tpu.matmul %195, %198, %cst_62 {dimension_numbers = #tpu.dot_dimension_numbers<[1], [0], [0], [1], [0, 0, 1, 1], [], []>} : vector<2x128xf32>, vector<128x512xf32>, vector<2x512xf32> -> vector<2x512xf32>
    %200 = arith.addf %197, %199 : vector<2x512xf32>
    %201 = vector.extract_strided_slice %200 {offsets = [0, 0], sizes = [2, 128], strides = [1, 1]} : vector<2x512xf32> to vector<2x128xf32>
    %202 = arith.negf %201 : vector<2x128xf32>
    %203 = math.exp %202 : vector<2x128xf32>
    %cst_63 = arith.constant 1.000000e+00 : f32
    %204 = vector.broadcast %cst_63 : f32 to vector<2x128xf32>
    %205 = arith.addf %204, %203 : vector<2x128xf32>
    %206 = arith.divf %204, %205 : vector<2x128xf32>
    %207 = vector.extract_strided_slice %200 {offsets = [0, 128], sizes = [2, 128], strides = [1, 1]} : vector<2x512xf32> to vector<2x128xf32>
    %208 = arith.negf %207 : vector<2x128xf32>
    %209 = math.exp %208 : vector<2x128xf32>
    %cst_64 = arith.constant 1.000000e+00 : f32
    %210 = vector.broadcast %cst_64 : f32 to vector<2x128xf32>
    %211 = arith.addf %210, %209 : vector<2x128xf32>
    %212 = arith.divf %210, %211 : vector<2x128xf32>
    %213 = vector.extract_strided_slice %200 {offsets = [0, 256], sizes = [2, 128], strides = [1, 1]} : vector<2x512xf32> to vector<2x128xf32>
    %214 = math.tanh %213 : vector<2x128xf32>
    %215 = vector.extract_strided_slice %200 {offsets = [0, 384], sizes = [2, 128], strides = [1, 1]} : vector<2x512xf32> to vector<2x128xf32>
    %216 = arith.negf %215 : vector<2x128xf32>
    %217 = math.exp %216 : vector<2x128xf32>
    %cst_65 = arith.constant 1.000000e+00 : f32
    %218 = vector.broadcast %cst_65 : f32 to vector<2x128xf32>
    %219 = arith.addf %218, %217 : vector<2x128xf32>
    %220 = arith.divf %218, %219 : vector<2x128xf32>
    %221 = arith.mulf %212, %193 : vector<2x128xf32>
    %222 = arith.mulf %206, %214 : vector<2x128xf32>
    %223 = arith.addf %221, %222 : vector<2x128xf32>
    %224 = math.tanh %223 : vector<2x128xf32>
    %225 = arith.mulf %220, %224 : vector<2x128xf32>
    %c12 = arith.constant 12 : index
    %c0_66 = arith.constant 0 : index
    %226 = vector.load %arg21[%c12, %c0_66] : memref<16x128xf32, #tpu.memory_space<vmem>>, vector<2x128xf32>
    tpu.vector_store %arg21[%c12, %c0_66], %225 {strides = array<i32>} : memref<16x128xf32, #tpu.memory_space<vmem>>, vector<2x128xf32>,
    %227 = vector.extract_strided_slice %14 {offsets = [14, 0], sizes = [2, 512], strides = [1, 1]} : vector<16x512xf32> to vector<2x512xf32>
    %c0_67 = arith.constant 0 : index
    %c0_68 = arith.constant 0 : index
    %228 = vector.load %arg5[%c0_67, %c0_68] : memref<128x512xf32, #tpu.memory_space<vmem>>, vector<128x512xf32>
    %cst_69 = arith.constant dense<0.000000e+00> : vector<2x512xf32>
    %229 = tpu.matmul %225, %228, %cst_69 {dimension_numbers = #tpu.dot_dimension_numbers<[1], [0], [0], [1], [0, 0, 1, 1], [], []>} : vector<2x128xf32>, vector<128x512xf32>, vector<2x512xf32> -> vector<2x512xf32>
    %230 = arith.addf %227, %229 : vector<2x512xf32>
    %231 = vector.extract_strided_slice %230 {offsets = [0, 0], sizes = [2, 128], strides = [1, 1]} : vector<2x512xf32> to vector<2x128xf32>
    %232 = arith.negf %231 : vector<2x128xf32>
    %233 = math.exp %232 : vector<2x128xf32>
    %cst_70 = arith.constant 1.000000e+00 : f32
    %234 = vector.broadcast %cst_70 : f32 to vector<2x128xf32>
    %235 = arith.addf %234, %233 : vector<2x128xf32>
    %236 = arith.divf %234, %235 : vector<2x128xf32>
    %237 = vector.extract_strided_slice %230 {offsets = [0, 128], sizes = [2, 128], strides = [1, 1]} : vector<2x512xf32> to vector<2x128xf32>
    %238 = arith.negf %237 : vector<2x128xf32>
    %239 = math.exp %238 : vector<2x128xf32>
    %cst_71 = arith.constant 1.000000e+00 : f32
    %240 = vector.broadcast %cst_71 : f32 to vector<2x128xf32>
    %241 = arith.addf %240, %239 : vector<2x128xf32>
    %242 = arith.divf %240, %241 : vector<2x128xf32>
    %243 = vector.extract_strided_slice %230 {offsets = [0, 256], sizes = [2, 128], strides = [1, 1]} : vector<2x512xf32> to vector<2x128xf32>
    %244 = math.tanh %243 : vector<2x128xf32>
    %245 = vector.extract_strided_slice %230 {offsets = [0, 384], sizes = [2, 128], strides = [1, 1]} : vector<2x512xf32> to vector<2x128xf32>
    %246 = arith.negf %245 : vector<2x128xf32>
    %247 = math.exp %246 : vector<2x128xf32>
    %cst_72 = arith.constant 1.000000e+00 : f32
    %248 = vector.broadcast %cst_72 : f32 to vector<2x128xf32>
    %249 = arith.addf %248, %247 : vector<2x128xf32>
    %250 = arith.divf %248, %249 : vector<2x128xf32>
    %251 = arith.mulf %242, %223 : vector<2x128xf32>
    %252 = arith.mulf %236, %244 : vector<2x128xf32>
    %253 = arith.addf %251, %252 : vector<2x128xf32>
    %254 = math.tanh %253 : vector<2x128xf32>
    %255 = arith.mulf %250, %254 : vector<2x128xf32>
    %c14 = arith.constant 14 : index
    %c0_73 = arith.constant 0 : index
    %256 = vector.load %arg21[%c14, %c0_73] : memref<16x128xf32, #tpu.memory_space<vmem>>, vector<2x128xf32>
    tpu.vector_store %arg21[%c14, %c0_73], %255 {strides = array<i32>} : memref<16x128xf32, #tpu.memory_space<vmem>>, vector<2x128xf32>,
    %c0_74 = arith.constant 0 : index
    %c0_75 = arith.constant 0 : index
    %257 = vector.load %arg21[%c0_74, %c0_75] : memref<16x128xf32, #tpu.memory_space<vmem>>, vector<16x128xf32>
    %c0_76 = arith.constant 0 : index
    %c0_77 = arith.constant 0 : index
    %258 = vector.load %arg7[%c0_76, %c0_77] : memref<128x512xf32, #tpu.memory_space<vmem>>, vector<128x512xf32>
    %cst_78 = arith.constant dense<0.000000e+00> : vector<16x512xf32>
    %259 = tpu.matmul %257, %258, %cst_78 {dimension_numbers = #tpu.dot_dimension_numbers<[1], [0], [0], [1], [0, 0, 1, 1], [], []>} : vector<16x128xf32>, vector<128x512xf32>, vector<16x512xf32> -> vector<16x512xf32>
    %c0_79 = arith.constant 0 : index
    %c0_80 = arith.constant 0 : index
    %260 = vector.load %arg9[%c0_79, %c0_80] : memref<1x512xf32, #tpu.memory_space<vmem>>, vector<1x512xf32>
    %261 = vector.broadcast %260 : vector<1x512xf32> to vector<16x512xf32>
    %262 = arith.addf %259, %261 : vector<16x512xf32>
    %cst_81 = arith.constant 0.000000e+00 : f32
    %263 = vector.broadcast %cst_81 : f32 to vector<2x128xf32>
    %cst_82 = arith.constant 0.000000e+00 : f32
    %264 = vector.broadcast %cst_82 : f32 to vector<2x128xf32>
    %265 = vector.extract_strided_slice %262 {offsets = [0, 0], sizes = [2, 512], strides = [1, 1]} : vector<16x512xf32> to vector<2x512xf32>
    %c0_83 = arith.constant 0 : index
    %c0_84 = arith.constant 0 : index
    %266 = vector.load %arg8[%c0_83, %c0_84] : memref<128x512xf32, #tpu.memory_space<vmem>>, vector<128x512xf32>
    %cst_85 = arith.constant dense<0.000000e+00> : vector<2x512xf32>
    %267 = tpu.matmul %263, %266, %cst_85 {dimension_numbers = #tpu.dot_dimension_numbers<[1], [0], [0], [1], [0, 0, 1, 1], [], []>} : vector<2x128xf32>, vector<128x512xf32>, vector<2x512xf32> -> vector<2x512xf32>
    %268 = arith.addf %265, %267 : vector<2x512xf32>
    %269 = vector.extract_strided_slice %268 {offsets = [0, 0], sizes = [2, 128], strides = [1, 1]} : vector<2x512xf32> to vector<2x128xf32>
    %270 = arith.negf %269 : vector<2x128xf32>
    %271 = math.exp %270 : vector<2x128xf32>
    %cst_86 = arith.constant 1.000000e+00 : f32
    %272 = vector.broadcast %cst_86 : f32 to vector<2x128xf32>
    %273 = arith.addf %272, %271 : vector<2x128xf32>
    %274 = arith.divf %272, %273 : vector<2x128xf32>
    %275 = vector.extract_strided_slice %268 {offsets = [0, 128], sizes = [2, 128], strides = [1, 1]} : vector<2x512xf32> to vector<2x128xf32>
    %276 = arith.negf %275 : vector<2x128xf32>
    %277 = math.exp %276 : vector<2x128xf32>
    %cst_87 = arith.constant 1.000000e+00 : f32
    %278 = vector.broadcast %cst_87 : f32 to vector<2x128xf32>
    %279 = arith.addf %278, %277 : vector<2x128xf32>
    %280 = arith.divf %278, %279 : vector<2x128xf32>
    %281 = vector.extract_strided_slice %268 {offsets = [0, 256], sizes = [2, 128], strides = [1, 1]} : vector<2x512xf32> to vector<2x128xf32>
    %282 = math.tanh %281 : vector<2x128xf32>
    %283 = vector.extract_strided_slice %268 {offsets = [0, 384], sizes = [2, 128], strides = [1, 1]} : vector<2x512xf32> to vector<2x128xf32>
    %284 = arith.negf %283 : vector<2x128xf32>
    %285 = math.exp %284 : vector<2x128xf32>
    %cst_88 = arith.constant 1.000000e+00 : f32
    %286 = vector.broadcast %cst_88 : f32 to vector<2x128xf32>
    %287 = arith.addf %286, %285 : vector<2x128xf32>
    %288 = arith.divf %286, %287 : vector<2x128xf32>
    %289 = arith.mulf %280, %264 : vector<2x128xf32>
    %290 = arith.mulf %274, %282 : vector<2x128xf32>
    %291 = arith.addf %289, %290 : vector<2x128xf32>
    %292 = math.tanh %291 : vector<2x128xf32>
    %293 = arith.mulf %288, %292 : vector<2x128xf32>
    %294 = vector.extract_strided_slice %293 {offsets = [0, 0], sizes = [1, 128], strides = [1, 1]} : vector<2x128xf32> to vector<1x128xf32>
    %c0_89 = arith.constant 0 : index
    %c0_90 = arith.constant 0 : index
    %295 = vector.load %arg19[%c0_89, %c0_90] : memref<16x128xf32, #tpu.memory_space<vmem>>, vector<1x128xf32>
    tpu.vector_store %arg19[%c0_89, %c0_90], %294 {strides = array<i32>} : memref<16x128xf32, #tpu.memory_space<vmem>>, vector<1x128xf32>,
    %296 = vector.extract_strided_slice %293 {offsets = [1, 0], sizes = [1, 128], strides = [1, 1]} : vector<2x128xf32> to vector<1x128xf32>
    %c8_91 = arith.constant 8 : index
    %c0_92 = arith.constant 0 : index
    %297 = vector.load %arg19[%c8_91, %c0_92] : memref<16x128xf32, #tpu.memory_space<vmem>>, vector<1x128xf32>
    tpu.vector_store %arg19[%c8_91, %c0_92], %296 {strides = array<i32>} : memref<16x128xf32, #tpu.memory_space<vmem>>, vector<1x128xf32>,
    %298 = vector.extract_strided_slice %262 {offsets = [2, 0], sizes = [2, 512], strides = [1, 1]} : vector<16x512xf32> to vector<2x512xf32>
    %c0_93 = arith.constant 0 : index
    %c0_94 = arith.constant 0 : index
    %299 = vector.load %arg8[%c0_93, %c0_94] : memref<128x512xf32, #tpu.memory_space<vmem>>, vector<128x512xf32>
    %cst_95 = arith.constant dense<0.000000e+00> : vector<2x512xf32>
    %300 = tpu.matmul %293, %299, %cst_95 {dimension_numbers = #tpu.dot_dimension_numbers<[1], [0], [0], [1], [0, 0, 1, 1], [], []>} : vector<2x128xf32>, vector<128x512xf32>, vector<2x512xf32> -> vector<2x512xf32>
    %301 = arith.addf %298, %300 : vector<2x512xf32>
    %302 = vector.extract_strided_slice %301 {offsets = [0, 0], sizes = [2, 128], strides = [1, 1]} : vector<2x512xf32> to vector<2x128xf32>
    %303 = arith.negf %302 : vector<2x128xf32>
    %304 = math.exp %303 : vector<2x128xf32>
    %cst_96 = arith.constant 1.000000e+00 : f32
    %305 = vector.broadcast %cst_96 : f32 to vector<2x128xf32>
    %306 = arith.addf %305, %304 : vector<2x128xf32>
    %307 = arith.divf %305, %306 : vector<2x128xf32>
    %308 = vector.extract_strided_slice %301 {offsets = [0, 128], sizes = [2, 128], strides = [1, 1]} : vector<2x512xf32> to vector<2x128xf32>
    %309 = arith.negf %308 : vector<2x128xf32>
    %310 = math.exp %309 : vector<2x128xf32>
    %cst_97 = arith.constant 1.000000e+00 : f32
    %311 = vector.broadcast %cst_97 : f32 to vector<2x128xf32>
    %312 = arith.addf %311, %310 : vector<2x128xf32>
    %313 = arith.divf %311, %312 : vector<2x128xf32>
    %314 = vector.extract_strided_slice %301 {offsets = [0, 256], sizes = [2, 128], strides = [1, 1]} : vector<2x512xf32> to vector<2x128xf32>
    %315 = math.tanh %314 : vector<2x128xf32>
    %316 = vector.extract_strided_slice %301 {offsets = [0, 384], sizes = [2, 128], strides = [1, 1]} : vector<2x512xf32> to vector<2x128xf32>
    %317 = arith.negf %316 : vector<2x128xf32>
    %318 = math.exp %317 : vector<2x128xf32>
    %cst_98 = arith.constant 1.000000e+00 : f32
    %319 = vector.broadcast %cst_98 : f32 to vector<2x128xf32>
    %320 = arith.addf %319, %318 : vector<2x128xf32>
    %321 = arith.divf %319, %320 : vector<2x128xf32>
    %322 = arith.mulf %313, %291 : vector<2x128xf32>
    %323 = arith.mulf %307, %315 : vector<2x128xf32>
    %324 = arith.addf %322, %323 : vector<2x128xf32>
    %325 = math.tanh %324 : vector<2x128xf32>
    %326 = arith.mulf %321, %325 : vector<2x128xf32>
    %327 = vector.extract_strided_slice %326 {offsets = [0, 0], sizes = [1, 128], strides = [1, 1]} : vector<2x128xf32> to vector<1x128xf32>
    %c1 = arith.constant 1 : index
    %c0_99 = arith.constant 0 : index
    %328 = vector.load %arg19[%c1, %c0_99] : memref<16x128xf32, #tpu.memory_space<vmem>>, vector<1x128xf32>
    tpu.vector_store %arg19[%c1, %c0_99], %327 {strides = array<i32>} : memref<16x128xf32, #tpu.memory_space<vmem>>, vector<1x128xf32>,
    %329 = vector.extract_strided_slice %326 {offsets = [1, 0], sizes = [1, 128], strides = [1, 1]} : vector<2x128xf32> to vector<1x128xf32>
    %c9 = arith.constant 9 : index
    %c0_100 = arith.constant 0 : index
    %330 = vector.load %arg19[%c9, %c0_100] : memref<16x128xf32, #tpu.memory_space<vmem>>, vector<1x128xf32>
    tpu.vector_store %arg19[%c9, %c0_100], %329 {strides = array<i32>} : memref<16x128xf32, #tpu.memory_space<vmem>>, vector<1x128xf32>,
    %331 = vector.extract_strided_slice %262 {offsets = [4, 0], sizes = [2, 512], strides = [1, 1]} : vector<16x512xf32> to vector<2x512xf32>
    %c0_101 = arith.constant 0 : index
    %c0_102 = arith.constant 0 : index
    %332 = vector.load %arg8[%c0_101, %c0_102] : memref<128x512xf32, #tpu.memory_space<vmem>>, vector<128x512xf32>
    %cst_103 = arith.constant dense<0.000000e+00> : vector<2x512xf32>
    %333 = tpu.matmul %326, %332, %cst_103 {dimension_numbers = #tpu.dot_dimension_numbers<[1], [0], [0], [1], [0, 0, 1, 1], [], []>} : vector<2x128xf32>, vector<128x512xf32>, vector<2x512xf32> -> vector<2x512xf32>
    %334 = arith.addf %331, %333 : vector<2x512xf32>
    %335 = vector.extract_strided_slice %334 {offsets = [0, 0], sizes = [2, 128], strides = [1, 1]} : vector<2x512xf32> to vector<2x128xf32>
    %336 = arith.negf %335 : vector<2x128xf32>
    %337 = math.exp %336 : vector<2x128xf32>
    %cst_104 = arith.constant 1.000000e+00 : f32
    %338 = vector.broadcast %cst_104 : f32 to vector<2x128xf32>
    %339 = arith.addf %338, %337 : vector<2x128xf32>
    %340 = arith.divf %338, %339 : vector<2x128xf32>
    %341 = vector.extract_strided_slice %334 {offsets = [0, 128], sizes = [2, 128], strides = [1, 1]} : vector<2x512xf32> to vector<2x128xf32>
    %342 = arith.negf %341 : vector<2x128xf32>
    %343 = math.exp %342 : vector<2x128xf32>
    %cst_105 = arith.constant 1.000000e+00 : f32
    %344 = vector.broadcast %cst_105 : f32 to vector<2x128xf32>
    %345 = arith.addf %344, %343 : vector<2x128xf32>
    %346 = arith.divf %344, %345 : vector<2x128xf32>
    %347 = vector.extract_strided_slice %334 {offsets = [0, 256], sizes = [2, 128], strides = [1, 1]} : vector<2x512xf32> to vector<2x128xf32>
    %348 = math.tanh %347 : vector<2x128xf32>
    %349 = vector.extract_strided_slice %334 {offsets = [0, 384], sizes = [2, 128], strides = [1, 1]} : vector<2x512xf32> to vector<2x128xf32>
    %350 = arith.negf %349 : vector<2x128xf32>
    %351 = math.exp %350 : vector<2x128xf32>
    %cst_106 = arith.constant 1.000000e+00 : f32
    %352 = vector.broadcast %cst_106 : f32 to vector<2x128xf32>
    %353 = arith.addf %352, %351 : vector<2x128xf32>
    %354 = arith.divf %352, %353 : vector<2x128xf32>
    %355 = arith.mulf %346, %324 : vector<2x128xf32>
    %356 = arith.mulf %340, %348 : vector<2x128xf32>
    %357 = arith.addf %355, %356 : vector<2x128xf32>
    %358 = math.tanh %357 : vector<2x128xf32>
    %359 = arith.mulf %354, %358 : vector<2x128xf32>
    %360 = vector.extract_strided_slice %359 {offsets = [0, 0], sizes = [1, 128], strides = [1, 1]} : vector<2x128xf32> to vector<1x128xf32>
    %c2_107 = arith.constant 2 : index
    %c0_108 = arith.constant 0 : index
    %361 = vector.load %arg19[%c2_107, %c0_108] : memref<16x128xf32, #tpu.memory_space<vmem>>, vector<1x128xf32>
    tpu.vector_store %arg19[%c2_107, %c0_108], %360 {strides = array<i32>} : memref<16x128xf32, #tpu.memory_space<vmem>>, vector<1x128xf32>,
    %362 = vector.extract_strided_slice %359 {offsets = [1, 0], sizes = [1, 128], strides = [1, 1]} : vector<2x128xf32> to vector<1x128xf32>
    %c10_109 = arith.constant 10 : index
    %c0_110 = arith.constant 0 : index
    %363 = vector.load %arg19[%c10_109, %c0_110] : memref<16x128xf32, #tpu.memory_space<vmem>>, vector<1x128xf32>
    tpu.vector_store %arg19[%c10_109, %c0_110], %362 {strides = array<i32>} : memref<16x128xf32, #tpu.memory_space<vmem>>, vector<1x128xf32>,
    %364 = vector.extract_strided_slice %262 {offsets = [6, 0], sizes = [2, 512], strides = [1, 1]} : vector<16x512xf32> to vector<2x512xf32>
    %c0_111 = arith.constant 0 : index
    %c0_112 = arith.constant 0 : index
    %365 = vector.load %arg8[%c0_111, %c0_112] : memref<128x512xf32, #tpu.memory_space<vmem>>, vector<128x512xf32>
    %cst_113 = arith.constant dense<0.000000e+00> : vector<2x512xf32>
    %366 = tpu.matmul %359, %365, %cst_113 {dimension_numbers = #tpu.dot_dimension_numbers<[1], [0], [0], [1], [0, 0, 1, 1], [], []>} : vector<2x128xf32>, vector<128x512xf32>, vector<2x512xf32> -> vector<2x512xf32>
    %367 = arith.addf %364, %366 : vector<2x512xf32>
    %368 = vector.extract_strided_slice %367 {offsets = [0, 0], sizes = [2, 128], strides = [1, 1]} : vector<2x512xf32> to vector<2x128xf32>
    %369 = arith.negf %368 : vector<2x128xf32>
    %370 = math.exp %369 : vector<2x128xf32>
    %cst_114 = arith.constant 1.000000e+00 : f32
    %371 = vector.broadcast %cst_114 : f32 to vector<2x128xf32>
    %372 = arith.addf %371, %370 : vector<2x128xf32>
    %373 = arith.divf %371, %372 : vector<2x128xf32>
    %374 = vector.extract_strided_slice %367 {offsets = [0, 128], sizes = [2, 128], strides = [1, 1]} : vector<2x512xf32> to vector<2x128xf32>
    %375 = arith.negf %374 : vector<2x128xf32>
    %376 = math.exp %375 : vector<2x128xf32>
    %cst_115 = arith.constant 1.000000e+00 : f32
    %377 = vector.broadcast %cst_115 : f32 to vector<2x128xf32>
    %378 = arith.addf %377, %376 : vector<2x128xf32>
    %379 = arith.divf %377, %378 : vector<2x128xf32>
    %380 = vector.extract_strided_slice %367 {offsets = [0, 256], sizes = [2, 128], strides = [1, 1]} : vector<2x512xf32> to vector<2x128xf32>
    %381 = math.tanh %380 : vector<2x128xf32>
    %382 = vector.extract_strided_slice %367 {offsets = [0, 384], sizes = [2, 128], strides = [1, 1]} : vector<2x512xf32> to vector<2x128xf32>
    %383 = arith.negf %382 : vector<2x128xf32>
    %384 = math.exp %383 : vector<2x128xf32>
    %cst_116 = arith.constant 1.000000e+00 : f32
    %385 = vector.broadcast %cst_116 : f32 to vector<2x128xf32>
    %386 = arith.addf %385, %384 : vector<2x128xf32>
    %387 = arith.divf %385, %386 : vector<2x128xf32>
    %388 = arith.mulf %379, %357 : vector<2x128xf32>
    %389 = arith.mulf %373, %381 : vector<2x128xf32>
    %390 = arith.addf %388, %389 : vector<2x128xf32>
    %391 = math.tanh %390 : vector<2x128xf32>
    %392 = arith.mulf %387, %391 : vector<2x128xf32>
    %393 = vector.extract_strided_slice %392 {offsets = [0, 0], sizes = [1, 128], strides = [1, 1]} : vector<2x128xf32> to vector<1x128xf32>
    %c3 = arith.constant 3 : index
    %c0_117 = arith.constant 0 : index
    %394 = vector.load %arg19[%c3, %c0_117] : memref<16x128xf32, #tpu.memory_space<vmem>>, vector<1x128xf32>
    tpu.vector_store %arg19[%c3, %c0_117], %393 {strides = array<i32>} : memref<16x128xf32, #tpu.memory_space<vmem>>, vector<1x128xf32>,
    %395 = vector.extract_strided_slice %392 {offsets = [1, 0], sizes = [1, 128], strides = [1, 1]} : vector<2x128xf32> to vector<1x128xf32>
    %c11 = arith.constant 11 : index
    %c0_118 = arith.constant 0 : index
    %396 = vector.load %arg19[%c11, %c0_118] : memref<16x128xf32, #tpu.memory_space<vmem>>, vector<1x128xf32>
    tpu.vector_store %arg19[%c11, %c0_118], %395 {strides = array<i32>} : memref<16x128xf32, #tpu.memory_space<vmem>>, vector<1x128xf32>,
    %397 = vector.extract_strided_slice %262 {offsets = [8, 0], sizes = [2, 512], strides = [1, 1]} : vector<16x512xf32> to vector<2x512xf32>
    %c0_119 = arith.constant 0 : index
    %c0_120 = arith.constant 0 : index
    %398 = vector.load %arg8[%c0_119, %c0_120] : memref<128x512xf32, #tpu.memory_space<vmem>>, vector<128x512xf32>
    %cst_121 = arith.constant dense<0.000000e+00> : vector<2x512xf32>
    %399 = tpu.matmul %392, %398, %cst_121 {dimension_numbers = #tpu.dot_dimension_numbers<[1], [0], [0], [1], [0, 0, 1, 1], [], []>} : vector<2x128xf32>, vector<128x512xf32>, vector<2x512xf32> -> vector<2x512xf32>
    %400 = arith.addf %397, %399 : vector<2x512xf32>
    %401 = vector.extract_strided_slice %400 {offsets = [0, 0], sizes = [2, 128], strides = [1, 1]} : vector<2x512xf32> to vector<2x128xf32>
    %402 = arith.negf %401 : vector<2x128xf32>
    %403 = math.exp %402 : vector<2x128xf32>
    %cst_122 = arith.constant 1.000000e+00 : f32
    %404 = vector.broadcast %cst_122 : f32 to vector<2x128xf32>
    %405 = arith.addf %404, %403 : vector<2x128xf32>
    %406 = arith.divf %404, %405 : vector<2x128xf32>
    %407 = vector.extract_strided_slice %400 {offsets = [0, 128], sizes = [2, 128], strides = [1, 1]} : vector<2x512xf32> to vector<2x128xf32>
    %408 = arith.negf %407 : vector<2x128xf32>
    %409 = math.exp %408 : vector<2x128xf32>
    %cst_123 = arith.constant 1.000000e+00 : f32
    %410 = vector.broadcast %cst_123 : f32 to vector<2x128xf32>
    %411 = arith.addf %410, %409 : vector<2x128xf32>
    %412 = arith.divf %410, %411 : vector<2x128xf32>
    %413 = vector.extract_strided_slice %400 {offsets = [0, 256], sizes = [2, 128], strides = [1, 1]} : vector<2x512xf32> to vector<2x128xf32>
    %414 = math.tanh %413 : vector<2x128xf32>
    %415 = vector.extract_strided_slice %400 {offsets = [0, 384], sizes = [2, 128], strides = [1, 1]} : vector<2x512xf32> to vector<2x128xf32>
    %416 = arith.negf %415 : vector<2x128xf32>
    %417 = math.exp %416 : vector<2x128xf32>
    %cst_124 = arith.constant 1.000000e+00 : f32
    %418 = vector.broadcast %cst_124 : f32 to vector<2x128xf32>
    %419 = arith.addf %418, %417 : vector<2x128xf32>
    %420 = arith.divf %418, %419 : vector<2x128xf32>
    %421 = arith.mulf %412, %390 : vector<2x128xf32>
    %422 = arith.mulf %406, %414 : vector<2x128xf32>
    %423 = arith.addf %421, %422 : vector<2x128xf32>
    %424 = math.tanh %423 : vector<2x128xf32>
    %425 = arith.mulf %420, %424 : vector<2x128xf32>
    %426 = vector.extract_strided_slice %425 {offsets = [0, 0], sizes = [1, 128], strides = [1, 1]} : vector<2x128xf32> to vector<1x128xf32>
    %c4_125 = arith.constant 4 : index
    %c0_126 = arith.constant 0 : index
    %427 = vector.load %arg19[%c4_125, %c0_126] : memref<16x128xf32, #tpu.memory_space<vmem>>, vector<1x128xf32>
    tpu.vector_store %arg19[%c4_125, %c0_126], %426 {strides = array<i32>} : memref<16x128xf32, #tpu.memory_space<vmem>>, vector<1x128xf32>,
    %428 = vector.extract_strided_slice %425 {offsets = [1, 0], sizes = [1, 128], strides = [1, 1]} : vector<2x128xf32> to vector<1x128xf32>
    %c12_127 = arith.constant 12 : index
    %c0_128 = arith.constant 0 : index
    %429 = vector.load %arg19[%c12_127, %c0_128] : memref<16x128xf32, #tpu.memory_space<vmem>>, vector<1x128xf32>
    tpu.vector_store %arg19[%c12_127, %c0_128], %428 {strides = array<i32>} : memref<16x128xf32, #tpu.memory_space<vmem>>, vector<1x128xf32>,
    %430 = vector.extract_strided_slice %262 {offsets = [10, 0], sizes = [2, 512], strides = [1, 1]} : vector<16x512xf32> to vector<2x512xf32>
    %c0_129 = arith.constant 0 : index
    %c0_130 = arith.constant 0 : index
    %431 = vector.load %arg8[%c0_129, %c0_130] : memref<128x512xf32, #tpu.memory_space<vmem>>, vector<128x512xf32>
    %cst_131 = arith.constant dense<0.000000e+00> : vector<2x512xf32>
    %432 = tpu.matmul %425, %431, %cst_131 {dimension_numbers = #tpu.dot_dimension_numbers<[1], [0], [0], [1], [0, 0, 1, 1], [], []>} : vector<2x128xf32>, vector<128x512xf32>, vector<2x512xf32> -> vector<2x512xf32>
    %433 = arith.addf %430, %432 : vector<2x512xf32>
    %434 = vector.extract_strided_slice %433 {offsets = [0, 0], sizes = [2, 128], strides = [1, 1]} : vector<2x512xf32> to vector<2x128xf32>
    %435 = arith.negf %434 : vector<2x128xf32>
    %436 = math.exp %435 : vector<2x128xf32>
    %cst_132 = arith.constant 1.000000e+00 : f32
    %437 = vector.broadcast %cst_132 : f32 to vector<2x128xf32>
    %438 = arith.addf %437, %436 : vector<2x128xf32>
    %439 = arith.divf %437, %438 : vector<2x128xf32>
    %440 = vector.extract_strided_slice %433 {offsets = [0, 128], sizes = [2, 128], strides = [1, 1]} : vector<2x512xf32> to vector<2x128xf32>
    %441 = arith.negf %440 : vector<2x128xf32>
    %442 = math.exp %441 : vector<2x128xf32>
    %cst_133 = arith.constant 1.000000e+00 : f32
    %443 = vector.broadcast %cst_133 : f32 to vector<2x128xf32>
    %444 = arith.addf %443, %442 : vector<2x128xf32>
    %445 = arith.divf %443, %444 : vector<2x128xf32>
    %446 = vector.extract_strided_slice %433 {offsets = [0, 256], sizes = [2, 128], strides = [1, 1]} : vector<2x512xf32> to vector<2x128xf32>
    %447 = math.tanh %446 : vector<2x128xf32>
    %448 = vector.extract_strided_slice %433 {offsets = [0, 384], sizes = [2, 128], strides = [1, 1]} : vector<2x512xf32> to vector<2x128xf32>
    %449 = arith.negf %448 : vector<2x128xf32>
    %450 = math.exp %449 : vector<2x128xf32>
    %cst_134 = arith.constant 1.000000e+00 : f32
    %451 = vector.broadcast %cst_134 : f32 to vector<2x128xf32>
    %452 = arith.addf %451, %450 : vector<2x128xf32>
    %453 = arith.divf %451, %452 : vector<2x128xf32>
    %454 = arith.mulf %445, %423 : vector<2x128xf32>
    %455 = arith.mulf %439, %447 : vector<2x128xf32>
    %456 = arith.addf %454, %455 : vector<2x128xf32>
    %457 = math.tanh %456 : vector<2x128xf32>
    %458 = arith.mulf %453, %457 : vector<2x128xf32>
    %459 = vector.extract_strided_slice %458 {offsets = [0, 0], sizes = [1, 128], strides = [1, 1]} : vector<2x128xf32> to vector<1x128xf32>
    %c5 = arith.constant 5 : index
    %c0_135 = arith.constant 0 : index
    %460 = vector.load %arg19[%c5, %c0_135] : memref<16x128xf32, #tpu.memory_space<vmem>>, vector<1x128xf32>
    tpu.vector_store %arg19[%c5, %c0_135], %459 {strides = array<i32>} : memref<16x128xf32, #tpu.memory_space<vmem>>, vector<1x128xf32>,
    %461 = vector.extract_strided_slice %458 {offsets = [1, 0], sizes = [1, 128], strides = [1, 1]} : vector<2x128xf32> to vector<1x128xf32>
    %c13 = arith.constant 13 : index
    %c0_136 = arith.constant 0 : index
    %462 = vector.load %arg19[%c13, %c0_136] : memref<16x128xf32, #tpu.memory_space<vmem>>, vector<1x128xf32>
    tpu.vector_store %arg19[%c13, %c0_136], %461 {strides = array<i32>} : memref<16x128xf32, #tpu.memory_space<vmem>>, vector<1x128xf32>,
    %463 = vector.extract_strided_slice %262 {offsets = [12, 0], sizes = [2, 512], strides = [1, 1]} : vector<16x512xf32> to vector<2x512xf32>
    %c0_137 = arith.constant 0 : index
    %c0_138 = arith.constant 0 : index
    %464 = vector.load %arg8[%c0_137, %c0_138] : memref<128x512xf32, #tpu.memory_space<vmem>>, vector<128x512xf32>
    %cst_139 = arith.constant dense<0.000000e+00> : vector<2x512xf32>
    %465 = tpu.matmul %458, %464, %cst_139 {dimension_numbers = #tpu.dot_dimension_numbers<[1], [0], [0], [1], [0, 0, 1, 1], [], []>} : vector<2x128xf32>, vector<128x512xf32>, vector<2x512xf32> -> vector<2x512xf32>
    %466 = arith.addf %463, %465 : vector<2x512xf32>
    %467 = vector.extract_strided_slice %466 {offsets = [0, 0], sizes = [2, 128], strides = [1, 1]} : vector<2x512xf32> to vector<2x128xf32>
    %468 = arith.negf %467 : vector<2x128xf32>
    %469 = math.exp %468 : vector<2x128xf32>
    %cst_140 = arith.constant 1.000000e+00 : f32
    %470 = vector.broadcast %cst_140 : f32 to vector<2x128xf32>
    %471 = arith.addf %470, %469 : vector<2x128xf32>
    %472 = arith.divf %470, %471 : vector<2x128xf32>
    %473 = vector.extract_strided_slice %466 {offsets = [0, 128], sizes = [2, 128], strides = [1, 1]} : vector<2x512xf32> to vector<2x128xf32>
    %474 = arith.negf %473 : vector<2x128xf32>
    %475 = math.exp %474 : vector<2x128xf32>
    %cst_141 = arith.constant 1.000000e+00 : f32
    %476 = vector.broadcast %cst_141 : f32 to vector<2x128xf32>
    %477 = arith.addf %476, %475 : vector<2x128xf32>
    %478 = arith.divf %476, %477 : vector<2x128xf32>
    %479 = vector.extract_strided_slice %466 {offsets = [0, 256], sizes = [2, 128], strides = [1, 1]} : vector<2x512xf32> to vector<2x128xf32>
    %480 = math.tanh %479 : vector<2x128xf32>
    %481 = vector.extract_strided_slice %466 {offsets = [0, 384], sizes = [2, 128], strides = [1, 1]} : vector<2x512xf32> to vector<2x128xf32>
    %482 = arith.negf %481 : vector<2x128xf32>
    %483 = math.exp %482 : vector<2x128xf32>
    %cst_142 = arith.constant 1.000000e+00 : f32
    %484 = vector.broadcast %cst_142 : f32 to vector<2x128xf32>
    %485 = arith.addf %484, %483 : vector<2x128xf32>
    %486 = arith.divf %484, %485 : vector<2x128xf32>
    %487 = arith.mulf %478, %456 : vector<2x128xf32>
    %488 = arith.mulf %472, %480 : vector<2x128xf32>
    %489 = arith.addf %487, %488 : vector<2x128xf32>
    %490 = math.tanh %489 : vector<2x128xf32>
    %491 = arith.mulf %486, %490 : vector<2x128xf32>
    %492 = vector.extract_strided_slice %491 {offsets = [0, 0], sizes = [1, 128], strides = [1, 1]} : vector<2x128xf32> to vector<1x128xf32>
    %c6_143 = arith.constant 6 : index
    %c0_144 = arith.constant 0 : index
    %493 = vector.load %arg19[%c6_143, %c0_144] : memref<16x128xf32, #tpu.memory_space<vmem>>, vector<1x128xf32>
    tpu.vector_store %arg19[%c6_143, %c0_144], %492 {strides = array<i32>} : memref<16x128xf32, #tpu.memory_space<vmem>>, vector<1x128xf32>,
    %494 = vector.extract_strided_slice %491 {offsets = [1, 0], sizes = [1, 128], strides = [1, 1]} : vector<2x128xf32> to vector<1x128xf32>
    %c14_145 = arith.constant 14 : index
    %c0_146 = arith.constant 0 : index
    %495 = vector.load %arg19[%c14_145, %c0_146] : memref<16x128xf32, #tpu.memory_space<vmem>>, vector<1x128xf32>
    tpu.vector_store %arg19[%c14_145, %c0_146], %494 {strides = array<i32>} : memref<16x128xf32, #tpu.memory_space<vmem>>, vector<1x128xf32>,
    %496 = vector.extract_strided_slice %262 {offsets = [14, 0], sizes = [2, 512], strides = [1, 1]} : vector<16x512xf32> to vector<2x512xf32>
    %c0_147 = arith.constant 0 : index
    %c0_148 = arith.constant 0 : index
    %497 = vector.load %arg8[%c0_147, %c0_148] : memref<128x512xf32, #tpu.memory_space<vmem>>, vector<128x512xf32>
    %cst_149 = arith.constant dense<0.000000e+00> : vector<2x512xf32>
    %498 = tpu.matmul %491, %497, %cst_149 {dimension_numbers = #tpu.dot_dimension_numbers<[1], [0], [0], [1], [0, 0, 1, 1], [], []>} : vector<2x128xf32>, vector<128x512xf32>, vector<2x512xf32> -> vector<2x512xf32>
    %499 = arith.addf %496, %498 : vector<2x512xf32>
    %500 = vector.extract_strided_slice %499 {offsets = [0, 0], sizes = [2, 128], strides = [1, 1]} : vector<2x512xf32> to vector<2x128xf32>
    %501 = arith.negf %500 : vector<2x128xf32>
    %502 = math.exp %501 : vector<2x128xf32>
    %cst_150 = arith.constant 1.000000e+00 : f32
    %503 = vector.broadcast %cst_150 : f32 to vector<2x128xf32>
    %504 = arith.addf %503, %502 : vector<2x128xf32>
    %505 = arith.divf %503, %504 : vector<2x128xf32>
    %506 = vector.extract_strided_slice %499 {offsets = [0, 128], sizes = [2, 128], strides = [1, 1]} : vector<2x512xf32> to vector<2x128xf32>
    %507 = arith.negf %506 : vector<2x128xf32>
    %508 = math.exp %507 : vector<2x128xf32>
    %cst_151 = arith.constant 1.000000e+00 : f32
    %509 = vector.broadcast %cst_151 : f32 to vector<2x128xf32>
    %510 = arith.addf %509, %508 : vector<2x128xf32>
    %511 = arith.divf %509, %510 : vector<2x128xf32>
    %512 = vector.extract_strided_slice %499 {offsets = [0, 256], sizes = [2, 128], strides = [1, 1]} : vector<2x512xf32> to vector<2x128xf32>
    %513 = math.tanh %512 : vector<2x128xf32>
    %514 = vector.extract_strided_slice %499 {offsets = [0, 384], sizes = [2, 128], strides = [1, 1]} : vector<2x512xf32> to vector<2x128xf32>
    %515 = arith.negf %514 : vector<2x128xf32>
    %516 = math.exp %515 : vector<2x128xf32>
    %cst_152 = arith.constant 1.000000e+00 : f32
    %517 = vector.broadcast %cst_152 : f32 to vector<2x128xf32>
    %518 = arith.addf %517, %516 : vector<2x128xf32>
    %519 = arith.divf %517, %518 : vector<2x128xf32>
    %520 = arith.mulf %511, %489 : vector<2x128xf32>
    %521 = arith.mulf %505, %513 : vector<2x128xf32>
    %522 = arith.addf %520, %521 : vector<2x128xf32>
    %523 = math.tanh %522 : vector<2x128xf32>
    %524 = arith.mulf %519, %523 : vector<2x128xf32>
    %525 = vector.extract_strided_slice %524 {offsets = [0, 0], sizes = [1, 128], strides = [1, 1]} : vector<2x128xf32> to vector<1x128xf32>
    %c7 = arith.constant 7 : index
    %c0_153 = arith.constant 0 : index
    %526 = vector.load %arg19[%c7, %c0_153] : memref<16x128xf32, #tpu.memory_space<vmem>>, vector<1x128xf32>
    tpu.vector_store %arg19[%c7, %c0_153], %525 {strides = array<i32>} : memref<16x128xf32, #tpu.memory_space<vmem>>, vector<1x128xf32>,
    %527 = vector.extract_strided_slice %524 {offsets = [1, 0], sizes = [1, 128], strides = [1, 1]} : vector<2x128xf32> to vector<1x128xf32>
    %c15 = arith.constant 15 : index
    %c0_154 = arith.constant 0 : index
    %528 = vector.load %arg19[%c15, %c0_154] : memref<16x128xf32, #tpu.memory_space<vmem>>, vector<1x128xf32>
    tpu.vector_store %arg19[%c15, %c0_154], %527 {strides = array<i32>} : memref<16x128xf32, #tpu.memory_space<vmem>>, vector<1x128xf32>,
    %c0_155 = arith.constant 0 : index
    %c0_156 = arith.constant 0 : index
    %529 = vector.load %arg10[%c0_155, %c0_156] : memref<128x25xf32, #tpu.memory_space<vmem>>, vector<128x25xf32>
    %c0_157 = arith.constant 0 : index
    %c0_158 = arith.constant 0 : index
    %530 = vector.load %arg11[%c0_157, %c0_158] : memref<1x25xf32, #tpu.memory_space<vmem>>, vector<1x25xf32>
    %c0_159 = arith.constant 0 : index
    %c0_160 = arith.constant 0 : index
    %531 = vector.load %arg19[%c0_159, %c0_160] : memref<16x128xf32, #tpu.memory_space<vmem>>, vector<8x128xf32>
    %cst_161 = arith.constant dense<0.000000e+00> : vector<8x25xf32>
    %532 = tpu.matmul %531, %529, %cst_161 {dimension_numbers = #tpu.dot_dimension_numbers<[1], [0], [0], [1], [0, 0, 1, 1], [], []>} : vector<8x128xf32>, vector<128x25xf32>, vector<8x25xf32> -> vector<8x25xf32>
    %533 = vector.broadcast %530 : vector<1x25xf32> to vector<8x25xf32>
    %534 = arith.addf %532, %533 : vector<8x25xf32>
    %c0_162 = arith.constant 0 : index
    %c0_163 = arith.constant 0 : index
    %535 = vector.load %arg22[%c0_162, %c0_163] : memref<64x50xf32, #tpu.memory_space<vmem>>, vector<32x25xf32>
    %cst_164 = arith.constant dense<0.000000e+00> : vector<32x8xf32>
    %536 = tpu.matmul %535, %534, %cst_164 {dimension_numbers = #tpu.dot_dimension_numbers<[1], [1], [0], [0], [0, 0, 1, 0], [], []>} : vector<32x25xf32>, vector<8x25xf32>, vector<32x8xf32> -> vector<32x8xf32>
    %c8_165 = arith.constant 8 : index
    %c0_166 = arith.constant 0 : index
    %537 = vector.load %arg19[%c8_165, %c0_166] : memref<16x128xf32, #tpu.memory_space<vmem>>, vector<8x128xf32>
    %cst_167 = arith.constant dense<0.000000e+00> : vector<8x25xf32>
    %538 = tpu.matmul %537, %529, %cst_167 {dimension_numbers = #tpu.dot_dimension_numbers<[1], [0], [0], [1], [0, 0, 1, 1], [], []>} : vector<8x128xf32>, vector<128x25xf32>, vector<8x25xf32> -> vector<8x25xf32>
    %539 = vector.broadcast %530 : vector<1x25xf32> to vector<8x25xf32>
    %540 = arith.addf %538, %539 : vector<8x25xf32>
    %c0_168 = arith.constant 0 : index
    %c25 = arith.constant 25 : index
    %541 = vector.load %arg22[%c0_168, %c25] : memref<64x50xf32, #tpu.memory_space<vmem>>, vector<32x25xf32>
    %cst_169 = arith.constant dense<0.000000e+00> : vector<32x8xf32>
    %542 = tpu.matmul %541, %540, %cst_169 {dimension_numbers = #tpu.dot_dimension_numbers<[1], [1], [0], [0], [0, 0, 1, 0], [], []>} : vector<32x25xf32>, vector<8x25xf32>, vector<32x8xf32> -> vector<32x8xf32>
    %543 = arith.maximumf %536, %542 : vector<32x8xf32>
    %544 = arith.subf %536, %543 : vector<32x8xf32>
    %545 = math.exp %544 : vector<32x8xf32>
    %546 = arith.subf %542, %543 : vector<32x8xf32>
    %547 = math.exp %546 : vector<32x8xf32>
    %548 = arith.addf %545, %547 : vector<32x8xf32>
    %549 = tpu.reciprocal %548 {approx = true} : vector<32x8xf32> -> vector<32x8xf32>
    %550 = arith.mulf %545, %549 : vector<32x8xf32>
    %cst_170 = arith.constant dense<0.000000e+00> : vector<32x25xf32>
    %551 = tpu.matmul %550, %534, %cst_170 {dimension_numbers = #tpu.dot_dimension_numbers<[1], [0], [0], [1], [0, 0, 1, 1], [], []>} : vector<32x8xf32>, vector<8x25xf32>, vector<32x25xf32> -> vector<32x25xf32>
    %c32 = arith.constant 32 : index
    %c0_171 = arith.constant 0 : index
    %552 = vector.load %arg22[%c32, %c0_171] : memref<64x50xf32, #tpu.memory_space<vmem>>, vector<32x25xf32>
    tpu.vector_store %arg22[%c32, %c0_171], %551 {strides = array<i32>} : memref<64x50xf32, #tpu.memory_space<vmem>>, vector<32x25xf32>,
    %553 = arith.mulf %547, %549 : vector<32x8xf32>
    %cst_172 = arith.constant dense<0.000000e+00> : vector<32x25xf32>
    %554 = tpu.matmul %553, %540, %cst_172 {dimension_numbers = #tpu.dot_dimension_numbers<[1], [0], [0], [1], [0, 0, 1, 1], [], []>} : vector<32x8xf32>, vector<8x25xf32>, vector<32x25xf32> -> vector<32x25xf32>
    %c32_173 = arith.constant 32 : index
    %c25_174 = arith.constant 25 : index
    %555 = vector.load %arg22[%c32_173, %c25_174] : memref<64x50xf32, #tpu.memory_space<vmem>>, vector<32x25xf32>
    tpu.vector_store %arg22[%c32_173, %c25_174], %554 {strides = array<i32>} : memref<64x50xf32, #tpu.memory_space<vmem>>, vector<32x25xf32>,
    %c0_175 = arith.constant 0 : index
    %c0_176 = arith.constant 0 : index
    %556 = vector.load %arg22[%c0_175, %c0_176] : memref<64x50xf32, #tpu.memory_space<vmem>>, vector<64x50xf32>
    %c0_177 = arith.constant 0 : index
    %c0_178 = arith.constant 0 : index
    %c0_179 = arith.constant 0 : index
    %557 = vector.load %arg12[%c0_177, %c0_178, %c0_179] : memref<9x50x50xf32, #tpu.memory_space<vmem>>, vector<1x50x50xf32>
    %558 = vector.shape_cast %557 : vector<1x50x50xf32> to vector<50x50xf32>
    %cst_180 = arith.constant dense<0.000000e+00> : vector<64x50xf32>
    %559 = tpu.matmul %556, %558, %cst_180 {dimension_numbers = #tpu.dot_dimension_numbers<[1], [0], [0], [1], [0, 0, 1, 1], [], []>} : vector<64x50xf32>, vector<50x50xf32>, vector<64x50xf32> -> vector<64x50xf32>
    %c0_181 = arith.constant 0 : index
    %c0_182 = arith.constant 0 : index
    %c0_183 = arith.constant 0 : index
    %560 = vector.load %arg13[%c0_181, %c0_182, %c0_183] : memref<9x64x64xf32, #tpu.memory_space<vmem>>, vector<1x64x64xf32>
    %561 = vector.shape_cast %560 : vector<1x64x64xf32> to vector<64x64xf32>
    %cst_184 = arith.constant dense<0.000000e+00> : vector<64x50xf32>
    %562 = tpu.matmul %561, %559, %cst_184 {dimension_numbers = #tpu.dot_dimension_numbers<[1], [0], [0], [1], [0, 0, 1, 1], [], []>} : vector<64x64xf32>, vector<64x50xf32>, vector<64x50xf32> -> vector<64x50xf32>
    %c1_185 = arith.constant 1 : index
    %c0_186 = arith.constant 0 : index
    %c0_187 = arith.constant 0 : index
    %563 = vector.load %arg12[%c1_185, %c0_186, %c0_187] : memref<9x50x50xf32, #tpu.memory_space<vmem>>, vector<1x50x50xf32>
    %564 = vector.shape_cast %563 : vector<1x50x50xf32> to vector<50x50xf32>
    %cst_188 = arith.constant dense<0.000000e+00> : vector<64x50xf32>
    %565 = tpu.matmul %556, %564, %cst_188 {dimension_numbers = #tpu.dot_dimension_numbers<[1], [0], [0], [1], [0, 0, 1, 1], [], []>} : vector<64x50xf32>, vector<50x50xf32>, vector<64x50xf32> -> vector<64x50xf32>
    %c1_189 = arith.constant 1 : index
    %c0_190 = arith.constant 0 : index
    %c0_191 = arith.constant 0 : index
    %566 = vector.load %arg13[%c1_189, %c0_190, %c0_191] : memref<9x64x64xf32, #tpu.memory_space<vmem>>, vector<1x64x64xf32>
    %567 = vector.shape_cast %566 : vector<1x64x64xf32> to vector<64x64xf32>
    %cst_192 = arith.constant dense<0.000000e+00> : vector<64x50xf32>
    %568 = tpu.matmul %567, %565, %cst_192 {dimension_numbers = #tpu.dot_dimension_numbers<[1], [0], [0], [1], [0, 0, 1, 1], [], []>} : vector<64x64xf32>, vector<64x50xf32>, vector<64x50xf32> -> vector<64x50xf32>
    %569 = arith.addf %562, %568 : vector<64x50xf32>
    %c2_193 = arith.constant 2 : index
    %c0_194 = arith.constant 0 : index
    %c0_195 = arith.constant 0 : index
    %570 = vector.load %arg12[%c2_193, %c0_194, %c0_195] : memref<9x50x50xf32, #tpu.memory_space<vmem>>, vector<1x50x50xf32>
    %571 = vector.shape_cast %570 : vector<1x50x50xf32> to vector<50x50xf32>
    %cst_196 = arith.constant dense<0.000000e+00> : vector<64x50xf32>
    %572 = tpu.matmul %556, %571, %cst_196 {dimension_numbers = #tpu.dot_dimension_numbers<[1], [0], [0], [1], [0, 0, 1, 1], [], []>} : vector<64x50xf32>, vector<50x50xf32>, vector<64x50xf32> -> vector<64x50xf32>
    %c2_197 = arith.constant 2 : index
    %c0_198 = arith.constant 0 : index
    %c0_199 = arith.constant 0 : index
    %573 = vector.load %arg13[%c2_197, %c0_198, %c0_199] : memref<9x64x64xf32, #tpu.memory_space<vmem>>, vector<1x64x64xf32>
    %574 = vector.shape_cast %573 : vector<1x64x64xf32> to vector<64x64xf32>
    %cst_200 = arith.constant dense<0.000000e+00> : vector<64x50xf32>
    %575 = tpu.matmul %574, %572, %cst_200 {dimension_numbers = #tpu.dot_dimension_numbers<[1], [0], [0], [1], [0, 0, 1, 1], [], []>} : vector<64x64xf32>, vector<64x50xf32>, vector<64x50xf32> -> vector<64x50xf32>
    %576 = arith.addf %569, %575 : vector<64x50xf32>
    %c3_201 = arith.constant 3 : index
    %c0_202 = arith.constant 0 : index
    %c0_203 = arith.constant 0 : index
    %577 = vector.load %arg12[%c3_201, %c0_202, %c0_203] : memref<9x50x50xf32, #tpu.memory_space<vmem>>, vector<1x50x50xf32>
    %578 = vector.shape_cast %577 : vector<1x50x50xf32> to vector<50x50xf32>
    %cst_204 = arith.constant dense<0.000000e+00> : vector<64x50xf32>
    %579 = tpu.matmul %556, %578, %cst_204 {dimension_numbers = #tpu.dot_dimension_numbers<[1], [0], [0], [1], [0, 0, 1, 1], [], []>} : vector<64x50xf32>, vector<50x50xf32>, vector<64x50xf32> -> vector<64x50xf32>
    %c3_205 = arith.constant 3 : index
    %c0_206 = arith.constant 0 : index
    %c0_207 = arith.constant 0 : index
    %580 = vector.load %arg13[%c3_205, %c0_206, %c0_207] : memref<9x64x64xf32, #tpu.memory_space<vmem>>, vector<1x64x64xf32>
    %581 = vector.shape_cast %580 : vector<1x64x64xf32> to vector<64x64xf32>
    %cst_208 = arith.constant dense<0.000000e+00> : vector<64x50xf32>
    %582 = tpu.matmul %581, %579, %cst_208 {dimension_numbers = #tpu.dot_dimension_numbers<[1], [0], [0], [1], [0, 0, 1, 1], [], []>} : vector<64x64xf32>, vector<64x50xf32>, vector<64x50xf32> -> vector<64x50xf32>
    %583 = arith.addf %576, %582 : vector<64x50xf32>
    %c4_209 = arith.constant 4 : index
    %c0_210 = arith.constant 0 : index
    %c0_211 = arith.constant 0 : index
    %584 = vector.load %arg13[%c4_209, %c0_210, %c0_211] : memref<9x64x64xf32, #tpu.memory_space<vmem>>, vector<1x64x64xf32>
    %585 = vector.shape_cast %584 : vector<1x64x64xf32> to vector<64x64xf32>
    %cst_212 = arith.constant dense<0.000000e+00> : vector<64x50xf32>
    %586 = tpu.matmul %585, %556, %cst_212 {dimension_numbers = #tpu.dot_dimension_numbers<[1], [0], [0], [1], [0, 0, 1, 1], [], []>} : vector<64x64xf32>, vector<64x50xf32>, vector<64x50xf32> -> vector<64x50xf32>
    %587 = arith.addf %583, %586 : vector<64x50xf32>
    %c5_213 = arith.constant 5 : index
    %c0_214 = arith.constant 0 : index
    %c0_215 = arith.constant 0 : index
    %588 = vector.load %arg12[%c5_213, %c0_214, %c0_215] : memref<9x50x50xf32, #tpu.memory_space<vmem>>, vector<1x50x50xf32>
    %589 = vector.shape_cast %588 : vector<1x50x50xf32> to vector<50x50xf32>
    %cst_216 = arith.constant dense<0.000000e+00> : vector<64x50xf32>
    %590 = tpu.matmul %556, %589, %cst_216 {dimension_numbers = #tpu.dot_dimension_numbers<[1], [0], [0], [1], [0, 0, 1, 1], [], []>} : vector<64x50xf32>, vector<50x50xf32>, vector<64x50xf32> -> vector<64x50xf32>
    %c5_217 = arith.constant 5 : index
    %c0_218 = arith.constant 0 : index
    %c0_219 = arith.constant 0 : index
    %591 = vector.load %arg13[%c5_217, %c0_218, %c0_219] : memref<9x64x64xf32, #tpu.memory_space<vmem>>, vector<1x64x64xf32>
    %592 = vector.shape_cast %591 : vector<1x64x64xf32> to vector<64x64xf32>
    %cst_220 = arith.constant dense<0.000000e+00> : vector<64x50xf32>
    %593 = tpu.matmul %592, %590, %cst_220 {dimension_numbers = #tpu.dot_dimension_numbers<[1], [0], [0], [1], [0, 0, 1, 1], [], []>} : vector<64x64xf32>, vector<64x50xf32>, vector<64x50xf32> -> vector<64x50xf32>
    %594 = arith.addf %587, %593 : vector<64x50xf32>
    %c6_221 = arith.constant 6 : index
    %c0_222 = arith.constant 0 : index
    %c0_223 = arith.constant 0 : index
    %595 = vector.load %arg12[%c6_221, %c0_222, %c0_223] : memref<9x50x50xf32, #tpu.memory_space<vmem>>, vector<1x50x50xf32>
    %596 = vector.shape_cast %595 : vector<1x50x50xf32> to vector<50x50xf32>
    %cst_224 = arith.constant dense<0.000000e+00> : vector<64x50xf32>
    %597 = tpu.matmul %556, %596, %cst_224 {dimension_numbers = #tpu.dot_dimension_numbers<[1], [0], [0], [1], [0, 0, 1, 1], [], []>} : vector<64x50xf32>, vector<50x50xf32>, vector<64x50xf32> -> vector<64x50xf32>
    %c6_225 = arith.constant 6 : index
    %c0_226 = arith.constant 0 : index
    %c0_227 = arith.constant 0 : index
    %598 = vector.load %arg13[%c6_225, %c0_226, %c0_227] : memref<9x64x64xf32, #tpu.memory_space<vmem>>, vector<1x64x64xf32>
    %599 = vector.shape_cast %598 : vector<1x64x64xf32> to vector<64x64xf32>
    %cst_228 = arith.constant dense<0.000000e+00> : vector<64x50xf32>
    %600 = tpu.matmul %599, %597, %cst_228 {dimension_numbers = #tpu.dot_dimension_numbers<[1], [0], [0], [1], [0, 0, 1, 1], [], []>} : vector<64x64xf32>, vector<64x50xf32>, vector<64x50xf32> -> vector<64x50xf32>
    %601 = arith.addf %594, %600 : vector<64x50xf32>
    %c7_229 = arith.constant 7 : index
    %c0_230 = arith.constant 0 : index
    %c0_231 = arith.constant 0 : index
    %602 = vector.load %arg12[%c7_229, %c0_230, %c0_231] : memref<9x50x50xf32, #tpu.memory_space<vmem>>, vector<1x50x50xf32>
    %603 = vector.shape_cast %602 : vector<1x50x50xf32> to vector<50x50xf32>
    %cst_232 = arith.constant dense<0.000000e+00> : vector<64x50xf32>
    %604 = tpu.matmul %556, %603, %cst_232 {dimension_numbers = #tpu.dot_dimension_numbers<[1], [0], [0], [1], [0, 0, 1, 1], [], []>} : vector<64x50xf32>, vector<50x50xf32>, vector<64x50xf32> -> vector<64x50xf32>
    %c7_233 = arith.constant 7 : index
    %c0_234 = arith.constant 0 : index
    %c0_235 = arith.constant 0 : index
    %605 = vector.load %arg13[%c7_233, %c0_234, %c0_235] : memref<9x64x64xf32, #tpu.memory_space<vmem>>, vector<1x64x64xf32>
    %606 = vector.shape_cast %605 : vector<1x64x64xf32> to vector<64x64xf32>
    %cst_236 = arith.constant dense<0.000000e+00> : vector<64x50xf32>
    %607 = tpu.matmul %606, %604, %cst_236 {dimension_numbers = #tpu.dot_dimension_numbers<[1], [0], [0], [1], [0, 0, 1, 1], [], []>} : vector<64x64xf32>, vector<64x50xf32>, vector<64x50xf32> -> vector<64x50xf32>
    %608 = arith.addf %601, %607 : vector<64x50xf32>
    %c8_237 = arith.constant 8 : index
    %c0_238 = arith.constant 0 : index
    %c0_239 = arith.constant 0 : index
    %609 = vector.load %arg12[%c8_237, %c0_238, %c0_239] : memref<9x50x50xf32, #tpu.memory_space<vmem>>, vector<1x50x50xf32>
    %610 = vector.shape_cast %609 : vector<1x50x50xf32> to vector<50x50xf32>
    %cst_240 = arith.constant dense<0.000000e+00> : vector<64x50xf32>
    %611 = tpu.matmul %556, %610, %cst_240 {dimension_numbers = #tpu.dot_dimension_numbers<[1], [0], [0], [1], [0, 0, 1, 1], [], []>} : vector<64x50xf32>, vector<50x50xf32>, vector<64x50xf32> -> vector<64x50xf32>
    %c8_241 = arith.constant 8 : index
    %c0_242 = arith.constant 0 : index
    %c0_243 = arith.constant 0 : index
    %612 = vector.load %arg13[%c8_241, %c0_242, %c0_243] : memref<9x64x64xf32, #tpu.memory_space<vmem>>, vector<1x64x64xf32>
    %613 = vector.shape_cast %612 : vector<1x64x64xf32> to vector<64x64xf32>
    %cst_244 = arith.constant dense<0.000000e+00> : vector<64x50xf32>
    %614 = tpu.matmul %613, %611, %cst_244 {dimension_numbers = #tpu.dot_dimension_numbers<[1], [0], [0], [1], [0, 0, 1, 1], [], []>} : vector<64x64xf32>, vector<64x50xf32>, vector<64x50xf32> -> vector<64x50xf32>
    %615 = arith.addf %608, %614 : vector<64x50xf32>
    %c0_245 = arith.constant 0 : index
    %c0_246 = arith.constant 0 : index
    %616 = vector.load %arg14[%c0_245, %c0_246] : memref<64x1xf32, #tpu.memory_space<vmem>>, vector<64x1xf32>
    %617 = vector.broadcast %616 : vector<64x1xf32> to vector<64x50xf32>
    %618 = arith.addf %615, %617 : vector<64x50xf32>
    %619 = arith.addf %618, %556 : vector<64x50xf32>
    %cst_247 = arith.constant 0.000000e+00 : f32
    %620 = vector.broadcast %cst_247 : f32 to vector<64x50xf32>
    %621 = arith.maximumf %619, %620 : vector<64x50xf32>
    %c0_248 = arith.constant 0 : index
    %c0_249 = arith.constant 0 : index
    %c0_250 = arith.constant 0 : index
    %622 = vector.load %arg12[%c0_248, %c0_249, %c0_250] : memref<9x50x50xf32, #tpu.memory_space<vmem>>, vector<1x50x50xf32>
    %623 = vector.shape_cast %622 : vector<1x50x50xf32> to vector<50x50xf32>
    %cst_251 = arith.constant dense<0.000000e+00> : vector<64x50xf32>
    %624 = tpu.matmul %621, %623, %cst_251 {dimension_numbers = #tpu.dot_dimension_numbers<[1], [0], [0], [1], [0, 0, 1, 1], [], []>} : vector<64x50xf32>, vector<50x50xf32>, vector<64x50xf32> -> vector<64x50xf32>
    %c0_252 = arith.constant 0 : index
    %c0_253 = arith.constant 0 : index
    %c0_254 = arith.constant 0 : index
    %625 = vector.load %arg15[%c0_252, %c0_253, %c0_254] : memref<9x64x64xf32, #tpu.memory_space<vmem>>, vector<1x64x64xf32>
    %626 = vector.shape_cast %625 : vector<1x64x64xf32> to vector<64x64xf32>
    %cst_255 = arith.constant dense<0.000000e+00> : vector<64x50xf32>
    %627 = tpu.matmul %626, %624, %cst_255 {dimension_numbers = #tpu.dot_dimension_numbers<[1], [0], [0], [1], [0, 0, 1, 1], [], []>} : vector<64x64xf32>, vector<64x50xf32>, vector<64x50xf32> -> vector<64x50xf32>
    %c1_256 = arith.constant 1 : index
    %c0_257 = arith.constant 0 : index
    %c0_258 = arith.constant 0 : index
    %628 = vector.load %arg12[%c1_256, %c0_257, %c0_258] : memref<9x50x50xf32, #tpu.memory_space<vmem>>, vector<1x50x50xf32>
    %629 = vector.shape_cast %628 : vector<1x50x50xf32> to vector<50x50xf32>
    %cst_259 = arith.constant dense<0.000000e+00> : vector<64x50xf32>
    %630 = tpu.matmul %621, %629, %cst_259 {dimension_numbers = #tpu.dot_dimension_numbers<[1], [0], [0], [1], [0, 0, 1, 1], [], []>} : vector<64x50xf32>, vector<50x50xf32>, vector<64x50xf32> -> vector<64x50xf32>
    %c1_260 = arith.constant 1 : index
    %c0_261 = arith.constant 0 : index
    %c0_262 = arith.constant 0 : index
    %631 = vector.load %arg15[%c1_260, %c0_261, %c0_262] : memref<9x64x64xf32, #tpu.memory_space<vmem>>, vector<1x64x64xf32>
    %632 = vector.shape_cast %631 : vector<1x64x64xf32> to vector<64x64xf32>
    %cst_263 = arith.constant dense<0.000000e+00> : vector<64x50xf32>
    %633 = tpu.matmul %632, %630, %cst_263 {dimension_numbers = #tpu.dot_dimension_numbers<[1], [0], [0], [1], [0, 0, 1, 1], [], []>} : vector<64x64xf32>, vector<64x50xf32>, vector<64x50xf32> -> vector<64x50xf32>
    %634 = arith.addf %627, %633 : vector<64x50xf32>
    %c2_264 = arith.constant 2 : index
    %c0_265 = arith.constant 0 : index
    %c0_266 = arith.constant 0 : index
    %635 = vector.load %arg12[%c2_264, %c0_265, %c0_266] : memref<9x50x50xf32, #tpu.memory_space<vmem>>, vector<1x50x50xf32>
    %636 = vector.shape_cast %635 : vector<1x50x50xf32> to vector<50x50xf32>
    %cst_267 = arith.constant dense<0.000000e+00> : vector<64x50xf32>
    %637 = tpu.matmul %621, %636, %cst_267 {dimension_numbers = #tpu.dot_dimension_numbers<[1], [0], [0], [1], [0, 0, 1, 1], [], []>} : vector<64x50xf32>, vector<50x50xf32>, vector<64x50xf32> -> vector<64x50xf32>
    %c2_268 = arith.constant 2 : index
    %c0_269 = arith.constant 0 : index
    %c0_270 = arith.constant 0 : index
    %638 = vector.load %arg15[%c2_268, %c0_269, %c0_270] : memref<9x64x64xf32, #tpu.memory_space<vmem>>, vector<1x64x64xf32>
    %639 = vector.shape_cast %638 : vector<1x64x64xf32> to vector<64x64xf32>
    %cst_271 = arith.constant dense<0.000000e+00> : vector<64x50xf32>
    %640 = tpu.matmul %639, %637, %cst_271 {dimension_numbers = #tpu.dot_dimension_numbers<[1], [0], [0], [1], [0, 0, 1, 1], [], []>} : vector<64x64xf32>, vector<64x50xf32>, vector<64x50xf32> -> vector<64x50xf32>
    %641 = arith.addf %634, %640 : vector<64x50xf32>
    %c3_272 = arith.constant 3 : index
    %c0_273 = arith.constant 0 : index
    %c0_274 = arith.constant 0 : index
    %642 = vector.load %arg12[%c3_272, %c0_273, %c0_274] : memref<9x50x50xf32, #tpu.memory_space<vmem>>, vector<1x50x50xf32>
    %643 = vector.shape_cast %642 : vector<1x50x50xf32> to vector<50x50xf32>
    %cst_275 = arith.constant dense<0.000000e+00> : vector<64x50xf32>
    %644 = tpu.matmul %621, %643, %cst_275 {dimension_numbers = #tpu.dot_dimension_numbers<[1], [0], [0], [1], [0, 0, 1, 1], [], []>} : vector<64x50xf32>, vector<50x50xf32>, vector<64x50xf32> -> vector<64x50xf32>
    %c3_276 = arith.constant 3 : index
    %c0_277 = arith.constant 0 : index
    %c0_278 = arith.constant 0 : index
    %645 = vector.load %arg15[%c3_276, %c0_277, %c0_278] : memref<9x64x64xf32, #tpu.memory_space<vmem>>, vector<1x64x64xf32>
    %646 = vector.shape_cast %645 : vector<1x64x64xf32> to vector<64x64xf32>
    %cst_279 = arith.constant dense<0.000000e+00> : vector<64x50xf32>
    %647 = tpu.matmul %646, %644, %cst_279 {dimension_numbers = #tpu.dot_dimension_numbers<[1], [0], [0], [1], [0, 0, 1, 1], [], []>} : vector<64x64xf32>, vector<64x50xf32>, vector<64x50xf32> -> vector<64x50xf32>
    %648 = arith.addf %641, %647 : vector<64x50xf32>
    %c4_280 = arith.constant 4 : index
    %c0_281 = arith.constant 0 : index
    %c0_282 = arith.constant 0 : index
    %649 = vector.load %arg15[%c4_280, %c0_281, %c0_282] : memref<9x64x64xf32, #tpu.memory_space<vmem>>, vector<1x64x64xf32>
    %650 = vector.shape_cast %649 : vector<1x64x64xf32> to vector<64x64xf32>
    %cst_283 = arith.constant dense<0.000000e+00> : vector<64x50xf32>
    %651 = tpu.matmul %650, %621, %cst_283 {dimension_numbers = #tpu.dot_dimension_numbers<[1], [0], [0], [1], [0, 0, 1, 1], [], []>} : vector<64x64xf32>, vector<64x50xf32>, vector<64x50xf32> -> vector<64x50xf32>
    %652 = arith.addf %648, %651 : vector<64x50xf32>
    %c5_284 = arith.constant 5 : index
    %c0_285 = arith.constant 0 : index
    %c0_286 = arith.constant 0 : index
    %653 = vector.load %arg12[%c5_284, %c0_285, %c0_286] : memref<9x50x50xf32, #tpu.memory_space<vmem>>, vector<1x50x50xf32>
    %654 = vector.shape_cast %653 : vector<1x50x50xf32> to vector<50x50xf32>
    %cst_287 = arith.constant dense<0.000000e+00> : vector<64x50xf32>
    %655 = tpu.matmul %621, %654, %cst_287 {dimension_numbers = #tpu.dot_dimension_numbers<[1], [0], [0], [1], [0, 0, 1, 1], [], []>} : vector<64x50xf32>, vector<50x50xf32>, vector<64x50xf32> -> vector<64x50xf32>
    %c5_288 = arith.constant 5 : index
    %c0_289 = arith.constant 0 : index
    %c0_290 = arith.constant 0 : index
    %656 = vector.load %arg15[%c5_288, %c0_289, %c0_290] : memref<9x64x64xf32, #tpu.memory_space<vmem>>, vector<1x64x64xf32>
    %657 = vector.shape_cast %656 : vector<1x64x64xf32> to vector<64x64xf32>
    %cst_291 = arith.constant dense<0.000000e+00> : vector<64x50xf32>
    %658 = tpu.matmul %657, %655, %cst_291 {dimension_numbers = #tpu.dot_dimension_numbers<[1], [0], [0], [1], [0, 0, 1, 1], [], []>} : vector<64x64xf32>, vector<64x50xf32>, vector<64x50xf32> -> vector<64x50xf32>
    %659 = arith.addf %652, %658 : vector<64x50xf32>
    %c6_292 = arith.constant 6 : index
    %c0_293 = arith.constant 0 : index
    %c0_294 = arith.constant 0 : index
    %660 = vector.load %arg12[%c6_292, %c0_293, %c0_294] : memref<9x50x50xf32, #tpu.memory_space<vmem>>, vector<1x50x50xf32>
    %661 = vector.shape_cast %660 : vector<1x50x50xf32> to vector<50x50xf32>
    %cst_295 = arith.constant dense<0.000000e+00> : vector<64x50xf32>
    %662 = tpu.matmul %621, %661, %cst_295 {dimension_numbers = #tpu.dot_dimension_numbers<[1], [0], [0], [1], [0, 0, 1, 1], [], []>} : vector<64x50xf32>, vector<50x50xf32>, vector<64x50xf32> -> vector<64x50xf32>
    %c6_296 = arith.constant 6 : index
    %c0_297 = arith.constant 0 : index
    %c0_298 = arith.constant 0 : index
    %663 = vector.load %arg15[%c6_296, %c0_297, %c0_298] : memref<9x64x64xf32, #tpu.memory_space<vmem>>, vector<1x64x64xf32>
    %664 = vector.shape_cast %663 : vector<1x64x64xf32> to vector<64x64xf32>
    %cst_299 = arith.constant dense<0.000000e+00> : vector<64x50xf32>
    %665 = tpu.matmul %664, %662, %cst_299 {dimension_numbers = #tpu.dot_dimension_numbers<[1], [0], [0], [1], [0, 0, 1, 1], [], []>} : vector<64x64xf32>, vector<64x50xf32>, vector<64x50xf32> -> vector<64x50xf32>
    %666 = arith.addf %659, %665 : vector<64x50xf32>
    %c7_300 = arith.constant 7 : index
    %c0_301 = arith.constant 0 : index
    %c0_302 = arith.constant 0 : index
    %667 = vector.load %arg12[%c7_300, %c0_301, %c0_302] : memref<9x50x50xf32, #tpu.memory_space<vmem>>, vector<1x50x50xf32>
    %668 = vector.shape_cast %667 : vector<1x50x50xf32> to vector<50x50xf32>
    %cst_303 = arith.constant dense<0.000000e+00> : vector<64x50xf32>
    %669 = tpu.matmul %621, %668, %cst_303 {dimension_numbers = #tpu.dot_dimension_numbers<[1], [0], [0], [1], [0, 0, 1, 1], [], []>} : vector<64x50xf32>, vector<50x50xf32>, vector<64x50xf32> -> vector<64x50xf32>
    %c7_304 = arith.constant 7 : index
    %c0_305 = arith.constant 0 : index
    %c0_306 = arith.constant 0 : index
    %670 = vector.load %arg15[%c7_304, %c0_305, %c0_306] : memref<9x64x64xf32, #tpu.memory_space<vmem>>, vector<1x64x64xf32>
    %671 = vector.shape_cast %670 : vector<1x64x64xf32> to vector<64x64xf32>
    %cst_307 = arith.constant dense<0.000000e+00> : vector<64x50xf32>
    %672 = tpu.matmul %671, %669, %cst_307 {dimension_numbers = #tpu.dot_dimension_numbers<[1], [0], [0], [1], [0, 0, 1, 1], [], []>} : vector<64x64xf32>, vector<64x50xf32>, vector<64x50xf32> -> vector<64x50xf32>
    %673 = arith.addf %666, %672 : vector<64x50xf32>
    %c8_308 = arith.constant 8 : index
    %c0_309 = arith.constant 0 : index
    %c0_310 = arith.constant 0 : index
    %674 = vector.load %arg12[%c8_308, %c0_309, %c0_310] : memref<9x50x50xf32, #tpu.memory_space<vmem>>, vector<1x50x50xf32>
    %675 = vector.shape_cast %674 : vector<1x50x50xf32> to vector<50x50xf32>
    %cst_311 = arith.constant dense<0.000000e+00> : vector<64x50xf32>
    %676 = tpu.matmul %621, %675, %cst_311 {dimension_numbers = #tpu.dot_dimension_numbers<[1], [0], [0], [1], [0, 0, 1, 1], [], []>} : vector<64x50xf32>, vector<50x50xf32>, vector<64x50xf32> -> vector<64x50xf32>
    %c8_312 = arith.constant 8 : index
    %c0_313 = arith.constant 0 : index
    %c0_314 = arith.constant 0 : index
    %677 = vector.load %arg15[%c8_312, %c0_313, %c0_314] : memref<9x64x64xf32, #tpu.memory_space<vmem>>, vector<1x64x64xf32>
    %678 = vector.shape_cast %677 : vector<1x64x64xf32> to vector<64x64xf32>
    %cst_315 = arith.constant dense<0.000000e+00> : vector<64x50xf32>
    %679 = tpu.matmul %678, %676, %cst_315 {dimension_numbers = #tpu.dot_dimension_numbers<[1], [0], [0], [1], [0, 0, 1, 1], [], []>} : vector<64x64xf32>, vector<64x50xf32>, vector<64x50xf32> -> vector<64x50xf32>
    %680 = arith.addf %673, %679 : vector<64x50xf32>
    %c0_316 = arith.constant 0 : index
    %c0_317 = arith.constant 0 : index
    %681 = vector.load %arg16[%c0_316, %c0_317] : memref<64x1xf32, #tpu.memory_space<vmem>>, vector<64x1xf32>
    %682 = vector.broadcast %681 : vector<64x1xf32> to vector<64x50xf32>
    %683 = arith.addf %680, %682 : vector<64x50xf32>
    %684 = arith.addf %683, %621 : vector<64x50xf32>
    %cst_318 = arith.constant 0.000000e+00 : f32
    %685 = vector.broadcast %cst_318 : f32 to vector<64x50xf32>
    %686 = arith.maximumf %684, %685 : vector<64x50xf32>
    %c0_319 = arith.constant 0 : index
    %c0_320 = arith.constant 0 : index
    %687 = vector.load %arg17[%c0_319, %c0_320] : memref<48x64xf32, #tpu.memory_space<vmem>>, vector<48x64xf32>
    %cst_321 = arith.constant dense<0.000000e+00> : vector<48x50xf32>
    %688 = tpu.matmul %687, %686, %cst_321 {dimension_numbers = #tpu.dot_dimension_numbers<[1], [0], [0], [1], [0, 0, 1, 1], [], []>} : vector<48x64xf32>, vector<64x50xf32>, vector<48x50xf32> -> vector<48x50xf32>
    %c0_322 = arith.constant 0 : index
    %c0_323 = arith.constant 0 : index
    %689 = vector.load %arg18[%c0_322, %c0_323] : memref<48x1xf32, #tpu.memory_space<vmem>>, vector<48x1xf32>
    %690 = vector.broadcast %689 : vector<48x1xf32> to vector<48x50xf32>
    %691 = arith.addf %688, %690 : vector<48x50xf32>
    %692 = math.tanh %691 : vector<48x50xf32>
    %c0_324 = arith.constant 0 : index
    %c0_325 = arith.constant 0 : index
    %693 = vector.load %arg20[%c0_324, %c0_325] : memref<48x50xf32, #tpu.memory_space<vmem>>, vector<48x50xf32>
    tpu.vector_store %arg20[%c0_324, %c0_325], %692 {strides = array<i32>} : memref<48x50xf32, #tpu.memory_space<vmem>>, vector<48x50xf32>,
    return
  }
}

</mosaic_0001>

<bundles_post_ra>
// kernel: teacgan_forward.1
= control target key start
LH: loop header
LB: loop body
LE: loop exit
PB: predicated region body
PF: predicated region fallthrough
CT: control target
= control target key end

     0   :  { %s17496_s0 = inlined_call_operand.vmem [shape: f32[48,50], index: 0, kind: input, shape index: {}]   ;;  %s17497_s1 = inlined_call_operand.vmem [shape: f32[16,32], index: 1, kind: input, shape index: {}]   ;;  %s17498_s2 = inlined_call_operand.vmem [shape: f32[32,48], index: 2, kind: input, shape index: {}]   ;;  %s17499_s3 = inlined_call_operand.vmem [shape: f32[32,1], index: 3, kind: input, shape index: {}]   ;;  %s17500_s4 = inlined_call_operand.vmem [shape: f32[32,512], index: 4, kind: input, shape index: {}]   ;;  %s17501_s5 = inlined_call_operand.vmem [shape: f32[128,512], index: 5, kind: input, shape index: {}]   ;;  %s17502_s6 = inlined_call_operand.vmem [shape: f32[1,512], index: 6, kind: input, shape index: {}]   ;;  %s17503_s7 = inlined_call_operand.vmem [shape: f32[128,512], index: 7, kind: input, shape index: {}]   ;;  %s17504_s8 = inlined_call_operand.vmem [shape: f32[128,512], index: 8, kind: input, shape index: {}]   ;;  %s17505_s9 = inlined_call_operand.vmem [shape: f32[1,512], index: 9, kind: input, shape index: {}]   ;;  %s17506_s10 = inlined_call_operand.vmem [shape: f32[128,25], index: 10, kind: input, shape index: {}]   ;;  %s17507_s11 = inlined_call_operand.vmem [shape: f32[1,25], index: 11, kind: input, shape index: {}]   ;;  %s17508_s12 = inlined_call_operand.vmem [shape: f32[9,50,50], index: 12, kind: input, shape index: {}]   ;;  %s17509_s13 = inlined_call_operand.vmem [shape: f32[9,64,64], index: 13, kind: input, shape index: {}]   ;;  %s17510_s14 = inlined_call_operand.vmem [shape: f32[64,1], index: 14, kind: input, shape index: {}]   ;;  %s17511_s15 = inlined_call_operand.vmem [shape: f32[9,64,64], index: 15, kind: input, shape index: {}]   ;;  %s17512_s16 = inlined_call_operand.vmem [shape: f32[64,1], index: 16, kind: input, shape index: {}]   ;;  %s17513_s17 = inlined_call_operand.vmem [shape: f32[48,64], index: 17, kind: input, shape index: {}]   ;;  %s17514_s18 = inlined_call_operand.vmem [shape: f32[48,1], index: 18, kind: input, shape index: {}]   ;;  %s17515_s19 = inlined_call_operand.hbm [shape: f32[16,128], index: 19, kind: output, shape index: {0}]   ;;  %s17516_s20 = inlined_call_operand.vmem [shape: f32[48,50], index: 20, kind: output, shape index: {1}]  }
   0x1   :  { %17723 = sst [smem:[#allocation38_spill]] %s17496_s0 }
   0x2   :  { %17724 = sst [smem:[#allocation39_spill]] %s17497_s1 }
   0x3   :  { %17725 = sst [smem:[#allocation40_spill]] %s17498_s2 }
   0x4   :  { %17726 = sst [smem:[#allocation41_spill]] %s17499_s3 }
   0x5   :  { %17727 = sst [smem:[#allocation42_spill]] %s17500_s4 }
   0x6   :  { %17728 = sst [smem:[#allocation43_spill]] %s17511_s15 }
   0x7   :  { %s17729_s23 = sld [smem:[#allocation38_spill]]  ;;  %vm246_vm0 = vcmask 261120   ;;  %v17535_v16 = vmov 0.0   ;;  %vm99_vm1 = vcmask 392192   ;;  %v12812_v23 = vld [vmem:[%s17501_s5 + $0x1e8] sm:$0xff]  ;;  %v12826_v26 = vld [vmem:[%s17501_s5 + $0x1e0] sm:$0xff] }
   0x8   :  { %s17730_s15 = sld [smem:[#allocation42_spill]]  ;;  %317 = vmatprep.mubr.f32.mxu1 %v17535_v16  ;;  %v12835_v28 = vld [vmem:[%s17501_s5 + $0x1c8] sm:$0xff]  ;;  %v12846_v30 = vld [vmem:[%s17501_s5 + $0x1c0] sm:$0xff]  ;;  %v12858_v32 = vld [vmem:[%s17501_s5 + $0x1f8] sm:$0xff] }
   0x9   :  { %s17731_s24 = sld [smem:[#allocation39_spill]]  ;;  %v12852_v31 = vld [vmem:[%s17501_s5 + $0x1a8] sm:$0xff]  ;;  %v12864_v33 = vld [vmem:[%s17501_s5 + $0x1a0] sm:$0xff]  ;;  %v12869_v34 = vld [vmem:[%s17501_s5 + $0x1f0] sm:$0xff] }
   0xa   :  { %s17732_s30 = sld [smem:[#allocation40_spill]]  ;;  %v12876_v35 = vld [vmem:[%s17501_s5 + $0x188] sm:$0xff]  ;;  %v12881_v36 = vld [vmem:[%s17501_s5 + $0x1d8] sm:$0xff]  ;;  %v12888_v37 = vld [vmem:[%s17501_s5 + $0x180] sm:$0xff] }
   0xb   :  { %v12893_v38 = vld [vmem:[%s17501_s5 + $0x1d0] sm:$0xff]  ;;  %v12900_v39 = vld [vmem:[%s17501_s5 + $0x168] sm:$0xff]  ;;  %v12905_v40 = vld [vmem:[%s17501_s5 + $0x1b8] sm:$0xff] }
   0xc   :  { %v12912_v41 = vld [vmem:[%s17501_s5 + $0x160] sm:$0xff]  ;;  %v12917_v42 = vld [vmem:[%s17501_s5 + $0x1b0] sm:$0xff]  ;;  %v12924_v43 = vld [vmem:[%s17501_s5 + $0x148] sm:$0xff] }
   0xd   :  { %v74_v0 = vld [vmem:[%s17729_s23 + $0x28] sm:$0xff]  ;;  %v73_v3 = vld [vmem:[%s17729_s23 + $0x20] sm:$0xff]  ;;  %v72_v6 = vld [vmem:[%s17729_s23 + $0x18] sm:$0xff] }
   0xe   :  { %v221_v1 = vld [vmem:[%s17730_s15 + $0x68] sm:$0xff]  ;;  %v220_v2 = vld [vmem:[%s17730_s15 + $0x60] sm:$0xff]  ;;  %11173 = vmatprep.subr.mxu0 %v74_v0  ;;  %v71_v9 = vld [vmem:[%s17729_s23 + $0x10] sm:$0xff] }
   0xf   :  { %277 = vmatprep.subr.mxu1 %v221_v1  ;;  %v217_v4 = vld [vmem:[%s17730_s15 + $0x48] sm:$0xff]  ;;  %v216_v5 = vld [vmem:[%s17730_s15 + $0x40] sm:$0xff]  ;;  %11174 = vmatpush3.msra.mxu0 %v74_v0  ;;  %v223_v13 = vld [vmem:[%s17730_s15 + $0x78] sm:$0xff] }
  0x10   :  { %278 = vmatpush1.msra.mxu1 %v220_v2  ;;  %v213_v7 = vld [vmem:[%s17730_s15 + $0x28] sm:$0xff]  ;;  %11175 = vmatprep.subr.mxu0 %v73_v3  ;;  %v212_v8 = vld [vmem:[%s17730_s15 + $0x20] sm:$0xff]  ;;  %v222_v17 = vld [vmem:[%s17730_s15 + $0x70] sm:$0xff] }
  0x11   :  { %279 = vmatprep.subr.mxu1 %v217_v4  ;;  %11176 = vmatpush3.msra.mxu0 %v73_v3  ;;  %v209_v10 = vld [vmem:[%s17730_s15 + $0x8] sm:$0xff]  ;;  %v208_v11 = vld [vmem:[%s17730_s15] sm:$0xff]  ;;  %v219_v18 = vld [vmem:[%s17730_s15 + $0x58] sm:$0xff] }
  0x12   :  { %280 = vmatpush1.msra.mxu1 %v216_v5  ;;  %11177 = vmatprep.subr.mxu0 %v72_v6  ;;  %v70_v12 = vld [vmem:[%s17729_s23 + $0x8] sm:$0xff]  ;;  %v206_v14 = vld [vmem:[%s17731_s24] sm:$0xff]  ;;  %v218_v20 = vld [vmem:[%s17730_s15 + $0x50] sm:$0xff] }
  0x13   :  { %281 = vmatprep.subr.mxu1 %v213_v7  ;;  %11178 = vmatpush3.msra.mxu0 %v72_v6  ;;  %v69_v15 = vld [vmem:[%s17729_s23] sm:$0xff]  ;;  %v66_v21 = vld [vmem:[%s17732_s30 + $0x8] sm:$0xff]  ;;  %v215_v22 = vld [vmem:[%s17730_s15 + $0x38] sm:$0xff] }
  0x14   :  { %282 = vmatpush1.msra.mxu1 %v212_v8  ;;  %11179 = vmatprep.subr.mxu0 %v71_v9  ;;  %v65_v19 = vld [vmem:[%s17732_s30] sm:$0xff]  ;;  %v12817_v24 = vld [vmem:[%s17731_s24 + $0x8] sm:$0xff]  ;;  %v214_v25 = vld [vmem:[%s17730_s15 + $0x30] sm:$0xff] }
  0x15   :  { %283 = vmatprep.subr.mxu1 %v209_v10  ;;  %11180 = vmatpush3.msra.mxu0 %v71_v9  ;;  %v211_v27 = vld [vmem:[%s17730_s15 + $0x18] sm:$0xff]  ;;  %v210_v29 = vld [vmem:[%s17730_s15 + $0x10] sm:$0xff]  ;;  %v12936_v45 = vld [vmem:[%s17501_s5 + $0x140] sm:$0xff] }
  0x16   :  { %284 = vmatpush1.msra.mxu1 %v208_v11  ;;  %11181 = vmatprep.subr.mxu0 %v70_v12  ;;  %v12929_v44 = vld [vmem:[%s17501_s5 + $0x198] sm:$0xff]  ;;  %v12941_v46 = vld [vmem:[%s17501_s5 + $0x190] sm:$0xff]  ;;  %v12948_v47 = vld [vmem:[%s17501_s5 + $0x128] sm:$0xff] }
  0x17   :  { %354 = vmatprep.subr.mxu1 %v223_v13  ;;  %11182 = vmatpush3.msra.mxu0 %v70_v12  ;;  %v12953_v48 = vld [vmem:[%s17501_s5 + $0x178] sm:$0xff]  ;;  %v12960_v49 = vld [vmem:[%s17501_s5 + $0x120] sm:$0xff]  ;;  %v12965_v50 = vld [vmem:[%s17501_s5 + $0x170] sm:$0xff] }
  0x18   :  { %10025 = vmatmul.mubr.msk.f32.vlgmr.msra.gmra.mxu1 %vm246_vm0, %v206_v14  ;;  %11183 = vmatprep.subr.mxu0 %v69_v15  ;;  %v12972_v51 = vld [vmem:[%s17501_s5 + $0x108] sm:$0xff]  ;;  %v12977_v52 = vld [vmem:[%s17501_s5 + $0x158] sm:$0xff]  ;;  %v12984_v53 = vld [vmem:[%s17501_s5 + $0x100] sm:$0xff] }
  0x19   :  { %355 = vmatpush1.msra.mxu1 %v222_v17  ;;  %11184 = vmatpush3.msra.mxu0 %v69_v15  ;;  %v12989_v54 = vld [vmem:[%s17501_s5 + $0x150] sm:$0xff]  ;;  %v12996_v55 = vld [vmem:[%s17501_s5 + $0xe8] sm:$0xff]  ;;  %v13001_v56 = vld [vmem:[%s17501_s5 + $0x138] sm:$0xff] }
  0x1a   :  { %356 = vmatprep.subr.mxu1 %v219_v18  ;;  %11185 = vmatprep.mubr.msk.f32.mxu0 %vm99_vm1, %v65_v19  ;;  %v13008_v57 = vld [vmem:[%s17501_s5 + $0xe0] sm:$0xff]  ;;  %v13013_v58 = vld [vmem:[%s17501_s5 + $0x130] sm:$0xff]  ;;  %v13020_v59 = vld [vmem:[%s17501_s5 + $0xc8] sm:$0xff] }
  0x1b   :  { %357 = vmatpush1.msra.mxu1 %v218_v20  ;;  %11186 = vmatmul.mubr.msk.f32.vlgmr.msra.gmra.mxu0 %vm99_vm1, %v66_v21  ;;  %v13025_v60 = vld [vmem:[%s17501_s5 + $0x118] sm:$0xff] }
  0x1c   :  { %323 = vmatprep.mubr.f32.mxu1 %v17535_v16  ;;  %358 = vmatprep.subr.mxu1 %v215_v22 }
  0x1d   :  { %471 = vmatprep.subr.mxu0 %v12812_v23  ;;  %10026 = vmatmul.mubr.msk.f32.gmra.mxu1 %vm246_vm0, %v12817_v24 }
  0x1e   :  { %359 = vmatpush1.msra.mxu1 %v214_v25  ;;  %472 = vmatpush1.msra.mxu0 %v12826_v26 }
  0x1f   :  { %360 = vmatprep.subr.mxu1 %v211_v27  ;;  %473 = vmatprep.subr.mxu0 %v12835_v28 }
  0x20   :  { %361 = vmatpush1.msra.mxu1 %v210_v29  ;;  %474 = vmatpush1.msra.mxu0 %v12846_v30 }
  0x21   :  { %394 = vmatprep.mubr.f32.mxu1 %v17535_v16  ;;  %475 = vmatprep.subr.mxu0 %v12852_v31 }
  0x22   :  { %542 = vmatprep.subr.mxu1 %v12858_v32  ;;  %10027 = vmatmul.mubr.msk.f32.vlgmr.msra.gmra.mxu1 %vm246_vm0, %v206_v14 }
  0x23   :  { %476 = vmatpush1.msra.mxu0 %v12864_v33  ;;  %543 = vmatpush1.msra.mxu1 %v12869_v34 }
  0x24   :  { %477 = vmatprep.subr.mxu0 %v12876_v35  ;;  %544 = vmatprep.subr.mxu1 %v12881_v36 }
  0x25   :  { %478 = vmatpush1.msra.mxu0 %v12888_v37  ;;  %545 = vmatpush1.msra.mxu1 %v12893_v38 }
  0x26   :  { %479 = vmatprep.subr.mxu0 %v12900_v39  ;;  %546 = vmatprep.subr.mxu1 %v12905_v40 }
  0x27   :  { %480 = vmatpush1.msra.mxu0 %v12912_v41  ;;  %547 = vmatpush1.msra.mxu1 %v12917_v42 }
  0x28   :  { %481 = vmatprep.subr.mxu0 %v12924_v43  ;;  %548 = vmatprep.subr.mxu1 %v12929_v44 }
  0x29   :  { %482 = vmatpush1.msra.mxu0 %v12936_v45  ;;  %549 = vmatpush1.msra.mxu1 %v12941_v46 }
  0x2a   :  { %483 = vmatprep.subr.mxu0 %v12948_v47  ;;  %550 = vmatprep.subr.mxu1 %v12953_v48 }
  0x2b   :  { %484 = vmatpush1.msra.mxu0 %v12960_v49  ;;  %551 = vmatpush1.msra.mxu1 %v12965_v50 }
  0x2c   :  { %485 = vmatprep.subr.mxu0 %v12972_v51  ;;  %552 = vmatprep.subr.mxu1 %v12977_v52 }
  0x2d   :  { %486 = vmatpush1.msra.mxu0 %v12984_v53  ;;  %553 = vmatpush1.msra.mxu1 %v12989_v54 }
  0x2e   :  { %26 = vsyncpa [#allocation5], 0  ;;  %487 = vmatprep.subr.mxu0 %v12996_v55  ;;  %554 = vmatprep.subr.mxu1 %v13001_v56  ;;  %v13032_v61 = vld [vmem:[%s17501_s5 + $0xc0] sm:$0xff]  ;;  %v13037_v62 = vld [vmem:[%s17501_s5 + $0x110] sm:$0xff]  ;;  %s17751_s28 = sld [smem:[#allocation41_spill]]  ;;  %vm201_vm2 = vcmask 408576  }
  0x2f   :  { %488 = vmatpush1.msra.mxu0 %v13008_v57  ;;  %555 = vmatpush1.msra.mxu1 %v13013_v58  ;;  %v13044_v63 = vld [vmem:[%s17501_s5 + $0xa8] sm:$0xff]  ;;  %v13049_v0 = vld [vmem:[%s17501_s5 + $0xf8] sm:$0xff]  ;;  %v13056_v1 = vld [vmem:[%s17501_s5 + $0xa0] sm:$0xff]  ;;  %vm4731_vm3 = vcmask 203776   ;;  %vm12630_vm4 = vmmov 0   ;;  %vm5310_vm5 = vcmask 1041408  }
  0x30   :  { %489 = vmatprep.subr.mxu0 %v13020_v59  ;;  %556 = vmatprep.subr.mxu1 %v13025_v60  ;;  %v13061_v2 = vld [vmem:[%s17501_s5 + $0xf0] sm:$0xff]  ;;  %v13068_v3 = vld [vmem:[%s17501_s5 + $0x88] sm:$0xff]  ;;  %v13073_v4 = vld [vmem:[%s17501_s5 + $0xd8] sm:$0xff]  ;;  %vm5047_vm6 = vcmask 64512   ;;  %s12631_s3 = smov 25   ;;  %vm5266_vm7 = vcmask 408776  }
  0x31   :  { %490 = vmatpush1.msra.mxu0 %v13032_v61  ;;  %557 = vmatpush1.msra.mxu1 %v13037_v62  ;;  %v13080_v5 = vld [vmem:[%s17501_s5 + $0x80] sm:$0xff]  ;;  %v13085_v6 = vld [vmem:[%s17501_s5 + $0xd0] sm:$0xff]  ;;  %v13092_v7 = vld [vmem:[%s17501_s5 + $0x68] sm:$0xff]  ;;  %vm5552_vm8 = vcmask 523264   ;;  %s18084_s0 = sld [smem:[#allocation43_spill]]  ;;  %s12632_s21 = smov [#allocation4]  }
  0x32   :  { %491 = vmatprep.subr.mxu0 %v13044_v63  ;;  %558 = vmatprep.subr.mxu1 %v13049_v0  ;;  %17733 = vst [vmem:[#allocation7_spill] sm:$0xff] %v13080_v5  ;;  %17734 = vst [vmem:[#allocation8_spill] sm:$0xff] %v13092_v7  ;;  %v13097_v8 = vld [vmem:[%s17501_s5 + $0xb8] sm:$0xff]  ;;  %v67_v9 = vld [vmem:[%s17732_s30 + $0x10] sm:$0xff]  ;;  %s10006_s24 = sshll.u32 %s12632_s21, 4  ;;  %s10007_s24 = int_to_ptr.vmem [resolvable:$true] %s10006_s24 }
  0x33   :  { %492 = vmatpush1.msra.mxu0 %v13056_v1  ;;  %559 = vmatpush1.msra.mxu1 %v13061_v2  ;;  %v13107_v10 = vld [vmem:[%s17501_s5 + $0x60] sm:$0xff]  ;;  %v13114_v11 = vld [vmem:[%s17501_s5 + $0xb0] sm:$0xff]  ;;  %v68_v12 = vld [vmem:[%s17732_s30 + $0x18] sm:$0xff]  ;;  %s12605_s1 = scalar_lea.vmem %s10007_s24, 256  ;;  %p12610_p1 = scmp.lt.s32.totalorder %s10007_s24, %s10007_s24 }
  0x34   :  { %493 = vmatprep.subr.mxu0 %v13068_v3  ;;  %560 = vmatprep.subr.mxu1 %v13073_v4  ;;  %17735 = vst [vmem:[#allocation9_spill] sm:$0xff] %v13107_v10  ;;  %v13124_v13 = vld [vmem:[%s17501_s5 + $0x48] sm:$0xff]  ;;  %v13129_v14 = vld [vmem:[%s17501_s5 + $0x98] sm:$0xff]  ;;  %v13136_v15 = vld [vmem:[%s17501_s5 + $0x40] sm:$0xff]  ;;  %p12606_p0 = scmp.ne.s32.totalorder %s10007_s24, %s12605_s1  ;;  %p12611_p2 = scmp.lt.s32.totalorder %s12605_s1, %s12605_s1 }
  0x35   :  { %494 = vmatpush1.msra.mxu0 %v13080_v5  ;;  %561 = vmatpush1.msra.mxu1 %v13085_v6  ;;  %17736 = vst [vmem:[#allocation10_spill] sm:$0xff] %v13124_v13  ;;  %17737 = vst [vmem:[#allocation11_spill] sm:$0xff] %v13129_v14  ;;  %v13141_v17 = vld [vmem:[%s17501_s5 + $0x90] sm:$0xff]  ;;  %v13148_v18 = vld [vmem:[%s17501_s5 + $0x28] sm:$0xff] }
  0x36   :  { %495 = vmatprep.subr.mxu0 %v13092_v7  ;;  %562 = vmatprep.subr.mxu1 %v13097_v8  ;;  %17738 = vst [vmem:[#allocation12_spill] sm:$0xff] %v13136_v15  ;;  %17739 = vst [vmem:[#allocation13_spill] sm:$0xff] %v13141_v17  ;;  %v13153_v19 = vld [vmem:[%s17501_s5 + $0x78] sm:$0xff]  ;;  %v13160_v20 = vld [vmem:[%s17501_s5 + $0x20] sm:$0xff]  ;;  %p12612_p3 = por %p12611_p2, %p12610_p1 }
  0x37   :  { %11188 = vmatprep.mubr.msk.f32.mxu0 %vm99_vm1, %v67_v9  ;;  %496 = vmatpush1.msra.mxu0 %v13107_v10  ;;  %17740 = vst [vmem:[#allocation14_spill] sm:$0xff] %v13148_v18  ;;  %17741 = vst [vmem:[#allocation15_spill] sm:$0xff] %v13153_v19  ;;  %v13165_v21 = vld [vmem:[%s17501_s5 + $0x70] sm:$0xff]  ;;  %v13172_v22 = vld [vmem:[%s17501_s5 + $0x8] sm:$0xff] }
  0x38   :  { %563 = vmatpush1.msra.mxu1 %v13114_v11  ;;  %11189 = vmatmul.mubr.msk.f32.gmra.mxu0 %vm99_vm1, %v68_v12  ;;  %17742 = vst [vmem:[#allocation16_spill] sm:$0xff] %v13160_v20  ;;  %17743 = vst [vmem:[#allocation17_spill] sm:$0xff] %v13165_v21  ;;  %v13177_v25 = vld [vmem:[%s17501_s5 + $0x58] sm:$0xff]  ;;  %v13184_v27 = vld [vmem:[%s17501_s5] sm:$0xff]  ;;  %p12613_p4 = pnand %p12612_p3, %p12606_p0 }
  0x39   :  { %497 = vmatprep.subr.mxu0 %v13124_v13  ;;  %564 = vmatprep.subr.mxu1 %v13129_v14  ;;  %17744 = vst [vmem:[#allocation18_spill] sm:$0xff] %v13172_v22  ;;  %17745 = vst [vmem:[#allocation19_spill] sm:$0xff] %v13177_v25  ;;  %v13191_v29 = vld [vmem:[%s17501_s5 + $0x50] sm:$0xff]  ;;  %v13200_v9 = vld [vmem:[%s17501_s5 + $0x38] sm:$0xff] }
  0x3a   :  { %498 = vmatpush1.msra.mxu0 %v13136_v15  ;;  %565 = vmatpush1.msra.mxu1 %v13141_v17  ;;  %17746 = vst [vmem:[#allocation20_spill] sm:$0xff] %v13184_v27  ;;  %17747 = vst [vmem:[#allocation21_spill] sm:$0xff] %v13191_v29  ;;  %v13207_v12 = vld [vmem:[%s17501_s5 + $0x30] sm:$0xff] }
  0x3b   :  { %499 = vmatprep.subr.mxu0 %v13148_v18  ;;  %566 = vmatprep.subr.mxu1 %v13153_v19  ;;  %17748 = vst [vmem:[#allocation22_spill] sm:$0xff] %v13200_v9  ;;  %17749 = vst [vmem:[#allocation23_spill] sm:$0xff] %v13207_v12  ;;  %v77_v18 = vld [vmem:[%s17751_s28 + $0x10] sm:$0xff] }
  0x3c   :  { %500 = vmatpush1.msra.mxu0 %v13160_v20  ;;  %567 = vmatpush1.msra.mxu1 %v13165_v21  ;;  %v13224_v20 = vld [vmem:[%s17501_s5 + $0x10] sm:$0xff] }
  0x3d   :  { %501 = vmatprep.subr.mxu0 %v13172_v22  ;;  %568 = vmatprep.subr.mxu1 %v13177_v25  ;;  %v75_v22 = vld [vmem:[%s17751_s28] sm:$0xff]  ;;  %17752 = vst [vmem:[#allocation25_spill] sm:$0xff] %v13224_v20 }
  0x3e   :  { %400 = vmatprep.mubr.f32.mxu1 %v17535_v16  ;;  %502 = vmatpush1.msra.mxu0 %v13184_v27  ;;  %v13215_v27 = vld [vmem:[%s17501_s5 + $0x18] sm:$0xff] }
  0x3f   :  { %535 = vmatprep.mubr.f32.mxu0 %v17535_v16  ;;  %569 = vmatpush1.msra.mxu1 %v13191_v29  ;;  %17750 = vst [vmem:[#allocation24_spill] sm:$0xff] %v13215_v27 }
  0x40   :  { %10028 = vmatmul.mubr.msk.f32.gmra.mxu1 %vm246_vm0, %v12817_v24  ;;  %536 = vmatmul.mubr.f32.vlgmr.msra.gmra.mxu0 %v17535_v16  ;;  %v12628_v24 = vmov 0  }
  0x41   :  { %570 = vmatprep.subr.mxu1 %v13200_v9  ;;  %606 = vmatprep.mubr.f32.mxu1 %v17535_v16  ;;  %v76_v9 = vld [vmem:[%s17751_s28 + $0x8] sm:$0xff] }
  0x42   :  { %571 = vmatpush1.msra.mxu1 %v13207_v12  ;;  %12246 = vset.pattern.permute.xlu0 %v12628_v24  ;;  %v78_v12 = vld [vmem:[%s17751_s28 + $0x18] sm:$0xff] }
  0x43   :  { %572 = vmatprep.subr.mxu1 %v13215_v27  ;;  %81 = vperm.xlu0 %12246, %v75_v22   ;;  %v17754_v22 = vld [vmem:[#allocation22_spill] sm:$0xff] }
  0x44   :  { %573 = vmatpush1.msra.mxu1 %v13224_v20  ;;  %12247 = vset.pattern.permute.xlu1 %v12628_v24  ;;  %v17757_v24 = vld [vmem:[#allocation18_spill] sm:$0xff] }
  0x45   :  { %607 = vmatmul.mubr.f32.vlgmr.msra.gmra.mxu1 %v17535_v16  ;;  %91 = vperm.xlu1 %12247, %v77_v18   ;;  %v17753_v18 = vld [vmem:[#allocation14_spill] sm:$0xff]  ;;  %v17758_v16 = vld [vmem:[#allocation20_spill] sm:$0xff] }
  0x46   :  { %706 = vmatprep.subr.mxu0 %v12812_v23  ;;  %777 = vmatprep.subr.mxu1 %v12858_v32 }
  0x47   :  { %86 = vperm.xlu0 %12246, %v76_v9   ;;  %707 = vmatpush1.msra.mxu0 %v12826_v26  ;;  %v17755_v9 = vld [vmem:[#allocation16_spill] sm:$0xff] }
  0x48   :  { %778 = vmatpush1.msra.mxu1 %v12869_v34  ;;  %708 = vmatprep.subr.mxu0 %v12835_v28 }
  0x49   :  { %96 = vperm.xlu1 %12247, %v78_v12   ;;  %779 = vmatprep.subr.mxu1 %v12881_v36  ;;  %v17756_v12 = vld [vmem:[#allocation23_spill] sm:$0xff] }
  0x4a   :  { %709 = vmatpush1.msra.mxu0 %v12846_v30  ;;  %780 = vmatpush1.msra.mxu1 %v12893_v38 }
  0x4b   :  { %710 = vmatprep.subr.mxu0 %v12852_v31  ;;  %781 = vmatprep.subr.mxu1 %v12905_v40 }
  0x4c   :  { %711 = vmatpush1.msra.mxu0 %v12864_v33  ;;  %782 = vmatpush1.msra.mxu1 %v12917_v42 }
  0x4d   :  { %712 = vmatprep.subr.mxu0 %v12876_v35  ;;  %783 = vmatprep.subr.mxu1 %v12929_v44 }
  0x4e   :  { %713 = vmatpush1.msra.mxu0 %v12888_v37  ;;  %784 = vmatpush1.msra.mxu1 %v12941_v46 }
  0x4f   :  { %714 = vmatprep.subr.mxu0 %v12900_v39  ;;  %785 = vmatprep.subr.mxu1 %v12953_v48 }
  0x50   :  { %715 = vmatpush1.msra.mxu0 %v12912_v41  ;;  %786 = vmatpush1.msra.mxu1 %v12965_v50 }
  0x51   :  { %716 = vmatprep.subr.mxu0 %v12924_v43  ;;  %787 = vmatprep.subr.mxu1 %v12977_v52 }
  0x52   :  { %717 = vmatpush1.msra.mxu0 %v12936_v45  ;;  %788 = vmatpush1.msra.mxu1 %v12989_v54 }
  0x53   :  { %718 = vmatprep.subr.mxu0 %v12948_v47  ;;  %789 = vmatprep.subr.mxu1 %v13001_v56 }
  0x54   :  { %719 = vmatpush1.msra.mxu0 %v12960_v49  ;;  %790 = vmatpush1.msra.mxu1 %v13013_v58 }
  0x55   :  { %720 = vmatprep.subr.mxu0 %v12972_v51  ;;  %791 = vmatprep.subr.mxu1 %v13025_v60 }
  0x56   :  { %721 = vmatpush1.msra.mxu0 %v12984_v53  ;;  %792 = vmatpush1.msra.mxu1 %v13037_v62 }
  0x57   :  { %722 = vmatprep.subr.mxu0 %v12996_v55  ;;  %793 = vmatprep.subr.mxu1 %v13049_v0 }
  0x58   :  { %723 = vmatpush1.msra.mxu0 %v13008_v57  ;;  %794 = vmatpush1.msra.mxu1 %v13061_v2 }
  0x59   :  { %724 = vmatprep.subr.mxu0 %v13020_v59  ;;  %795 = vmatprep.subr.mxu1 %v13073_v4 }
  0x5a   :  { %725 = vmatpush1.msra.mxu0 %v13032_v61  ;;  %796 = vmatpush1.msra.mxu1 %v13085_v6 }
  0x5b   :  { %726 = vmatprep.subr.mxu0 %v13044_v63  ;;  %797 = vmatprep.subr.mxu1 %v13097_v8 }
  0x5c   :  { %727 = vmatpush1.msra.mxu0 %v13056_v1  ;;  %798 = vmatpush1.msra.mxu1 %v13114_v11 }
  0x5d   :  { %728 = vmatprep.subr.mxu0 %v13068_v3  ;;  %799 = vmatprep.subr.mxu1 %v13129_v14 }
  0x5e   :  { %729 = vmatpush1.msra.mxu0 %v13080_v5  ;;  %800 = vmatpush1.msra.mxu1 %v13141_v17 }
  0x5f   :  { %730 = vmatprep.subr.mxu0 %v13092_v7  ;;  %801 = vmatprep.subr.mxu1 %v13153_v19 }
  0x60   :  { %731 = vmatpush1.msra.mxu0 %v13107_v10  ;;  %802 = vmatpush1.msra.mxu1 %v13165_v21 }
  0x61   :  { %732 = vmatprep.subr.mxu0 %v13124_v13  ;;  %803 = vmatprep.subr.mxu1 %v13177_v25  ;;  %v17759_v13 = vmov 0.0  }
  0x62   :  { %733 = vmatpush1.msra.mxu0 %v13136_v15  ;;  %804 = vmatpush1.msra.mxu1 %v13191_v29 }
  0x63   :  { %734 = vmatprep.subr.mxu0 %v17753_v18  ;;  %805 = vmatprep.subr.mxu1 %v17754_v22  ;;  %v226_v22 = vlaneseq }
  0x64   :  { %735 = vmatpush1.msra.mxu0 %v17755_v9  ;;  %806 = vmatpush1.msra.mxu1 %v17756_v12 }
  0x65   :  { %736 = vmatprep.subr.mxu0 %v17757_v24  ;;  %807 = vmatprep.subr.mxu1 %v13215_v27  ;;  %v13308_v18 = vshrl.u32 %v226_v22, 7 }
  0x66   :  { %737 = vmatpush1.msra.mxu0 %v17758_v16  ;;  %770 = vmatprep.mubr.f32.mxu0 %v17759_v13  ;;  %v224_v16 = vld [vmem:[%s17502_s6] sm:$0xf]  ;;  %s12629_s6 = smov 103  }
  0x67   :  { %808 = vmatpush1.msra.mxu1 %v13224_v20  ;;  %841 = vmatprep.mubr.f32.mxu1 %v17759_v13  ;;  %17760 = vst [vmem:[#allocation26_spill] sm:$0xff] %v13308_v18  ;;  %v17547_v24 = vsub.s32 0, %v13308_v18 }
  0x68   :  { %959 = vmatprep.subr.mxu0 %v12812_v23  ;;  %1030 = vmatprep.subr.mxu1 %v12858_v32 }
  0x69   :  { %v229_v23 = vrot.slane %v224_v16, %v17547_v24 }
  0xbe   :  { %v82_v9 = vpop.permute.xlu0 %81 }
  0xc2   :  { %v87_v27 = vpop.permute.xlu0 %86 }
  0xd8   :  { %v319_v12 = vpop.f32.mrf.mxu1 }
  0xda   :  { %v321_v29 = vpop.f32.mrf.mxu1 }
  0xdb   :  { %v11187_v20 = vpop.f32.mrf.mxu0 }
  0xdc   :  { %v184_v15 = vadd.f32 %v11187_v20, %v87_v27  ;;  %v92_v27 = vpop.permute.xlu1 %91 }
  0xdd   :  { %v178_v32 = vpop.f32.mrf.mxu0  ;;  %v325_v13 = vpop.f32.mrf.mxu1 }
  0xde   :  { %v198_v25 = vmax.f32 %v184_v15, 0.0  ;;  %v179_v22 = vadd.f32 %v178_v32, %v82_v9  ;;  %v13316_v21 = vadd.f32 %v325_v13, %v229_v23  ;;  %v17552_v13 = vsub.s32 1, %v13308_v18 }
  0xdf   :  { %v13322_v24 = vpop.f32.mrf.mxu1 }
  0xe0   :  { %17761 = vst [vmem:[#allocation27_spill] sm:$0xff] %v13316_v21  ;;  %203 = vst.msk [vmem:[#allocation3 + $0x8] sm:$0xff] %vm201_vm2, %v198_v25  ;;  %v197_v10 = vmax.f32 %v179_v22, 0.0  ;;  %v97_v7 = vpop.permute.xlu1 %96  ;;  %v17553_v22 = vsub.s32 2, %v13308_v18 }
  0xe1   :  { %17762 = vst [vmem:[#allocation28_spill] sm:$0xff] %v13322_v24  ;;  %v13331_v24 = vadd.f32 %v319_v12, %v229_v23 }
  0xe2   :  { %202 = vst.msk [vmem:[#allocation3] sm:$0xff] %vm201_vm2, %v197_v10  ;;  %v396_v32 = vpop.f32.mrf.mxu1  ;;  %v237_v5 = vrot.slane %v224_v16, %v17553_v22 }
  0xe4   :  { %v398_v17 = vpop.f32.mrf.mxu1 }
  0xe7   :  { %v4728_v19 = vld [vmem:[#allocation3 + $0x8] sm:$0xff] }
  0xe8   :  { %4905 = vrot.lane.b32.xlu1 %v4728_v19, %s12629_s6  ;;  %v13328_v19 = vrot.slane %v224_v16, %v17552_v13 }
  0xe9   :  { %v4727_v20 = vld [vmem:[#allocation3] sm:$0xff] }
  0xea   :  { %4903 = vrot.lane.b32.xlu0 %v4727_v20, %s12629_s6  ;;  %17763 = vst [vmem:[#allocation29_spill] sm:$0xff] %v13328_v19 }
  0xf8   :  { %v11190_v15 = vpop.f32.mrf.mxu0 }
  0xf9   :  { %v194_v9 = vadd.f32 %v11190_v15, %v97_v7 }
  0xfa   :  { %v188_v25 = vpop.f32.mrf.mxu0 }
  0xfb   :  { %v200_v10 = vmax.f32 %v194_v9, 0.0  ;;  %v189_v21 = vadd.f32 %v188_v25, %v92_v27  ;;  %v13337_v9 = vadd.f32 %v321_v29, %v13328_v19 }
  0xfd   :  { %205 = vst.msk [vmem:[#allocation3 + $0x18] sm:$0xff] %vm201_vm2, %v200_v10  ;;  %v199_v20 = vmax.f32 %v189_v21, 0.0  ;;  %v17558_v10 = vsub.s32 3, %v13308_v18 }
  0xff   :  { %204 = vst.msk [vmem:[#allocation3 + $0x10] sm:$0xff] %vm201_vm2, %v199_v20  ;;  %v13349_v29 = vrot.slane %v224_v16, %v17558_v10 }
 0x100   :  { %v402_v7 = vpop.f32.mrf.mxu1  ;;  %v537_v15 = vpop.f32.mrf.mxu0 }
 0x101   :  { %v13339_v27 = vadd.f32 %v402_v7, %v237_v5  ;;  %v613_v25 = vadd.f32 %v537_v15, %v13331_v24  ;;  %17766 = vst [vmem:[#allocation32_spill] sm:$0xff] %v13349_v29 }
 0x102   :  { %v13343_v21 = vpop.f32.mrf.mxu1  ;;  %v539_v12 = vpop.f32.mrf.mxu0 }
 0x103   :  { %17764 = vst [vmem:[#allocation30_spill] sm:$0xff] %v13339_v27  ;;  %17765 = vst [vmem:[#allocation31_spill] sm:$0xff] %v13343_v21  ;;  %v10029_v23 = vmul.f32 -1.442695, %v613_v25  ;;  %v614_v13 = vadd.f32 %v539_v12, %v13337_v9  ;;  %v13353_v27 = vadd.f32 %v398_v17, %v13349_v29  ;;  %v13356_v12 = vadd.f32 %v396_v32, %v237_v5 }
 0x104   :  { %v4730_v22 = vld [vmem:[#allocation3 + $0x18] sm:$0xff] }
 0x105   :  { %12248 = vpow2.f32 %v10029_v23  ;;  %v10030_v20 = vmul.f32 -1.442695, %v614_v13  ;;  %v608_v14 = vpop.f32.mrf.mxu1  ;;  %4909 = vrot.lane.b32.xlu1 %v4730_v22, %s12629_s6 }
 0x106   :  { %v4729_v7 = vld [vmem:[#allocation3 + $0x10] sm:$0xff]  ;;  %v615_v22 = vadd.f32 %v608_v14, %v13356_v12 }
 0x107   :  { %12250 = vpow2.f32 %v10030_v20  ;;  %4907 = vrot.lane.b32.xlu0 %v4729_v7, %s12629_s6  ;;  %v610_v15 = vpop.f32.mrf.mxu1 }
 0x108   :  { %v616_v25 = vadd.f32 %v610_v15, %v13353_v27 }
 0x10a   :  { %v10031_v13 = vmul.f32 -1.442695, %v616_v25 }
 0x10c   :  { %12252 = vpow2.f32 %v10031_v13 }
 0x112   :  { %v12249_v23 = vpop.eup %12248 }
 0x113   :  { %v620_v21 = vadd.f32 1.0, %v12249_v23 }
 0x114   :  { %v12251_v18 = vpop.eup %12250 }
 0x115   :  { %12254 = vrcp.f32 %v620_v21  ;;  %v626_v16 = vadd.f32 1.0, %v12251_v18 }
 0x116   :  { %12256 = vtanh.f32 %v615_v22 }
 0x117   :  { %12258 = vrcp.f32 %v626_v16 }
 0x119   :  { %v12253_v20 = vpop.eup %12252 }
 0x11a   :  { %v633_v29 = vadd.f32 1.0, %v12253_v20  ;;  %v13439_v20 = vld [vmem:[%s17501_s5 + $0x1e8] sm:$0xff] }
 0x11c   :  { %12260 = vrcp.f32 %v633_v29 }
 0x122   :  { %v12255_v7 = vpop.eup %12254 }
 0x123   :  { %v12257_v10 = vpop.eup %12256 }
 0x124   :  { %v12259_v17 = vpop.eup %12258  ;;  %v637_v15 = vmul.f32 %v12257_v10, %v12255_v7  ;;  %v13444_v7 = vld [vmem:[%s17501_s5 + $0x1f8] sm:$0xff] }
 0x125   :  { %v636_v19 = vmul.f32 0.0, %v12259_v17  ;;  %v13451_v17 = vld [vmem:[%s17501_s5 + $0x1e0] sm:$0xff] }
 0x127   :  { %v13359_v5 = vadd.f32 %v637_v15, %v636_v19  ;;  %v13456_v15 = vld [vmem:[%s17501_s5 + $0x1f0] sm:$0xff] }
 0x129   :  { %12262 = vtanh.f32 %v13359_v5  ;;  %v12261_v14 = vpop.eup %12260 }
 0x136   :  { %v12263_v32 = vpop.eup %12262 }
 0x137   :  { %v640_v25 = vmul.f32 %v12263_v32, %v12261_v14  ;;  %v13468_v14 = vld [vmem:[%s17501_s5 + $0x1d8] sm:$0xff]  ;;  %v13475_v32 = vld [vmem:[%s17501_s5 + $0x1c0] sm:$0xff] }
 0x139   :  { %641 = vst [vmem:[#allocation2] sm:$0x3] %v640_v25  ;;  %771 = vmatmul.mubr.f32.vlgmr.msra.gmra.mxu0 %v640_v25  ;;  %842 = vmatmul.mubr.f32.vlgmr.msra.gmra.mxu1 %v640_v25  ;;  %v13480_v25 = vld [vmem:[%s17501_s5 + $0x1d0] sm:$0xff] }
 0x13a   :  { %960 = vmatpush1.msra.mxu0 %v12826_v26  ;;  %1031 = vmatpush1.msra.mxu1 %v12869_v34  ;;  %v17767_v26 = vld [vmem:[#allocation11_spill] sm:$0xff]  ;;  %v17772_v34 = vld [vmem:[#allocation9_spill] sm:$0xff] }
 0x13b   :  { %961 = vmatprep.subr.mxu0 %v12835_v28  ;;  %1032 = vmatprep.subr.mxu1 %v12881_v36  ;;  %v17768_v28 = vld [vmem:[#allocation7_spill] sm:$0xff]  ;;  %v17774_v36 = vld [vmem:[#allocation10_spill] sm:$0xff]  ;;  %17787 = vst [vmem:[#allocation11_spill] sm:$0xff] %v13439_v20 }
 0x13c   :  { %962 = vmatpush1.msra.mxu0 %v12846_v30  ;;  %1033 = vmatpush1.msra.mxu1 %v12893_v38  ;;  %v17769_v30 = vld [vmem:[#allocation13_spill] sm:$0xff]  ;;  %v17776_v38 = vld [vmem:[#allocation12_spill] sm:$0xff]  ;;  %17788 = vst [vmem:[#allocation7_spill] sm:$0xff] %v13444_v7 }
 0x13d   :  { %963 = vmatprep.subr.mxu0 %v12852_v31  ;;  %1034 = vmatprep.subr.mxu1 %v12905_v40  ;;  %v17770_v31 = vld [vmem:[#allocation8_spill] sm:$0xff]  ;;  %v17778_v40 = vld [vmem:[#allocation14_spill] sm:$0xff] }
 0x13e   :  { %964 = vmatpush1.msra.mxu0 %v12864_v33  ;;  %1035 = vmatpush1.msra.mxu1 %v12917_v42  ;;  %v17771_v33 = vld [vmem:[#allocation15_spill] sm:$0xff]  ;;  %v17780_v42 = vld [vmem:[#allocation16_spill] sm:$0xff] }
 0x13f   :  { %965 = vmatprep.subr.mxu0 %v12876_v35  ;;  %1036 = vmatprep.subr.mxu1 %v12929_v44  ;;  %v17773_v35 = vld [vmem:[#allocation17_spill] sm:$0xff]  ;;  %v17782_v44 = vld [vmem:[#allocation18_spill] sm:$0xff] }
 0x140   :  { %966 = vmatpush1.msra.mxu0 %v12888_v37  ;;  %1037 = vmatpush1.msra.mxu1 %v12941_v46  ;;  %v17775_v37 = vld [vmem:[#allocation19_spill] sm:$0xff]  ;;  %v17784_v46 = vld [vmem:[#allocation20_spill] sm:$0xff] }
 0x141   :  { %967 = vmatprep.subr.mxu0 %v12900_v39  ;;  %1038 = vmatprep.subr.mxu1 %v12953_v48  ;;  %v17777_v39 = vld [vmem:[#allocation21_spill] sm:$0xff] }
 0x142   :  { %968 = vmatpush1.msra.mxu0 %v12912_v41  ;;  %1039 = vmatpush1.msra.mxu1 %v12965_v50  ;;  %v17779_v41 = vld [vmem:[#allocation22_spill] sm:$0xff]  ;;  %v17786_v48 = vld [vmem:[#allocation25_spill] sm:$0xff] }
 0x143   :  { %969 = vmatprep.subr.mxu0 %v12924_v43  ;;  %1040 = vmatprep.subr.mxu1 %v12977_v52  ;;  %v17781_v43 = vld [vmem:[#allocation23_spill] sm:$0xff] }
 0x144   :  { %970 = vmatpush1.msra.mxu0 %v12936_v45  ;;  %1041 = vmatpush1.msra.mxu1 %v12989_v54  ;;  %v17783_v45 = vld [vmem:[#allocation24_spill] sm:$0xff] }
 0x145   :  { %971 = vmatprep.subr.mxu0 %v12948_v47  ;;  %1042 = vmatprep.subr.mxu1 %v13001_v56  ;;  %v17785_v47 = vmov 0.0  }
 0x146   :  { %972 = vmatpush1.msra.mxu0 %v12960_v49  ;;  %1043 = vmatpush1.msra.mxu1 %v13013_v58 }
 0x147   :  { %973 = vmatprep.subr.mxu0 %v12972_v51  ;;  %1044 = vmatprep.subr.mxu1 %v13025_v60 }
 0x148   :  { %974 = vmatpush1.msra.mxu0 %v12984_v53  ;;  %1045 = vmatpush1.msra.mxu1 %v13037_v62 }
 0x149   :  { %975 = vmatprep.subr.mxu0 %v12996_v55  ;;  %1046 = vmatprep.subr.mxu1 %v13049_v0 }
 0x14a   :  { %976 = vmatpush1.msra.mxu0 %v13008_v57  ;;  %1047 = vmatpush1.msra.mxu1 %v13061_v2 }
 0x14b   :  { %977 = vmatprep.subr.mxu0 %v13020_v59  ;;  %1048 = vmatprep.subr.mxu1 %v13073_v4 }
 0x14c   :  { %978 = vmatpush1.msra.mxu0 %v13032_v61  ;;  %1049 = vmatpush1.msra.mxu1 %v13085_v6 }
 0x14d   :  { %979 = vmatprep.subr.mxu0 %v13044_v63  ;;  %1050 = vmatprep.subr.mxu1 %v13097_v8 }
 0x14e   :  { %980 = vmatpush1.msra.mxu0 %v13056_v1  ;;  %1051 = vmatpush1.msra.mxu1 %v13114_v11  ;;  %v884_v11 = vrot.slane %v13359_v5, 6  ;;  %v13463_v5 = vld [vmem:[%s17501_s5 + $0x1c8] sm:$0xff] }
 0x14f   :  { %981 = vmatprep.subr.mxu0 %v13068_v3  ;;  %1052 = vmatprep.subr.mxu1 %v17767_v26  ;;  %v13487_v26 = vld [vmem:[%s17501_s5 + $0x1a8] sm:$0xff] }
 0x150   :  { %982 = vmatpush1.msra.mxu0 %v17768_v28  ;;  %1053 = vmatpush1.msra.mxu1 %v17769_v30  ;;  %v13492_v28 = vld [vmem:[%s17501_s5 + $0x1b8] sm:$0xff]  ;;  %v13499_v30 = vld [vmem:[%s17501_s5 + $0x1a0] sm:$0xff] }
 0x151   :  { %983 = vmatprep.subr.mxu0 %v17770_v31  ;;  %1054 = vmatprep.subr.mxu1 %v17771_v33  ;;  %v13504_v31 = vld [vmem:[%s17501_s5 + $0x1b0] sm:$0xff]  ;;  %v13511_v33 = vld [vmem:[%s17501_s5 + $0x188] sm:$0xff] }
 0x152   :  { %984 = vmatpush1.msra.mxu0 %v17772_v34  ;;  %1055 = vmatpush1.msra.mxu1 %v17773_v35  ;;  %v13516_v34 = vld [vmem:[%s17501_s5 + $0x198] sm:$0xff]  ;;  %v13523_v35 = vld [vmem:[%s17501_s5 + $0x180] sm:$0xff] }
 0x153   :  { %985 = vmatprep.subr.mxu0 %v17774_v36  ;;  %1056 = vmatprep.subr.mxu1 %v17775_v37  ;;  %v13528_v36 = vld [vmem:[%s17501_s5 + $0x190] sm:$0xff]  ;;  %v13535_v37 = vld [vmem:[%s17501_s5 + $0x168] sm:$0xff] }
 0x154   :  { %986 = vmatpush1.msra.mxu0 %v17776_v38  ;;  %1057 = vmatpush1.msra.mxu1 %v17777_v39  ;;  %v13540_v38 = vld [vmem:[%s17501_s5 + $0x178] sm:$0xff]  ;;  %v13547_v39 = vld [vmem:[%s17501_s5 + $0x160] sm:$0xff] }
 0x155   :  { %987 = vmatprep.subr.mxu0 %v17778_v40  ;;  %1058 = vmatprep.subr.mxu1 %v17779_v41  ;;  %v13552_v40 = vld [vmem:[%s17501_s5 + $0x170] sm:$0xff]  ;;  %v13559_v41 = vld [vmem:[%s17501_s5 + $0x148] sm:$0xff] }
 0x156   :  { %988 = vmatpush1.msra.mxu0 %v17780_v42  ;;  %1059 = vmatpush1.msra.mxu1 %v17781_v43  ;;  %v13564_v42 = vld [vmem:[%s17501_s5 + $0x158] sm:$0xff]  ;;  %v13571_v43 = vld [vmem:[%s17501_s5 + $0x140] sm:$0xff] }
 0x157   :  { %989 = vmatprep.subr.mxu0 %v17782_v44  ;;  %1060 = vmatprep.subr.mxu1 %v17783_v45  ;;  %v13576_v44 = vld [vmem:[%s17501_s5 + $0x150] sm:$0xff]  ;;  %v13583_v45 = vld [vmem:[%s17501_s5 + $0x128] sm:$0xff] }
 0x158   :  { %990 = vmatpush1.msra.mxu0 %v17784_v46  ;;  %1023 = vmatprep.mubr.f32.mxu0 %v17785_v47  ;;  %v13588_v46 = vld [vmem:[%s17501_s5 + $0x138] sm:$0xff] }
 0x159   :  { %1061 = vmatpush1.msra.mxu1 %v17786_v48  ;;  %1094 = vmatprep.mubr.f32.mxu1 %v17785_v47  ;;  %v13593_v48 = vld [vmem:[%s17501_s5 + $0x120] sm:$0xff] }
 0x15a   :  { %1212 = vmatprep.subr.mxu0 %v13439_v20  ;;  %1283 = vmatprep.subr.mxu1 %v13444_v7 }
 0x1f9   :  { %v772_v49 = vpop.f32.mrf.mxu0  ;;  %v843_v53 = vpop.f32.mrf.mxu1 }
 0x1fa   :  { %v852_v50 = vrot.slane %v772_v49, 6  ;;  %v854_v61 = vrot.slane %v843_v53, 6  ;;  %v13600_v49 = vld [vmem:[%s17501_s5 + $0x130] sm:$0xff] }
 0x1fb   :  { %v774_v51 = vpop.f32.mrf.mxu0  ;;  %v845_v58 = vpop.f32.mrf.mxu1  ;;  %v13622_v53 = vld [vmem:[%s17501_s5 + $0x110] sm:$0xff] }
 0x1fc   :  { %v860_v52 = vadd.f32 %v852_v50, %v13331_v24  ;;  %v853_v54 = vrot.slane %v774_v51, 6  ;;  %v855_v59 = vrot.slane %v845_v58, 6  ;;  %v862_v0 = vadd.f32 %v854_v61, %v13356_v12  ;;  %v13605_v50 = vld [vmem:[%s17501_s5 + $0x108] sm:$0xff]  ;;  %v13610_v51 = vld [vmem:[%s17501_s5 + $0x118] sm:$0xff]  ;;  %v13668_v61 = vld [vmem:[%s17501_s5 + $0xd0] sm:$0xff] }
 0x1fd   :  { %v13651_v58 = vld [vmem:[%s17501_s5 + $0xc8] sm:$0xff] }
 0x1fe   :  { %v10032_v55 = vmul.f32 -1.442695, %v860_v52  ;;  %v861_v56 = vadd.f32 %v853_v54, %v13337_v9  ;;  %v863_v60 = vadd.f32 %v855_v59, %v13353_v27  ;;  %v13617_v52 = vld [vmem:[%s17501_s5 + $0x100] sm:$0xff]  ;;  %v13627_v54 = vld [vmem:[%s17501_s5 + $0xe8] sm:$0xff]  ;;  %v13656_v59 = vld [vmem:[%s17501_s5 + $0xd8] sm:$0xff] }
 0x200   :  { %12264 = vpow2.f32 %v10032_v55  ;;  %v10033_v57 = vmul.f32 -1.442695, %v861_v56  ;;  %v10034_v62 = vmul.f32 -1.442695, %v863_v60  ;;  %v13634_v55 = vld [vmem:[%s17501_s5 + $0xf8] sm:$0xff]  ;;  %v13639_v56 = vld [vmem:[%s17501_s5 + $0xe0] sm:$0xff] }
 0x201   :  { %v13663_v60 = vld [vmem:[%s17501_s5 + $0xc0] sm:$0xff] }
 0x202   :  { %12266 = vpow2.f32 %v10033_v57  ;;  %v13644_v57 = vld [vmem:[%s17501_s5 + $0xf0] sm:$0xff] }
 0x203   :  { %12268 = vpow2.f32 %v10034_v62  ;;  %v13675_v62 = vld [vmem:[%s17501_s5 + $0xa8] sm:$0xff] }
 0x20d   :  { %v12265_v63 = vpop.eup %12264 }
 0x20e   :  { %v867_v1 = vadd.f32 1.0, %v12265_v63  ;;  %v13680_v63 = vld [vmem:[%s17501_s5 + $0xb8] sm:$0xff] }
 0x20f   :  { %v12267_v2 = vpop.eup %12266 }
 0x210   :  { %12270 = vrcp.f32 %v867_v1  ;;  %v873_v3 = vadd.f32 1.0, %v12267_v2  ;;  %v12269_v4 = vpop.eup %12268  ;;  %v13692_v1 = vld [vmem:[%s17501_s5 + $0xb0] sm:$0xff]  ;;  %v13699_v2 = vld [vmem:[%s17501_s5 + $0x88] sm:$0xff] }
 0x211   :  { %12272 = vtanh.f32 %v862_v0  ;;  %v880_v19 = vadd.f32 1.0, %v12269_v4  ;;  %v13687_v0 = vld [vmem:[%s17501_s5 + $0xa0] sm:$0xff]  ;;  %17789 = vst [vmem:[#allocation13_spill] sm:$0xff] %v13699_v2 }
 0x212   :  { %12274 = vrcp.f32 %v873_v3  ;;  %v13704_v3 = vld [vmem:[%s17501_s5 + $0x98] sm:$0xff]  ;;  %v13711_v4 = vld [vmem:[%s17501_s5 + $0x80] sm:$0xff] }
 0x213   :  { %12276 = vrcp.f32 %v880_v19  ;;  %17790 = vst [vmem:[#allocation8_spill] sm:$0xff] %v13704_v3  ;;  %17791 = vst [vmem:[#allocation15_spill] sm:$0xff] %v13711_v4  ;;  %v13740_v19 = vld [vmem:[%s17501_s5 + $0x70] sm:$0xff] }
 0x214   :  { %17796 = vst [vmem:[#allocation12_spill] sm:$0xff] %v13740_v19 }
 0x21d   :  { %v12271_v6 = vpop.eup %12270 }
 0x21e   :  { %v12273_v8 = vpop.eup %12272 }
 0x21f   :  { %v12275_v18 = vpop.eup %12274  ;;  %v887_v10 = vmul.f32 %v12273_v8, %v12271_v6  ;;  %v13716_v6 = vld [vmem:[%s17501_s5 + $0x90] sm:$0xff]  ;;  %v13723_v8 = vld [vmem:[%s17501_s5 + $0x68] sm:$0xff] }
 0x220   :  { %v886_v21 = vmul.f32 %v12275_v18, %v884_v11  ;;  %v12277_v13 = vpop.eup %12276  ;;  %17792 = vst [vmem:[#allocation9_spill] sm:$0xff] %v13716_v6  ;;  %17793 = vst [vmem:[#allocation17_spill] sm:$0xff] %v13723_v8  ;;  %v13728_v11 = vld [vmem:[%s17501_s5 + $0x78] sm:$0xff]  ;;  %v13735_v18 = vld [vmem:[%s17501_s5 + $0x60] sm:$0xff] }
 0x221   :  { %17794 = vst [vmem:[#allocation10_spill] sm:$0xff] %v13728_v11  ;;  %17795 = vst [vmem:[#allocation19_spill] sm:$0xff] %v13735_v18 }
 0x222   :  { %v13431_v29 = vadd.f32 %v887_v10, %v886_v21  ;;  %v13747_v10 = vld [vmem:[%s17501_s5 + $0x48] sm:$0xff]  ;;  %v13752_v21 = vld [vmem:[%s17501_s5 + $0x58] sm:$0xff] }
 0x223   :  { %17797 = vst [vmem:[#allocation21_spill] sm:$0xff] %v13747_v10  ;;  %17798 = vst [vmem:[#allocation14_spill] sm:$0xff] %v13752_v21 }
 0x224   :  { %12278 = vtanh.f32 %v13431_v29 }
 0x231   :  { %v12279_v23 = vpop.eup %12278 }
 0x232   :  { %v890_v22 = vmul.f32 %v12279_v23, %v12277_v13  ;;  %v13759_v13 = vld [vmem:[%s17501_s5 + $0x40] sm:$0xff]  ;;  %v13764_v23 = vld [vmem:[%s17501_s5 + $0x50] sm:$0xff] }
 0x233   :  { %17799 = vst [vmem:[#allocation22_spill] sm:$0xff] %v13759_v13  ;;  %17800 = vst [vmem:[#allocation16_spill] sm:$0xff] %v13764_v23 }
 0x234   :  { %891 = vst [vmem:[#allocation2] sm:$0xc] %v890_v22  ;;  %v957_v16 = vrot.slane %v890_v22, 2  ;;  %v13771_v22 = vld [vmem:[%s17501_s5 + $0x28] sm:$0xff] }
 0x235   :  { %17801 = vst [vmem:[#allocation23_spill] sm:$0xff] %v13771_v22 }
 0x236   :  { %1024 = vmatmul.mubr.f32.vlgmr.msra.gmra.mxu0 %v957_v16  ;;  %1095 = vmatmul.mubr.f32.vlgmr.msra.gmra.mxu1 %v957_v16  ;;  %v13776_v16 = vld [vmem:[%s17501_s5 + $0x38] sm:$0xff] }
 0x237   :  { %1276 = vmatprep.mubr.f32.mxu0 %v17785_v47  ;;  %1347 = vmatprep.mubr.f32.mxu1 %v17785_v47  ;;  %17802 = vst [vmem:[#allocation18_spill] sm:$0xff] %v13776_v16  ;;  %v13783_v47 = vld [vmem:[%s17501_s5 + $0x20] sm:$0xff] }
 0x238   :  { %1213 = vmatpush1.msra.mxu0 %v13451_v17  ;;  %1284 = vmatpush1.msra.mxu1 %v13456_v15  ;;  %17803 = vst [vmem:[#allocation24_spill] sm:$0xff] %v13783_v47 }
 0x239   :  { %1214 = vmatprep.subr.mxu0 %v13463_v5  ;;  %1285 = vmatprep.subr.mxu1 %v13468_v14 }
 0x23a   :  { %1215 = vmatpush1.msra.mxu0 %v13475_v32  ;;  %1286 = vmatpush1.msra.mxu1 %v13480_v25 }
 0x23b   :  { %1216 = vmatprep.subr.mxu0 %v13487_v26  ;;  %1287 = vmatprep.subr.mxu1 %v13492_v28 }
 0x23c   :  { %1217 = vmatpush1.msra.mxu0 %v13499_v30  ;;  %1288 = vmatpush1.msra.mxu1 %v13504_v31 }
 0x23d   :  { %1218 = vmatprep.subr.mxu0 %v13511_v33  ;;  %1289 = vmatprep.subr.mxu1 %v13516_v34 }
 0x23e   :  { %1219 = vmatpush1.msra.mxu0 %v13523_v35  ;;  %1290 = vmatpush1.msra.mxu1 %v13528_v36 }
 0x23f   :  { %1220 = vmatprep.subr.mxu0 %v13535_v37  ;;  %1291 = vmatprep.subr.mxu1 %v13540_v38 }
 0x240   :  { %1221 = vmatpush1.msra.mxu0 %v13547_v39  ;;  %1292 = vmatpush1.msra.mxu1 %v13552_v40 }
 0x241   :  { %1222 = vmatprep.subr.mxu0 %v13559_v41  ;;  %1293 = vmatprep.subr.mxu1 %v13564_v42 }
 0x242   :  { %1223 = vmatpush1.msra.mxu0 %v13571_v43  ;;  %1294 = vmatpush1.msra.mxu1 %v13576_v44 }
 0x243   :  { %1224 = vmatprep.subr.mxu0 %v13583_v45  ;;  %1295 = vmatprep.subr.mxu1 %v13588_v46 }
 0x244   :  { %1225 = vmatpush1.msra.mxu0 %v13593_v48  ;;  %1296 = vmatpush1.msra.mxu1 %v13600_v49 }
 0x245   :  { %1226 = vmatprep.subr.mxu0 %v13605_v50  ;;  %1297 = vmatprep.subr.mxu1 %v13610_v51 }
 0x246   :  { %1227 = vmatpush1.msra.mxu0 %v13617_v52  ;;  %1298 = vmatpush1.msra.mxu1 %v13622_v53 }
 0x247   :  { %1228 = vmatprep.subr.mxu0 %v13627_v54  ;;  %1299 = vmatprep.subr.mxu1 %v13634_v55 }
 0x248   :  { %1229 = vmatpush1.msra.mxu0 %v13639_v56  ;;  %1300 = vmatpush1.msra.mxu1 %v13644_v57 }
 0x249   :  { %1230 = vmatprep.subr.mxu0 %v13651_v58  ;;  %1301 = vmatprep.subr.mxu1 %v13656_v59 }
 0x24a   :  { %1231 = vmatpush1.msra.mxu0 %v13663_v60  ;;  %1302 = vmatpush1.msra.mxu1 %v13668_v61 }
 0x24b   :  { %1232 = vmatprep.subr.mxu0 %v13675_v62  ;;  %1303 = vmatprep.subr.mxu1 %v13680_v63 }
 0x24c   :  { %1233 = vmatpush1.msra.mxu0 %v13687_v0  ;;  %1304 = vmatpush1.msra.mxu1 %v13692_v1 }
 0x24d   :  { %1234 = vmatprep.subr.mxu0 %v13699_v2  ;;  %1305 = vmatprep.subr.mxu1 %v13704_v3 }
 0x24e   :  { %1235 = vmatpush1.msra.mxu0 %v13711_v4  ;;  %1306 = vmatpush1.msra.mxu1 %v13716_v6 }
 0x24f   :  { %1236 = vmatprep.subr.mxu0 %v13723_v8  ;;  %1307 = vmatprep.subr.mxu1 %v13728_v11 }
 0x250   :  { %1237 = vmatpush1.msra.mxu0 %v13735_v18  ;;  %1308 = vmatpush1.msra.mxu1 %v13740_v19  ;;  %v13788_v19 = vld [vmem:[%s17501_s5 + $0x30] sm:$0xff] }
 0x251   :  { %1238 = vmatprep.subr.mxu0 %v13747_v10  ;;  %1309 = vmatprep.subr.mxu1 %v13752_v21  ;;  %17804 = vst [vmem:[#allocation20_spill] sm:$0xff] %v13788_v19  ;;  %v13795_v10 = vld [vmem:[%s17501_s5 + $0x8] sm:$0xff]  ;;  %v13800_v21 = vld [vmem:[%s17501_s5 + $0x18] sm:$0xff] }
 0x252   :  { %1239 = vmatpush1.msra.mxu0 %v13759_v13  ;;  %1310 = vmatpush1.msra.mxu1 %v13764_v23  ;;  %17805 = vst [vmem:[#allocation25_spill] sm:$0xff] %v13795_v10  ;;  %17806 = vst [vmem:[#allocation33_spill] sm:$0xff] %v13800_v21  ;;  %v13807_v13 = vld [vmem:[%s17501_s5] sm:$0xff]  ;;  %v13812_v23 = vld [vmem:[%s17501_s5 + $0x10] sm:$0xff] }
 0x253   :  { %1240 = vmatprep.subr.mxu0 %v13771_v22  ;;  %1311 = vmatprep.subr.mxu1 %v13776_v16  ;;  %17807 = vst [vmem:[#allocation34_spill] sm:$0xff] %v13807_v13  ;;  %17808 = vst [vmem:[#allocation35_spill] sm:$0xff] %v13812_v23 }
 0x254   :  { %1241 = vmatpush1.msra.mxu0 %v13783_v47  ;;  %1312 = vmatpush1.msra.mxu1 %v13788_v19 }
 0x255   :  { %1242 = vmatprep.subr.mxu0 %v13795_v10  ;;  %1313 = vmatprep.subr.mxu1 %v13800_v21 }
 0x256   :  { %1243 = vmatpush1.msra.mxu0 %v13807_v13  ;;  %1314 = vmatpush1.msra.mxu1 %v13812_v23 }
 0x257   :  { %1465 = vmatprep.subr.mxu0 %v13439_v20  ;;  %1536 = vmatprep.subr.mxu1 %v13444_v7 }
 0x2f6   :  { %v1025_v16 = vpop.f32.mrf.mxu0  ;;  %v1096_v47 = vpop.f32.mrf.mxu1 }
 0x2f7   :  { %v1105_v22 = vrot.slane %v1025_v16, 4  ;;  %v1107_v20 = vrot.slane %v1096_v47, 4 }
 0x2f8   :  { %v1027_v18 = vpop.f32.mrf.mxu0  ;;  %v1098_v6 = vpop.f32.mrf.mxu1 }
 0x2f9   :  { %v1113_v11 = vadd.f32 %v1105_v22, %v13331_v24  ;;  %v1106_v8 = vrot.slane %v1027_v18, 4  ;;  %v1108_v13 = vrot.slane %v1098_v6, 4  ;;  %v1115_v16 = vadd.f32 %v1107_v20, %v13356_v12  ;;  %v17811_v22 = vld [vmem:[#allocation15_spill] sm:$0xff] }
 0x2fb   :  { %v10035_v19 = vmul.f32 -1.442695, %v1113_v11  ;;  %v1114_v10 = vadd.f32 %v1106_v8, %v13337_v9  ;;  %v1116_v23 = vadd.f32 %v1108_v13, %v13353_v27 }
 0x2fd   :  { %12280 = vpow2.f32 %v10035_v19  ;;  %v10036_v21 = vmul.f32 -1.442695, %v1114_v10  ;;  %v10037_v4 = vmul.f32 -1.442695, %v1116_v23  ;;  %v1137_v10 = vrot.slane %v13431_v29, 6  ;;  %v17809_v29 = vld [vmem:[#allocation13_spill] sm:$0xff] }
 0x2ff   :  { %12282 = vpow2.f32 %v10036_v21 }
 0x300   :  { %12284 = vpow2.f32 %v10037_v4  ;;  %v17810_v4 = vld [vmem:[#allocation8_spill] sm:$0xff] }
 0x30a   :  { %v12281_v7 = vpop.eup %12280 }
 0x30b   :  { %v1120_v3 = vadd.f32 1.0, %v12281_v7 }
 0x30c   :  { %v12283_v2 = vpop.eup %12282 }
 0x30d   :  { %12286 = vrcp.f32 %v1120_v3  ;;  %v1126_v18 = vadd.f32 1.0, %v12283_v2  ;;  %v12285_v8 = vpop.eup %12284 }
 0x30e   :  { %12288 = vtanh.f32 %v1115_v16  ;;  %v1133_v21 = vadd.f32 1.0, %v12285_v8  ;;  %v17812_v16 = vld [vmem:[#allocation9_spill] sm:$0xff]  ;;  %v17814_v8 = vld [vmem:[#allocation10_spill] sm:$0xff] }
 0x30f   :  { %12290 = vrcp.f32 %v1126_v18  ;;  %v17813_v18 = vld [vmem:[#allocation17_spill] sm:$0xff] }
 0x310   :  { %12292 = vrcp.f32 %v1133_v21  ;;  %v17819_v21 = vld [vmem:[#allocation22_spill] sm:$0xff] }
 0x31a   :  { %v12287_v11 = vpop.eup %12286 }
 0x31b   :  { %v12289_v19 = vpop.eup %12288 }
 0x31c   :  { %v12291_v6 = vpop.eup %12290  ;;  %v1140_v13 = vmul.f32 %v12289_v19, %v12287_v11  ;;  %v17815_v11 = vld [vmem:[#allocation19_spill] sm:$0xff]  ;;  %v17816_v19 = vld [vmem:[#allocation12_spill] sm:$0xff] }
 0x31d   :  { %v1139_v47 = vmul.f32 %v12291_v6, %v1137_v10  ;;  %v12293_v20 = vpop.eup %12292  ;;  %v17817_v10 = vld [vmem:[#allocation21_spill] sm:$0xff]  ;;  %v17818_v6 = vld [vmem:[#allocation14_spill] sm:$0xff] }
 0x31f   :  { %v13827_v23 = vadd.f32 %v1140_v13, %v1139_v47  ;;  %v17820_v13 = vld [vmem:[#allocation16_spill] sm:$0xff]  ;;  %v17821_v47 = vld [vmem:[#allocation23_spill] sm:$0xff] }
 0x321   :  { %12294 = vtanh.f32 %v13827_v23 }
 0x32e   :  { %v12295_v7 = vpop.eup %12294 }
 0x32f   :  { %v1143_v3 = vmul.f32 %v12295_v7, %v12293_v20  ;;  %v17822_v20 = vld [vmem:[#allocation18_spill] sm:$0xff]  ;;  %v17823_v7 = vld [vmem:[#allocation24_spill] sm:$0xff] }
 0x331   :  { %1144 = vst [vmem:[#allocation2] sm:$0x30] %v1143_v3  ;;  %v1210_v2 = vrot.slane %v1143_v3, 4  ;;  %v17824_v3 = vld [vmem:[#allocation20_spill] sm:$0xff] }
 0x333   :  { %1277 = vmatmul.mubr.f32.vlgmr.msra.gmra.mxu0 %v1210_v2  ;;  %1348 = vmatmul.mubr.f32.vlgmr.msra.gmra.mxu1 %v1210_v2  ;;  %v17825_v2 = vld [vmem:[#allocation25_spill] sm:$0xff] }
 0x334   :  { %1466 = vmatpush1.msra.mxu0 %v13451_v17  ;;  %1537 = vmatpush1.msra.mxu1 %v13456_v15 }
 0x335   :  { %1467 = vmatprep.subr.mxu0 %v13463_v5  ;;  %1538 = vmatprep.subr.mxu1 %v13468_v14 }
 0x336   :  { %1468 = vmatpush1.msra.mxu0 %v13475_v32  ;;  %1539 = vmatpush1.msra.mxu1 %v13480_v25 }
 0x337   :  { %1469 = vmatprep.subr.mxu0 %v13487_v26  ;;  %1540 = vmatprep.subr.mxu1 %v13492_v28 }
 0x338   :  { %1470 = vmatpush1.msra.mxu0 %v13499_v30  ;;  %1541 = vmatpush1.msra.mxu1 %v13504_v31 }
 0x339   :  { %1471 = vmatprep.subr.mxu0 %v13511_v33  ;;  %1542 = vmatprep.subr.mxu1 %v13516_v34 }
 0x33a   :  { %1472 = vmatpush1.msra.mxu0 %v13523_v35  ;;  %1543 = vmatpush1.msra.mxu1 %v13528_v36 }
 0x33b   :  { %1473 = vmatprep.subr.mxu0 %v13535_v37  ;;  %1544 = vmatprep.subr.mxu1 %v13540_v38 }
 0x33c   :  { %1474 = vmatpush1.msra.mxu0 %v13547_v39  ;;  %1545 = vmatpush1.msra.mxu1 %v13552_v40 }
 0x33d   :  { %1475 = vmatprep.subr.mxu0 %v13559_v41  ;;  %1546 = vmatprep.subr.mxu1 %v13564_v42 }
 0x33e   :  { %1476 = vmatpush1.msra.mxu0 %v13571_v43  ;;  %1547 = vmatpush1.msra.mxu1 %v13576_v44 }
 0x33f   :  { %1477 = vmatprep.subr.mxu0 %v13583_v45  ;;  %1548 = vmatprep.subr.mxu1 %v13588_v46 }
 0x340   :  { %1478 = vmatpush1.msra.mxu0 %v13593_v48  ;;  %1549 = vmatpush1.msra.mxu1 %v13600_v49 }
 0x341   :  { %1479 = vmatprep.subr.mxu0 %v13605_v50  ;;  %1550 = vmatprep.subr.mxu1 %v13610_v51 }
 0x342   :  { %1480 = vmatpush1.msra.mxu0 %v13617_v52  ;;  %1551 = vmatpush1.msra.mxu1 %v13622_v53 }
 0x343   :  { %1481 = vmatprep.subr.mxu0 %v13627_v54  ;;  %1552 = vmatprep.subr.mxu1 %v13634_v55 }
 0x344   :  { %1482 = vmatpush1.msra.mxu0 %v13639_v56  ;;  %1553 = vmatpush1.msra.mxu1 %v13644_v57 }
 0x345   :  { %1483 = vmatprep.subr.mxu0 %v13651_v58  ;;  %1554 = vmatprep.subr.mxu1 %v13656_v59 }
 0x346   :  { %1484 = vmatpush1.msra.mxu0 %v13663_v60  ;;  %1555 = vmatpush1.msra.mxu1 %v13668_v61 }
 0x347   :  { %1485 = vmatprep.subr.mxu0 %v13675_v62  ;;  %1556 = vmatprep.subr.mxu1 %v13680_v63 }
 0x348   :  { %1486 = vmatpush1.msra.mxu0 %v13687_v0  ;;  %1557 = vmatpush1.msra.mxu1 %v13692_v1 }
 0x349   :  { %1487 = vmatprep.subr.mxu0 %v17809_v29  ;;  %1558 = vmatprep.subr.mxu1 %v17810_v4 }
 0x34a   :  { %1488 = vmatpush1.msra.mxu0 %v17811_v22  ;;  %1559 = vmatpush1.msra.mxu1 %v17812_v16 }
 0x34b   :  { %1489 = vmatprep.subr.mxu0 %v17813_v18  ;;  %1560 = vmatprep.subr.mxu1 %v17814_v8 }
 0x34c   :  { %1490 = vmatpush1.msra.mxu0 %v17815_v11  ;;  %1561 = vmatpush1.msra.mxu1 %v17816_v19  ;;  %v17826_v11 = vld [vmem:[#allocation33_spill] sm:$0xff]  ;;  %v17827_v19 = vld [vmem:[#allocation34_spill] sm:$0xff] }
 0x34d   :  { %1491 = vmatprep.subr.mxu0 %v17817_v10  ;;  %1562 = vmatprep.subr.mxu1 %v17818_v6  ;;  %v17828_v10 = vmov 0.0   ;;  %v17829_v6 = vld [vmem:[#allocation35_spill] sm:$0xff] }
 0x34e   :  { %1492 = vmatpush1.msra.mxu0 %v17819_v21  ;;  %1563 = vmatpush1.msra.mxu1 %v17820_v13  ;;  %v17830_v13 = vld [vmem:[#allocation11_spill] sm:$0xff] }
 0x34f   :  { %1493 = vmatprep.subr.mxu0 %v17821_v47  ;;  %1564 = vmatprep.subr.mxu1 %v17822_v20  ;;  %v17831_v47 = vld [vmem:[#allocation7_spill] sm:$0xff] }
 0x350   :  { %1494 = vmatpush1.msra.mxu0 %v17823_v7  ;;  %1565 = vmatpush1.msra.mxu1 %v17824_v3 }
 0x351   :  { %1495 = vmatprep.subr.mxu0 %v17825_v2  ;;  %1566 = vmatprep.subr.mxu1 %v17826_v11 }
 0x352   :  { %1496 = vmatpush1.msra.mxu0 %v17827_v19  ;;  %1529 = vmatprep.mubr.f32.mxu0 %v17828_v10 }
 0x353   :  { %1567 = vmatpush1.msra.mxu1 %v17829_v6  ;;  %1600 = vmatprep.mubr.f32.mxu1 %v17828_v10 }
 0x354   :  { %1703 = vmatprep.subr.mxu0 %v17830_v13  ;;  %1774 = vmatprep.subr.mxu1 %v17831_v47 }
 0x3f3   :  { %v1278_v20 = vpop.f32.mrf.mxu0  ;;  %v1349_v2 = vpop.f32.mrf.mxu1 }
 0x3f4   :  { %v1358_v7 = vrot.slane %v1278_v20, 2  ;;  %v1360_v13 = vrot.slane %v1349_v2, 2  ;;  %v17838_v2 = vld [vmem:[#allocation19_spill] sm:$0xff] }
 0x3f5   :  { %v1280_v21 = vpop.f32.mrf.mxu0  ;;  %v1351_v16 = vpop.f32.mrf.mxu1 }
 0x3f6   :  { %v1366_v3 = vadd.f32 %v1358_v7, %v13331_v24  ;;  %v1359_v8 = vrot.slane %v1280_v21, 2  ;;  %v1361_v6 = vrot.slane %v1351_v16, 2  ;;  %v1368_v20 = vadd.f32 %v1360_v13, %v13356_v12  ;;  %v17833_v21 = vld [vmem:[#allocation8_spill] sm:$0xff]  ;;  %v17834_v13 = vld [vmem:[#allocation15_spill] sm:$0xff]  ;;  %v17836_v7 = vld [vmem:[#allocation17_spill] sm:$0xff] }
 0x3f8   :  { %v10038_v11 = vmul.f32 -1.442695, %v1366_v3  ;;  %v1367_v19 = vadd.f32 %v1359_v8, %v13337_v9  ;;  %v1369_v10 = vadd.f32 %v1361_v6, %v13353_v27  ;;  %v17837_v3 = vld [vmem:[#allocation10_spill] sm:$0xff] }
 0x3fa   :  { %12296 = vpow2.f32 %v10038_v11  ;;  %v10039_v18 = vmul.f32 -1.442695, %v1367_v19  ;;  %v10040_v22 = vmul.f32 -1.442695, %v1369_v10 }
 0x3fc   :  { %12298 = vpow2.f32 %v10039_v18  ;;  %v1390_v18 = vrot.slane %v13827_v23, 6  ;;  %v17832_v23 = vld [vmem:[#allocation13_spill] sm:$0xff] }
 0x3fd   :  { %12300 = vpow2.f32 %v10040_v22 }
 0x407   :  { %v12297_v47 = vpop.eup %12296 }
 0x408   :  { %v1373_v4 = vadd.f32 1.0, %v12297_v47  ;;  %v17835_v47 = vld [vmem:[#allocation9_spill] sm:$0xff] }
 0x409   :  { %v12299_v29 = vpop.eup %12298 }
 0x40a   :  { %12302 = vrcp.f32 %v1373_v4  ;;  %v1379_v24 = vadd.f32 1.0, %v12299_v29  ;;  %v12301_v9 = vpop.eup %12300 }
 0x40b   :  { %12304 = vtanh.f32 %v1368_v20  ;;  %v1386_v19 = vadd.f32 1.0, %v12301_v9  ;;  %v17839_v20 = vld [vmem:[#allocation12_spill] sm:$0xff]  ;;  %v17841_v9 = vld [vmem:[#allocation14_spill] sm:$0xff] }
 0x40c   :  { %12306 = vrcp.f32 %v1379_v24  ;;  %v17840_v24 = vld [vmem:[#allocation21_spill] sm:$0xff] }
 0x40d   :  { %12308 = vrcp.f32 %v1386_v19  ;;  %v17846_v19 = vld [vmem:[#allocation24_spill] sm:$0xff] }
 0x417   :  { %v12303_v8 = vpop.eup %12302 }
 0x418   :  { %v12305_v11 = vpop.eup %12304 }
 0x419   :  { %v12307_v16 = vpop.eup %12306  ;;  %v1393_v27 = vmul.f32 %v12305_v11, %v12303_v8  ;;  %v17842_v8 = vld [vmem:[#allocation22_spill] sm:$0xff]  ;;  %v17843_v11 = vld [vmem:[#allocation16_spill] sm:$0xff] }
 0x41a   :  { %v1392_v6 = vmul.f32 %v12307_v16, %v1390_v18  ;;  %v12309_v12 = vpop.eup %12308  ;;  %v17844_v18 = vld [vmem:[#allocation23_spill] sm:$0xff]  ;;  %v17845_v16 = vld [vmem:[#allocation18_spill] sm:$0xff] }
 0x41c   :  { %v13901_v10 = vadd.f32 %v1393_v27, %v1392_v6  ;;  %v17847_v27 = vld [vmem:[#allocation20_spill] sm:$0xff]  ;;  %v17848_v6 = vld [vmem:[#allocation25_spill] sm:$0xff] }
 0x41e   :  { %12310 = vtanh.f32 %v13901_v10 }
 0x42b   :  { %v12311_v22 = vpop.eup %12310 }
 0x42c   :  { %v1396_v4 = vmul.f32 %v12311_v22, %v12309_v12  ;;  %v17849_v12 = vld [vmem:[#allocation33_spill] sm:$0xff]  ;;  %v17850_v22 = vld [vmem:[#allocation34_spill] sm:$0xff] }
 0x42e   :  { %1397 = vst [vmem:[#allocation2] sm:$0xc0] %v1396_v4  ;;  %v1463_v29 = vrot.slane %v1396_v4, 6  ;;  %v17851_v4 = vmov 0.0  }
 0x430   :  { %1530 = vmatmul.mubr.f32.vlgmr.msra.gmra.mxu0 %v1463_v29  ;;  %1601 = vmatmul.mubr.f32.vlgmr.msra.gmra.mxu1 %v1463_v29  ;;  %v17852_v29 = vld [vmem:[#allocation35_spill] sm:$0xff] }
 0x431   :  { %1704 = vmatpush1.msra.mxu0 %v13451_v17  ;;  %1775 = vmatpush1.msra.mxu1 %v13456_v15 }
 0x432   :  { %1705 = vmatprep.subr.mxu0 %v13463_v5  ;;  %1776 = vmatprep.subr.mxu1 %v13468_v14 }
 0x433   :  { %1706 = vmatpush1.msra.mxu0 %v13475_v32  ;;  %1777 = vmatpush1.msra.mxu1 %v13480_v25 }
 0x434   :  { %1707 = vmatprep.subr.mxu0 %v13487_v26  ;;  %1778 = vmatprep.subr.mxu1 %v13492_v28 }
 0x435   :  { %1708 = vmatpush1.msra.mxu0 %v13499_v30  ;;  %1779 = vmatpush1.msra.mxu1 %v13504_v31 }
 0x436   :  { %1709 = vmatprep.subr.mxu0 %v13511_v33  ;;  %1780 = vmatprep.subr.mxu1 %v13516_v34 }
 0x437   :  { %1710 = vmatpush1.msra.mxu0 %v13523_v35  ;;  %1781 = vmatpush1.msra.mxu1 %v13528_v36 }
 0x438   :  { %1711 = vmatprep.subr.mxu0 %v13535_v37  ;;  %1782 = vmatprep.subr.mxu1 %v13540_v38 }
 0x439   :  { %1712 = vmatpush1.msra.mxu0 %v13547_v39  ;;  %1783 = vmatpush1.msra.mxu1 %v13552_v40 }
 0x43a   :  { %1713 = vmatprep.subr.mxu0 %v13559_v41  ;;  %1784 = vmatprep.subr.mxu1 %v13564_v42 }
 0x43b   :  { %1714 = vmatpush1.msra.mxu0 %v13571_v43  ;;  %1785 = vmatpush1.msra.mxu1 %v13576_v44 }
 0x43c   :  { %1715 = vmatprep.subr.mxu0 %v13583_v45  ;;  %1786 = vmatprep.subr.mxu1 %v13588_v46 }
 0x43d   :  { %1716 = vmatpush1.msra.mxu0 %v13593_v48  ;;  %1787 = vmatpush1.msra.mxu1 %v13600_v49 }
 0x43e   :  { %1717 = vmatprep.subr.mxu0 %v13605_v50  ;;  %1788 = vmatprep.subr.mxu1 %v13610_v51 }
 0x43f   :  { %1718 = vmatpush1.msra.mxu0 %v13617_v52  ;;  %1789 = vmatpush1.msra.mxu1 %v13622_v53 }
 0x440   :  { %1719 = vmatprep.subr.mxu0 %v13627_v54  ;;  %1790 = vmatprep.subr.mxu1 %v13634_v55 }
 0x441   :  { %1720 = vmatpush1.msra.mxu0 %v13639_v56  ;;  %1791 = vmatpush1.msra.mxu1 %v13644_v57 }
 0x442   :  { %1721 = vmatprep.subr.mxu0 %v13651_v58  ;;  %1792 = vmatprep.subr.mxu1 %v13656_v59 }
 0x443   :  { %1722 = vmatpush1.msra.mxu0 %v13663_v60  ;;  %1793 = vmatpush1.msra.mxu1 %v13668_v61 }
 0x444   :  { %1723 = vmatprep.subr.mxu0 %v13675_v62  ;;  %1794 = vmatprep.subr.mxu1 %v13680_v63 }
 0x445   :  { %1724 = vmatpush1.msra.mxu0 %v13687_v0  ;;  %1795 = vmatpush1.msra.mxu1 %v13692_v1 }
 0x446   :  { %1725 = vmatprep.subr.mxu0 %v17832_v23  ;;  %1796 = vmatprep.subr.mxu1 %v17833_v21 }
 0x447   :  { %1726 = vmatpush1.msra.mxu0 %v17834_v13  ;;  %1797 = vmatpush1.msra.mxu1 %v17835_v47 }
 0x448   :  { %1727 = vmatprep.subr.mxu0 %v17836_v7  ;;  %1798 = vmatprep.subr.mxu1 %v17837_v3 }
 0x449   :  { %1728 = vmatpush1.msra.mxu0 %v17838_v2  ;;  %1799 = vmatpush1.msra.mxu1 %v17839_v20  ;;  %v17859_v2 = vld [vmem:[#allocation32_spill] sm:$0xff] }
 0x44a   :  { %1729 = vmatprep.subr.mxu0 %v17840_v24  ;;  %1800 = vmatprep.subr.mxu1 %v17841_v9 }
 0x44b   :  { %1730 = vmatpush1.msra.mxu0 %v17842_v8  ;;  %1801 = vmatpush1.msra.mxu1 %v17843_v11  ;;  %v17853_v11 = vld [vmem:[#allocation11_spill] sm:$0xff]  ;;  %v17856_v8 = vld [vmem:[#allocation28_spill] sm:$0xff] }
 0x44c   :  { %1731 = vmatprep.subr.mxu0 %v17844_v18  ;;  %1802 = vmatprep.subr.mxu1 %v17845_v16  ;;  %v17854_v18 = vld [vmem:[#allocation7_spill] sm:$0xff] }
 0x44d   :  { %1732 = vmatpush1.msra.mxu0 %v17846_v19  ;;  %1803 = vmatpush1.msra.mxu1 %v17847_v27  ;;  %v17855_v19 = vld [vmem:[#allocation29_spill] sm:$0xff] }
 0x44e   :  { %1733 = vmatprep.subr.mxu0 %v17848_v6  ;;  %1804 = vmatprep.subr.mxu1 %v17849_v12  ;;  %v13972_v27 = vadd.f32 %v17856_v8, %v17855_v19  ;;  %v17858_v6 = vld [vmem:[#allocation27_spill] sm:$0xff]  ;;  %v17861_v19 = vld [vmem:[#allocation30_spill] sm:$0xff] }
 0x44f   :  { %1734 = vmatpush1.msra.mxu0 %v17850_v22  ;;  %1767 = vmatprep.mubr.f32.mxu0 %v17851_v4 }
 0x450   :  { %1805 = vmatpush1.msra.mxu1 %v17852_v29  ;;  %1838 = vmatprep.mubr.f32.mxu1 %v17851_v4  ;;  %17857 = vst [vmem:[#allocation13_spill] sm:$0xff] %v13972_v27 }
 0x451   :  { %1956 = vmatprep.subr.mxu0 %v17853_v11  ;;  %2027 = vmatprep.subr.mxu1 %v17854_v18  ;;  %v17860_v11 = vld [vmem:[#allocation31_spill] sm:$0xff] }
 0x452   :  { %v13978_v3 = vadd.f32 %v17860_v11, %v17859_v2 }
 0x4f0   :  { %v1531_v16 = vpop.f32.mrf.mxu0  ;;  %v1602_v20 = vpop.f32.mrf.mxu1 }
 0x4f1   :  { %v1607_v9 = vadd.f32 %v1531_v16, %v17858_v6  ;;  %v1609_v47 = vadd.f32 %v1602_v20, %v17861_v19 }
 0x4f2   :  { %v1533_v12 = vpop.f32.mrf.mxu0  ;;  %v1604_v4 = vpop.f32.mrf.mxu1 }
 0x4f3   :  { %v10041_v24 = vmul.f32 -1.442695, %v1607_v9  ;;  %v1608_v22 = vadd.f32 %v1533_v12, %v13972_v27  ;;  %v1610_v18 = vadd.f32 %v1604_v4, %v13978_v3 }
 0x4f5   :  { %12312 = vpow2.f32 %v10041_v24  ;;  %v10042_v29 = vmul.f32 -1.442695, %v1608_v22  ;;  %v10043_v7 = vmul.f32 -1.442695, %v1610_v18 }
 0x4f7   :  { %12314 = vpow2.f32 %v10042_v29  ;;  %v1631_v29 = vrot.slane %v13901_v10, 6 }
 0x4f8   :  { %12316 = vpow2.f32 %v10043_v7 }
 0x502   :  { %v12313_v8 = vpop.eup %12312 }
 0x503   :  { %v1614_v16 = vadd.f32 1.0, %v12313_v8 }
 0x504   :  { %v12315_v6 = vpop.eup %12314 }
 0x505   :  { %12318 = vrcp.f32 %v1614_v16  ;;  %v1620_v9 = vadd.f32 1.0, %v12315_v6  ;;  %v12317_v24 = vpop.eup %12316 }
 0x506   :  { %12320 = vtanh.f32 %v1609_v47  ;;  %v1627_v11 = vadd.f32 1.0, %v12317_v24 }
 0x507   :  { %12322 = vrcp.f32 %v1620_v9 }
 0x508   :  { %12324 = vrcp.f32 %v1627_v11  ;;  %v2199_v11 = vld [vmem:[%s17501_s5 + $0x1c8] sm:$0xff] }
 0x512   :  { %v12319_v12 = vpop.eup %12318 }
 0x513   :  { %v12321_v22 = vpop.eup %12320 }
 0x514   :  { %v12323_v2 = vpop.eup %12322  ;;  %v1634_v27 = vmul.f32 %v12321_v22, %v12319_v12  ;;  %v2203_v12 = vld [vmem:[%s17501_s5 + $0x1e8] sm:$0xff]  ;;  %v2205_v22 = vld [vmem:[%s17501_s5 + $0x1f8] sm:$0xff] }
 0x515   :  { %v1633_v4 = vmul.f32 %v12323_v2, %v1631_v29  ;;  %v12325_v20 = vpop.eup %12324  ;;  %v2202_v29 = vld [vmem:[%s17501_s5 + $0x1e0] sm:$0xff]  ;;  %v2204_v2 = vld [vmem:[%s17501_s5 + $0x1f0] sm:$0xff] }
 0x517   :  { %v13983_v18 = vadd.f32 %v1634_v27, %v1633_v4  ;;  %v2201_v4 = vld [vmem:[%s17501_s5 + $0x1d8] sm:$0xff] }
 0x519   :  { %12326 = vtanh.f32 %v13983_v18  ;;  %v1881_v10 = vrot.slane %v13983_v18, 6  ;;  %v2198_v18 = vld [vmem:[%s17501_s5 + $0x1c0] sm:$0xff] }
 0x526   :  { %v12327_v7 = vpop.eup %12326 }
 0x527   :  { %v1637_v8 = vmul.f32 %v12327_v7, %v12325_v20  ;;  %v2200_v20 = vld [vmem:[%s17501_s5 + $0x1d0] sm:$0xff]  ;;  %v2195_v7 = vld [vmem:[%s17501_s5 + $0x1a8] sm:$0xff] }
 0x529   :  { %1638 = vst [vmem:[#allocation2 + $0x8] sm:$0x3] %v1637_v8  ;;  %1768 = vmatmul.mubr.f32.vlgmr.msra.gmra.mxu0 %v1637_v8  ;;  %1839 = vmatmul.mubr.f32.vlgmr.msra.gmra.mxu1 %v1637_v8  ;;  %v2197_v8 = vld [vmem:[%s17501_s5 + $0x1b8] sm:$0xff] }
 0x52a   :  { %1957 = vmatpush1.msra.mxu0 %v13451_v17  ;;  %2028 = vmatpush1.msra.mxu1 %v13456_v15  ;;  %v17862_v17 = vld [vmem:[#allocation9_spill] sm:$0xff] }
 0x52b   :  { %1958 = vmatprep.subr.mxu0 %v13463_v5  ;;  %2029 = vmatprep.subr.mxu1 %v13468_v14  ;;  %v17863_v15 = vld [vmem:[#allocation17_spill] sm:$0xff]  ;;  %v17864_v5 = vld [vmem:[#allocation10_spill] sm:$0xff]  ;;  %v17865_v14 = vld [vmem:[#allocation19_spill] sm:$0xff] }
 0x52c   :  { %1959 = vmatpush1.msra.mxu0 %v13475_v32  ;;  %2030 = vmatpush1.msra.mxu1 %v13480_v25  ;;  %v17866_v32 = vld [vmem:[#allocation12_spill] sm:$0xff]  ;;  %v17867_v25 = vld [vmem:[#allocation21_spill] sm:$0xff] }
 0x52d   :  { %1960 = vmatprep.subr.mxu0 %v13487_v26  ;;  %2031 = vmatprep.subr.mxu1 %v13492_v28  ;;  %v17868_v26 = vld [vmem:[#allocation14_spill] sm:$0xff] }
 0x52e   :  { %1961 = vmatpush1.msra.mxu0 %v13499_v30  ;;  %2032 = vmatpush1.msra.mxu1 %v13504_v31  ;;  %v17869_v28 = vld [vmem:[#allocation22_spill] sm:$0xff]  ;;  %v17870_v30 = vld [vmem:[#allocation16_spill] sm:$0xff]  ;;  %v17871_v31 = vld [vmem:[#allocation23_spill] sm:$0xff] }
 0x52f   :  { %1962 = vmatprep.subr.mxu0 %v13511_v33  ;;  %2033 = vmatprep.subr.mxu1 %v13516_v34  ;;  %v17872_v33 = vld [vmem:[#allocation18_spill] sm:$0xff]  ;;  %v17873_v34 = vld [vmem:[#allocation24_spill] sm:$0xff] }
 0x530   :  { %1963 = vmatpush1.msra.mxu0 %v13523_v35  ;;  %2034 = vmatpush1.msra.mxu1 %v13528_v36  ;;  %v17874_v35 = vld [vmem:[#allocation20_spill] sm:$0xff]  ;;  %v17875_v36 = vld [vmem:[#allocation25_spill] sm:$0xff] }
 0x531   :  { %1964 = vmatprep.subr.mxu0 %v13535_v37  ;;  %2035 = vmatprep.subr.mxu1 %v13540_v38  ;;  %v17876_v37 = vld [vmem:[#allocation33_spill] sm:$0xff]  ;;  %v17877_v38 = vld [vmem:[#allocation34_spill] sm:$0xff] }
 0x532   :  { %1965 = vmatpush1.msra.mxu0 %v13547_v39  ;;  %2036 = vmatpush1.msra.mxu1 %v13552_v40  ;;  %v17878_v39 = vmov 0.0   ;;  %v17879_v40 = vld [vmem:[#allocation35_spill] sm:$0xff] }
 0x533   :  { %1966 = vmatprep.subr.mxu0 %v13559_v41  ;;  %2037 = vmatprep.subr.mxu1 %v13564_v42 }
 0x534   :  { %1967 = vmatpush1.msra.mxu0 %v13571_v43  ;;  %2038 = vmatpush1.msra.mxu1 %v13576_v44  ;;  %v17880_v44 = vld [vmem:[#allocation27_spill] sm:$0xff] }
 0x535   :  { %1968 = vmatprep.subr.mxu0 %v13583_v45  ;;  %2039 = vmatprep.subr.mxu1 %v13588_v46 }
 0x536   :  { %1969 = vmatpush1.msra.mxu0 %v13593_v48  ;;  %2040 = vmatpush1.msra.mxu1 %v13600_v49 }
 0x537   :  { %1970 = vmatprep.subr.mxu0 %v13605_v50  ;;  %2041 = vmatprep.subr.mxu1 %v13610_v51  ;;  %v17881_v50 = vld [vmem:[#allocation13_spill] sm:$0xff] }
 0x538   :  { %1971 = vmatpush1.msra.mxu0 %v13617_v52  ;;  %2042 = vmatpush1.msra.mxu1 %v13622_v53 }
 0x539   :  { %1972 = vmatprep.subr.mxu0 %v13627_v54  ;;  %2043 = vmatprep.subr.mxu1 %v13634_v55 }
 0x53a   :  { %1973 = vmatpush1.msra.mxu0 %v13639_v56  ;;  %2044 = vmatpush1.msra.mxu1 %v13644_v57 }
 0x53b   :  { %1974 = vmatprep.subr.mxu0 %v13651_v58  ;;  %2045 = vmatprep.subr.mxu1 %v13656_v59 }
 0x53c   :  { %1975 = vmatpush1.msra.mxu0 %v13663_v60  ;;  %2046 = vmatpush1.msra.mxu1 %v13668_v61 }
 0x53d   :  { %1976 = vmatprep.subr.mxu0 %v13675_v62  ;;  %2047 = vmatprep.subr.mxu1 %v13680_v63 }
 0x53e   :  { %1977 = vmatpush1.msra.mxu0 %v13687_v0  ;;  %2048 = vmatpush1.msra.mxu1 %v13692_v1 }
 0x53f   :  { %1978 = vmatprep.subr.mxu0 %v17832_v23  ;;  %2049 = vmatprep.subr.mxu1 %v17833_v21 }
 0x540   :  { %1979 = vmatpush1.msra.mxu0 %v17834_v13  ;;  %2050 = vmatpush1.msra.mxu1 %v17862_v17  ;;  %v2194_v17 = vld [vmem:[%s17501_s5 + $0x1a0] sm:$0xff] }
 0x541   :  { %1980 = vmatprep.subr.mxu0 %v17863_v15  ;;  %2051 = vmatprep.subr.mxu1 %v17864_v5  ;;  %v2196_v15 = vld [vmem:[%s17501_s5 + $0x1b0] sm:$0xff]  ;;  %v2191_v5 = vld [vmem:[%s17501_s5 + $0x188] sm:$0xff] }
 0x542   :  { %1981 = vmatpush1.msra.mxu0 %v17865_v14  ;;  %2052 = vmatpush1.msra.mxu1 %v17866_v32  ;;  %v2193_v14 = vld [vmem:[%s17501_s5 + $0x198] sm:$0xff]  ;;  %v2190_v32 = vld [vmem:[%s17501_s5 + $0x180] sm:$0xff] }
 0x543   :  { %1982 = vmatprep.subr.mxu0 %v17867_v25  ;;  %2053 = vmatprep.subr.mxu1 %v17868_v26  ;;  %v2192_v25 = vld [vmem:[%s17501_s5 + $0x190] sm:$0xff]  ;;  %v2187_v26 = vld [vmem:[%s17501_s5 + $0x168] sm:$0xff] }
 0x544   :  { %1983 = vmatpush1.msra.mxu0 %v17869_v28  ;;  %2054 = vmatpush1.msra.mxu1 %v17870_v30  ;;  %v2189_v28 = vld [vmem:[%s17501_s5 + $0x178] sm:$0xff]  ;;  %v2186_v30 = vld [vmem:[%s17501_s5 + $0x160] sm:$0xff] }
 0x545   :  { %1984 = vmatprep.subr.mxu0 %v17871_v31  ;;  %2055 = vmatprep.subr.mxu1 %v17872_v33  ;;  %v2188_v31 = vld [vmem:[%s17501_s5 + $0x170] sm:$0xff]  ;;  %v2183_v33 = vld [vmem:[%s17501_s5 + $0x148] sm:$0xff] }
 0x546   :  { %1985 = vmatpush1.msra.mxu0 %v17873_v34  ;;  %2056 = vmatpush1.msra.mxu1 %v17874_v35  ;;  %v2185_v34 = vld [vmem:[%s17501_s5 + $0x158] sm:$0xff]  ;;  %v2182_v35 = vld [vmem:[%s17501_s5 + $0x140] sm:$0xff] }
 0x547   :  { %1986 = vmatprep.subr.mxu0 %v17875_v36  ;;  %2057 = vmatprep.subr.mxu1 %v17876_v37  ;;  %v2184_v36 = vld [vmem:[%s17501_s5 + $0x150] sm:$0xff]  ;;  %v2179_v37 = vld [vmem:[%s17501_s5 + $0x128] sm:$0xff] }
 0x548   :  { %1987 = vmatpush1.msra.mxu0 %v17877_v38  ;;  %2020 = vmatprep.mubr.f32.mxu0 %v17878_v39  ;;  %v2181_v38 = vld [vmem:[%s17501_s5 + $0x138] sm:$0xff] }
 0x549   :  { %2058 = vmatpush1.msra.mxu1 %v17879_v40  ;;  %2091 = vmatprep.mubr.f32.mxu1 %v17878_v39  ;;  %v2178_v40 = vld [vmem:[%s17501_s5 + $0x120] sm:$0xff] }
 0x54a   :  { %2209 = vmatprep.subr.mxu0 %v2203_v12  ;;  %2280 = vmatprep.subr.mxu1 %v2205_v22  ;;  %v2146_v12 = vld [vmem:[%s17501_s5 + $0x20] sm:$0xff]  ;;  %v2148_v22 = vld [vmem:[%s17501_s5 + $0x30] sm:$0xff] }
 0x5e9   :  { %v1769_v41 = vpop.f32.mrf.mxu0  ;;  %v1840_v46 = vpop.f32.mrf.mxu1 }
 0x5ea   :  { %v1849_v42 = vrot.slane %v1769_v41, 6  ;;  %v1851_v56 = vrot.slane %v1840_v46, 6  ;;  %v2180_v41 = vld [vmem:[%s17501_s5 + $0x130] sm:$0xff] }
 0x5eb   :  { %v1771_v43 = vpop.f32.mrf.mxu0  ;;  %v1842_v53 = vpop.f32.mrf.mxu1  ;;  %v2176_v46 = vld [vmem:[%s17501_s5 + $0x110] sm:$0xff] }
 0x5ec   :  { %v1857_v45 = vadd.f32 %v1849_v42, %v17880_v44  ;;  %v1850_v48 = vrot.slane %v1771_v43, 6  ;;  %v1852_v54 = vrot.slane %v1842_v53, 6  ;;  %v1859_v59 = vadd.f32 %v1851_v56, %v17861_v19  ;;  %v2175_v42 = vld [vmem:[%s17501_s5 + $0x108] sm:$0xff]  ;;  %v2177_v43 = vld [vmem:[%s17501_s5 + $0x118] sm:$0xff]  ;;  %v2168_v56 = vld [vmem:[%s17501_s5 + $0xd0] sm:$0xff] }
 0x5ed   :  { %v2167_v53 = vld [vmem:[%s17501_s5 + $0xc8] sm:$0xff] }
 0x5ee   :  { %v10044_v49 = vmul.f32 -1.442695, %v1857_v45  ;;  %v1858_v51 = vadd.f32 %v1850_v48, %v17881_v50  ;;  %v1860_v55 = vadd.f32 %v1852_v54, %v13978_v3  ;;  %v2174_v45 = vld [vmem:[%s17501_s5 + $0x100] sm:$0xff]  ;;  %v2171_v48 = vld [vmem:[%s17501_s5 + $0xe8] sm:$0xff]  ;;  %v2169_v54 = vld [vmem:[%s17501_s5 + $0xd8] sm:$0xff] }
 0x5f0   :  { %12328 = vpow2.f32 %v10044_v49  ;;  %v10045_v52 = vmul.f32 -1.442695, %v1858_v51  ;;  %v10046_v57 = vmul.f32 -1.442695, %v1860_v55  ;;  %v2173_v49 = vld [vmem:[%s17501_s5 + $0xf8] sm:$0xff]  ;;  %v2170_v51 = vld [vmem:[%s17501_s5 + $0xe0] sm:$0xff] }
 0x5f1   :  { %v2166_v55 = vld [vmem:[%s17501_s5 + $0xc0] sm:$0xff] }
 0x5f2   :  { %12330 = vpow2.f32 %v10045_v52  ;;  %v2172_v52 = vld [vmem:[%s17501_s5 + $0xf0] sm:$0xff] }
 0x5f3   :  { %12332 = vpow2.f32 %v10046_v57  ;;  %v2163_v57 = vld [vmem:[%s17501_s5 + $0xa8] sm:$0xff] }
 0x5fd   :  { %v12329_v58 = vpop.eup %12328 }
 0x5fe   :  { %v1864_v60 = vadd.f32 1.0, %v12329_v58  ;;  %v2165_v58 = vld [vmem:[%s17501_s5 + $0xb8] sm:$0xff] }
 0x5ff   :  { %v12331_v61 = vpop.eup %12330 }
 0x600   :  { %12334 = vrcp.f32 %v1864_v60  ;;  %v1870_v62 = vadd.f32 1.0, %v12331_v61  ;;  %v12333_v63 = vpop.eup %12332  ;;  %v2164_v60 = vld [vmem:[%s17501_s5 + $0xb0] sm:$0xff]  ;;  %v2159_v61 = vld [vmem:[%s17501_s5 + $0x88] sm:$0xff] }
 0x601   :  { %12336 = vtanh.f32 %v1859_v59  ;;  %v1877_v21 = vadd.f32 1.0, %v12333_v63  ;;  %v2162_v59 = vld [vmem:[%s17501_s5 + $0xa0] sm:$0xff] }
 0x602   :  { %12338 = vrcp.f32 %v1870_v62  ;;  %v2161_v62 = vld [vmem:[%s17501_s5 + $0x98] sm:$0xff]  ;;  %v2158_v63 = vld [vmem:[%s17501_s5 + $0x80] sm:$0xff] }
 0x603   :  { %12340 = vrcp.f32 %v1877_v21  ;;  %v2156_v21 = vld [vmem:[%s17501_s5 + $0x70] sm:$0xff] }
 0x60d   :  { %v12335_v0 = vpop.eup %12334 }
 0x60e   :  { %v12337_v1 = vpop.eup %12336 }
 0x60f   :  { %v12339_v23 = vpop.eup %12338  ;;  %v1884_v13 = vmul.f32 %v12337_v1, %v12335_v0  ;;  %v2160_v0 = vld [vmem:[%s17501_s5 + $0x90] sm:$0xff]  ;;  %v2155_v1 = vld [vmem:[%s17501_s5 + $0x68] sm:$0xff] }
 0x610   :  { %v1883_v47 = vmul.f32 %v12339_v23, %v1881_v10  ;;  %v12341_v6 = vpop.eup %12340  ;;  %v2157_v10 = vld [vmem:[%s17501_s5 + $0x78] sm:$0xff]  ;;  %v2154_v23 = vld [vmem:[%s17501_s5 + $0x60] sm:$0xff] }
 0x612   :  { %v14055_v27 = vadd.f32 %v1884_v13, %v1883_v47  ;;  %v2151_v13 = vld [vmem:[%s17501_s5 + $0x48] sm:$0xff]  ;;  %v2153_v47 = vld [vmem:[%s17501_s5 + $0x58] sm:$0xff] }
 0x614   :  { %12342 = vtanh.f32 %v14055_v27 }
 0x621   :  { %v12343_v16 = vpop.eup %12342 }
 0x622   :  { %v1887_v9 = vmul.f32 %v12343_v16, %v12341_v6  ;;  %v2150_v6 = vld [vmem:[%s17501_s5 + $0x40] sm:$0xff]  ;;  %v2152_v16 = vld [vmem:[%s17501_s5 + $0x50] sm:$0xff] }
 0x624   :  { %1888 = vst [vmem:[#allocation2 + $0x8] sm:$0xc] %v1887_v9  ;;  %v1954_v24 = vrot.slane %v1887_v9, 2  ;;  %v2147_v9 = vld [vmem:[%s17501_s5 + $0x28] sm:$0xff] }
 0x626   :  { %2021 = vmatmul.mubr.f32.vlgmr.msra.gmra.mxu0 %v1954_v24  ;;  %2092 = vmatmul.mubr.f32.vlgmr.msra.gmra.mxu1 %v1954_v24  ;;  %v2149_v24 = vld [vmem:[%s17501_s5 + $0x38] sm:$0xff] }
 0x627   :  { %2273 = vmatprep.mubr.f32.mxu0 %v17878_v39  ;;  %2344 = vmatprep.mubr.f32.mxu1 %v17878_v39 }
 0x628   :  { %2210 = vmatpush1.msra.mxu0 %v2202_v29  ;;  %2281 = vmatpush1.msra.mxu1 %v2204_v2  ;;  %v2143_v29 = vld [vmem:[%s17501_s5 + $0x8] sm:$0xff]  ;;  %v2145_v2 = vld [vmem:[%s17501_s5 + $0x18] sm:$0xff] }
 0x629   :  { %2211 = vmatprep.subr.mxu0 %v2199_v11  ;;  %2282 = vmatprep.subr.mxu1 %v2201_v4  ;;  %v2142_v11 = vld [vmem:[%s17501_s5] sm:$0xff]  ;;  %v2144_v4 = vld [vmem:[%s17501_s5 + $0x10] sm:$0xff] }
 0x62a   :  { %2212 = vmatpush1.msra.mxu0 %v2198_v18  ;;  %2283 = vmatpush1.msra.mxu1 %v2200_v20  ;;  %v2458_v18 = vld [vmem:[%s17503_s7 + $0x1e8] sm:$0xff]  ;;  %v2460_v20 = vld [vmem:[%s17503_s7 + $0x1f8] sm:$0xff] }
 0x62b   :  { %2213 = vmatprep.subr.mxu0 %v2195_v7  ;;  %2284 = vmatprep.subr.mxu1 %v2197_v8 }
 0x62c   :  { %2214 = vmatpush1.msra.mxu0 %v2194_v17  ;;  %2285 = vmatpush1.msra.mxu1 %v2196_v15 }
 0x62d   :  { %2215 = vmatprep.subr.mxu0 %v2191_v5  ;;  %2286 = vmatprep.subr.mxu1 %v2193_v14 }
 0x62e   :  { %2216 = vmatpush1.msra.mxu0 %v2190_v32  ;;  %2287 = vmatpush1.msra.mxu1 %v2192_v25 }
 0x62f   :  { %2217 = vmatprep.subr.mxu0 %v2187_v26  ;;  %2288 = vmatprep.subr.mxu1 %v2189_v28 }
 0x630   :  { %2218 = vmatpush1.msra.mxu0 %v2186_v30  ;;  %2289 = vmatpush1.msra.mxu1 %v2188_v31 }
 0x631   :  { %2219 = vmatprep.subr.mxu0 %v2183_v33  ;;  %2290 = vmatprep.subr.mxu1 %v2185_v34 }
 0x632   :  { %2220 = vmatpush1.msra.mxu0 %v2182_v35  ;;  %2291 = vmatpush1.msra.mxu1 %v2184_v36 }
 0x633   :  { %2221 = vmatprep.subr.mxu0 %v2179_v37  ;;  %2292 = vmatprep.subr.mxu1 %v2181_v38 }
 0x634   :  { %2222 = vmatpush1.msra.mxu0 %v2178_v40  ;;  %2293 = vmatpush1.msra.mxu1 %v2180_v41 }
 0x635   :  { %2223 = vmatprep.subr.mxu0 %v2175_v42  ;;  %2294 = vmatprep.subr.mxu1 %v2177_v43 }
 0x636   :  { %2224 = vmatpush1.msra.mxu0 %v2174_v45  ;;  %2295 = vmatpush1.msra.mxu1 %v2176_v46  ;;  %v2134_v45 = vrot.slane %v14055_v27, 6  ;;  %v2459_v27 = vld [vmem:[%s17503_s7 + $0x1f0] sm:$0xff] }
 0x637   :  { %2225 = vmatprep.subr.mxu0 %v2171_v48  ;;  %2296 = vmatprep.subr.mxu1 %v2173_v49 }
 0x638   :  { %2226 = vmatpush1.msra.mxu0 %v2170_v51  ;;  %2297 = vmatpush1.msra.mxu1 %v2172_v52 }
 0x639   :  { %2227 = vmatprep.subr.mxu0 %v2167_v53  ;;  %2298 = vmatprep.subr.mxu1 %v2169_v54 }
 0x63a   :  { %2228 = vmatpush1.msra.mxu0 %v2166_v55  ;;  %2299 = vmatpush1.msra.mxu1 %v2168_v56 }
 0x63b   :  { %2229 = vmatprep.subr.mxu0 %v2163_v57  ;;  %2300 = vmatprep.subr.mxu1 %v2165_v58  ;;  %v2457_v57 = vld [vmem:[%s17503_s7 + $0x1e0] sm:$0xff]  ;;  %v2454_v58 = vld [vmem:[%s17503_s7 + $0x1c8] sm:$0xff] }
 0x63c   :  { %2230 = vmatpush1.msra.mxu0 %v2162_v59  ;;  %2301 = vmatpush1.msra.mxu1 %v2164_v60  ;;  %v2456_v59 = vld [vmem:[%s17503_s7 + $0x1d8] sm:$0xff]  ;;  %v2453_v60 = vld [vmem:[%s17503_s7 + $0x1c0] sm:$0xff] }
 0x63d   :  { %2231 = vmatprep.subr.mxu0 %v2159_v61  ;;  %2302 = vmatprep.subr.mxu1 %v2161_v62  ;;  %v2455_v61 = vld [vmem:[%s17503_s7 + $0x1d0] sm:$0xff]  ;;  %v2450_v62 = vld [vmem:[%s17503_s7 + $0x1a8] sm:$0xff] }
 0x63e   :  { %2232 = vmatpush1.msra.mxu0 %v2158_v63  ;;  %2303 = vmatpush1.msra.mxu1 %v2160_v0  ;;  %v2452_v63 = vld [vmem:[%s17503_s7 + $0x1b8] sm:$0xff]  ;;  %v2449_v0 = vld [vmem:[%s17503_s7 + $0x1a0] sm:$0xff] }
 0x63f   :  { %2233 = vmatprep.subr.mxu0 %v2155_v1  ;;  %2304 = vmatprep.subr.mxu1 %v2157_v10  ;;  %v2451_v1 = vld [vmem:[%s17503_s7 + $0x1b0] sm:$0xff]  ;;  %v2446_v10 = vld [vmem:[%s17503_s7 + $0x188] sm:$0xff] }
 0x640   :  { %2234 = vmatpush1.msra.mxu0 %v2154_v23  ;;  %2305 = vmatpush1.msra.mxu1 %v2156_v21  ;;  %v2448_v23 = vld [vmem:[%s17503_s7 + $0x198] sm:$0xff]  ;;  %v2445_v21 = vld [vmem:[%s17503_s7 + $0x180] sm:$0xff] }
 0x641   :  { %2235 = vmatprep.subr.mxu0 %v2151_v13  ;;  %2306 = vmatprep.subr.mxu1 %v2153_v47  ;;  %v2447_v13 = vld [vmem:[%s17503_s7 + $0x190] sm:$0xff]  ;;  %v2442_v47 = vld [vmem:[%s17503_s7 + $0x168] sm:$0xff] }
 0x642   :  { %2236 = vmatpush1.msra.mxu0 %v2150_v6  ;;  %2307 = vmatpush1.msra.mxu1 %v2152_v16  ;;  %v2444_v6 = vld [vmem:[%s17503_s7 + $0x178] sm:$0xff]  ;;  %v2441_v16 = vld [vmem:[%s17503_s7 + $0x160] sm:$0xff] }
 0x643   :  { %2237 = vmatprep.subr.mxu0 %v2147_v9  ;;  %2308 = vmatprep.subr.mxu1 %v2149_v24  ;;  %v2443_v9 = vld [vmem:[%s17503_s7 + $0x170] sm:$0xff]  ;;  %v2438_v24 = vld [vmem:[%s17503_s7 + $0x148] sm:$0xff] }
 0x644   :  { %2238 = vmatpush1.msra.mxu0 %v2146_v12  ;;  %2309 = vmatpush1.msra.mxu1 %v2148_v22  ;;  %v2440_v12 = vld [vmem:[%s17503_s7 + $0x158] sm:$0xff]  ;;  %v2437_v22 = vld [vmem:[%s17503_s7 + $0x140] sm:$0xff] }
 0x645   :  { %2239 = vmatprep.subr.mxu0 %v2143_v29  ;;  %2310 = vmatprep.subr.mxu1 %v2145_v2  ;;  %v2439_v29 = vld [vmem:[%s17503_s7 + $0x150] sm:$0xff]  ;;  %v2434_v2 = vld [vmem:[%s17503_s7 + $0x128] sm:$0xff] }
 0x646   :  { %2240 = vmatpush1.msra.mxu0 %v2142_v11  ;;  %2311 = vmatpush1.msra.mxu1 %v2144_v4  ;;  %v2436_v11 = vld [vmem:[%s17503_s7 + $0x138] sm:$0xff]  ;;  %v2433_v4 = vld [vmem:[%s17503_s7 + $0x120] sm:$0xff] }
 0x647   :  { %2483 = vmatprep.subr.mxu0 %v2458_v18  ;;  %2560 = vmatprep.subr.mxu1 %v2460_v20  ;;  %v2435_v18 = vld [vmem:[%s17503_s7 + $0x130] sm:$0xff]  ;;  %v2430_v20 = vld [vmem:[%s17503_s7 + $0x108] sm:$0xff] }
 0x6e6   :  { %v2022_v7 = vpop.f32.mrf.mxu0  ;;  %v2093_v5 = vpop.f32.mrf.mxu1 }
 0x6e7   :  { %v2102_v8 = vrot.slane %v2022_v7, 4  ;;  %v2104_v33 = vrot.slane %v2093_v5, 4  ;;  %v2432_v7 = vld [vmem:[%s17503_s7 + $0x118] sm:$0xff] }
 0x6e8   :  { %v2024_v17 = vpop.f32.mrf.mxu0  ;;  %v2095_v28 = vpop.f32.mrf.mxu1  ;;  %v2428_v5 = vld [vmem:[%s17503_s7 + $0xf8] sm:$0xff] }
 0x6e9   :  { %v2110_v15 = vadd.f32 %v2102_v8, %v17880_v44  ;;  %v2103_v14 = vrot.slane %v2024_v17, 4  ;;  %v2105_v30 = vrot.slane %v2095_v28, 4  ;;  %v2112_v36 = vadd.f32 %v2104_v33, %v17861_v19  ;;  %v2429_v8 = vld [vmem:[%s17503_s7 + $0x100] sm:$0xff]  ;;  %v2431_v17 = vld [vmem:[%s17503_s7 + $0x110] sm:$0xff]  ;;  %v2420_v33 = vld [vmem:[%s17503_s7 + $0xb8] sm:$0xff] }
 0x6ea   :  { %v2421_v28 = vld [vmem:[%s17503_s7 + $0xc0] sm:$0xff] }
 0x6eb   :  { %v10047_v32 = vmul.f32 -1.442695, %v2110_v15  ;;  %v2111_v25 = vadd.f32 %v2103_v14, %v17881_v50  ;;  %v2113_v31 = vadd.f32 %v2105_v30, %v13978_v3  ;;  %v2426_v15 = vld [vmem:[%s17503_s7 + $0xe8] sm:$0xff]  ;;  %v2425_v14 = vld [vmem:[%s17503_s7 + $0xe0] sm:$0xff]  ;;  %v2423_v30 = vld [vmem:[%s17503_s7 + $0xd0] sm:$0xff] }
 0x6ed   :  { %12344 = vpow2.f32 %v10047_v32  ;;  %v10048_v26 = vmul.f32 -1.442695, %v2111_v25  ;;  %v10049_v34 = vmul.f32 -1.442695, %v2113_v31  ;;  %v2427_v32 = vld [vmem:[%s17503_s7 + $0xf0] sm:$0xff]  ;;  %v2422_v25 = vld [vmem:[%s17503_s7 + $0xc8] sm:$0xff] }
 0x6ee   :  { %v2418_v31 = vld [vmem:[%s17503_s7 + $0xa8] sm:$0xff] }
 0x6ef   :  { %12346 = vpow2.f32 %v10048_v26  ;;  %v2424_v26 = vld [vmem:[%s17503_s7 + $0xd8] sm:$0xff] }
 0x6f0   :  { %12348 = vpow2.f32 %v10049_v34  ;;  %v2417_v34 = vld [vmem:[%s17503_s7 + $0xa0] sm:$0xff] }
 0x6fa   :  { %v12345_v35 = vpop.eup %12344 }
 0x6fb   :  { %v2117_v37 = vadd.f32 1.0, %v12345_v35  ;;  %v2419_v35 = vld [vmem:[%s17503_s7 + $0xb0] sm:$0xff] }
 0x6fc   :  { %v12347_v38 = vpop.eup %12346 }
 0x6fd   :  { %12350 = vrcp.f32 %v2117_v37  ;;  %v2123_v40 = vadd.f32 1.0, %v12347_v38  ;;  %v12349_v41 = vpop.eup %12348  ;;  %v2416_v37 = vld [vmem:[%s17503_s7 + $0x98] sm:$0xff]  ;;  %v2413_v38 = vld [vmem:[%s17503_s7 + $0x80] sm:$0xff] }
 0x6fe   :  { %12352 = vtanh.f32 %v2112_v36  ;;  %v2130_v48 = vadd.f32 1.0, %v12349_v41  ;;  %v2414_v36 = vld [vmem:[%s17503_s7 + $0x88] sm:$0xff] }
 0x6ff   :  { %12354 = vrcp.f32 %v2123_v40  ;;  %v2415_v40 = vld [vmem:[%s17503_s7 + $0x90] sm:$0xff]  ;;  %v2410_v41 = vld [vmem:[%s17503_s7 + $0x68] sm:$0xff] }
 0x700   :  { %12356 = vrcp.f32 %v2130_v48  ;;  %v2408_v48 = vld [vmem:[%s17503_s7 + $0x58] sm:$0xff] }
 0x70a   :  { %v12351_v42 = vpop.eup %12350 }
 0x70b   :  { %v12353_v43 = vpop.eup %12352 }
 0x70c   :  { %v12355_v46 = vpop.eup %12354  ;;  %v2137_v49 = vmul.f32 %v12353_v43, %v12351_v42  ;;  %v2412_v42 = vld [vmem:[%s17503_s7 + $0x78] sm:$0xff]  ;;  %v2409_v43 = vld [vmem:[%s17503_s7 + $0x60] sm:$0xff] }
 0x70d   :  { %v2136_v51 = vmul.f32 %v12355_v46, %v2134_v45  ;;  %v12357_v53 = vpop.eup %12356  ;;  %v2411_v45 = vld [vmem:[%s17503_s7 + $0x70] sm:$0xff]  ;;  %v2406_v46 = vld [vmem:[%s17503_s7 + $0x48] sm:$0xff] }
 0x70f   :  { %v14263_v52 = vadd.f32 %v2137_v49, %v2136_v51  ;;  %v2405_v49 = vld [vmem:[%s17503_s7 + $0x40] sm:$0xff]  ;;  %v2407_v51 = vld [vmem:[%s17503_s7 + $0x50] sm:$0xff] }
 0x711   :  { %12358 = vtanh.f32 %v14263_v52 }
 0x71e   :  { %v12359_v54 = vpop.eup %12358 }
 0x71f   :  { %v2140_v55 = vmul.f32 %v12359_v54, %v12357_v53  ;;  %v2402_v53 = vld [vmem:[%s17503_s7 + $0x28] sm:$0xff]  ;;  %v2404_v54 = vld [vmem:[%s17503_s7 + $0x38] sm:$0xff] }
 0x721   :  { %2141 = vst [vmem:[#allocation2 + $0x8] sm:$0x30] %v2140_v55  ;;  %v2207_v56 = vrot.slane %v2140_v55, 4  ;;  %v2401_v55 = vld [vmem:[%s17503_s7 + $0x20] sm:$0xff] }
 0x723   :  { %2274 = vmatmul.mubr.f32.vlgmr.msra.gmra.mxu0 %v2207_v56  ;;  %2345 = vmatmul.mubr.f32.vlgmr.msra.gmra.mxu1 %v2207_v56  ;;  %v2403_v56 = vld [vmem:[%s17503_s7 + $0x30] sm:$0xff] }
 0x724   :  { %2484 = vmatpush1.msra.mxu0 %v2457_v57  ;;  %2561 = vmatpush1.msra.mxu1 %v2459_v27  ;;  %v2398_v57 = vld [vmem:[%s17503_s7 + $0x8] sm:$0xff]  ;;  %v2400_v27 = vld [vmem:[%s17503_s7 + $0x18] sm:$0xff] }
 0x725   :  { %2485 = vmatprep.subr.mxu0 %v2454_v58  ;;  %2562 = vmatprep.subr.mxu1 %v2456_v59  ;;  %v2397_v58 = vld [vmem:[%s17503_s7] sm:$0xff]  ;;  %v2399_v59 = vld [vmem:[%s17503_s7 + $0x10] sm:$0xff] }
 0x726   :  { %2486 = vmatpush1.msra.mxu0 %v2453_v60  ;;  %2563 = vmatpush1.msra.mxu1 %v2455_v61  ;;  %v2395_v60 = vld [vmem:[#allocation2] sm:$0xff]  ;;  %v14459_v61 = vld [vmem:[%s17504_s8 + $0x1e8] sm:$0xff] }
 0x727   :  { %2487 = vmatprep.subr.mxu0 %v2450_v62  ;;  %2564 = vmatprep.subr.mxu1 %v2452_v63  ;;  %17882 = vst [vmem:[#allocation8_spill] sm:$0xff] %v14459_v61  ;;  %v14464_v62 = vld [vmem:[%s17504_s8 + $0x1f8] sm:$0xff]  ;;  %v14471_v63 = vld [vmem:[%s17504_s8 + $0x1e0] sm:$0xff] }
 0x728   :  { %2488 = vmatpush1.msra.mxu0 %v2449_v0  ;;  %2565 = vmatpush1.msra.mxu1 %v2451_v1  ;;  %17883 = vst [vmem:[#allocation15_spill] sm:$0xff] %v14464_v62  ;;  %v14476_v0 = vld [vmem:[%s17504_s8 + $0x1f0] sm:$0xff]  ;;  %v14483_v1 = vld [vmem:[%s17504_s8 + $0x1c8] sm:$0xff] }
 0x729   :  { %2489 = vmatprep.subr.mxu0 %v2446_v10  ;;  %2566 = vmatprep.subr.mxu1 %v2448_v23  ;;  %v14488_v10 = vld [vmem:[%s17504_s8 + $0x1d8] sm:$0xff]  ;;  %v14495_v23 = vld [vmem:[%s17504_s8 + $0x1c0] sm:$0xff] }
 0x72a   :  { %2490 = vmatpush1.msra.mxu0 %v2445_v21  ;;  %2567 = vmatpush1.msra.mxu1 %v2447_v13  ;;  %v14500_v21 = vld [vmem:[%s17504_s8 + $0x1d0] sm:$0xff]  ;;  %v14507_v13 = vld [vmem:[%s17504_s8 + $0x1a8] sm:$0xff] }
 0x72b   :  { %2491 = vmatprep.subr.mxu0 %v2442_v47  ;;  %2568 = vmatprep.subr.mxu1 %v2444_v6  ;;  %v14512_v47 = vld [vmem:[%s17504_s8 + $0x1b8] sm:$0xff]  ;;  %v14519_v6 = vld [vmem:[%s17504_s8 + $0x1a0] sm:$0xff] }
 0x72c   :  { %2492 = vmatpush1.msra.mxu0 %v2441_v16  ;;  %2569 = vmatpush1.msra.mxu1 %v2443_v9  ;;  %v14524_v16 = vld [vmem:[%s17504_s8 + $0x1b0] sm:$0xff]  ;;  %v14531_v9 = vld [vmem:[%s17504_s8 + $0x188] sm:$0xff] }
 0x72d   :  { %2493 = vmatprep.subr.mxu0 %v2438_v24  ;;  %2570 = vmatprep.subr.mxu1 %v2440_v12  ;;  %v14536_v24 = vld [vmem:[%s17504_s8 + $0x198] sm:$0xff]  ;;  %v14543_v12 = vld [vmem:[%s17504_s8 + $0x180] sm:$0xff] }
 0x72e   :  { %2494 = vmatpush1.msra.mxu0 %v2437_v22  ;;  %2571 = vmatpush1.msra.mxu1 %v2439_v29  ;;  %v14548_v22 = vld [vmem:[%s17504_s8 + $0x190] sm:$0xff]  ;;  %v14555_v29 = vld [vmem:[%s17504_s8 + $0x168] sm:$0xff] }
 0x72f   :  { %2495 = vmatprep.subr.mxu0 %v2434_v2  ;;  %2572 = vmatprep.subr.mxu1 %v2436_v11  ;;  %v14560_v2 = vld [vmem:[%s17504_s8 + $0x178] sm:$0xff]  ;;  %v14567_v11 = vld [vmem:[%s17504_s8 + $0x160] sm:$0xff] }
 0x730   :  { %2496 = vmatpush1.msra.mxu0 %v2433_v4  ;;  %2573 = vmatpush1.msra.mxu1 %v2435_v18  ;;  %v14572_v4 = vld [vmem:[%s17504_s8 + $0x170] sm:$0xff]  ;;  %v14579_v18 = vld [vmem:[%s17504_s8 + $0x148] sm:$0xff] }
 0x731   :  { %2497 = vmatprep.subr.mxu0 %v2430_v20  ;;  %2574 = vmatprep.subr.mxu1 %v2432_v7  ;;  %v14584_v20 = vld [vmem:[%s17504_s8 + $0x158] sm:$0xff]  ;;  %v14591_v7 = vld [vmem:[%s17504_s8 + $0x140] sm:$0xff] }
 0x732   :  { %2498 = vmatpush1.msra.mxu0 %v2429_v8  ;;  %2575 = vmatpush1.msra.mxu1 %v2431_v17  ;;  %v14596_v8 = vld [vmem:[%s17504_s8 + $0x150] sm:$0xff]  ;;  %v14603_v17 = vld [vmem:[%s17504_s8 + $0x128] sm:$0xff] }
 0x733   :  { %2499 = vmatprep.subr.mxu0 %v2426_v15  ;;  %2576 = vmatprep.subr.mxu1 %v2428_v5  ;;  %v14608_v15 = vld [vmem:[%s17504_s8 + $0x138] sm:$0xff]  ;;  %v14615_v5 = vld [vmem:[%s17504_s8 + $0x120] sm:$0xff] }
 0x734   :  { %2500 = vmatpush1.msra.mxu0 %v2425_v14  ;;  %2577 = vmatpush1.msra.mxu1 %v2427_v32  ;;  %v14620_v14 = vld [vmem:[%s17504_s8 + $0x130] sm:$0xff]  ;;  %v14627_v32 = vld [vmem:[%s17504_s8 + $0x108] sm:$0xff] }
 0x735   :  { %2501 = vmatprep.subr.mxu0 %v2422_v25  ;;  %2578 = vmatprep.subr.mxu1 %v2424_v26  ;;  %v14632_v25 = vld [vmem:[%s17504_s8 + $0x118] sm:$0xff]  ;;  %v14639_v26 = vld [vmem:[%s17504_s8 + $0x100] sm:$0xff] }
 0x736   :  { %2502 = vmatpush1.msra.mxu0 %v2421_v28  ;;  %2579 = vmatpush1.msra.mxu1 %v2423_v30  ;;  %v14644_v28 = vld [vmem:[%s17504_s8 + $0x110] sm:$0xff]  ;;  %v14651_v30 = vld [vmem:[%s17504_s8 + $0xe8] sm:$0xff] }
 0x737   :  { %2503 = vmatprep.subr.mxu0 %v2418_v31  ;;  %2580 = vmatprep.subr.mxu1 %v2420_v33  ;;  %v14656_v31 = vld [vmem:[%s17504_s8 + $0xf8] sm:$0xff]  ;;  %v14663_v33 = vld [vmem:[%s17504_s8 + $0xe0] sm:$0xff] }
 0x738   :  { %2504 = vmatpush1.msra.mxu0 %v2417_v34  ;;  %2581 = vmatpush1.msra.mxu1 %v2419_v35  ;;  %v14668_v34 = vld [vmem:[%s17504_s8 + $0xf0] sm:$0xff]  ;;  %v14675_v35 = vld [vmem:[%s17504_s8 + $0xc8] sm:$0xff] }
 0x739   :  { %2505 = vmatprep.subr.mxu0 %v2414_v36  ;;  %2582 = vmatprep.subr.mxu1 %v2416_v37  ;;  %v14680_v36 = vld [vmem:[%s17504_s8 + $0xd8] sm:$0xff]  ;;  %v14687_v37 = vld [vmem:[%s17504_s8 + $0xc0] sm:$0xff] }
 0x73a   :  { %2506 = vmatpush1.msra.mxu0 %v2413_v38  ;;  %2583 = vmatpush1.msra.mxu1 %v2415_v40  ;;  %v14692_v38 = vld [vmem:[%s17504_s8 + $0xd0] sm:$0xff]  ;;  %v14697_v40 = vld [vmem:[%s17504_s8 + $0xa8] sm:$0xff] }
 0x73b   :  { %2507 = vmatprep.subr.mxu0 %v2410_v41  ;;  %2584 = vmatprep.subr.mxu1 %v2412_v42  ;;  %v14704_v41 = vld [vmem:[%s17504_s8 + $0xb8] sm:$0xff]  ;;  %v14709_v42 = vld [vmem:[%s17504_s8 + $0xa0] sm:$0xff] }
 0x73c   :  { %2508 = vmatpush1.msra.mxu0 %v2409_v43  ;;  %2585 = vmatpush1.msra.mxu1 %v2411_v45  ;;  %v14714_v43 = vld [vmem:[%s17504_s8 + $0xb0] sm:$0xff]  ;;  %v14721_v45 = vld [vmem:[%s17504_s8 + $0x88] sm:$0xff] }
 0x73d   :  { %2509 = vmatprep.subr.mxu0 %v2406_v46  ;;  %2586 = vmatprep.subr.mxu1 %v2408_v48  ;;  %17884 = vst [vmem:[#allocation11_spill] sm:$0xff] %v14714_v43  ;;  %17885 = vst [vmem:[#allocation7_spill] sm:$0xff] %v14721_v45  ;;  %v14726_v46 = vld [vmem:[%s17504_s8 + $0x98] sm:$0xff]  ;;  %v14731_v48 = vld [vmem:[%s17504_s8 + $0x80] sm:$0xff] }
 0x73e   :  { %2510 = vmatpush1.msra.mxu0 %v2405_v49  ;;  %2587 = vmatpush1.msra.mxu1 %v2407_v51  ;;  %17886 = vst [vmem:[#allocation29_spill] sm:$0xff] %v14726_v46  ;;  %17887 = vst [vmem:[#allocation28_spill] sm:$0xff] %v14731_v48  ;;  %v14738_v49 = vld [vmem:[%s17504_s8 + $0x90] sm:$0xff]  ;;  %v14743_v51 = vld [vmem:[%s17504_s8 + $0x68] sm:$0xff] }
 0x73f   :  { %2511 = vmatprep.subr.mxu0 %v2402_v53  ;;  %2588 = vmatprep.subr.mxu1 %v2404_v54  ;;  %17888 = vst [vmem:[#allocation32_spill] sm:$0xff] %v14738_v49  ;;  %17889 = vst [vmem:[#allocation31_spill] sm:$0xff] %v14743_v51  ;;  %v14748_v53 = vld [vmem:[%s17504_s8 + $0x78] sm:$0xff]  ;;  %v14755_v54 = vld [vmem:[%s17504_s8 + $0x60] sm:$0xff] }
 0x740   :  { %2512 = vmatpush1.msra.mxu0 %v2401_v55  ;;  %2589 = vmatpush1.msra.mxu1 %v2403_v56  ;;  %17890 = vst [vmem:[#allocation30_spill] sm:$0xff] %v14748_v53  ;;  %17891 = vst [vmem:[#allocation9_spill] sm:$0xff] %v14755_v54  ;;  %v14760_v55 = vld [vmem:[%s17504_s8 + $0x70] sm:$0xff]  ;;  %v14767_v56 = vld [vmem:[%s17504_s8 + $0x48] sm:$0xff] }
 0x741   :  { %2513 = vmatprep.subr.mxu0 %v2398_v57  ;;  %2590 = vmatprep.subr.mxu1 %v2400_v27  ;;  %17892 = vst [vmem:[#allocation17_spill] sm:$0xff] %v14760_v55  ;;  %17893 = vst [vmem:[#allocation10_spill] sm:$0xff] %v14767_v56  ;;  %v14772_v57 = vld [vmem:[%s17504_s8 + $0x58] sm:$0xff]  ;;  %v14779_v27 = vld [vmem:[%s17504_s8 + $0x40] sm:$0xff] }
 0x742   :  { %2514 = vmatpush1.msra.mxu0 %v2397_v58  ;;  %2547 = vmatprep.mubr.f32.mxu0 %v17878_v39  ;;  %17894 = vst [vmem:[#allocation19_spill] sm:$0xff] %v14772_v57  ;;  %17895 = vst [vmem:[#allocation12_spill] sm:$0xff] %v14779_v27  ;;  %v14784_v58 = vld [vmem:[%s17504_s8 + $0x50] sm:$0xff] }
 0x743   :  { %2591 = vmatpush1.msra.mxu1 %v2399_v59  ;;  %2624 = vmatprep.mubr.f32.mxu1 %v17878_v39  ;;  %17896 = vst [vmem:[#allocation21_spill] sm:$0xff] %v14784_v58  ;;  %v14793_v59 = vld [vmem:[%s17504_s8 + $0x28] sm:$0xff] }
 0x744   :  { %2548 = vmatmul.mubr.f32.vlgmr.msra.gmra.mxu0 %v2395_v60  ;;  %2625 = vmatmul.mubr.f32.vlgmr.msra.gmra.mxu1 %v2395_v60  ;;  %17897 = vst [vmem:[#allocation14_spill] sm:$0xff] %v14793_v59  ;;  %v14798_v60 = vld [vmem:[%s17504_s8 + $0x38] sm:$0xff] }
 0x745   :  { %2553 = vmatprep.mubr.f32.mxu0 %v17878_v39  ;;  %2630 = vmatprep.mubr.f32.mxu1 %v17878_v39  ;;  %17898 = vst [vmem:[#allocation22_spill] sm:$0xff] %v14798_v60 }
 0x746   :  { %2701 = vmatprep.subr.mxu0 %v14459_v61  ;;  %2772 = vmatprep.subr.mxu1 %v14464_v62 }
 0x747   :  { %2702 = vmatpush1.msra.mxu0 %v14471_v63  ;;  %2773 = vmatpush1.msra.mxu1 %v14476_v0 }
 0x748   :  { %2703 = vmatprep.subr.mxu0 %v14483_v1  ;;  %2774 = vmatprep.subr.mxu1 %v14488_v10 }
 0x749   :  { %2704 = vmatpush1.msra.mxu0 %v14495_v23  ;;  %2775 = vmatpush1.msra.mxu1 %v14500_v21 }
 0x74a   :  { %2705 = vmatprep.subr.mxu0 %v14507_v13  ;;  %2776 = vmatprep.subr.mxu1 %v14512_v47 }
 0x74b   :  { %2706 = vmatpush1.msra.mxu0 %v14519_v6  ;;  %2777 = vmatpush1.msra.mxu1 %v14524_v16 }
 0x74c   :  { %2707 = vmatprep.subr.mxu0 %v14531_v9  ;;  %2778 = vmatprep.subr.mxu1 %v14536_v24 }
 0x74d   :  { %2708 = vmatpush1.msra.mxu0 %v14543_v12  ;;  %2779 = vmatpush1.msra.mxu1 %v14548_v22 }
 0x74e   :  { %2709 = vmatprep.subr.mxu0 %v14555_v29  ;;  %2780 = vmatprep.subr.mxu1 %v14560_v2 }
 0x74f   :  { %2710 = vmatpush1.msra.mxu0 %v14567_v11  ;;  %2781 = vmatpush1.msra.mxu1 %v14572_v4 }
 0x750   :  { %2711 = vmatprep.subr.mxu0 %v14579_v18  ;;  %2782 = vmatprep.subr.mxu1 %v14584_v20 }
 0x751   :  { %2712 = vmatpush1.msra.mxu0 %v14591_v7  ;;  %2783 = vmatpush1.msra.mxu1 %v14596_v8 }
 0x752   :  { %2713 = vmatprep.subr.mxu0 %v14603_v17  ;;  %2784 = vmatprep.subr.mxu1 %v14608_v15 }
 0x753   :  { %2714 = vmatpush1.msra.mxu0 %v14615_v5  ;;  %2785 = vmatpush1.msra.mxu1 %v14620_v14 }
 0x754   :  { %2715 = vmatprep.subr.mxu0 %v14627_v32  ;;  %2786 = vmatprep.subr.mxu1 %v14632_v25 }
 0x755   :  { %2716 = vmatpush1.msra.mxu0 %v14639_v26  ;;  %2787 = vmatpush1.msra.mxu1 %v14644_v28 }
 0x756   :  { %2717 = vmatprep.subr.mxu0 %v14651_v30  ;;  %2788 = vmatprep.subr.mxu1 %v14656_v31 }
 0x757   :  { %2718 = vmatpush1.msra.mxu0 %v14663_v33  ;;  %2789 = vmatpush1.msra.mxu1 %v14668_v34 }
 0x758   :  { %2719 = vmatprep.subr.mxu0 %v14675_v35  ;;  %2790 = vmatprep.subr.mxu1 %v14680_v36 }
 0x759   :  { %2720 = vmatpush1.msra.mxu0 %v14687_v37  ;;  %2791 = vmatpush1.msra.mxu1 %v14692_v38 }
 0x75a   :  { %2721 = vmatprep.subr.mxu0 %v14697_v40  ;;  %2792 = vmatprep.subr.mxu1 %v14704_v41 }
 0x75b   :  { %2722 = vmatpush1.msra.mxu0 %v14709_v42  ;;  %2793 = vmatpush1.msra.mxu1 %v14714_v43 }
 0x75c   :  { %2723 = vmatprep.subr.mxu0 %v14721_v45  ;;  %2794 = vmatprep.subr.mxu1 %v14726_v46 }
 0x75d   :  { %2724 = vmatpush1.msra.mxu0 %v14731_v48  ;;  %2795 = vmatpush1.msra.mxu1 %v14738_v49 }
 0x75e   :  { %2725 = vmatprep.subr.mxu0 %v14743_v51  ;;  %2796 = vmatprep.subr.mxu1 %v14748_v53 }
 0x75f   :  { %2726 = vmatpush1.msra.mxu0 %v14755_v54  ;;  %2797 = vmatpush1.msra.mxu1 %v14760_v55  ;;  %v14803_v54 = vld [vmem:[%s17504_s8 + $0x20] sm:$0xff]  ;;  %v14820_v55 = vld [vmem:[%s17504_s8 + $0x18] sm:$0xff] }
 0x760   :  { %2727 = vmatprep.subr.mxu0 %v14767_v56  ;;  %2798 = vmatprep.subr.mxu1 %v14772_v57  ;;  %17899 = vst [vmem:[#allocation16_spill] sm:$0xff] %v14803_v54  ;;  %v14810_v57 = vld [vmem:[%s17504_s8 + $0x30] sm:$0xff]  ;;  %v14815_v56 = vld [vmem:[%s17504_s8 + $0x8] sm:$0xff]  ;;  %17902 = vst [vmem:[#allocation24_spill] sm:$0xff] %v14820_v55 }
 0x761   :  { %2728 = vmatpush1.msra.mxu0 %v14779_v27  ;;  %2799 = vmatpush1.msra.mxu1 %v14784_v58  ;;  %17900 = vst [vmem:[#allocation23_spill] sm:$0xff] %v14810_v57  ;;  %17901 = vst [vmem:[#allocation18_spill] sm:$0xff] %v14815_v56  ;;  %v14827_v58 = vld [vmem:[%s17504_s8] sm:$0xff]  ;;  %v14832_v27 = vld [vmem:[%s17504_s8 + $0x10] sm:$0xff] }
 0x762   :  { %2729 = vmatprep.subr.mxu0 %v14793_v59  ;;  %2800 = vmatprep.subr.mxu1 %v14798_v60  ;;  %17903 = vst [vmem:[#allocation20_spill] sm:$0xff] %v14827_v58  ;;  %17904 = vst [vmem:[#allocation25_spill] sm:$0xff] %v14832_v27 }
 0x763   :  { %2730 = vmatpush1.msra.mxu0 %v14803_v54  ;;  %2801 = vmatpush1.msra.mxu1 %v14810_v57 }
 0x764   :  { %2731 = vmatprep.subr.mxu0 %v14815_v56  ;;  %2802 = vmatprep.subr.mxu1 %v14820_v55 }
 0x765   :  { %2732 = vmatpush1.msra.mxu0 %v14827_v58  ;;  %2803 = vmatpush1.msra.mxu1 %v14832_v27 }
 0x766   :  { %2937 = vmatprep.subr.mxu0 %v14459_v61  ;;  %3008 = vmatprep.subr.mxu1 %v14464_v62 }
 0x7e3   :  { %v2275_v60 = vpop.f32.mrf.mxu0  ;;  %v2346_v54 = vpop.f32.mrf.mxu1 }
 0x7e4   :  { %v2355_v59 = vrot.slane %v2275_v60, 2  ;;  %v2357_v61 = vrot.slane %v2346_v54, 2 }
 0x7e5   :  { %v2277_v53 = vpop.f32.mrf.mxu0  ;;  %v2348_v48 = vpop.f32.mrf.mxu1 }
 0x7e6   :  { %v2363_v51 = vadd.f32 %v2355_v59, %v17880_v44  ;;  %v2356_v49 = vrot.slane %v2277_v53, 2  ;;  %v2358_v58 = vrot.slane %v2348_v48, 2  ;;  %v2365_v60 = vadd.f32 %v2357_v61, %v17861_v19  ;;  %v17911_v59 = vld [vmem:[#allocation30_spill] sm:$0xff] }
 0x7e7   :  { %v2387_v53 = vrot.slane %v14263_v52, 6  ;;  %v17905_v52 = vld [vmem:[#allocation11_spill] sm:$0xff] }
 0x7e8   :  { %v10050_v57 = vmul.f32 -1.442695, %v2363_v51  ;;  %v2364_v56 = vadd.f32 %v2356_v49, %v17881_v50  ;;  %v2366_v27 = vadd.f32 %v2358_v58, %v13978_v3  ;;  %v17910_v58 = vld [vmem:[#allocation31_spill] sm:$0xff] }
 0x7ea   :  { %12360 = vpow2.f32 %v10050_v57  ;;  %v10051_v55 = vmul.f32 -1.442695, %v2364_v56  ;;  %v10052_v46 = vmul.f32 -1.442695, %v2366_v27  ;;  %v17908_v57 = vld [vmem:[#allocation28_spill] sm:$0xff] }
 0x7eb   :  { %v17909_v27 = vld [vmem:[#allocation32_spill] sm:$0xff] }
 0x7ec   :  { %12362 = vpow2.f32 %v10051_v55 }
 0x7ed   :  { %12364 = vpow2.f32 %v10052_v46  ;;  %v17907_v46 = vld [vmem:[#allocation29_spill] sm:$0xff] }
 0x7f7   :  { %v12361_v62 = vpop.eup %12360 }
 0x7f8   :  { %v2370_v45 = vadd.f32 1.0, %v12361_v62 }
 0x7f9   :  { %v12363_v43 = vpop.eup %12362 }
 0x7fa   :  { %12366 = vrcp.f32 %v2370_v45  ;;  %v2376_v44 = vadd.f32 1.0, %v12363_v43  ;;  %v12365_v50 = vpop.eup %12364  ;;  %v17906_v43 = vld [vmem:[#allocation7_spill] sm:$0xff] }
 0x7fb   :  { %12368 = vtanh.f32 %v2365_v60  ;;  %v2383_v55 = vadd.f32 1.0, %v12365_v50  ;;  %v17912_v60 = vld [vmem:[#allocation9_spill] sm:$0xff]  ;;  %v17914_v50 = vld [vmem:[#allocation10_spill] sm:$0xff] }
 0x7fc   :  { %12370 = vrcp.f32 %v2376_v44  ;;  %v17913_v44 = vld [vmem:[#allocation17_spill] sm:$0xff] }
 0x7fd   :  { %12372 = vrcp.f32 %v2383_v55  ;;  %v17919_v55 = vld [vmem:[#allocation22_spill] sm:$0xff] }
 0x807   :  { %v12367_v49 = vpop.eup %12366 }
 0x808   :  { %v12369_v51 = vpop.eup %12368 }
 0x809   :  { %v12371_v48 = vpop.eup %12370  ;;  %v2390_v3 = vmul.f32 %v12369_v51, %v12367_v49  ;;  %v17915_v49 = vld [vmem:[#allocation19_spill] sm:$0xff]  ;;  %v17916_v51 = vld [vmem:[#allocation12_spill] sm:$0xff] }
 0x80a   :  { %v2389_v54 = vmul.f32 %v12371_v48, %v2387_v53  ;;  %v12373_v19 = vpop.eup %12372  ;;  %v17917_v53 = vld [vmem:[#allocation21_spill] sm:$0xff]  ;;  %v17918_v48 = vld [vmem:[#allocation14_spill] sm:$0xff] }
 0x80c   :  { %v2391_v56 = vadd.f32 %v2390_v3, %v2389_v54  ;;  %v17920_v3 = vld [vmem:[#allocation16_spill] sm:$0xff]  ;;  %v17921_v54 = vld [vmem:[#allocation23_spill] sm:$0xff] }
 0x80e   :  { %12374 = vtanh.f32 %v2391_v56  ;;  %v17922_v56 = vld [vmem:[#allocation18_spill] sm:$0xff] }
 0x81b   :  { %v12375_v61 = vpop.eup %12374 }
 0x81c   :  { %v2393_v62 = vmul.f32 %v12375_v61, %v12373_v19  ;;  %v17923_v19 = vld [vmem:[#allocation24_spill] sm:$0xff] }
 0x81d   :  { %v17924_v61 = vld [vmem:[#allocation20_spill] sm:$0xff] }
 0x81e   :  { %2394 = vst [vmem:[#allocation2 + $0x8] sm:$0xc0] %v2393_v62  ;;  %v17925_v62 = vld [vmem:[#allocation25_spill] sm:$0xff] }
 0x825   :  { %v2396_v45 = vld [vmem:[#allocation2 + $0x8] sm:$0xff] }
 0x826   :  { %2554 = vmatmul.mubr.f32.gmra.mxu0 %v2396_v45  ;;  %2631 = vmatmul.mubr.f32.gmra.mxu1 %v2396_v45  ;;  %v17926_v45 = vld [vmem:[#allocation8_spill] sm:$0xff] }
 0x827   :  { %2765 = vmatprep.mubr.f32.mxu0 %v17878_v39  ;;  %2836 = vmatprep.mubr.f32.mxu1 %v17878_v39 }
 0x82a   :  { %2766 = vmatmul.mubr.f32.vlgmr.msra.gmra.mxu0 %v17878_v39  ;;  %2837 = vmatmul.mubr.f32.vlgmr.msra.gmra.mxu1 %v17878_v39 }
 0x82b   :  { %2938 = vmatpush1.msra.mxu0 %v14471_v63  ;;  %3009 = vmatpush1.msra.mxu1 %v14476_v0 }
 0x82c   :  { %2939 = vmatprep.subr.mxu0 %v14483_v1  ;;  %3010 = vmatprep.subr.mxu1 %v14488_v10 }
 0x82d   :  { %2940 = vmatpush1.msra.mxu0 %v14495_v23  ;;  %3011 = vmatpush1.msra.mxu1 %v14500_v21 }
 0x82e   :  { %2941 = vmatprep.subr.mxu0 %v14507_v13  ;;  %3012 = vmatprep.subr.mxu1 %v14512_v47 }
 0x82f   :  { %2942 = vmatpush1.msra.mxu0 %v14519_v6  ;;  %3013 = vmatpush1.msra.mxu1 %v14524_v16 }
 0x830   :  { %2943 = vmatprep.subr.mxu0 %v14531_v9  ;;  %3014 = vmatprep.subr.mxu1 %v14536_v24 }
 0x831   :  { %2944 = vmatpush1.msra.mxu0 %v14543_v12  ;;  %3015 = vmatpush1.msra.mxu1 %v14548_v22 }
 0x832   :  { %2945 = vmatprep.subr.mxu0 %v14555_v29  ;;  %3016 = vmatprep.subr.mxu1 %v14560_v2 }
 0x833   :  { %2946 = vmatpush1.msra.mxu0 %v14567_v11  ;;  %3017 = vmatpush1.msra.mxu1 %v14572_v4 }
 0x834   :  { %2947 = vmatprep.subr.mxu0 %v14579_v18  ;;  %3018 = vmatprep.subr.mxu1 %v14584_v20 }
 0x835   :  { %2948 = vmatpush1.msra.mxu0 %v14591_v7  ;;  %3019 = vmatpush1.msra.mxu1 %v14596_v8 }
 0x836   :  { %2949 = vmatprep.subr.mxu0 %v14603_v17  ;;  %3020 = vmatprep.subr.mxu1 %v14608_v15 }
 0x837   :  { %2950 = vmatpush1.msra.mxu0 %v14615_v5  ;;  %3021 = vmatpush1.msra.mxu1 %v14620_v14 }
 0x838   :  { %2951 = vmatprep.subr.mxu0 %v14627_v32  ;;  %3022 = vmatprep.subr.mxu1 %v14632_v25 }
 0x839   :  { %2952 = vmatpush1.msra.mxu0 %v14639_v26  ;;  %3023 = vmatpush1.msra.mxu1 %v14644_v28 }
 0x83a   :  { %2953 = vmatprep.subr.mxu0 %v14651_v30  ;;  %3024 = vmatprep.subr.mxu1 %v14656_v31 }
 0x83b   :  { %2954 = vmatpush1.msra.mxu0 %v14663_v33  ;;  %3025 = vmatpush1.msra.mxu1 %v14668_v34 }
 0x83c   :  { %2955 = vmatprep.subr.mxu0 %v14675_v35  ;;  %3026 = vmatprep.subr.mxu1 %v14680_v36 }
 0x83d   :  { %2956 = vmatpush1.msra.mxu0 %v14687_v37  ;;  %3027 = vmatpush1.msra.mxu1 %v14692_v38 }
 0x83e   :  { %2957 = vmatprep.subr.mxu0 %v14697_v40  ;;  %3028 = vmatprep.subr.mxu1 %v14704_v41 }
 0x83f   :  { %2958 = vmatpush1.msra.mxu0 %v14709_v42  ;;  %3029 = vmatpush1.msra.mxu1 %v17905_v52 }
 0x840   :  { %2959 = vmatprep.subr.mxu0 %v17906_v43  ;;  %3030 = vmatprep.subr.mxu1 %v17907_v46 }
 0x841   :  { %2960 = vmatpush1.msra.mxu0 %v17908_v57  ;;  %3031 = vmatpush1.msra.mxu1 %v17909_v27 }
 0x842   :  { %2961 = vmatprep.subr.mxu0 %v17910_v58  ;;  %3032 = vmatprep.subr.mxu1 %v17911_v59 }
 0x843   :  { %2962 = vmatpush1.msra.mxu0 %v17912_v60  ;;  %3033 = vmatpush1.msra.mxu1 %v17913_v44 }
 0x844   :  { %2963 = vmatprep.subr.mxu0 %v17914_v50  ;;  %3034 = vmatprep.subr.mxu1 %v17915_v49 }
 0x845   :  { %2964 = vmatpush1.msra.mxu0 %v17916_v51  ;;  %3035 = vmatpush1.msra.mxu1 %v17917_v53 }
 0x846   :  { %2965 = vmatprep.subr.mxu0 %v17918_v48  ;;  %3036 = vmatprep.subr.mxu1 %v17919_v55  ;;  %v17927_v48 = vld [vmem:[#allocation15_spill] sm:$0xff]  ;;  %v2549_v55 = vpop.f32.mrf.mxu0 }
 0x847   :  { %2966 = vmatpush1.msra.mxu0 %v17920_v3  ;;  %3037 = vmatpush1.msra.mxu1 %v17921_v54  ;;  %v2626_v3 = vpop.f32.mrf.mxu1 }
 0x848   :  { %2967 = vmatprep.subr.mxu0 %v17922_v56  ;;  %3038 = vmatprep.subr.mxu1 %v17923_v19  ;;  %v2461_v56 = vld [vmem:[%s17505_s9] sm:$0xf]  ;;  %v2551_v54 = vpop.f32.mrf.mxu0  ;;  %v17928_v19 = vld [vmem:[#allocation26_spill] sm:$0xff] }
 0x849   :  { %2968 = vmatpush1.msra.mxu0 %v17924_v61  ;;  %3001 = vmatprep.mubr.f32.mxu0 %v17878_v39  ;;  %v17929_v53 = vsub.s32 0, %v17928_v19  ;;  %v2628_v51 = vpop.f32.mrf.mxu1 }
 0x84a   :  { %3039 = vmatpush1.msra.mxu1 %v17925_v62  ;;  %3072 = vmatprep.mubr.f32.mxu1 %v17878_v39  ;;  %v17932_v62 = vsub.s32 1, %v17928_v19 }
 0x84b   :  { %3191 = vmatprep.subr.mxu0 %v17926_v45  ;;  %3262 = vmatprep.subr.mxu1 %v17927_v48  ;;  %v14922_v61 = vrot.slane %v2461_v56, %v17929_v53 }
 0x84c   :  { %v14928_v39 = vrot.slane %v2461_v56, %v17932_v62 }
 0x84d   :  { %17930 = vst [vmem:[#allocation33_spill] sm:$0xff] %v14922_v61  ;;  %v14935_v50 = vadd.f32 %v2549_v55, %v14922_v61 }
 0x84e   :  { %17933 = vst [vmem:[#allocation35_spill] sm:$0xff] %v14928_v39  ;;  %v14938_v60 = vadd.f32 %v2551_v54, %v14928_v39 }
 0x8e6   :  { %v14924_v49 = vpop.f32.mrf.mxu0  ;;  %v14930_v45 = vpop.f32.mrf.mxu1 }
 0x8e7   :  { %17931 = vst [vmem:[#allocation34_spill] sm:$0xff] %v14924_v49  ;;  %17934 = vst [vmem:[#allocation27_spill] sm:$0xff] %v14930_v45 }
 0x8e8   :  { %v14932_v48 = vpop.f32.mrf.mxu0  ;;  %v14940_v53 = vpop.f32.mrf.mxu1 }
 0x8e9   :  { %17935 = vst [vmem:[#allocation13_spill] sm:$0xff] %v14932_v48  ;;  %17936 = vst [vmem:[#allocation11_spill] sm:$0xff] %v14940_v53  ;;  %v17937_v48 = vsub.s32 3, %v17928_v19  ;;  %v17940_v53 = vsub.s32 2, %v17928_v19 }
 0x8ea   :  { %v2767_v44 = vpop.f32.mrf.mxu0  ;;  %v2838_v27 = vpop.f32.mrf.mxu1 }
 0x8eb   :  { %v2843_v59 = vadd.f32 %v2767_v44, %v14935_v50  ;;  %v14946_v57 = vrot.slane %v2461_v56, %v17937_v48  ;;  %v14953_v39 = vrot.slane %v2461_v56, %v17940_v53 }
 0x8ec   :  { %v2769_v49 = vpop.f32.mrf.mxu0  ;;  %v2840_v55 = vpop.f32.mrf.mxu1 }
 0x8ed   :  { %v10053_v58 = vmul.f32 -1.442695, %v2843_v59  ;;  %v2844_v62 = vadd.f32 %v2769_v49, %v14938_v60  ;;  %17938 = vst [vmem:[#allocation26_spill] sm:$0xff] %v14946_v57  ;;  %v14949_v54 = vadd.f32 %v2628_v51, %v14946_v57  ;;  %17941 = vst [vmem:[#allocation37_spill] sm:$0xff] %v14953_v39  ;;  %v14957_v44 = vadd.f32 %v2626_v3, %v14953_v39  ;;  %v17957_v39 = vld [vmem:[#allocation24_spill] sm:$0xff] }
 0x8ef   :  { %12376 = vpow2.f32 %v10053_v58  ;;  %v10054_v45 = vmul.f32 -1.442695, %v2844_v62  ;;  %17939 = vst [vmem:[#allocation36_spill] sm:$0xff] %v14949_v54  ;;  %v2846_v59 = vadd.f32 %v2840_v55, %v14949_v54  ;;  %v2845_v62 = vadd.f32 %v2838_v27, %v14957_v44 }
 0x8f1   :  { %12378 = vpow2.f32 %v10054_v45  ;;  %v10055_v58 = vmul.f32 -1.442695, %v2846_v59 }
 0x8f3   :  { %12380 = vpow2.f32 %v10055_v58  ;;  %v17945_v58 = vld [vmem:[#allocation30_spill] sm:$0xff] }
 0x8fc   :  { %v12377_v49 = vpop.eup %12376 }
 0x8fd   :  { %v2850_v48 = vadd.f32 1.0, %v12377_v49 }
 0x8fe   :  { %v12379_v61 = vpop.eup %12378 }
 0x8ff   :  { %12382 = vrcp.f32 %v2850_v48  ;;  %v2856_v45 = vadd.f32 1.0, %v12379_v61  ;;  %v17943_v61 = vld [vmem:[#allocation32_spill] sm:$0xff]  ;;  %v17947_v48 = vld [vmem:[#allocation17_spill] sm:$0xff] }
 0x900   :  { %12384 = vtanh.f32 %v2845_v62  ;;  %v12381_v51 = vpop.eup %12380  ;;  %v17946_v62 = vld [vmem:[#allocation9_spill] sm:$0xff] }
 0x901   :  { %12386 = vrcp.f32 %v2856_v45  ;;  %v2863_v57 = vadd.f32 1.0, %v12381_v51  ;;  %v17948_v45 = vld [vmem:[#allocation10_spill] sm:$0xff]  ;;  %v17949_v51 = vld [vmem:[#allocation19_spill] sm:$0xff] }
 0x903   :  { %12388 = vrcp.f32 %v2863_v57  ;;  %v17942_v57 = vld [vmem:[#allocation28_spill] sm:$0xff] }
 0x90c   :  { %v12383_v19 = vpop.eup %12382 }
 0x90d   :  { %v12385_v56 = vpop.eup %12384 }
 0x90e   :  { %v12387_v53 = vpop.eup %12386  ;;  %v2867_v54 = vmul.f32 %v12385_v56, %v12383_v19  ;;  %v17950_v19 = vld [vmem:[#allocation12_spill] sm:$0xff]  ;;  %v17951_v56 = vld [vmem:[#allocation21_spill] sm:$0xff] }
 0x90f   :  { %v2866_v55 = vmul.f32 0.0, %v12387_v53  ;;  %v17952_v53 = vld [vmem:[#allocation14_spill] sm:$0xff] }
 0x910   :  { %v12389_v27 = vpop.eup %12388 }
 0x911   :  { %v14960_v3 = vadd.f32 %v2867_v54, %v2866_v55  ;;  %v17944_v54 = vld [vmem:[#allocation31_spill] sm:$0xff]  ;;  %v17953_v55 = vld [vmem:[#allocation22_spill] sm:$0xff] }
 0x913   :  { %12390 = vtanh.f32 %v14960_v3 }
 0x920   :  { %v12391_v59 = vpop.eup %12390 }
 0x921   :  { %v2870_v49 = vmul.f32 %v12391_v59, %v12389_v27  ;;  %v17954_v27 = vld [vmem:[#allocation16_spill] sm:$0xff]  ;;  %v17955_v59 = vld [vmem:[#allocation23_spill] sm:$0xff] }
 0x923   :  { %2871 = vst [vmem:[#allocation4] sm:$0x1] %v2870_v49  ;;  %2872 = vst [vmem:[#allocation4 + $0x7] sm:$0x2] %v2870_v49  ;;  %3002 = vmatmul.mubr.f32.vlgmr.msra.gmra.mxu0 %v2870_v49  ;;  %3073 = vmatmul.mubr.f32.vlgmr.msra.gmra.mxu1 %v2870_v49  ;;  %v17956_v49 = vld [vmem:[#allocation18_spill] sm:$0xff] }
 0x924   :  { %3192 = vmatpush1.msra.mxu0 %v14471_v63  ;;  %3263 = vmatpush1.msra.mxu1 %v14476_v0 }
 0x925   :  { %3193 = vmatprep.subr.mxu0 %v14483_v1  ;;  %3264 = vmatprep.subr.mxu1 %v14488_v10 }
 0x926   :  { %3194 = vmatpush1.msra.mxu0 %v14495_v23  ;;  %3265 = vmatpush1.msra.mxu1 %v14500_v21 }
 0x927   :  { %3195 = vmatprep.subr.mxu0 %v14507_v13  ;;  %3266 = vmatprep.subr.mxu1 %v14512_v47 }
 0x928   :  { %3196 = vmatpush1.msra.mxu0 %v14519_v6  ;;  %3267 = vmatpush1.msra.mxu1 %v14524_v16 }
 0x929   :  { %3197 = vmatprep.subr.mxu0 %v14531_v9  ;;  %3268 = vmatprep.subr.mxu1 %v14536_v24 }
 0x92a   :  { %3198 = vmatpush1.msra.mxu0 %v14543_v12  ;;  %3269 = vmatpush1.msra.mxu1 %v14548_v22 }
 0x92b   :  { %3199 = vmatprep.subr.mxu0 %v14555_v29  ;;  %3270 = vmatprep.subr.mxu1 %v14560_v2 }
 0x92c   :  { %3200 = vmatpush1.msra.mxu0 %v14567_v11  ;;  %3271 = vmatpush1.msra.mxu1 %v14572_v4 }
 0x92d   :  { %3201 = vmatprep.subr.mxu0 %v14579_v18  ;;  %3272 = vmatprep.subr.mxu1 %v14584_v20 }
 0x92e   :  { %3202 = vmatpush1.msra.mxu0 %v14591_v7  ;;  %3273 = vmatpush1.msra.mxu1 %v14596_v8 }
 0x92f   :  { %3203 = vmatprep.subr.mxu0 %v14603_v17  ;;  %3274 = vmatprep.subr.mxu1 %v14608_v15 }
 0x930   :  { %3204 = vmatpush1.msra.mxu0 %v14615_v5  ;;  %3275 = vmatpush1.msra.mxu1 %v14620_v14 }
 0x931   :  { %3205 = vmatprep.subr.mxu0 %v14627_v32  ;;  %3276 = vmatprep.subr.mxu1 %v14632_v25 }
 0x932   :  { %3206 = vmatpush1.msra.mxu0 %v14639_v26  ;;  %3277 = vmatpush1.msra.mxu1 %v14644_v28 }
 0x933   :  { %3207 = vmatprep.subr.mxu0 %v14651_v30  ;;  %3278 = vmatprep.subr.mxu1 %v14656_v31 }
 0x934   :  { %3208 = vmatpush1.msra.mxu0 %v14663_v33  ;;  %3279 = vmatpush1.msra.mxu1 %v14668_v34 }
 0x935   :  { %3209 = vmatprep.subr.mxu0 %v14675_v35  ;;  %3280 = vmatprep.subr.mxu1 %v14680_v36 }
 0x936   :  { %3210 = vmatpush1.msra.mxu0 %v14687_v37  ;;  %3281 = vmatpush1.msra.mxu1 %v14692_v38 }
 0x937   :  { %3211 = vmatprep.subr.mxu0 %v14697_v40  ;;  %3282 = vmatprep.subr.mxu1 %v14704_v41 }
 0x938   :  { %3212 = vmatpush1.msra.mxu0 %v14709_v42  ;;  %3283 = vmatpush1.msra.mxu1 %v17905_v52 }
 0x939   :  { %3213 = vmatprep.subr.mxu0 %v17906_v43  ;;  %3284 = vmatprep.subr.mxu1 %v17907_v46 }
 0x93a   :  { %3214 = vmatpush1.msra.mxu0 %v17942_v57  ;;  %3285 = vmatpush1.msra.mxu1 %v17943_v61 }
 0x93b   :  { %3215 = vmatprep.subr.mxu0 %v17944_v54  ;;  %3286 = vmatprep.subr.mxu1 %v17945_v58 }
 0x93c   :  { %3216 = vmatpush1.msra.mxu0 %v17946_v62  ;;  %3287 = vmatpush1.msra.mxu1 %v17947_v48  ;;  %v17958_v48 = vld [vmem:[#allocation20_spill] sm:$0xff] }
 0x93d   :  { %3217 = vmatprep.subr.mxu0 %v17948_v45  ;;  %3288 = vmatprep.subr.mxu1 %v17949_v51  ;;  %v17959_v45 = vmov 0.0   ;;  %v17960_v51 = vld [vmem:[#allocation25_spill] sm:$0xff] }
 0x93e   :  { %3218 = vmatpush1.msra.mxu0 %v17950_v19  ;;  %3289 = vmatpush1.msra.mxu1 %v17951_v56  ;;  %v17961_v56 = vld [vmem:[#allocation8_spill] sm:$0xff] }
 0x93f   :  { %3219 = vmatprep.subr.mxu0 %v17952_v53  ;;  %3290 = vmatprep.subr.mxu1 %v17953_v55  ;;  %v17962_v53 = vld [vmem:[#allocation15_spill] sm:$0xff] }
 0x940   :  { %3220 = vmatpush1.msra.mxu0 %v17954_v27  ;;  %3291 = vmatpush1.msra.mxu1 %v17955_v59 }
 0x941   :  { %3221 = vmatprep.subr.mxu0 %v17956_v49  ;;  %3292 = vmatprep.subr.mxu1 %v17957_v39 }
 0x942   :  { %3222 = vmatpush1.msra.mxu0 %v17958_v48  ;;  %3255 = vmatprep.mubr.f32.mxu0 %v17959_v45 }
 0x943   :  { %3293 = vmatpush1.msra.mxu1 %v17960_v51  ;;  %3326 = vmatprep.mubr.f32.mxu1 %v17959_v45  ;;  %v17963_v45 = vld [vmem:[#allocation36_spill] sm:$0xff] }
 0x944   :  { %3445 = vmatprep.subr.mxu0 %v17961_v56  ;;  %3516 = vmatprep.subr.mxu1 %v17962_v53 }
 0x9e3   :  { %v3003_v55 = vpop.f32.mrf.mxu0  ;;  %v3074_v49 = vpop.f32.mrf.mxu1 }
 0x9e4   :  { %v3083_v27 = vrot.slane %v3003_v55, 6  ;;  %v3085_v56 = vrot.slane %v3074_v49, 6 }
 0x9e5   :  { %v3005_v19 = vpop.f32.mrf.mxu0  ;;  %v3076_v54 = vpop.f32.mrf.mxu1 }
 0x9e6   :  { %v3091_v59 = vadd.f32 %v3083_v27, %v14935_v50  ;;  %v3084_v62 = vrot.slane %v3005_v19, 6  ;;  %v3086_v51 = vrot.slane %v3076_v54, 6  ;;  %v3093_v55 = vadd.f32 %v3085_v56, %v14957_v44 }
 0x9e8   :  { %v10056_v39 = vmul.f32 -1.442695, %v3091_v59  ;;  %v3092_v48 = vadd.f32 %v3084_v62, %v14938_v60  ;;  %v3094_v61 = vadd.f32 %v3086_v51, %v17963_v45 }
 0x9ea   :  { %12392 = vpow2.f32 %v10056_v39  ;;  %v10057_v58 = vmul.f32 -1.442695, %v3092_v48  ;;  %v10058_v57 = vmul.f32 -1.442695, %v3094_v61 }
 0x9ec   :  { %12394 = vpow2.f32 %v10057_v58  ;;  %v3115_v58 = vrot.slane %v14960_v3, 6 }
 0x9ed   :  { %12396 = vpow2.f32 %v10058_v57 }
 0x9f7   :  { %v12393_v53 = vpop.eup %12392 }
 0x9f8   :  { %v3098_v46 = vadd.f32 1.0, %v12393_v53 }
 0x9f9   :  { %v12395_v43 = vpop.eup %12394 }
 0x9fa   :  { %12398 = vrcp.f32 %v3098_v46  ;;  %v3104_v19 = vadd.f32 1.0, %v12395_v43  ;;  %v12397_v62 = vpop.eup %12396 }
 0x9fb   :  { %12400 = vtanh.f32 %v3093_v55  ;;  %v3111_v27 = vadd.f32 1.0, %v12397_v62 }
 0x9fc   :  { %12402 = vrcp.f32 %v3104_v19 }
 0x9fd   :  { %12404 = vrcp.f32 %v3111_v27 }
 0xa07   :  { %v12399_v39 = vpop.eup %12398 }
 0xa08   :  { %v12401_v48 = vpop.eup %12400 }
 0xa09   :  { %v12403_v54 = vpop.eup %12402  ;;  %v3118_v51 = vmul.f32 %v12401_v48, %v12399_v39 }
 0xa0a   :  { %v3117_v59 = vmul.f32 %v12403_v54, %v3115_v58  ;;  %v12405_v49 = vpop.eup %12404 }
 0xa0c   :  { %v15034_v61 = vadd.f32 %v3118_v51, %v3117_v59  ;;  %v15114_v51 = vld [vmem:[%s17504_s8 + $0x1e8] sm:$0xff]  ;;  %v15119_v59 = vld [vmem:[%s17504_s8 + $0x1f8] sm:$0xff] }
 0xa0d   :  { %17985 = vst [vmem:[#allocation8_spill] sm:$0xff] %v15114_v51  ;;  %17986 = vst [vmem:[#allocation15_spill] sm:$0xff] %v15119_v59 }
 0xa0e   :  { %12406 = vtanh.f32 %v15034_v61  ;;  %v3369_v56 = vrot.slane %v15034_v61, 6  ;;  %v15126_v61 = vld [vmem:[%s17504_s8 + $0x1e0] sm:$0xff] }
 0xa1b   :  { %v12407_v57 = vpop.eup %12406 }
 0xa1c   :  { %v3121_v46 = vmul.f32 %v12407_v57, %v12405_v49  ;;  %v15131_v49 = vld [vmem:[%s17504_s8 + $0x1f0] sm:$0xff]  ;;  %v15138_v57 = vld [vmem:[%s17504_s8 + $0x1c8] sm:$0xff] }
 0xa1e   :  { %3122 = vst [vmem:[#allocation4 - $0x1] sm:$0x4] %v3121_v46  ;;  %3123 = vst [vmem:[#allocation4 + $0x6] sm:$0x8] %v3121_v46  ;;  %v3189_v43 = vrot.slane %v3121_v46, 2  ;;  %v15143_v46 = vld [vmem:[%s17504_s8 + $0x1d8] sm:$0xff] }
 0xa20   :  { %3256 = vmatmul.mubr.f32.vlgmr.msra.gmra.mxu0 %v3189_v43  ;;  %3327 = vmatmul.mubr.f32.vlgmr.msra.gmra.mxu1 %v3189_v43  ;;  %v15150_v43 = vld [vmem:[%s17504_s8 + $0x1c0] sm:$0xff] }
 0xa21   :  { %3446 = vmatpush1.msra.mxu0 %v14471_v63  ;;  %3517 = vmatpush1.msra.mxu1 %v14476_v0  ;;  %v17964_v63 = vld [vmem:[#allocation7_spill] sm:$0xff]  ;;  %v17965_v0 = vld [vmem:[#allocation29_spill] sm:$0xff] }
 0xa22   :  { %3447 = vmatprep.subr.mxu0 %v14483_v1  ;;  %3518 = vmatprep.subr.mxu1 %v14488_v10  ;;  %v17966_v1 = vld [vmem:[#allocation28_spill] sm:$0xff] }
 0xa23   :  { %3448 = vmatpush1.msra.mxu0 %v14495_v23  ;;  %3519 = vmatpush1.msra.mxu1 %v14500_v21  ;;  %v17967_v10 = vld [vmem:[#allocation32_spill] sm:$0xff]  ;;  %v17968_v23 = vld [vmem:[#allocation31_spill] sm:$0xff]  ;;  %v17969_v21 = vld [vmem:[#allocation30_spill] sm:$0xff] }
 0xa24   :  { %3449 = vmatprep.subr.mxu0 %v14507_v13  ;;  %3520 = vmatprep.subr.mxu1 %v14512_v47  ;;  %v17970_v13 = vld [vmem:[#allocation9_spill] sm:$0xff] }
 0xa25   :  { %3450 = vmatpush1.msra.mxu0 %v14519_v6  ;;  %3521 = vmatpush1.msra.mxu1 %v14524_v16  ;;  %v17971_v47 = vld [vmem:[#allocation17_spill] sm:$0xff]  ;;  %v17972_v6 = vld [vmem:[#allocation10_spill] sm:$0xff]  ;;  %v17973_v16 = vld [vmem:[#allocation19_spill] sm:$0xff] }
 0xa26   :  { %3451 = vmatprep.subr.mxu0 %v14531_v9  ;;  %3522 = vmatprep.subr.mxu1 %v14536_v24  ;;  %v17974_v9 = vld [vmem:[#allocation12_spill] sm:$0xff]  ;;  %v17975_v24 = vld [vmem:[#allocation21_spill] sm:$0xff] }
 0xa27   :  { %3452 = vmatpush1.msra.mxu0 %v14543_v12  ;;  %3523 = vmatpush1.msra.mxu1 %v14548_v22  ;;  %v17976_v12 = vld [vmem:[#allocation14_spill] sm:$0xff] }
 0xa28   :  { %3453 = vmatprep.subr.mxu0 %v14555_v29  ;;  %3524 = vmatprep.subr.mxu1 %v14560_v2  ;;  %v17977_v22 = vld [vmem:[#allocation22_spill] sm:$0xff]  ;;  %v17978_v29 = vld [vmem:[#allocation16_spill] sm:$0xff]  ;;  %v17979_v2 = vld [vmem:[#allocation23_spill] sm:$0xff] }
 0xa29   :  { %3454 = vmatpush1.msra.mxu0 %v14567_v11  ;;  %3525 = vmatpush1.msra.mxu1 %v14572_v4  ;;  %v17980_v11 = vld [vmem:[#allocation18_spill] sm:$0xff]  ;;  %v17981_v4 = vld [vmem:[#allocation24_spill] sm:$0xff] }
 0xa2a   :  { %3455 = vmatprep.subr.mxu0 %v14579_v18  ;;  %3526 = vmatprep.subr.mxu1 %v14584_v20  ;;  %v17982_v18 = vld [vmem:[#allocation20_spill] sm:$0xff]  ;;  %v17983_v20 = vmov 0.0  }
 0xa2b   :  { %3456 = vmatpush1.msra.mxu0 %v14591_v7  ;;  %3527 = vmatpush1.msra.mxu1 %v14596_v8  ;;  %v17984_v7 = vld [vmem:[#allocation25_spill] sm:$0xff] }
 0xa2c   :  { %3457 = vmatprep.subr.mxu0 %v14603_v17  ;;  %3528 = vmatprep.subr.mxu1 %v14608_v15 }
 0xa2d   :  { %3458 = vmatpush1.msra.mxu0 %v14615_v5  ;;  %3529 = vmatpush1.msra.mxu1 %v14620_v14 }
 0xa2e   :  { %3459 = vmatprep.subr.mxu0 %v14627_v32  ;;  %3530 = vmatprep.subr.mxu1 %v14632_v25 }
 0xa2f   :  { %3460 = vmatpush1.msra.mxu0 %v14639_v26  ;;  %3531 = vmatpush1.msra.mxu1 %v14644_v28 }
 0xa30   :  { %3461 = vmatprep.subr.mxu0 %v14651_v30  ;;  %3532 = vmatprep.subr.mxu1 %v14656_v31 }
 0xa31   :  { %3462 = vmatpush1.msra.mxu0 %v14663_v33  ;;  %3533 = vmatpush1.msra.mxu1 %v14668_v34 }
 0xa32   :  { %3463 = vmatprep.subr.mxu0 %v14675_v35  ;;  %3534 = vmatprep.subr.mxu1 %v14680_v36 }
 0xa33   :  { %3464 = vmatpush1.msra.mxu0 %v14687_v37  ;;  %3535 = vmatpush1.msra.mxu1 %v14692_v38 }
 0xa34   :  { %3465 = vmatprep.subr.mxu0 %v14697_v40  ;;  %3536 = vmatprep.subr.mxu1 %v14704_v41 }
 0xa35   :  { %3466 = vmatpush1.msra.mxu0 %v14709_v42  ;;  %3537 = vmatpush1.msra.mxu1 %v17905_v52 }
 0xa36   :  { %3467 = vmatprep.subr.mxu0 %v17964_v63  ;;  %3538 = vmatprep.subr.mxu1 %v17965_v0  ;;  %v15155_v63 = vld [vmem:[%s17504_s8 + $0x1d0] sm:$0xff]  ;;  %v15162_v0 = vld [vmem:[%s17504_s8 + $0x1a8] sm:$0xff] }
 0xa37   :  { %3468 = vmatpush1.msra.mxu0 %v17966_v1  ;;  %3539 = vmatpush1.msra.mxu1 %v17967_v10  ;;  %v15167_v1 = vld [vmem:[%s17504_s8 + $0x1b8] sm:$0xff]  ;;  %v15174_v10 = vld [vmem:[%s17504_s8 + $0x1a0] sm:$0xff] }
 0xa38   :  { %3469 = vmatprep.subr.mxu0 %v17968_v23  ;;  %3540 = vmatprep.subr.mxu1 %v17969_v21  ;;  %v15179_v23 = vld [vmem:[%s17504_s8 + $0x1b0] sm:$0xff]  ;;  %v15186_v21 = vld [vmem:[%s17504_s8 + $0x188] sm:$0xff] }
 0xa39   :  { %3470 = vmatpush1.msra.mxu0 %v17970_v13  ;;  %3541 = vmatpush1.msra.mxu1 %v17971_v47  ;;  %v15191_v13 = vld [vmem:[%s17504_s8 + $0x198] sm:$0xff]  ;;  %v15198_v47 = vld [vmem:[%s17504_s8 + $0x180] sm:$0xff] }
 0xa3a   :  { %3471 = vmatprep.subr.mxu0 %v17972_v6  ;;  %3542 = vmatprep.subr.mxu1 %v17973_v16  ;;  %v15203_v6 = vld [vmem:[%s17504_s8 + $0x190] sm:$0xff]  ;;  %v15210_v16 = vld [vmem:[%s17504_s8 + $0x168] sm:$0xff] }
 0xa3b   :  { %3472 = vmatpush1.msra.mxu0 %v17974_v9  ;;  %3543 = vmatpush1.msra.mxu1 %v17975_v24  ;;  %v15215_v9 = vld [vmem:[%s17504_s8 + $0x178] sm:$0xff]  ;;  %v15222_v24 = vld [vmem:[%s17504_s8 + $0x160] sm:$0xff] }
 0xa3c   :  { %3473 = vmatprep.subr.mxu0 %v17976_v12  ;;  %3544 = vmatprep.subr.mxu1 %v17977_v22  ;;  %v15227_v12 = vld [vmem:[%s17504_s8 + $0x170] sm:$0xff]  ;;  %v15234_v22 = vld [vmem:[%s17504_s8 + $0x148] sm:$0xff] }
 0xa3d   :  { %3474 = vmatpush1.msra.mxu0 %v17978_v29  ;;  %3545 = vmatpush1.msra.mxu1 %v17979_v2  ;;  %v15239_v29 = vld [vmem:[%s17504_s8 + $0x158] sm:$0xff]  ;;  %v15246_v2 = vld [vmem:[%s17504_s8 + $0x140] sm:$0xff] }
 0xa3e   :  { %3475 = vmatprep.subr.mxu0 %v17980_v11  ;;  %3546 = vmatprep.subr.mxu1 %v17981_v4  ;;  %v15251_v11 = vld [vmem:[%s17504_s8 + $0x150] sm:$0xff]  ;;  %v15256_v4 = vld [vmem:[%s17504_s8 + $0x128] sm:$0xff] }
 0xa3f   :  { %3476 = vmatpush1.msra.mxu0 %v17982_v18  ;;  %3509 = vmatprep.mubr.f32.mxu0 %v17983_v20  ;;  %v15263_v18 = vld [vmem:[%s17504_s8 + $0x138] sm:$0xff] }
 0xa40   :  { %3547 = vmatpush1.msra.mxu1 %v17984_v7  ;;  %3580 = vmatprep.mubr.f32.mxu1 %v17983_v20  ;;  %v15268_v7 = vld [vmem:[%s17504_s8 + $0x120] sm:$0xff] }
 0xa41   :  { %3699 = vmatprep.subr.mxu0 %v15114_v51  ;;  %3770 = vmatprep.subr.mxu1 %v15119_v59 }
 0xae0   :  { %v3257_v8 = vpop.f32.mrf.mxu0  ;;  %v3328_v14 = vpop.f32.mrf.mxu1 }
 0xae1   :  { %v3337_v17 = vrot.slane %v3257_v8, 4  ;;  %v3339_v34 = vrot.slane %v3328_v14, 4  ;;  %v15273_v8 = vld [vmem:[%s17504_s8 + $0x130] sm:$0xff] }
 0xae2   :  { %v3259_v15 = vpop.f32.mrf.mxu0  ;;  %v3330_v30 = vpop.f32.mrf.mxu1  ;;  %v15297_v14 = vld [vmem:[%s17504_s8 + $0x110] sm:$0xff] }
 0xae3   :  { %v3345_v5 = vadd.f32 %v3337_v17, %v14935_v50  ;;  %v3338_v32 = vrot.slane %v3259_v15, 4  ;;  %v3340_v31 = vrot.slane %v3330_v30, 4  ;;  %v3347_v37 = vadd.f32 %v3339_v34, %v14957_v44  ;;  %v15280_v17 = vld [vmem:[%s17504_s8 + $0x108] sm:$0xff]  ;;  %v15285_v15 = vld [vmem:[%s17504_s8 + $0x118] sm:$0xff]  ;;  %v15343_v34 = vld [vmem:[%s17504_s8 + $0xd0] sm:$0xff] }
 0xae4   :  { %v15326_v30 = vld [vmem:[%s17504_s8 + $0xc8] sm:$0xff] }
 0xae5   :  { %v10059_v25 = vmul.f32 -1.442695, %v3345_v5  ;;  %v3346_v26 = vadd.f32 %v3338_v32, %v14938_v60  ;;  %v3348_v33 = vadd.f32 %v3340_v31, %v17963_v45  ;;  %v15290_v5 = vld [vmem:[%s17504_s8 + $0x100] sm:$0xff]  ;;  %v15302_v32 = vld [vmem:[%s17504_s8 + $0xe8] sm:$0xff]  ;;  %v15331_v31 = vld [vmem:[%s17504_s8 + $0xd8] sm:$0xff] }
 0xae7   :  { %12408 = vpow2.f32 %v10059_v25  ;;  %v10060_v28 = vmul.f32 -1.442695, %v3346_v26  ;;  %v10061_v35 = vmul.f32 -1.442695, %v3348_v33  ;;  %v15307_v25 = vld [vmem:[%s17504_s8 + $0xf8] sm:$0xff]  ;;  %v15314_v26 = vld [vmem:[%s17504_s8 + $0xe0] sm:$0xff] }
 0xae8   :  { %v15338_v33 = vld [vmem:[%s17504_s8 + $0xc0] sm:$0xff] }
 0xae9   :  { %12410 = vpow2.f32 %v10060_v28  ;;  %v15319_v28 = vld [vmem:[%s17504_s8 + $0xf0] sm:$0xff] }
 0xaea   :  { %12412 = vpow2.f32 %v10061_v35  ;;  %v15350_v35 = vld [vmem:[%s17504_s8 + $0xa8] sm:$0xff] }
 0xaf4   :  { %v12409_v36 = vpop.eup %12408 }
 0xaf5   :  { %v3352_v38 = vadd.f32 1.0, %v12409_v36  ;;  %v15355_v36 = vld [vmem:[%s17504_s8 + $0xb8] sm:$0xff] }
 0xaf6   :  { %v12411_v40 = vpop.eup %12410 }
 0xaf7   :  { %12414 = vrcp.f32 %v3352_v38  ;;  %v3358_v41 = vadd.f32 1.0, %v12411_v40  ;;  %v12413_v42 = vpop.eup %12412  ;;  %v15367_v38 = vld [vmem:[%s17504_s8 + $0xb0] sm:$0xff]  ;;  %v15374_v40 = vld [vmem:[%s17504_s8 + $0x88] sm:$0xff] }
 0xaf8   :  { %12416 = vtanh.f32 %v3347_v37  ;;  %v3365_v55 = vadd.f32 1.0, %v12413_v42  ;;  %v15362_v37 = vld [vmem:[%s17504_s8 + $0xa0] sm:$0xff]  ;;  %17987 = vst [vmem:[#allocation36_spill] sm:$0xff] %v15374_v40 }
 0xaf9   :  { %12418 = vrcp.f32 %v3358_v41  ;;  %v15379_v41 = vld [vmem:[%s17504_s8 + $0x98] sm:$0xff]  ;;  %v15386_v42 = vld [vmem:[%s17504_s8 + $0x80] sm:$0xff] }
 0xafa   :  { %12420 = vrcp.f32 %v3365_v55  ;;  %17988 = vst [vmem:[#allocation7_spill] sm:$0xff] %v15379_v41  ;;  %17989 = vst [vmem:[#allocation29_spill] sm:$0xff] %v15386_v42  ;;  %v15415_v55 = vld [vmem:[%s17504_s8 + $0x70] sm:$0xff] }
 0xafb   :  { %17994 = vst [vmem:[#allocation9_spill] sm:$0xff] %v15415_v55 }
 0xb04   :  { %v12415_v52 = vpop.eup %12414 }
 0xb05   :  { %v12417_v3 = vpop.eup %12416 }
 0xb06   :  { %v12419_v53 = vpop.eup %12418  ;;  %v3372_v19 = vmul.f32 %v12417_v3, %v12415_v52  ;;  %v15391_v52 = vld [vmem:[%s17504_s8 + $0x90] sm:$0xff]  ;;  %v15398_v3 = vld [vmem:[%s17504_s8 + $0x68] sm:$0xff] }
 0xb07   :  { %v3371_v62 = vmul.f32 %v12419_v53, %v3369_v56  ;;  %v12421_v48 = vpop.eup %12420  ;;  %17990 = vst [vmem:[#allocation28_spill] sm:$0xff] %v15391_v52  ;;  %17991 = vst [vmem:[#allocation32_spill] sm:$0xff] %v15398_v3  ;;  %v15403_v56 = vld [vmem:[%s17504_s8 + $0x78] sm:$0xff]  ;;  %v15410_v53 = vld [vmem:[%s17504_s8 + $0x60] sm:$0xff] }
 0xb08   :  { %17992 = vst [vmem:[#allocation31_spill] sm:$0xff] %v15403_v56  ;;  %17993 = vst [vmem:[#allocation30_spill] sm:$0xff] %v15410_v53 }
 0xb09   :  { %v15106_v39 = vadd.f32 %v3372_v19, %v3371_v62  ;;  %v15422_v19 = vld [vmem:[%s17504_s8 + $0x48] sm:$0xff]  ;;  %v15427_v62 = vld [vmem:[%s17504_s8 + $0x58] sm:$0xff] }
 0xb0a   :  { %17995 = vst [vmem:[#allocation17_spill] sm:$0xff] %v15422_v19  ;;  %17996 = vst [vmem:[#allocation10_spill] sm:$0xff] %v15427_v62 }
 0xb0b   :  { %12422 = vtanh.f32 %v15106_v39 }
 0xb18   :  { %v12423_v58 = vpop.eup %12422 }
 0xb19   :  { %v3375_v54 = vmul.f32 %v12423_v58, %v12421_v48  ;;  %v15434_v48 = vld [vmem:[%s17504_s8 + $0x40] sm:$0xff]  ;;  %v15439_v58 = vld [vmem:[%s17504_s8 + $0x50] sm:$0xff] }
 0xb1a   :  { %17997 = vst [vmem:[#allocation19_spill] sm:$0xff] %v15434_v48  ;;  %17998 = vst [vmem:[#allocation12_spill] sm:$0xff] %v15439_v58 }
 0xb1b   :  { %3376 = vst [vmem:[#allocation4 - $0x2] sm:$0x10] %v3375_v54  ;;  %3377 = vst [vmem:[#allocation4 + $0x5] sm:$0x20] %v3375_v54  ;;  %v3443_v27 = vrot.slane %v3375_v54, 4  ;;  %v15446_v54 = vld [vmem:[%s17504_s8 + $0x28] sm:$0xff] }
 0xb1c   :  { %17999 = vst [vmem:[#allocation21_spill] sm:$0xff] %v15446_v54 }
 0xb1d   :  { %3510 = vmatmul.mubr.f32.vlgmr.msra.gmra.mxu0 %v3443_v27  ;;  %3581 = vmatmul.mubr.f32.vlgmr.msra.gmra.mxu1 %v3443_v27  ;;  %v15451_v27 = vld [vmem:[%s17504_s8 + $0x38] sm:$0xff] }
 0xb1e   :  { %3763 = vmatprep.mubr.f32.mxu0 %v17983_v20  ;;  %3834 = vmatprep.mubr.f32.mxu1 %v17983_v20  ;;  %18000 = vst [vmem:[#allocation14_spill] sm:$0xff] %v15451_v27  ;;  %v15458_v20 = vld [vmem:[%s17504_s8 + $0x20] sm:$0xff] }
 0xb1f   :  { %3700 = vmatpush1.msra.mxu0 %v15126_v61  ;;  %3771 = vmatpush1.msra.mxu1 %v15131_v49  ;;  %18001 = vst [vmem:[#allocation22_spill] sm:$0xff] %v15458_v20 }
 0xb20   :  { %3701 = vmatprep.subr.mxu0 %v15138_v57  ;;  %3772 = vmatprep.subr.mxu1 %v15143_v46 }
 0xb21   :  { %3702 = vmatpush1.msra.mxu0 %v15150_v43  ;;  %3773 = vmatpush1.msra.mxu1 %v15155_v63 }
 0xb22   :  { %3703 = vmatprep.subr.mxu0 %v15162_v0  ;;  %3774 = vmatprep.subr.mxu1 %v15167_v1 }
 0xb23   :  { %3704 = vmatpush1.msra.mxu0 %v15174_v10  ;;  %3775 = vmatpush1.msra.mxu1 %v15179_v23 }
 0xb24   :  { %3705 = vmatprep.subr.mxu0 %v15186_v21  ;;  %3776 = vmatprep.subr.mxu1 %v15191_v13 }
 0xb25   :  { %3706 = vmatpush1.msra.mxu0 %v15198_v47  ;;  %3777 = vmatpush1.msra.mxu1 %v15203_v6 }
 0xb26   :  { %3707 = vmatprep.subr.mxu0 %v15210_v16  ;;  %3778 = vmatprep.subr.mxu1 %v15215_v9 }
 0xb27   :  { %3708 = vmatpush1.msra.mxu0 %v15222_v24  ;;  %3779 = vmatpush1.msra.mxu1 %v15227_v12 }
 0xb28   :  { %3709 = vmatprep.subr.mxu0 %v15234_v22  ;;  %3780 = vmatprep.subr.mxu1 %v15239_v29 }
 0xb29   :  { %3710 = vmatpush1.msra.mxu0 %v15246_v2  ;;  %3781 = vmatpush1.msra.mxu1 %v15251_v11 }
 0xb2a   :  { %3711 = vmatprep.subr.mxu0 %v15256_v4  ;;  %3782 = vmatprep.subr.mxu1 %v15263_v18 }
 0xb2b   :  { %3712 = vmatpush1.msra.mxu0 %v15268_v7  ;;  %3783 = vmatpush1.msra.mxu1 %v15273_v8 }
 0xb2c   :  { %3713 = vmatprep.subr.mxu0 %v15280_v17  ;;  %3784 = vmatprep.subr.mxu1 %v15285_v15 }
 0xb2d   :  { %3714 = vmatpush1.msra.mxu0 %v15290_v5  ;;  %3785 = vmatpush1.msra.mxu1 %v15297_v14 }
 0xb2e   :  { %3715 = vmatprep.subr.mxu0 %v15302_v32  ;;  %3786 = vmatprep.subr.mxu1 %v15307_v25 }
 0xb2f   :  { %3716 = vmatpush1.msra.mxu0 %v15314_v26  ;;  %3787 = vmatpush1.msra.mxu1 %v15319_v28 }
 0xb30   :  { %3717 = vmatprep.subr.mxu0 %v15326_v30  ;;  %3788 = vmatprep.subr.mxu1 %v15331_v31 }
 0xb31   :  { %3718 = vmatpush1.msra.mxu0 %v15338_v33  ;;  %3789 = vmatpush1.msra.mxu1 %v15343_v34 }
 0xb32   :  { %3719 = vmatprep.subr.mxu0 %v15350_v35  ;;  %3790 = vmatprep.subr.mxu1 %v15355_v36 }
 0xb33   :  { %3720 = vmatpush1.msra.mxu0 %v15362_v37  ;;  %3791 = vmatpush1.msra.mxu1 %v15367_v38 }
 0xb34   :  { %3721 = vmatprep.subr.mxu0 %v15374_v40  ;;  %3792 = vmatprep.subr.mxu1 %v15379_v41 }
 0xb35   :  { %3722 = vmatpush1.msra.mxu0 %v15386_v42  ;;  %3793 = vmatpush1.msra.mxu1 %v15391_v52 }
 0xb36   :  { %3723 = vmatprep.subr.mxu0 %v15398_v3  ;;  %3794 = vmatprep.subr.mxu1 %v15403_v56 }
 0xb37   :  { %3724 = vmatpush1.msra.mxu0 %v15410_v53  ;;  %3795 = vmatpush1.msra.mxu1 %v15415_v55  ;;  %v15463_v55 = vld [vmem:[%s17504_s8 + $0x30] sm:$0xff] }
 0xb38   :  { %3725 = vmatprep.subr.mxu0 %v15422_v19  ;;  %3796 = vmatprep.subr.mxu1 %v15427_v62  ;;  %18002 = vst [vmem:[#allocation16_spill] sm:$0xff] %v15463_v55  ;;  %v15470_v19 = vld [vmem:[%s17504_s8 + $0x8] sm:$0xff]  ;;  %v15475_v62 = vld [vmem:[%s17504_s8 + $0x18] sm:$0xff] }
 0xb39   :  { %3726 = vmatpush1.msra.mxu0 %v15434_v48  ;;  %3797 = vmatpush1.msra.mxu1 %v15439_v58  ;;  %18003 = vst [vmem:[#allocation23_spill] sm:$0xff] %v15470_v19  ;;  %18004 = vst [vmem:[#allocation18_spill] sm:$0xff] %v15475_v62  ;;  %v15482_v48 = vld [vmem:[%s17504_s8] sm:$0xff]  ;;  %v15487_v58 = vld [vmem:[%s17504_s8 + $0x10] sm:$0xff] }
 0xb3a   :  { %3727 = vmatprep.subr.mxu0 %v15446_v54  ;;  %3798 = vmatprep.subr.mxu1 %v15451_v27  ;;  %18005 = vst [vmem:[#allocation24_spill] sm:$0xff] %v15482_v48  ;;  %18006 = vst [vmem:[#allocation20_spill] sm:$0xff] %v15487_v58 }
 0xb3b   :  { %3728 = vmatpush1.msra.mxu0 %v15458_v20  ;;  %3799 = vmatpush1.msra.mxu1 %v15463_v55 }
 0xb3c   :  { %3729 = vmatprep.subr.mxu0 %v15470_v19  ;;  %3800 = vmatprep.subr.mxu1 %v15475_v62 }
 0xb3d   :  { %3730 = vmatpush1.msra.mxu0 %v15482_v48  ;;  %3801 = vmatpush1.msra.mxu1 %v15487_v58 }
 0xb3e   :  { %3938 = vmatprep.subr.mxu0 %v15114_v51  ;;  %4009 = vmatprep.subr.mxu1 %v15119_v59 }
 0xbdd   :  { %v3511_v27 = vpop.f32.mrf.mxu0  ;;  %v3582_v20 = vpop.f32.mrf.mxu1 }
 0xbde   :  { %v3591_v54 = vrot.slane %v3511_v27, 2  ;;  %v3593_v51 = vrot.slane %v3582_v20, 2 }
 0xbdf   :  { %v3513_v53 = vpop.f32.mrf.mxu0  ;;  %v3584_v52 = vpop.f32.mrf.mxu1 }
 0xbe0   :  { %v3599_v56 = vadd.f32 %v3591_v54, %v14935_v50  ;;  %v3592_v3 = vrot.slane %v3513_v53, 2  ;;  %v3594_v48 = vrot.slane %v3584_v52, 2  ;;  %v3601_v27 = vadd.f32 %v3593_v51, %v14957_v44  ;;  %v18013_v54 = vld [vmem:[#allocation30_spill] sm:$0xff] }
 0xbe1   :  { %v3623_v53 = vrot.slane %v15106_v39, 6  ;;  %v18007_v39 = vld [vmem:[#allocation36_spill] sm:$0xff] }
 0xbe2   :  { %v10062_v55 = vmul.f32 -1.442695, %v3599_v56  ;;  %v3600_v19 = vadd.f32 %v3592_v3, %v14938_v60  ;;  %v3602_v58 = vadd.f32 %v3594_v48, %v17963_v45  ;;  %v18011_v48 = vld [vmem:[#allocation32_spill] sm:$0xff] }
 0xbe4   :  { %12424 = vpow2.f32 %v10062_v55  ;;  %v10063_v62 = vmul.f32 -1.442695, %v3600_v19  ;;  %v10064_v42 = vmul.f32 -1.442695, %v3602_v58  ;;  %v18012_v58 = vld [vmem:[#allocation31_spill] sm:$0xff] }
 0xbe6   :  { %12426 = vpow2.f32 %v10063_v62  ;;  %v18010_v62 = vld [vmem:[#allocation28_spill] sm:$0xff] }
 0xbe7   :  { %12428 = vpow2.f32 %v10064_v42  ;;  %v18009_v42 = vld [vmem:[#allocation29_spill] sm:$0xff] }
 0xbf1   :  { %v12425_v59 = vpop.eup %12424 }
 0xbf2   :  { %v3606_v41 = vadd.f32 1.0, %v12425_v59 }
 0xbf3   :  { %v12427_v40 = vpop.eup %12426 }
 0xbf4   :  { %12430 = vrcp.f32 %v3606_v41  ;;  %v3612_v50 = vadd.f32 1.0, %v12427_v40  ;;  %v12429_v60 = vpop.eup %12428  ;;  %v18008_v41 = vld [vmem:[#allocation7_spill] sm:$0xff] }
 0xbf5   :  { %12432 = vtanh.f32 %v3601_v27  ;;  %v3619_v55 = vadd.f32 1.0, %v12429_v60  ;;  %v18014_v27 = vld [vmem:[#allocation9_spill] sm:$0xff]  ;;  %v18016_v60 = vld [vmem:[#allocation10_spill] sm:$0xff] }
 0xbf6   :  { %12434 = vrcp.f32 %v3612_v50  ;;  %v18015_v50 = vld [vmem:[#allocation17_spill] sm:$0xff] }
 0xbf7   :  { %12436 = vrcp.f32 %v3619_v55  ;;  %v18021_v55 = vld [vmem:[#allocation22_spill] sm:$0xff] }
 0xc01   :  { %v12431_v3 = vpop.eup %12430 }
 0xc02   :  { %v12433_v56 = vpop.eup %12432 }
 0xc03   :  { %v12435_v52 = vpop.eup %12434  ;;  %v3626_v45 = vmul.f32 %v12433_v56, %v12431_v3  ;;  %v18017_v3 = vld [vmem:[#allocation19_spill] sm:$0xff]  ;;  %v18018_v56 = vld [vmem:[#allocation12_spill] sm:$0xff] }
 0xc04   :  { %v3625_v20 = vmul.f32 %v12435_v52, %v3623_v53  ;;  %v12437_v44 = vpop.eup %12436  ;;  %v18019_v53 = vld [vmem:[#allocation21_spill] sm:$0xff]  ;;  %v18020_v52 = vld [vmem:[#allocation14_spill] sm:$0xff] }
 0xc06   :  { %v15502_v19 = vadd.f32 %v3626_v45, %v3625_v20  ;;  %v18022_v45 = vld [vmem:[#allocation16_spill] sm:$0xff]  ;;  %v18023_v20 = vld [vmem:[#allocation23_spill] sm:$0xff] }
 0xc08   :  { %12438 = vtanh.f32 %v15502_v19 }
 0xc15   :  { %v12439_v51 = vpop.eup %12438 }
 0xc16   :  { %v3629_v59 = vmul.f32 %v12439_v51, %v12437_v44  ;;  %v18024_v44 = vld [vmem:[#allocation18_spill] sm:$0xff]  ;;  %v18025_v51 = vld [vmem:[#allocation24_spill] sm:$0xff] }
 0xc18   :  { %3630 = vst [vmem:[#allocation4 - $0x3] sm:$0x40] %v3629_v59  ;;  %3631 = vst [vmem:[#allocation4 + $0x4] sm:$0x80] %v3629_v59  ;;  %v3697_v40 = vrot.slane %v3629_v59, 6  ;;  %v18026_v59 = vmov 0.0  }
 0xc1a   :  { %3764 = vmatmul.mubr.f32.vlgmr.msra.gmra.mxu0 %v3697_v40  ;;  %3835 = vmatmul.mubr.f32.vlgmr.msra.gmra.mxu1 %v3697_v40  ;;  %v18027_v40 = vld [vmem:[#allocation20_spill] sm:$0xff] }
 0xc1b   :  { %3939 = vmatpush1.msra.mxu0 %v15126_v61  ;;  %4010 = vmatpush1.msra.mxu1 %v15131_v49 }
 0xc1c   :  { %3940 = vmatprep.subr.mxu0 %v15138_v57  ;;  %4011 = vmatprep.subr.mxu1 %v15143_v46 }
 0xc1d   :  { %3941 = vmatpush1.msra.mxu0 %v15150_v43  ;;  %4012 = vmatpush1.msra.mxu1 %v15155_v63 }
 0xc1e   :  { %3942 = vmatprep.subr.mxu0 %v15162_v0  ;;  %4013 = vmatprep.subr.mxu1 %v15167_v1 }
 0xc1f   :  { %3943 = vmatpush1.msra.mxu0 %v15174_v10  ;;  %4014 = vmatpush1.msra.mxu1 %v15179_v23 }
 0xc20   :  { %3944 = vmatprep.subr.mxu0 %v15186_v21  ;;  %4015 = vmatprep.subr.mxu1 %v15191_v13 }
 0xc21   :  { %3945 = vmatpush1.msra.mxu0 %v15198_v47  ;;  %4016 = vmatpush1.msra.mxu1 %v15203_v6 }
 0xc22   :  { %3946 = vmatprep.subr.mxu0 %v15210_v16  ;;  %4017 = vmatprep.subr.mxu1 %v15215_v9 }
 0xc23   :  { %3947 = vmatpush1.msra.mxu0 %v15222_v24  ;;  %4018 = vmatpush1.msra.mxu1 %v15227_v12 }
 0xc24   :  { %3948 = vmatprep.subr.mxu0 %v15234_v22  ;;  %4019 = vmatprep.subr.mxu1 %v15239_v29 }
 0xc25   :  { %3949 = vmatpush1.msra.mxu0 %v15246_v2  ;;  %4020 = vmatpush1.msra.mxu1 %v15251_v11 }
 0xc26   :  { %3950 = vmatprep.subr.mxu0 %v15256_v4  ;;  %4021 = vmatprep.subr.mxu1 %v15263_v18 }
 0xc27   :  { %3951 = vmatpush1.msra.mxu0 %v15268_v7  ;;  %4022 = vmatpush1.msra.mxu1 %v15273_v8 }
 0xc28   :  { %3952 = vmatprep.subr.mxu0 %v15280_v17  ;;  %4023 = vmatprep.subr.mxu1 %v15285_v15 }
 0xc29   :  { %3953 = vmatpush1.msra.mxu0 %v15290_v5  ;;  %4024 = vmatpush1.msra.mxu1 %v15297_v14 }
 0xc2a   :  { %3954 = vmatprep.subr.mxu0 %v15302_v32  ;;  %4025 = vmatprep.subr.mxu1 %v15307_v25 }
 0xc2b   :  { %3955 = vmatpush1.msra.mxu0 %v15314_v26  ;;  %4026 = vmatpush1.msra.mxu1 %v15319_v28 }
 0xc2c   :  { %3956 = vmatprep.subr.mxu0 %v15326_v30  ;;  %4027 = vmatprep.subr.mxu1 %v15331_v31 }
 0xc2d   :  { %3957 = vmatpush1.msra.mxu0 %v15338_v33  ;;  %4028 = vmatpush1.msra.mxu1 %v15343_v34 }
 0xc2e   :  { %3958 = vmatprep.subr.mxu0 %v15350_v35  ;;  %4029 = vmatprep.subr.mxu1 %v15355_v36 }
 0xc2f   :  { %3959 = vmatpush1.msra.mxu0 %v15362_v37  ;;  %4030 = vmatpush1.msra.mxu1 %v15367_v38 }
 0xc30   :  { %3960 = vmatprep.subr.mxu0 %v18007_v39  ;;  %4031 = vmatprep.subr.mxu1 %v18008_v41 }
 0xc31   :  { %3961 = vmatpush1.msra.mxu0 %v18009_v42  ;;  %4032 = vmatpush1.msra.mxu1 %v18010_v62 }
 0xc32   :  { %3962 = vmatprep.subr.mxu0 %v18011_v48  ;;  %4033 = vmatprep.subr.mxu1 %v18012_v58  ;;  %v18037_v58 = vld [vmem:[#allocation11_spill] sm:$0xff]  ;;  %v18039_v48 = vld [vmem:[#allocation37_spill] sm:$0xff] }
 0xc33   :  { %3963 = vmatpush1.msra.mxu0 %v18013_v54  ;;  %4034 = vmatpush1.msra.mxu1 %v18014_v27  ;;  %v18036_v54 = vld [vmem:[#allocation26_spill] sm:$0xff] }
 0xc34   :  { %3964 = vmatprep.subr.mxu0 %v18015_v50  ;;  %4035 = vmatprep.subr.mxu1 %v18016_v60  ;;  %v18034_v60 = vld [vmem:[#allocation13_spill] sm:$0xff] }
 0xc35   :  { %3965 = vmatpush1.msra.mxu0 %v18017_v3  ;;  %4036 = vmatpush1.msra.mxu1 %v18018_v56  ;;  %v18028_v56 = vld [vmem:[#allocation8_spill] sm:$0xff] }
 0xc36   :  { %3966 = vmatprep.subr.mxu0 %v18019_v53  ;;  %4037 = vmatprep.subr.mxu1 %v18020_v52  ;;  %v18029_v53 = vld [vmem:[#allocation15_spill] sm:$0xff]  ;;  %v18030_v52 = vld [vmem:[#allocation33_spill] sm:$0xff] }
 0xc37   :  { %3967 = vmatpush1.msra.mxu0 %v18021_v55  ;;  %4038 = vmatpush1.msra.mxu1 %v18022_v45  ;;  %v18031_v55 = vld [vmem:[#allocation34_spill] sm:$0xff] }
 0xc38   :  { %3968 = vmatprep.subr.mxu0 %v18023_v20  ;;  %4039 = vmatprep.subr.mxu1 %v18024_v44  ;;  %v15573_v3 = vadd.f32 %v18031_v55, %v18030_v52  ;;  %v18033_v20 = vld [vmem:[#allocation35_spill] sm:$0xff]  ;;  %v15583_v52 = vadd.f32 %v18037_v58, %v18036_v54 }
 0xc39   :  { %3969 = vmatpush1.msra.mxu0 %v18025_v51  ;;  %4002 = vmatprep.mubr.f32.mxu0 %v18026_v59  ;;  %v15577_v44 = vadd.f32 %v18034_v60, %v18033_v20  ;;  %v18040_v60 = vld [vmem:[#allocation27_spill] sm:$0xff] }
 0xc3a   :  { %4040 = vmatpush1.msra.mxu1 %v18027_v40  ;;  %4073 = vmatprep.mubr.f32.mxu1 %v18026_v59  ;;  %18032 = vst [vmem:[#allocation25_spill] sm:$0xff] %v15573_v3  ;;  %18038 = vst [vmem:[#allocation34_spill] sm:$0xff] %v15583_v52  ;;  %v15588_v20 = vadd.f32 %v18040_v60, %v18039_v48 }
 0xc3b   :  { %4192 = vmatprep.subr.mxu0 %v18028_v56  ;;  %4263 = vmatprep.subr.mxu1 %v18029_v53  ;;  %18035 = vst [vmem:[#allocation33_spill] sm:$0xff] %v15577_v44 }
 0xcda   :  { %v3765_v45 = vpop.f32.mrf.mxu0  ;;  %v3836_v59 = vpop.f32.mrf.mxu1 }
 0xcdb   :  { %v3841_v51 = vadd.f32 %v3765_v45, %v15573_v3 }
 0xcdc   :  { %v3767_v50 = vpop.f32.mrf.mxu0  ;;  %v3838_v53 = vpop.f32.mrf.mxu1 }
 0xcdd   :  { %v10065_v27 = vmul.f32 -1.442695, %v3841_v51  ;;  %v3842_v40 = vadd.f32 %v3767_v50, %v15577_v44  ;;  %v3844_v55 = vadd.f32 %v3838_v53, %v15583_v52  ;;  %v3843_v51 = vadd.f32 %v3836_v59, %v15588_v20 }
 0xcde   :  { %v3865_v53 = vrot.slane %v15502_v19, 6  ;;  %v18041_v19 = vld [vmem:[#allocation32_spill] sm:$0xff] }
 0xcdf   :  { %12440 = vpow2.f32 %v10065_v27  ;;  %v10066_v56 = vmul.f32 -1.442695, %v3842_v40  ;;  %v10067_v45 = vmul.f32 -1.442695, %v3844_v55 }
 0xce1   :  { %12442 = vpow2.f32 %v10066_v56 }
 0xce2   :  { %12444 = vpow2.f32 %v10067_v45 }
 0xcec   :  { %v12441_v3 = vpop.eup %12440 }
 0xced   :  { %v3848_v50 = vadd.f32 1.0, %v12441_v3 }
 0xcee   :  { %v12443_v27 = vpop.eup %12442 }
 0xcef   :  { %12446 = vrcp.f32 %v3848_v50  ;;  %v3854_v56 = vadd.f32 1.0, %v12443_v27  ;;  %v12445_v40 = vpop.eup %12444  ;;  %v18045_v50 = vld [vmem:[#allocation17_spill] sm:$0xff]  ;;  %v18046_v27 = vld [vmem:[#allocation10_spill] sm:$0xff] }
 0xcf0   :  { %12448 = vtanh.f32 %v3843_v51  ;;  %v3861_v44 = vadd.f32 1.0, %v12445_v40  ;;  %v18044_v51 = vld [vmem:[#allocation9_spill] sm:$0xff]  ;;  %v18048_v40 = vld [vmem:[#allocation12_spill] sm:$0xff] }
 0xcf1   :  { %12450 = vrcp.f32 %v3854_v56  ;;  %v18047_v56 = vld [vmem:[#allocation19_spill] sm:$0xff] }
 0xcf2   :  { %12452 = vrcp.f32 %v3861_v44  ;;  %v18042_v44 = vld [vmem:[#allocation31_spill] sm:$0xff] }
 0xcfc   :  { %v12447_v58 = vpop.eup %12446 }
 0xcfd   :  { %v12449_v54 = vpop.eup %12448 }
 0xcfe   :  { %v12451_v52 = vpop.eup %12450  ;;  %v3868_v48 = vmul.f32 %v12449_v54, %v12447_v58  ;;  %v18049_v58 = vld [vmem:[#allocation21_spill] sm:$0xff]  ;;  %v18050_v54 = vld [vmem:[#allocation14_spill] sm:$0xff] }
 0xcff   :  { %v3867_v60 = vmul.f32 %v12451_v52, %v3865_v53  ;;  %v12453_v3 = vpop.eup %12452  ;;  %v18043_v52 = vld [vmem:[#allocation30_spill] sm:$0xff] }
 0xd00   :  { %v18051_v53 = vld [vmem:[#allocation22_spill] sm:$0xff] }
 0xd01   :  { %v15592_v55 = vadd.f32 %v3868_v48, %v3867_v60  ;;  %v18052_v48 = vld [vmem:[#allocation16_spill] sm:$0xff]  ;;  %v18053_v60 = vld [vmem:[#allocation23_spill] sm:$0xff] }
 0xd03   :  { %12454 = vtanh.f32 %v15592_v55 }
 0xd10   :  { %v12455_v59 = vpop.eup %12454 }
 0xd11   :  { %v3871_v45 = vmul.f32 %v12455_v59, %v12453_v3  ;;  %v18054_v3 = vld [vmem:[#allocation18_spill] sm:$0xff]  ;;  %v18055_v59 = vld [vmem:[#allocation24_spill] sm:$0xff] }
 0xd13   :  { %3872 = vst [vmem:[#allocation4 + $0x4] sm:$0x1] %v3871_v45  ;;  %3873 = vst [vmem:[#allocation4 + $0xb] sm:$0x2] %v3871_v45  ;;  %4003 = vmatmul.mubr.f32.vlgmr.msra.gmra.mxu0 %v3871_v45  ;;  %4074 = vmatmul.mubr.f32.vlgmr.msra.gmra.mxu1 %v3871_v45  ;;  %v18056_v45 = vmov 0.0  }
 0xd14   :  { %4193 = vmatpush1.msra.mxu0 %v15126_v61  ;;  %4264 = vmatpush1.msra.mxu1 %v15131_v49 }
 0xd15   :  { %4194 = vmatprep.subr.mxu0 %v15138_v57  ;;  %4265 = vmatprep.subr.mxu1 %v15143_v46 }
 0xd16   :  { %4195 = vmatpush1.msra.mxu0 %v15150_v43  ;;  %4266 = vmatpush1.msra.mxu1 %v15155_v63 }
 0xd17   :  { %4196 = vmatprep.subr.mxu0 %v15162_v0  ;;  %4267 = vmatprep.subr.mxu1 %v15167_v1 }
 0xd18   :  { %4197 = vmatpush1.msra.mxu0 %v15174_v10  ;;  %4268 = vmatpush1.msra.mxu1 %v15179_v23 }
 0xd19   :  { %4198 = vmatprep.subr.mxu0 %v15186_v21  ;;  %4269 = vmatprep.subr.mxu1 %v15191_v13 }
 0xd1a   :  { %4199 = vmatpush1.msra.mxu0 %v15198_v47  ;;  %4270 = vmatpush1.msra.mxu1 %v15203_v6 }
 0xd1b   :  { %4200 = vmatprep.subr.mxu0 %v15210_v16  ;;  %4271 = vmatprep.subr.mxu1 %v15215_v9 }
 0xd1c   :  { %4201 = vmatpush1.msra.mxu0 %v15222_v24  ;;  %4272 = vmatpush1.msra.mxu1 %v15227_v12 }
 0xd1d   :  { %4202 = vmatprep.subr.mxu0 %v15234_v22  ;;  %4273 = vmatprep.subr.mxu1 %v15239_v29 }
 0xd1e   :  { %4203 = vmatpush1.msra.mxu0 %v15246_v2  ;;  %4274 = vmatpush1.msra.mxu1 %v15251_v11 }
 0xd1f   :  { %4204 = vmatprep.subr.mxu0 %v15256_v4  ;;  %4275 = vmatprep.subr.mxu1 %v15263_v18 }
 0xd20   :  { %4205 = vmatpush1.msra.mxu0 %v15268_v7  ;;  %4276 = vmatpush1.msra.mxu1 %v15273_v8 }
 0xd21   :  { %4206 = vmatprep.subr.mxu0 %v15280_v17  ;;  %4277 = vmatprep.subr.mxu1 %v15285_v15 }
 0xd22   :  { %4207 = vmatpush1.msra.mxu0 %v15290_v5  ;;  %4278 = vmatpush1.msra.mxu1 %v15297_v14 }
 0xd23   :  { %4208 = vmatprep.subr.mxu0 %v15302_v32  ;;  %4279 = vmatprep.subr.mxu1 %v15307_v25 }
 0xd24   :  { %4209 = vmatpush1.msra.mxu0 %v15314_v26  ;;  %4280 = vmatpush1.msra.mxu1 %v15319_v28 }
 0xd25   :  { %4210 = vmatprep.subr.mxu0 %v15326_v30  ;;  %4281 = vmatprep.subr.mxu1 %v15331_v31 }
 0xd26   :  { %4211 = vmatpush1.msra.mxu0 %v15338_v33  ;;  %4282 = vmatpush1.msra.mxu1 %v15343_v34 }
 0xd27   :  { %4212 = vmatprep.subr.mxu0 %v15350_v35  ;;  %4283 = vmatprep.subr.mxu1 %v15355_v36 }
 0xd28   :  { %4213 = vmatpush1.msra.mxu0 %v15362_v37  ;;  %4284 = vmatpush1.msra.mxu1 %v15367_v38 }
 0xd29   :  { %4214 = vmatprep.subr.mxu0 %v18007_v39  ;;  %4285 = vmatprep.subr.mxu1 %v18008_v41 }
 0xd2a   :  { %4215 = vmatpush1.msra.mxu0 %v18009_v42  ;;  %4286 = vmatpush1.msra.mxu1 %v18010_v62 }
 0xd2b   :  { %4216 = vmatprep.subr.mxu0 %v18041_v19  ;;  %4287 = vmatprep.subr.mxu1 %v18042_v44 }
 0xd2c   :  { %4217 = vmatpush1.msra.mxu0 %v18043_v52  ;;  %4288 = vmatpush1.msra.mxu1 %v18044_v51  ;;  %v18061_v52 = vld [vmem:[#allocation33_spill] sm:$0xff] }
 0xd2d   :  { %4218 = vmatprep.subr.mxu0 %v18045_v50  ;;  %4289 = vmatprep.subr.mxu1 %v18046_v27  ;;  %v18057_v27 = vld [vmem:[#allocation20_spill] sm:$0xff] }
 0xd2e   :  { %4219 = vmatpush1.msra.mxu0 %v18047_v56  ;;  %4290 = vmatpush1.msra.mxu1 %v18048_v40  ;;  %v18058_v40 = vld [vmem:[#allocation8_spill] sm:$0xff] }
 0xd2f   :  { %4220 = vmatprep.subr.mxu0 %v18049_v58  ;;  %4291 = vmatprep.subr.mxu1 %v18050_v54  ;;  %v18059_v58 = vld [vmem:[#allocation15_spill] sm:$0xff] }
 0xd30   :  { %4221 = vmatpush1.msra.mxu0 %v18051_v53  ;;  %4292 = vmatpush1.msra.mxu1 %v18052_v48  ;;  %v18060_v48 = vld [vmem:[#allocation25_spill] sm:$0xff] }
 0xd31   :  { %4222 = vmatprep.subr.mxu0 %v18053_v60  ;;  %4293 = vmatprep.subr.mxu1 %v18054_v3 }
 0xd32   :  { %4223 = vmatpush1.msra.mxu0 %v18055_v59  ;;  %4256 = vmatprep.mubr.f32.mxu0 %v18056_v45 }
 0xd33   :  { %4294 = vmatpush1.msra.mxu1 %v18057_v27  ;;  %4327 = vmatprep.mubr.f32.mxu1 %v18056_v45  ;;  %v18062_v45 = vld [vmem:[#allocation34_spill] sm:$0xff] }
 0xd34   :  { %4446 = vmatprep.subr.mxu0 %v18058_v40  ;;  %4517 = vmatprep.subr.mxu1 %v18059_v58 }
 0xdd3   :  { %v4004_v54 = vpop.f32.mrf.mxu0  ;;  %v4075_v60 = vpop.f32.mrf.mxu1 }
 0xdd4   :  { %v4084_v53 = vrot.slane %v4004_v54, 6  ;;  %v4086_v40 = vrot.slane %v4075_v60, 6 }
 0xdd5   :  { %v4006_v56 = vpop.f32.mrf.mxu0  ;;  %v4077_v19 = vpop.f32.mrf.mxu1 }
 0xdd6   :  { %v4092_v50 = vadd.f32 %v4084_v53, %v18060_v48  ;;  %v4085_v51 = vrot.slane %v4006_v56, 6  ;;  %v4087_v27 = vrot.slane %v4077_v19, 6  ;;  %v4094_v54 = vadd.f32 %v4086_v40, %v15588_v20 }
 0xdd8   :  { %v10068_v3 = vmul.f32 -1.442695, %v4092_v50  ;;  %v4093_v59 = vadd.f32 %v4085_v51, %v18061_v52  ;;  %v4095_v62 = vadd.f32 %v4087_v27, %v18062_v45 }
 0xdda   :  { %12456 = vpow2.f32 %v10068_v3  ;;  %v10069_v44 = vmul.f32 -1.442695, %v4093_v59  ;;  %v10070_v42 = vmul.f32 -1.442695, %v4095_v62 }
 0xddc   :  { %12458 = vpow2.f32 %v10069_v44  ;;  %v4116_v44 = vrot.slane %v15592_v55, 6 }
 0xddd   :  { %12460 = vpow2.f32 %v10070_v42 }
 0xde7   :  { %v12457_v58 = vpop.eup %12456 }
 0xde8   :  { %v4099_v41 = vadd.f32 1.0, %v12457_v58 }
 0xde9   :  { %v12459_v39 = vpop.eup %12458 }
 0xdea   :  { %12462 = vrcp.f32 %v4099_v41  ;;  %v4105_v56 = vadd.f32 1.0, %v12459_v39  ;;  %v12461_v51 = vpop.eup %12460 }
 0xdeb   :  { %12464 = vtanh.f32 %v4094_v54  ;;  %v4112_v3 = vadd.f32 1.0, %v12461_v51 }
 0xdec   :  { %12466 = vrcp.f32 %v4105_v56 }
 0xded   :  { %12468 = vrcp.f32 %v4112_v3 }
 0xdf7   :  { %v12463_v50 = vpop.eup %12462 }
 0xdf8   :  { %v12465_v53 = vpop.eup %12464 }
 0xdf9   :  { %v12467_v19 = vpop.eup %12466  ;;  %v4119_v27 = vmul.f32 %v12465_v53, %v12463_v50 }
 0xdfa   :  { %v4118_v60 = vmul.f32 %v12467_v19, %v4116_v44  ;;  %v12469_v59 = vpop.eup %12468 }
 0xdfc   :  { %v15666_v62 = vadd.f32 %v4119_v27, %v4118_v60  ;;  %v12540_v27 = vld [vmem:[#allocation3] sm:$0xff]  ;;  %v15746_v60 = vld [vmem:[%s17506_s10 + $0x78] sm:$0xff] }
 0xdfe   :  { %12470 = vtanh.f32 %v15666_v62  ;;  %v4370_v40 = vrot.slane %v15666_v62, 6  ;;  %v15753_v62 = vld [vmem:[%s17506_s10 + $0x70] sm:$0xff] }
 0xe0b   :  { %v12471_v42 = vpop.eup %12470 }
 0xe0c   :  { %v4122_v41 = vmul.f32 %v12471_v42, %v12469_v59  ;;  %v15760_v59 = vld [vmem:[%s17506_s10 + $0x68] sm:$0xff]  ;;  %v15767_v42 = vld [vmem:[%s17506_s10 + $0x60] sm:$0xff] }
 0xe0e   :  { %4123 = vst [vmem:[#allocation4 + $0x3] sm:$0x4] %v4122_v41  ;;  %4124 = vst [vmem:[#allocation4 + $0xa] sm:$0x8] %v4122_v41  ;;  %v4190_v39 = vrot.slane %v4122_v41, 2  ;;  %v15774_v41 = vld [vmem:[%s17506_s10 + $0x58] sm:$0xff] }
 0xe10   :  { %4257 = vmatmul.mubr.f32.vlgmr.msra.gmra.mxu0 %v4190_v39  ;;  %4328 = vmatmul.mubr.f32.vlgmr.msra.gmra.mxu1 %v4190_v39  ;;  %v15781_v39 = vld [vmem:[%s17506_s10 + $0x50] sm:$0xff] }
 0xe11   :  { %4447 = vmatpush1.msra.mxu0 %v15126_v61  ;;  %4518 = vmatpush1.msra.mxu1 %v15131_v49  ;;  %v18063_v61 = vld [vmem:[#allocation36_spill] sm:$0xff]  ;;  %v18064_v49 = vld [vmem:[#allocation7_spill] sm:$0xff] }
 0xe12   :  { %4448 = vmatprep.subr.mxu0 %v15138_v57  ;;  %4519 = vmatprep.subr.mxu1 %v15143_v46  ;;  %v18065_v57 = vld [vmem:[#allocation29_spill] sm:$0xff]  ;;  %v18066_v46 = vld [vmem:[#allocation28_spill] sm:$0xff] }
 0xe13   :  { %4449 = vmatpush1.msra.mxu0 %v15150_v43  ;;  %4520 = vmatpush1.msra.mxu1 %v15155_v63  ;;  %v18067_v43 = vld [vmem:[#allocation32_spill] sm:$0xff]  ;;  %v18068_v63 = vld [vmem:[#allocation31_spill] sm:$0xff] }
 0xe14   :  { %4450 = vmatprep.subr.mxu0 %v15162_v0  ;;  %4521 = vmatprep.subr.mxu1 %v15167_v1  ;;  %v18069_v0 = vld [vmem:[#allocation30_spill] sm:$0xff]  ;;  %v18070_v1 = vld [vmem:[#allocation9_spill] sm:$0xff] }
 0xe15   :  { %4451 = vmatpush1.msra.mxu0 %v15174_v10  ;;  %4522 = vmatpush1.msra.mxu1 %v15179_v23  ;;  %v18071_v10 = vld [vmem:[#allocation17_spill] sm:$0xff]  ;;  %v18072_v23 = vld [vmem:[#allocation10_spill] sm:$0xff] }
 0xe16   :  { %4452 = vmatprep.subr.mxu0 %v15186_v21  ;;  %4523 = vmatprep.subr.mxu1 %v15191_v13  ;;  %v18073_v21 = vld [vmem:[#allocation19_spill] sm:$0xff]  ;;  %v18074_v13 = vld [vmem:[#allocation12_spill] sm:$0xff] }
 0xe17   :  { %4453 = vmatpush1.msra.mxu0 %v15198_v47  ;;  %4524 = vmatpush1.msra.mxu1 %v15203_v6  ;;  %v18075_v47 = vld [vmem:[#allocation21_spill] sm:$0xff]  ;;  %v18076_v6 = vld [vmem:[#allocation14_spill] sm:$0xff] }
 0xe18   :  { %4454 = vmatprep.subr.mxu0 %v15210_v16  ;;  %4525 = vmatprep.subr.mxu1 %v15215_v9  ;;  %v18077_v16 = vld [vmem:[#allocation22_spill] sm:$0xff]  ;;  %v18078_v9 = vld [vmem:[#allocation16_spill] sm:$0xff] }
 0xe19   :  { %4455 = vmatpush1.msra.mxu0 %v15222_v24  ;;  %4526 = vmatpush1.msra.mxu1 %v15227_v12  ;;  %v18079_v24 = vld [vmem:[#allocation23_spill] sm:$0xff]  ;;  %v18080_v12 = vld [vmem:[#allocation18_spill] sm:$0xff] }
 0xe1a   :  { %4456 = vmatprep.subr.mxu0 %v15234_v22  ;;  %4527 = vmatprep.subr.mxu1 %v15239_v29  ;;  %v18081_v22 = vld [vmem:[#allocation24_spill] sm:$0xff]  ;;  %v18082_v29 = vmov 0.0  }
 0xe1b   :  { %4457 = vmatpush1.msra.mxu0 %v15246_v2  ;;  %4528 = vmatpush1.msra.mxu1 %v15251_v11  ;;  %v18083_v2 = vld [vmem:[#allocation20_spill] sm:$0xff] }
 0xe1c   :  { %4458 = vmatprep.subr.mxu0 %v15256_v4  ;;  %4529 = vmatprep.subr.mxu1 %v15263_v18 }
 0xe1d   :  { %4459 = vmatpush1.msra.mxu0 %v15268_v7  ;;  %4530 = vmatpush1.msra.mxu1 %v15273_v8 }
 0xe1e   :  { %4460 = vmatprep.subr.mxu0 %v15280_v17  ;;  %4531 = vmatprep.subr.mxu1 %v15285_v15 }
 0xe1f   :  { %4461 = vmatpush1.msra.mxu0 %v15290_v5  ;;  %4532 = vmatpush1.msra.mxu1 %v15297_v14 }
 0xe20   :  { %4462 = vmatprep.subr.mxu0 %v15302_v32  ;;  %4533 = vmatprep.subr.mxu1 %v15307_v25 }
 0xe21   :  { %4463 = vmatpush1.msra.mxu0 %v15314_v26  ;;  %4534 = vmatpush1.msra.mxu1 %v15319_v28 }
 0xe22   :  { %4464 = vmatprep.subr.mxu0 %v15326_v30  ;;  %4535 = vmatprep.subr.mxu1 %v15331_v31 }
 0xe23   :  { %4465 = vmatpush1.msra.mxu0 %v15338_v33  ;;  %4536 = vmatpush1.msra.mxu1 %v15343_v34 }
 0xe24   :  { %4466 = vmatprep.subr.mxu0 %v15350_v35  ;;  %4537 = vmatprep.subr.mxu1 %v15355_v36 }
 0xe25   :  { %4467 = vmatpush1.msra.mxu0 %v15362_v37  ;;  %4538 = vmatpush1.msra.mxu1 %v15367_v38 }
 0xe26   :  { %4468 = vmatprep.subr.mxu0 %v18063_v61  ;;  %4539 = vmatprep.subr.mxu1 %v18064_v49  ;;  %v15788_v61 = vld [vmem:[%s17506_s10 + $0x48] sm:$0xff]  ;;  %v15795_v49 = vld [vmem:[%s17506_s10 + $0x40] sm:$0xff] }
 0xe27   :  { %4469 = vmatpush1.msra.mxu0 %v18065_v57  ;;  %4540 = vmatpush1.msra.mxu1 %v18066_v46  ;;  %v15802_v57 = vld [vmem:[%s17506_s10 + $0x38] sm:$0xff]  ;;  %v15809_v46 = vld [vmem:[%s17506_s10 + $0x30] sm:$0xff] }
 0xe28   :  { %4470 = vmatprep.subr.mxu0 %v18067_v43  ;;  %4541 = vmatprep.subr.mxu1 %v18068_v63  ;;  %v15816_v43 = vld [vmem:[%s17506_s10 + $0x28] sm:$0xff]  ;;  %v15823_v63 = vld [vmem:[%s17506_s10 + $0x20] sm:$0xff] }
 0xe29   :  { %4471 = vmatpush1.msra.mxu0 %v18069_v0  ;;  %4542 = vmatpush1.msra.mxu1 %v18070_v1  ;;  %v15828_v0 = vld [vmem:[%s17506_s10 + $0x18] sm:$0xff]  ;;  %v15837_v1 = vld [vmem:[%s17506_s10 + $0x10] sm:$0xff] }
 0xe2a   :  { %4472 = vmatprep.subr.mxu0 %v18071_v10  ;;  %4543 = vmatprep.subr.mxu1 %v18072_v23  ;;  %v15844_v10 = vld [vmem:[%s17506_s10 + $0x8] sm:$0xff]  ;;  %v15851_v23 = vld [vmem:[%s17506_s10] sm:$0xff] }
 0xe2b   :  { %4473 = vmatpush1.msra.mxu0 %v18073_v21  ;;  %4544 = vmatpush1.msra.mxu1 %v18074_v13 }
 0xe2c   :  { %4474 = vmatprep.subr.mxu0 %v18075_v47  ;;  %4545 = vmatprep.subr.mxu1 %v18076_v6 }
 0xe2d   :  { %4475 = vmatpush1.msra.mxu0 %v18077_v16  ;;  %4546 = vmatpush1.msra.mxu1 %v18078_v9 }
 0xe2e   :  { %4476 = vmatprep.subr.mxu0 %v18079_v24  ;;  %4547 = vmatprep.subr.mxu1 %v18080_v12 }
 0xe2f   :  { %4477 = vmatpush1.msra.mxu0 %v18081_v22  ;;  %4510 = vmatprep.mubr.f32.mxu0 %v18082_v29 }
 0xe30   :  { %4548 = vmatpush1.msra.mxu1 %v18083_v2  ;;  %4581 = vmatprep.mubr.f32.mxu1 %v18082_v29 }
 0xe31   :  { %11191 = vmatprep.subr.mxu0 %v18082_v29 }
 0xed0   :  { %v4258_v11 = vpop.f32.mrf.mxu0  ;;  %v4329_v8 = vpop.f32.mrf.mxu1 }
 0xed1   :  { %v4338_v4 = vrot.slane %v4258_v11, 4  ;;  %v4340_v28 = vrot.slane %v4329_v8, 4 }
 0xed2   :  { %v4260_v18 = vpop.f32.mrf.mxu0  ;;  %v4331_v32 = vpop.f32.mrf.mxu1 }
 0xed3   :  { %v4346_v7 = vadd.f32 %v4338_v4, %v18060_v48  ;;  %v4339_v17 = vrot.slane %v4260_v18, 4  ;;  %v4341_v25 = vrot.slane %v4331_v32, 4  ;;  %v4348_v33 = vadd.f32 %v4340_v28, %v15588_v20 }
 0xed5   :  { %v10071_v15 = vmul.f32 -1.442695, %v4346_v7  ;;  %v4347_v5 = vadd.f32 %v4339_v17, %v18061_v52  ;;  %v4349_v26 = vadd.f32 %v4341_v25, %v18062_v45 }
 0xed7   :  { %12472 = vpow2.f32 %v10071_v15  ;;  %v10072_v14 = vmul.f32 -1.442695, %v4347_v5  ;;  %v10073_v30 = vmul.f32 -1.442695, %v4349_v26 }
 0xed9   :  { %12474 = vpow2.f32 %v10072_v14 }
 0xeda   :  { %12476 = vpow2.f32 %v10073_v30 }
 0xee4   :  { %v12473_v31 = vpop.eup %12472 }
 0xee5   :  { %v4353_v34 = vadd.f32 1.0, %v12473_v31 }
 0xee6   :  { %v12475_v35 = vpop.eup %12474 }
 0xee7   :  { %12478 = vrcp.f32 %v4353_v34  ;;  %v4359_v36 = vadd.f32 1.0, %v12475_v35  ;;  %v12477_v37 = vpop.eup %12476 }
 0xee8   :  { %12480 = vtanh.f32 %v4348_v33  ;;  %v4366_v54 = vadd.f32 1.0, %v12477_v37 }
 0xee9   :  { %12482 = vrcp.f32 %v4359_v36  ;;  %v10077_v36 = vld [vmem:[%s17507_s11] ss:$0 sm:$0xff] }
 0xeea   :  { %12484 = vrcp.f32 %v4366_v54  ;;  %v12543_v54 = vld [vmem:[#allocation3 + $0x18] sm:$0xff] }
 0xef4   :  { %v12479_v38 = vpop.eup %12478 }
 0xef5   :  { %v12481_v55 = vpop.eup %12480 }
 0xef6   :  { %v12483_v58 = vpop.eup %12482  ;;  %v4373_v56 = vmul.f32 %v12481_v55, %v12479_v38 }
 0xef7   :  { %v4372_v51 = vmul.f32 %v12483_v58, %v4370_v40  ;;  %v12485_v53 = vpop.eup %12484  ;;  %v12541_v40 = vld [vmem:[#allocation3 + $0x8] sm:$0xff]  ;;  %v12542_v58 = vld [vmem:[#allocation3 + $0x10] sm:$0xff] }
 0xef9   :  { %v15739_v50 = vadd.f32 %v4373_v56, %v4372_v51  ;;  %v4904_v51 = vpop.permute.xlu0 %4903 }
 0xefb   :  { %12486 = vtanh.f32 %v15739_v50  ;;  %v4624_v25 = vrot.slane %v15739_v50, 6 }
 0xf08   :  { %v12487_v44 = vpop.eup %12486 }
 0xf09   :  { %v4376_v19 = vmul.f32 %v12487_v44, %v12485_v53 }
 0xf0b   :  { %4377 = vst [vmem:[#allocation4 + $0x2] sm:$0x10] %v4376_v19  ;;  %4378 = vst [vmem:[#allocation4 + $0x9] sm:$0x20] %v4376_v19  ;;  %v4444_v3 = vrot.slane %v4376_v19, 4 }
 0xf0d   :  { %4511 = vmatmul.mubr.f32.vlgmr.msra.gmra.mxu0 %v4444_v3  ;;  %4582 = vmatmul.mubr.f32.vlgmr.msra.gmra.mxu1 %v4444_v3 }
 0xf0e   :  { %11228 = vmatprep.mubr.msk.f32.mxu1 %vm4731_vm3, %v12540_v27  ;;  %11192 = vmatpush3.msra.mxu0 %v15746_v60 }
 0xf0f   :  { %11193 = vmatprep.subr.mxu0 %v18082_v29  ;;  %11223 = vmatprep.mubr.msk.f32.mxu0 %vm12630_vm4, %v18082_v29 }
 0xf10   :  { %11194 = vmatpush3.msra.mxu0 %v15753_v62 }
 0xf11   :  { %11195 = vmatprep.subr.mxu0 %v18082_v29 }
 0xf12   :  { %11196 = vmatpush3.msra.mxu0 %v15760_v59 }
 0xf13   :  { %11197 = vmatprep.subr.mxu0 %v18082_v29 }
 0xf14   :  { %11198 = vmatpush3.msra.mxu0 %v15767_v42 }
 0xf15   :  { %11199 = vmatprep.subr.mxu0 %v18082_v29 }
 0xf16   :  { %11200 = vmatpush3.msra.mxu0 %v15774_v41 }
 0xf17   :  { %11201 = vmatprep.subr.mxu0 %v18082_v29 }
 0xf18   :  { %11202 = vmatpush3.msra.mxu0 %v15781_v39 }
 0xf19   :  { %11203 = vmatprep.subr.mxu0 %v18082_v29 }
 0xf1a   :  { %11204 = vmatpush3.msra.mxu0 %v15788_v61 }
 0xf1b   :  { %11205 = vmatprep.subr.mxu0 %v18082_v29 }
 0xf1c   :  { %11206 = vmatpush3.msra.mxu0 %v15795_v49 }
 0xf1d   :  { %11207 = vmatprep.subr.mxu0 %v18082_v29 }
 0xf1e   :  { %11208 = vmatpush3.msra.mxu0 %v15802_v57 }
 0xf1f   :  { %11209 = vmatprep.subr.mxu0 %v18082_v29 }
 0xf20   :  { %11210 = vmatpush3.msra.mxu0 %v15809_v46 }
 0xf21   :  { %11211 = vmatprep.subr.mxu0 %v18082_v29 }
 0xf22   :  { %11212 = vmatpush3.msra.mxu0 %v15816_v43 }
 0xf23   :  { %11213 = vmatprep.subr.mxu0 %v18082_v29 }
 0xf24   :  { %11214 = vmatpush3.msra.mxu0 %v15823_v63 }
 0xf25   :  { %11215 = vmatprep.subr.mxu0 %v18082_v29 }
 0xf26   :  { %11216 = vmatpush3.msra.mxu0 %v15828_v0 }
 0xf27   :  { %11217 = vmatprep.subr.mxu0 %v18082_v29 }
 0xf28   :  { %11218 = vmatpush3.msra.mxu0 %v15837_v1 }
 0xf29   :  { %11219 = vmatprep.subr.mxu0 %v18082_v29 }
 0xf2a   :  { %11220 = vmatpush3.msra.mxu0 %v15844_v10 }
 0xf2b   :  { %11221 = vmatprep.subr.mxu0 %v18082_v29 }
 0xf2c   :  { %11222 = vmatpush3.msra.mxu0 %v15851_v23 }
 0xfcd   :  { %v4512_v21 = vpop.f32.mrf.mxu0  ;;  %v4583_v16 = vpop.f32.mrf.mxu1 }
 0xfce   :  { %v4592_v13 = vrot.slane %v4512_v21, 2  ;;  %v4594_v18 = vrot.slane %v4583_v16, 2 }
 0xfcf   :  { %v4514_v47 = vpop.f32.mrf.mxu0  ;;  %v4585_v2 = vpop.f32.mrf.mxu1 }
 0xfd0   :  { %v4600_v6 = vadd.f32 %v4592_v13, %v18060_v48  ;;  %v4593_v9 = vrot.slane %v4514_v47, 2  ;;  %v4595_v11 = vrot.slane %v4585_v2, 2  ;;  %v4602_v17 = vadd.f32 %v4594_v18, %v15588_v20 }
 0xfd2   :  { %v10074_v24 = vmul.f32 -1.442695, %v4600_v6  ;;  %v4601_v12 = vadd.f32 %v4593_v9, %v18061_v52  ;;  %v4603_v4 = vadd.f32 %v4595_v11, %v18062_v45 }
 0xfd4   :  { %12488 = vpow2.f32 %v10074_v24  ;;  %v10075_v22 = vmul.f32 -1.442695, %v4601_v12  ;;  %v10076_v7 = vmul.f32 -1.442695, %v4603_v4 }
 0xfd6   :  { %12490 = vpow2.f32 %v10075_v22 }
 0xfd7   :  { %12492 = vpow2.f32 %v10076_v7 }
 0xfe1   :  { %v12489_v8 = vpop.eup %12488 }
 0xfe2   :  { %v4607_v15 = vadd.f32 1.0, %v12489_v8 }
 0xfe3   :  { %v12491_v5 = vpop.eup %12490 }
 0xfe4   :  { %12494 = vrcp.f32 %v4607_v15  ;;  %v4613_v48 = vadd.f32 1.0, %v12491_v5  ;;  %v12493_v52 = vpop.eup %12492 }
 0xfe5   :  { %12496 = vtanh.f32 %v4602_v17  ;;  %v4620_v28 = vadd.f32 1.0, %v12493_v52 }
 0xfe6   :  { %12498 = vrcp.f32 %v4613_v48 }
 0xfe7   :  { %12500 = vrcp.f32 %v4620_v28 }
 0xff1   :  { %v12495_v14 = vpop.eup %12494 }
 0xff2   :  { %v12497_v32 = vpop.eup %12496 }
 0xff3   :  { %v12499_v26 = vpop.eup %12498  ;;  %v4627_v45 = vmul.f32 %v12497_v32, %v12495_v14 }
 0xff4   :  { %v4626_v30 = vmul.f32 %v12499_v26, %v4624_v25  ;;  %v12501_v20 = vpop.eup %12500 }
 0xff6   :  { %v4628_v31 = vadd.f32 %v4627_v45, %v4626_v30 }
 0xff8   :  { %12502 = vtanh.f32 %v4628_v31 }
0x1005   :  { %v12503_v33 = vpop.eup %12502 }
0x1006   :  { %v4630_v34 = vmul.f32 %v12503_v33, %v12501_v20 }
0x1008   :  { %4631 = vst [vmem:[#allocation4 + $0x1] sm:$0x40] %v4630_v34  ;;  %4632 = vst [vmem:[#allocation4 + $0x8] sm:$0x80] %v4630_v34 }
0x100f   :  { %v4650_v35 = vld [vmem:[#allocation4] sm:$0xff]  ;;  %v4832_v56 = vld [vmem:[#allocation4 + $0x8] sm:$0xff] }
0x1010   :  { %11224 = vmatmul.mubr.f32.vlgmr.msra.gmra.mxu0 %v4650_v35  ;;  %v5284_v35 = vld [vmem:[%s17508_s12 + $0x28] sm:$0xff] }
0x10d0   :  { %v4723_v37 = vpop.f32.mrf.mxu0 }
0x10d1   :  { %v4724_v38 = vadd.f32 %v10077_v36, %v4723_v37 }
0x10d2   :  { %v11225_v55 = vpop.f32.mrf.mxu0 }
0x10d3   :  { %11226 = vmatprep.subr.msk.mxu1 %vm4731_vm3, %v4724_v38  ;;  %11277 = vmatprep.subr.mxu0 %v4724_v38 }
0x10d4   :  { %11227 = vmatpush3.xpose.msk.msra.mxu1 %vm4731_vm3, %v4724_v38  ;;  %11278 = vmatpush3.msra.mxu0 %v4724_v38 }
0x10d5   :  { %11234 = vmatprep.subr.mxu1 %v18082_v29 }
0x10d7   :  { %11229 = vmatmul.mubr.msk.f32.vlgmr.msra.gmra.mxu1 %vm4731_vm3, %v12541_v40 }
0x10d8   :  { %11231 = vmatprep.mubr.msk.f32.mxu1 %vm4731_vm3, %v12542_v58  ;;  %11235 = vmatpush3.msra.mxu1 %v15746_v60  ;;  %v5283_v58 = vld [vmem:[%s17508_s12 + $0x20] sm:$0xff] }
0x10d9   :  { %11236 = vmatprep.subr.mxu1 %v18082_v29 }
0x10da   :  { %11237 = vmatpush3.msra.mxu1 %v15753_v62  ;;  %v4908_v62 = vpop.permute.xlu0 %4907 }
0x10db   :  { %11232 = vmatmul.mubr.msk.f32.gmra.mxu1 %vm4731_vm3, %v12543_v54  ;;  %11238 = vmatprep.subr.mxu1 %v18082_v29  ;;  %v10109_v54 = vld [vmem:[%s17508_s12 + $0x58] sm:$0xff] }
0x10dc   :  { %11239 = vmatpush3.msra.mxu1 %v15760_v59  ;;  %11266 = vmatprep.mubr.msk.f32.mxu1 %vm12630_vm4, %v18082_v29 }
0x10dd   :  { %11240 = vmatprep.subr.mxu1 %v18082_v29 }
0x10de   :  { %11241 = vmatpush3.msra.mxu1 %v15767_v42  ;;  %v15912_v42 = vld [vmem:[%s17508_s12 + $0x30] sm:$0x3] }
0x10df   :  { %11242 = vmatprep.subr.mxu1 %v18082_v29  ;;  %11293 = vmatprep.subr.msk.mxu0 %vm5310_vm5, %v15912_v42 }
0x10e0   :  { %11243 = vmatpush3.msra.mxu1 %v15774_v41  ;;  %v15917_v41 = vld [vmem:[%s17508_s12 + $0x68] sm:$0x3] }
0x10e1   :  { %11244 = vmatprep.subr.mxu1 %v18082_v29 }
0x10e2   :  { %11245 = vmatpush3.msra.mxu1 %v15781_v39 }
0x10e3   :  { %11246 = vmatprep.subr.mxu1 %v18082_v29 }
0x10e4   :  { %11247 = vmatpush3.msra.mxu1 %v15788_v61 }
0x10e5   :  { %11248 = vmatprep.subr.mxu1 %v18082_v29 }
0x10e6   :  { %11249 = vmatpush3.msra.mxu1 %v15795_v49 }
0x10e7   :  { %11250 = vmatprep.subr.mxu1 %v18082_v29 }
0x10e8   :  { %11251 = vmatpush3.msra.mxu1 %v15802_v57 }
0x10e9   :  { %11252 = vmatprep.subr.mxu1 %v18082_v29 }
0x10ea   :  { %11253 = vmatpush3.msra.mxu1 %v15809_v46 }
0x10eb   :  { %11254 = vmatprep.subr.mxu1 %v18082_v29 }
0x10ec   :  { %11255 = vmatpush3.msra.mxu1 %v15816_v43 }
0x10ed   :  { %11256 = vmatprep.subr.mxu1 %v18082_v29 }
0x10ee   :  { %11257 = vmatpush3.msra.mxu1 %v15823_v63 }
0x10ef   :  { %11258 = vmatprep.subr.mxu1 %v18082_v29 }
0x10f0   :  { %11259 = vmatpush3.msra.mxu1 %v15828_v0 }
0x10f1   :  { %11260 = vmatprep.subr.mxu1 %v18082_v29 }
0x10f2   :  { %11261 = vmatpush3.msra.mxu1 %v15837_v1 }
0x10f3   :  { %11262 = vmatprep.subr.mxu1 %v18082_v29 }
0x10f4   :  { %11263 = vmatpush3.msra.mxu1 %v15844_v10 }
0x10f5   :  { %11264 = vmatprep.subr.mxu1 %v18082_v29  ;;  %v4906_v29 = vpop.permute.xlu1 %4905 }
0x10f6   :  { %11265 = vmatpush3.msra.mxu1 %v15851_v23 }
0x10f7   :  { %11267 = vmatmul.mubr.f32.vlgmr.msra.gmra.mxu1 %v4832_v56 }
0x10f8   :  { %11271 = vmatprep.mubr.msk.f32.mxu1 %vm4731_vm3, %v4904_v51 }
0x10f9   :  { %v4910_v59 = vpop.permute.xlu1 %4909 }
0x1197   :  { %v11230_v50 = vpop.f32.mrf.mxu1 }
0x1199   :  { %v4813_v53 = vpop.f32.mrf.mxu1 }
0x119b   :  { %v11233_v44 = vpop.f32.mrf.mxu1 }
0x119d   :  { %v4823_v19 = vpop.f32.mrf.mxu1 }
0x11b7   :  { %v4899_v3 = vpop.f32.mrf.mxu1 }
0x11b8   :  { %v4900_v27 = vadd.f32 %v10077_v36, %v4899_v3  ;;  %v10110_v36 = vld [vmem:[%s17508_s12 + $0x60] sm:$0xff]  ;;  %v10107_v3 = vld [vmem:[%s17508_s12 + $0x48] sm:$0xff] }
0x11b9   :  { %v11268_v60 = vpop.f32.mrf.mxu1 }
0x11ba   :  { %11269 = vmatprep.subr.msk.mxu1 %vm4731_vm3, %v4900_v27  ;;  %v10106_v60 = vld [vmem:[%s17508_s12 + $0x40] sm:$0xff] }
0x11bb   :  { %11270 = vmatpush3.xpose.msk.msra.mxu1 %vm4731_vm3, %v4900_v27 }
0x11bc   :  { %11285 = vmatprep.subr.mxu1 %v4900_v27 }
0x11be   :  { %11272 = vmatmul.mubr.msk.f32.vlgmr.msra.gmra.mxu1 %vm4731_vm3, %v4906_v29  ;;  %v15984_v29 = vld [vmem:[%s17508_s12] sm:$0xff] }
0x11bf   :  { %11274 = vmatprep.mubr.msk.f32.mxu1 %vm4731_vm3, %v4908_v62  ;;  %11286 = vmatpush3.msra.mxu1 %v4900_v27  ;;  %v15974_v27 = vld [vmem:[%s17508_s12 + $0x8] sm:$0xff]  ;;  %v10105_v62 = vld [vmem:[%s17508_s12 + $0x38] sm:$0xff] }
0x11c0   :  { %11319 = vmatprep.subr.msk.mxu1 %vm5310_vm5, %v15917_v41 }
0x11c2   :  { %11275 = vmatmul.mubr.msk.f32.gmra.mxu1 %vm4731_vm3, %v4910_v59  ;;  %v15993_v59 = vld [vmem:[#allocation3 + $0x8] sm:$0xff] }
0x127e   :  { %v11273_v39 = vpop.f32.mrf.mxu1 }
0x127f   :  { %v5008_v61 = vmax.f32 %v11230_v50, %v11273_v39 }
0x1280   :  { %v4988_v49 = vpop.f32.mrf.mxu1 }
0x1281   :  { %v5012_v57 = vsub.f32 %v11230_v50, %v5008_v61  ;;  %v5024_v46 = vsub.f32 %v11273_v39, %v5008_v61  ;;  %v5007_v43 = vmax.f32 %v4813_v53, %v4988_v49  ;;  %v15948_v50 = vld [vmem:[%s17508_s12 + $0x18] sm:$0xff] }
0x1282   :  { %v11276_v63 = vpop.f32.mrf.mxu1 }
0x1283   :  { %v5017_v0 = vmul.f32 1.442695, %v5012_v57  ;;  %v5029_v1 = vmul.f32 1.442695, %v5024_v46  ;;  %v5011_v10 = vsub.f32 %v4813_v53, %v5007_v43  ;;  %v5023_v23 = vsub.f32 %v4988_v49, %v5007_v43  ;;  %v10108_v53 = vld [vmem:[%s17508_s12 + $0x50] sm:$0xff] }
0x1284   :  { %v5010_v21 = vmax.f32 %v11233_v44, %v11276_v63  ;;  %v4998_v13 = vpop.f32.mrf.mxu1 }
0x1285   :  { %12504 = vpow2.f32 %v5017_v0  ;;  %v5015_v47 = vmul.f32 1.442695, %v5011_v10  ;;  %v5027_v6 = vmul.f32 1.442695, %v5023_v23  ;;  %v5009_v16 = vmax.f32 %v4823_v19, %v4998_v13  ;;  %v7529_v10 = vld [vmem:[%s17510_s14] sm:$0xff]  ;;  %v7532_v23 = vld [vmem:[%s17510_s14 + $0x18] sm:$0xff] }
0x1286   :  { %12506 = vpow2.f32 %v5029_v1  ;;  %v5014_v9 = vsub.f32 %v11233_v44, %v5010_v21  ;;  %v5026_v24 = vsub.f32 %v11276_v63, %v5010_v21  ;;  %v15955_v44 = vld [vmem:[#allocation3] sm:$0xff]  ;;  %v7530_v1 = vld [vmem:[%s17510_s14 + $0x8] sm:$0xff] }
0x1287   :  { %12508 = vpow2.f32 %v5015_v47  ;;  %v5013_v12 = vsub.f32 %v4823_v19, %v5009_v16  ;;  %v5025_v22 = vsub.f32 %v4998_v13, %v5009_v16  ;;  %v15963_v19 = vld [vmem:[%s17508_s12 + $0x10] sm:$0xff]  ;;  %v7534_v13 = vld [vmem:[%s17510_s14 + $0x28] sm:$0xff]  ;;  %v7533_v47 = vld [vmem:[%s17510_s14 + $0x20] sm:$0xff] }
0x1288   :  { %12510 = vpow2.f32 %v5027_v6  ;;  %v5021_v2 = vmul.f32 1.442695, %v5014_v9  ;;  %v5033_v11 = vmul.f32 1.442695, %v5026_v24  ;;  %v7531_v21 = vld [vmem:[%s17510_s14 + $0x10] sm:$0xff]  ;;  %v7536_v6 = vld [vmem:[%s17510_s14 + $0x38] sm:$0xff] }
0x1289   :  { %v5019_v4 = vmul.f32 1.442695, %v5013_v12  ;;  %v5031_v18 = vmul.f32 1.442695, %v5025_v22  ;;  %v7535_v16 = vld [vmem:[%s17510_s14 + $0x30] sm:$0xff]  ;;  %v9769_v24 = vld [vmem:[%s17512_s16 + $0x38] sm:$0xff] }
0x128a   :  { %12512 = vpow2.f32 %v5021_v2  ;;  %v9768_v9 = vld [vmem:[%s17512_s16 + $0x30] sm:$0xff]  ;;  %v9766_v12 = vld [vmem:[%s17512_s16 + $0x20] sm:$0xff]  ;;  %v9767_v22 = vld [vmem:[%s17512_s16 + $0x28] sm:$0xff] }
0x128b   :  { %12514 = vpow2.f32 %v5033_v11  ;;  %v9764_v2 = vld [vmem:[%s17512_s16 + $0x10] sm:$0xff]  ;;  %v9765_v11 = vld [vmem:[%s17512_s16 + $0x18] sm:$0xff] }
0x128c   :  { %12516 = vpow2.f32 %v5019_v4  ;;  %v9762_v4 = vld [vmem:[%s17512_s16] sm:$0xff] }
0x128d   :  { %12518 = vpow2.f32 %v5031_v18  ;;  %v9763_v18 = vld [vmem:[%s17512_s16 + $0x8] sm:$0xff] }
0x1292   :  { %v12505_v7 = vpop.eup %12504 }
0x1293   :  { %v12507_v8 = vpop.eup %12506 }
0x1294   :  { %v12509_v17 = vpop.eup %12508  ;;  %v5036_v15 = vadd.f32 %v12507_v8, %v12505_v7 }
0x1295   :  { %v12511_v5 = vpop.eup %12510 }
0x1296   :  { %v5035_v48 = vadd.f32 %v12511_v5, %v12509_v17  ;;  %12520 = vrcp.f32 %v5036_v15  ;;  %v9842_v15 = vld [vmem:[%s17514_s18 + $0x10] sm:$0xff] }
0x1297   :  { %v12513_v52 = vpop.eup %12512 }
0x1298   :  { %v12515_v14 = vpop.eup %12514  ;;  %12522 = vrcp.f32 %v5035_v48  ;;  %v9844_v48 = vld [vmem:[%s17514_s18 + $0x20] sm:$0xff] }
0x1299   :  { %v12517_v32 = vpop.eup %12516  ;;  %v5038_v25 = vadd.f32 %v12515_v14, %v12513_v52 }
0x129a   :  { %v12519_v26 = vpop.eup %12518 }
0x129b   :  { %v5037_v28 = vadd.f32 %v12519_v26, %v12517_v32  ;;  %12524 = vrcp.f32 %v5038_v25 }
0x129d   :  { %12526 = vrcp.f32 %v5037_v28 }
0x12a3   :  { %v12521_v45 = vpop.eup %12520 }
0x12a4   :  { %v5150_v33 = vmul.f32 %v12521_v45, %v12507_v8  ;;  %v5044_v34 = vmul.f32 %v12521_v45, %v12505_v7  ;;  %v9841_v7 = vld [vmem:[%s17514_s18 + $0x8] sm:$0xff]  ;;  %v9840_v8 = vld [vmem:[%s17514_s18] sm:$0xff] }
0x12a5   :  { %v12523_v30 = vpop.eup %12522 }
0x12a6   :  { %v5043_v31 = vmul.f32 %v12523_v30, %v12509_v17  ;;  %v5149_v20 = vmul.f32 %v12523_v30, %v12511_v5  ;;  %v9843_v17 = vld [vmem:[%s17514_s18 + $0x18] sm:$0xff]  ;;  %v9845_v5 = vld [vmem:[%s17514_s18 + $0x28] sm:$0xff] }
0x12a8   :  { %11279 = vmatprep.mubr.msk.f32.mxu0 %vm5047_vm6, %v5043_v31  ;;  %11287 = vmatprep.mubr.msk.f32.mxu1 %vm5047_vm6, %v5149_v20  ;;  %v12525_v37 = vpop.eup %12524  ;;  %v10121_v31 = vld [vmem:[%s17509_s13 + $0x40] sm:$0xff] }
0x12a9   :  { %11280 = vmatmul.mubr.msk.f32.vlgmr.msra.gmra.mxu0 %vm5047_vm6, %v5044_v34  ;;  %11288 = vmatmul.mubr.msk.f32.vlgmr.msra.gmra.mxu1 %vm5047_vm6, %v5150_v33  ;;  %v5046_v56 = vmul.f32 %v12525_v37, %v12513_v52  ;;  %v5152_v51 = vmul.f32 %v12525_v37, %v12515_v14  ;;  %v5419_v20 = vld [vmem:[%s17509_s13] sm:$0xff] }
0x12aa   :  { %v12527_v38 = vpop.eup %12526  ;;  %11294 = vmatpush3.msk.msra.mxu0 %vm5310_vm5, %v15912_v42  ;;  %11320 = vmatpush3.msk.msra.mxu1 %vm5310_vm5, %v15917_v41  ;;  %v15999_v42 = vld [vmem:[#allocation3 + $0x10] sm:$0xff]  ;;  %v16005_v41 = vld [vmem:[#allocation3 + $0x18] sm:$0xff] }
0x12ab   :  { %11295 = vmatprep.subr.mxu0 %v5284_v35  ;;  %11321 = vmatprep.subr.mxu1 %v10110_v36  ;;  %v5045_v55 = vmul.f32 %v12527_v38, %v12517_v32  ;;  %v5151_v40 = vmul.f32 %v12527_v38, %v12519_v26 }
0x12ac   :  { %11296 = vmatpush3.msra.mxu0 %v5284_v35  ;;  %11322 = vmatpush3.msra.mxu1 %v10110_v36 }
0x12ad   :  { %11282 = vmatprep.mubr.msk.f32.mxu0 %vm5047_vm6, %v5045_v55  ;;  %11290 = vmatprep.mubr.msk.f32.mxu1 %vm5047_vm6, %v5151_v40 }
0x12ae   :  { %11297 = vmatprep.subr.mxu0 %v5283_v58  ;;  %11323 = vmatprep.subr.mxu1 %v10109_v54 }
0x12af   :  { %11283 = vmatmul.mubr.msk.f32.gmra.mxu0 %vm5047_vm6, %v5046_v56  ;;  %11291 = vmatmul.mubr.msk.f32.gmra.mxu1 %vm5047_vm6, %v5152_v51 }
0x12b0   :  { %11298 = vmatpush3.msra.mxu0 %v5283_v58  ;;  %11324 = vmatpush3.msra.mxu1 %v10109_v54 }
0x12b1   :  { %11299 = vmatprep.subr.mxu0 %v15948_v50  ;;  %11307 = vmatprep.mubr.msk.f32.mxu0 %vm201_vm2, %v15955_v44 }
0x12b2   :  { %11325 = vmatprep.subr.mxu1 %v10108_v53  ;;  %11333 = vmatprep.mubr.msk.f32.mxu1 %vm201_vm2, %v15955_v44 }
0x12b3   :  { %11300 = vmatpush3.msra.mxu0 %v15948_v50  ;;  %11326 = vmatpush3.msra.mxu1 %v10108_v53 }
0x12b4   :  { %11301 = vmatprep.subr.mxu0 %v15963_v19  ;;  %11327 = vmatprep.subr.mxu1 %v10107_v3 }
0x12b5   :  { %11302 = vmatpush3.msra.mxu0 %v15963_v19  ;;  %11328 = vmatpush3.msra.mxu1 %v10107_v3 }
0x12b6   :  { %11303 = vmatprep.subr.mxu0 %v15974_v27  ;;  %11329 = vmatprep.subr.mxu1 %v10106_v60 }
0x12b7   :  { %11304 = vmatpush3.msra.mxu0 %v15974_v27  ;;  %11330 = vmatpush3.msra.mxu1 %v10106_v60 }
0x12b8   :  { %11305 = vmatprep.subr.mxu0 %v15984_v29  ;;  %11331 = vmatprep.subr.mxu1 %v10105_v62 }
0x12b9   :  { %11306 = vmatpush3.msra.mxu0 %v15984_v29  ;;  %11332 = vmatpush3.msra.mxu1 %v10105_v62 }
0x12ba   :  { %11308 = vmatmul.mubr.msk.f32.vlgmr.msra.gmra.mxu0 %vm201_vm2, %v15993_v59  ;;  %11334 = vmatmul.mubr.msk.f32.vlgmr.msra.gmra.mxu1 %vm201_vm2, %v15993_v59 }
0x12bb   :  { %11310 = vmatprep.mubr.msk.f32.mxu0 %vm201_vm2, %v15999_v42  ;;  %11336 = vmatprep.mubr.msk.f32.mxu1 %vm201_vm2, %v15999_v42 }
0x12be   :  { %11311 = vmatmul.mubr.msk.f32.gmra.mxu0 %vm201_vm2, %v16005_v41  ;;  %11337 = vmatmul.mubr.msk.f32.gmra.mxu1 %vm201_vm2, %v16005_v41 }
0x1369   :  { %v11281_v39 = vpop.f32.mrf.mxu0  ;;  %v11289_v61 = vpop.f32.mrf.mxu1 }
0x136a   :  { %5146 = vst.msk [vmem:[#allocation3 + $0x28] sm:$0xff] %vm4731_vm3, %v11281_v39  ;;  %5256 = vrot.lane.b32.xlu1 %v11289_v61, %s12631_s3  ;;  %v10122_v39 = vld [vmem:[%s17509_s13 + $0x48] sm:$0xff] }
0x136b   :  { %v5126_v49 = vpop.f32.mrf.mxu0  ;;  %v5231_v57 = vpop.f32.mrf.mxu1  ;;  %v5420_v61 = vld [vmem:[%s17509_s13 + $0x8] sm:$0xff] }
0x136c   :  { %5145 = vst.msk [vmem:[#allocation3 + $0x20] sm:$0xff] %vm4731_vm3, %v5126_v49  ;;  %5254 = vrot.lane.b32.xlu0 %v5231_v57, %s12631_s3  ;;  %v10151_v49 = vld [vmem:[%s17508_s12 + $0xa0] sm:$0x3]  ;;  %v10123_v57 = vld [vmem:[%s17509_s13 + $0x50] sm:$0xff] }
0x136f   :  { %v11284_v46 = vpop.f32.mrf.mxu0  ;;  %v11292_v43 = vpop.f32.mrf.mxu1 }
0x1370   :  { %5148 = vst.msk [vmem:[#allocation3 + $0x38] sm:$0xff] %vm4731_vm3, %v11284_v46  ;;  %5260 = vrot.lane.b32.xlu1 %v11292_v43, %s12631_s3  ;;  %v5421_v46 = vld [vmem:[%s17509_s13 + $0x10] sm:$0xff]  ;;  %v10150_v43 = vld [vmem:[%s17508_s12 + $0x98] sm:$0xff] }
0x1371   :  { %v5136_v63 = vpop.f32.mrf.mxu0  ;;  %v5241_v0 = vpop.f32.mrf.mxu1 }
0x1372   :  { %5147 = vst.msk [vmem:[#allocation3 + $0x30] sm:$0xff] %vm4731_vm3, %v5136_v63  ;;  %5258 = vrot.lane.b32.xlu0 %v5241_v0, %s12631_s3  ;;  %v10124_v63 = vld [vmem:[%s17509_s13 + $0x58] sm:$0xff] }
0x1373   :  { %v5422_v0 = vld [vmem:[%s17509_s13 + $0x18] sm:$0xff] }
0x1374   :  { %7544 = vperm.xlu1 %12247, %v7530_v1   ;;  %v10125_v1 = vld [vmem:[%s17509_s13 + $0x60] sm:$0xff] }
0x1376   :  { %7539 = vperm.xlu0 %12246, %v7529_v10   ;;  %v10149_v10 = vld [vmem:[%s17508_s12 + $0x90] sm:$0xff] }
0x1378   :  { %7554 = vperm.xlu1 %12247, %v7532_v23   ;;  %v5423_v23 = vld [vmem:[%s17509_s13 + $0x20] sm:$0xff] }
0x137a   :  { %7549 = vperm.xlu0 %12246, %v7531_v21   ;;  %v11309_v33 = vpop.f32.mrf.mxu0  ;;  %v11335_v34 = vpop.f32.mrf.mxu1  ;;  %v10148_v21 = vld [vmem:[%s17508_s12 + $0x88] sm:$0xff] }
0x137c   :  { %7564 = vperm.xlu1 %12247, %v7534_v13   ;;  %v5380_v35 = vpop.f32.mrf.mxu0  ;;  %v5504_v36 = vpop.f32.mrf.mxu1  ;;  %v10126_v13 = vld [vmem:[%s17509_s13 + $0x68] sm:$0xff] }
0x137e   :  { %7559 = vperm.xlu0 %12246, %v7533_v47   ;;  %v11312_v37 = vpop.f32.mrf.mxu0  ;;  %v11338_v38 = vpop.f32.mrf.mxu1  ;;  %v5424_v47 = vld [vmem:[%s17509_s13 + $0x28] sm:$0xff] }
0x1380   :  { %7574 = vperm.xlu1 %12247, %v7536_v6   ;;  %v5390_v55 = vpop.f32.mrf.mxu0  ;;  %v5514_v40 = vpop.f32.mrf.mxu1  ;;  %v10147_v6 = vld [vmem:[%s17508_s12 + $0x80] sm:$0xff] }
0x1382   :  { %7569 = vperm.xlu0 %12246, %v7535_v16   ;;  %v10127_v16 = vld [vmem:[%s17509_s13 + $0x70] sm:$0xff] }
0x1384   :  { %9802 = vperm.xlu1 %12247, %v9768_v9   ;;  %v5425_v9 = vld [vmem:[%s17509_s13 + $0x30] sm:$0xff] }
0x1386   :  { %9807 = vperm.xlu0 %12246, %v9769_v24   ;;  %v10146_v24 = vld [vmem:[%s17508_s12 + $0x78] sm:$0xff] }
0x1388   :  { %9792 = vperm.xlu1 %12247, %v9766_v12   ;;  %v10128_v12 = vld [vmem:[%s17509_s13 + $0x78] sm:$0xff] }
0x138a   :  { %9797 = vperm.xlu0 %12246, %v9767_v22   ;;  %v5426_v22 = vld [vmem:[%s17509_s13 + $0x38] sm:$0xff] }
0x138c   :  { %9782 = vperm.xlu1 %12247, %v9764_v2   ;;  %v10145_v2 = vld [vmem:[%s17508_s12 + $0x70] sm:$0xff] }
0x138e   :  { %9787 = vperm.xlu0 %12246, %v9765_v11   ;;  %v10183_v11 = vld [vmem:[%s17508_s12 + $0xd8] sm:$0x3] }
0x1390   :  { %9772 = vperm.xlu1 %12247, %v9762_v4   ;;  %v10182_v4 = vld [vmem:[%s17508_s12 + $0xd0] sm:$0xff] }
0x1392   :  { %9777 = vperm.xlu0 %12246, %v9763_v18   ;;  %v10181_v18 = vld [vmem:[%s17508_s12 + $0xc8] sm:$0xff] }
0x1394   :  { %9853 = vperm.xlu1 %12247, %v9841_v7   ;;  %v10180_v7 = vld [vmem:[%s17508_s12 + $0xc0] sm:$0xff] }
0x1396   :  { %9848 = vperm.xlu0 %12246, %v9840_v8   ;;  %v10179_v8 = vld [vmem:[%s17508_s12 + $0xb8] sm:$0xff] }
0x1398   :  { %9863 = vperm.xlu1 %12247, %v9843_v17   ;;  %v10178_v17 = vld [vmem:[%s17508_s12 + $0xb0] sm:$0xff] }
0x139a   :  { %9858 = vperm.xlu0 %12246, %v9842_v15   ;;  %v10177_v15 = vld [vmem:[%s17508_s12 + $0xa8] sm:$0xff] }
0x139c   :  { %9873 = vperm.xlu1 %12247, %v9845_v5   ;;  %v10161_v5 = vld [vmem:[%s17509_s13 + $0x80] sm:$0xff] }
0x139e   :  { %9868 = vperm.xlu0 %12246, %v9844_v48   ;;  %v10209_v48 = vld [vmem:[%s17509_s13 + $0x100] sm:$0xff] }
0x13dc   :  { %v5257_v52 = vpop.permute.xlu1 %5256 }
0x13dd   :  { %5268 = vst.msk [vmem:[#allocation3 + $0x28] sm:$0xff] %vm5266_vm7, %v5257_v52  ;;  %v10210_v52 = vld [vmem:[%s17509_s13 + $0x108] sm:$0xff] }
0x13de   :  { %v5255_v14 = vpop.permute.xlu0 %5254 }
0x13df   :  { %5267 = vst.msk [vmem:[#allocation3 + $0x20] sm:$0xff] %vm5266_vm7, %v5255_v14  ;;  %v10211_v14 = vld [vmem:[%s17509_s13 + $0x110] sm:$0xff] }
0x13e2   :  { %v5261_v32 = vpop.permute.xlu1 %5260 }
0x13e3   :  { %5270 = vst.msk [vmem:[#allocation3 + $0x38] sm:$0xff] %vm5266_vm7, %v5261_v32  ;;  %v10212_v32 = vld [vmem:[%s17509_s13 + $0x118] sm:$0xff] }
0x13e4   :  { %v5259_v25 = vpop.permute.xlu0 %5258  ;;  %v16087_v28 = vld [vmem:[#allocation3 + $0x28] sm:$0xff] }
0x13e5   :  { %5269 = vst.msk [vmem:[#allocation3 + $0x30] sm:$0xff] %vm5266_vm7, %v5259_v25  ;;  %v10213_v25 = vld [vmem:[%s17509_s13 + $0x120] sm:$0xff] }
0x13e6   :  { %v16081_v26 = vld [vmem:[#allocation3 + $0x20] sm:$0xff] }
0x13e7   :  { %11313 = vmatprep.mubr.msk.f32.mxu0 %vm201_vm2, %v16081_v26  ;;  %11339 = vmatprep.mubr.msk.f32.mxu1 %vm201_vm2, %v16081_v26 }
0x13e8   :  { %11314 = vmatmul.mubr.msk.f32.gmra.mxu0 %vm201_vm2, %v16087_v28  ;;  %11340 = vmatmul.mubr.msk.f32.gmra.mxu1 %vm201_vm2, %v16087_v28 }
0x13ea   :  { %v16099_v30 = vld [vmem:[#allocation3 + $0x38] sm:$0xff] }
0x13ec   :  { %v16093_v45 = vld [vmem:[#allocation3 + $0x30] sm:$0xff] }
0x13ed   :  { %11316 = vmatprep.mubr.msk.f32.mxu0 %vm201_vm2, %v16093_v45  ;;  %11342 = vmatprep.mubr.msk.f32.mxu1 %vm201_vm2, %v16093_v45 }
0x13ee   :  { %11317 = vmatmul.mubr.msk.f32.gmra.mxu0 %vm201_vm2, %v16099_v30  ;;  %11343 = vmatmul.mubr.msk.f32.gmra.mxu1 %vm201_vm2, %v16099_v30 }
0x13ef   :  { %11361 = vmatprep.mubr.msk.f32.mxu0 %vm5552_vm8, %v10121_v31  ;;  %11389 = vmatprep.mubr.msk.f32.mxu1 %vm5552_vm8, %v5419_v20  ;;  %v10214_v31 = vld [vmem:[%s17509_s13 + $0x128] sm:$0xff]  ;;  %v10215_v20 = vld [vmem:[%s17509_s13 + $0x130] sm:$0xff] }
0x14a8   :  { %v11315_v58 = vpop.f32.mrf.mxu0  ;;  %v11341_v54 = vpop.f32.mrf.mxu1 }
0x14aa   :  { %v5400_v56 = vpop.f32.mrf.mxu0  ;;  %v5524_v51 = vpop.f32.mrf.mxu1 }
0x14ae   :  { %v11318_v53 = vpop.f32.mrf.mxu0  ;;  %v11344_v3 = vpop.f32.mrf.mxu1 }
0x14af   :  { %11345 = vmatprep.subr.mxu0 %v11344_v3  ;;  %11373 = vmatprep.subr.mxu1 %v11318_v53 }
0x14b0   :  { %v5410_v60 = vpop.f32.mrf.mxu0  ;;  %v5534_v62 = vpop.f32.mrf.mxu1  ;;  %11346 = vmatpush3.msra.mxu0 %v11344_v3  ;;  %11374 = vmatpush3.msra.mxu1 %v11318_v53 }
0x14b1   :  { %11347 = vmatprep.subr.mxu0 %v5534_v62  ;;  %11375 = vmatprep.subr.mxu1 %v5410_v60 }
0x14b2   :  { %11348 = vmatpush3.msra.mxu0 %v5534_v62  ;;  %11376 = vmatpush3.msra.mxu1 %v5410_v60 }
0x14b3   :  { %11349 = vmatprep.subr.mxu0 %v11341_v54  ;;  %11377 = vmatprep.subr.mxu1 %v11315_v58 }
0x14b4   :  { %11350 = vmatpush3.msra.mxu0 %v11341_v54  ;;  %11378 = vmatpush3.msra.mxu1 %v11315_v58 }
0x14b5   :  { %11351 = vmatprep.subr.mxu0 %v5524_v51  ;;  %11379 = vmatprep.subr.mxu1 %v5400_v56 }
0x14b6   :  { %11352 = vmatpush3.msra.mxu0 %v5524_v51  ;;  %11380 = vmatpush3.msra.mxu1 %v5400_v56 }
0x14b7   :  { %11353 = vmatprep.subr.mxu0 %v11338_v38  ;;  %11381 = vmatprep.subr.mxu1 %v11312_v37 }
0x14b8   :  { %11354 = vmatpush3.msra.mxu0 %v11338_v38  ;;  %11382 = vmatpush3.msra.mxu1 %v11312_v37 }
0x14b9   :  { %11355 = vmatprep.subr.mxu0 %v5514_v40  ;;  %11383 = vmatprep.subr.mxu1 %v5390_v55 }
0x14ba   :  { %11356 = vmatpush3.msra.mxu0 %v5514_v40  ;;  %11384 = vmatpush3.msra.mxu1 %v5390_v55 }
0x14bb   :  { %11357 = vmatprep.subr.mxu0 %v11335_v34  ;;  %11385 = vmatprep.subr.mxu1 %v11309_v33 }
0x14bc   :  { %11358 = vmatpush3.msra.mxu0 %v11335_v34  ;;  %11386 = vmatpush3.msra.mxu1 %v11309_v33  ;;  %v10216_v33 = vld [vmem:[%s17509_s13 + $0x138] sm:$0xff] }
0x14bd   :  { %11359 = vmatprep.subr.mxu0 %v5504_v36  ;;  %11387 = vmatprep.subr.mxu1 %v5380_v35 }
0x14be   :  { %11360 = vmatpush3.msra.mxu0 %v5504_v36  ;;  %11388 = vmatpush3.msra.mxu1 %v5380_v35 }
0x14bf   :  { %11362 = vmatmul.mubr.msk.f32.vlgmr.msra.gmra.mxu0 %vm5552_vm8, %v10122_v39  ;;  %11390 = vmatmul.mubr.msk.f32.vlgmr.msra.gmra.mxu1 %vm5552_vm8, %v5420_v61 }
0x14c0   :  { %11401 = vmatprep.subr.msk.mxu0 %vm5310_vm5, %v10151_v49  ;;  %11364 = vmatprep.mubr.msk.f32.mxu0 %vm5552_vm8, %v10123_v57 }
0x14c1   :  { %11402 = vmatpush3.msk.msra.mxu0 %vm5310_vm5, %v10151_v49  ;;  %11392 = vmatprep.mubr.msk.f32.mxu1 %vm5552_vm8, %v5421_v46 }
0x14c2   :  { %11403 = vmatprep.subr.mxu0 %v10150_v43 }
0x14c3   :  { %11365 = vmatmul.mubr.msk.f32.gmra.mxu0 %vm5552_vm8, %v10124_v63  ;;  %11393 = vmatmul.mubr.msk.f32.gmra.mxu1 %vm5552_vm8, %v5422_v0 }
0x14c4   :  { %11404 = vmatpush3.msra.mxu0 %v10150_v43  ;;  %11367 = vmatprep.mubr.msk.f32.mxu0 %vm5552_vm8, %v10125_v1 }
0x14c5   :  { %11405 = vmatprep.subr.mxu0 %v10149_v10  ;;  %11395 = vmatprep.mubr.msk.f32.mxu1 %vm5552_vm8, %v5423_v23 }
0x14c6   :  { %11406 = vmatpush3.msra.mxu0 %v10149_v10 }
0x14c7   :  { %11407 = vmatprep.subr.mxu0 %v10148_v21  ;;  %11368 = vmatmul.mubr.msk.f32.gmra.mxu0 %vm5552_vm8, %v10126_v13 }
0x14c8   :  { %11396 = vmatmul.mubr.msk.f32.gmra.mxu1 %vm5552_vm8, %v5424_v47  ;;  %11408 = vmatpush3.msra.mxu0 %v10148_v21 }
0x14c9   :  { %11409 = vmatprep.subr.mxu0 %v10147_v6  ;;  %11370 = vmatprep.mubr.msk.f32.mxu0 %vm5552_vm8, %v10127_v16 }
0x14ca   :  { %11410 = vmatpush3.msra.mxu0 %v10147_v6  ;;  %11398 = vmatprep.mubr.msk.f32.mxu1 %vm5552_vm8, %v5425_v9 }
0x14cb   :  { %11411 = vmatprep.subr.mxu0 %v10146_v24  ;;  %11371 = vmatmul.mubr.msk.f32.gmra.mxu0 %vm5552_vm8, %v10128_v12  ;;  %v10162_v12 = vld [vmem:[%s17509_s13 + $0x88] sm:$0xff] }
0x14cc   :  { %11399 = vmatmul.mubr.msk.f32.gmra.mxu1 %vm5552_vm8, %v5426_v22  ;;  %11412 = vmatpush3.msra.mxu0 %v10146_v24  ;;  %v10163_v22 = vld [vmem:[%s17509_s13 + $0x90] sm:$0xff] }
0x14cd   :  { %11413 = vmatprep.subr.mxu0 %v10145_v2  ;;  %11415 = vmatprep.mubr.msk.f32.mxu0 %vm201_vm2, %v15955_v44 }
0x14ce   :  { %11414 = vmatpush3.msra.mxu0 %v10145_v2  ;;  %11443 = vmatprep.mubr.msk.f32.mxu1 %vm5552_vm8, %v10161_v5  ;;  %v10194_v5 = vld [vmem:[%s17509_s13 + $0xc8] sm:$0xff] }
0x14cf   :  { %11455 = vmatprep.subr.msk.mxu0 %vm5310_vm5, %v10183_v11  ;;  %11416 = vmatmul.mubr.msk.f32.vlgmr.msra.gmra.mxu0 %vm201_vm2, %v15993_v59 }
0x14d0   :  { %11456 = vmatpush3.msk.msra.mxu0 %vm5310_vm5, %v10183_v11  ;;  %11418 = vmatprep.mubr.msk.f32.mxu0 %vm201_vm2, %v15999_v42 }
0x14d1   :  { %11457 = vmatprep.subr.mxu0 %v10182_v4 }
0x14d2   :  { %11458 = vmatpush3.msra.mxu0 %v10182_v4  ;;  %v10164_v4 = vld [vmem:[%s17509_s13 + $0x98] sm:$0xff] }
0x14d3   :  { %11459 = vmatprep.subr.mxu0 %v10181_v18  ;;  %11419 = vmatmul.mubr.msk.f32.gmra.mxu0 %vm201_vm2, %v16005_v41 }
0x14d4   :  { %11460 = vmatpush3.msra.mxu0 %v10181_v18  ;;  %11421 = vmatprep.mubr.msk.f32.mxu0 %vm201_vm2, %v16081_v26  ;;  %v10165_v18 = vld [vmem:[%s17509_s13 + $0xa0] sm:$0xff] }
0x14d5   :  { %11461 = vmatprep.subr.mxu0 %v10180_v7 }
0x14d6   :  { %11462 = vmatpush3.msra.mxu0 %v10180_v7  ;;  %v10166_v7 = vld [vmem:[%s17509_s13 + $0xa8] sm:$0xff] }
0x14d7   :  { %11463 = vmatprep.subr.mxu0 %v10179_v8  ;;  %11422 = vmatmul.mubr.msk.f32.gmra.mxu0 %vm201_vm2, %v16087_v28 }
0x14d8   :  { %11464 = vmatpush3.msra.mxu0 %v10179_v8  ;;  %11424 = vmatprep.mubr.msk.f32.mxu0 %vm201_vm2, %v16093_v45  ;;  %v10167_v8 = vld [vmem:[%s17509_s13 + $0xb0] sm:$0xff] }
0x14d9   :  { %11465 = vmatprep.subr.mxu0 %v10178_v17 }
0x14da   :  { %11466 = vmatpush3.msra.mxu0 %v10178_v17  ;;  %v10168_v17 = vld [vmem:[%s17509_s13 + $0xb8] sm:$0xff] }
0x14db   :  { %11467 = vmatprep.subr.mxu0 %v10177_v15  ;;  %11425 = vmatmul.mubr.msk.f32.gmra.mxu0 %vm201_vm2, %v16099_v30 }
0x14dc   :  { %11468 = vmatpush3.msra.mxu0 %v10177_v15  ;;  %11469 = vmatprep.mubr.msk.f32.mxu0 %vm201_vm2, %v15955_v44  ;;  %v10193_v15 = vld [vmem:[%s17509_s13 + $0xc0] sm:$0xff] }
0x14dd   :  { %11509 = vmatprep.subr.mxu0 %v16099_v30 }
0x14df   :  { %11470 = vmatmul.mubr.msk.f32.vlgmr.msra.gmra.mxu0 %vm201_vm2, %v15993_v59 }
0x14e0   :  { %11510 = vmatpush3.msra.mxu0 %v16099_v30  ;;  %11472 = vmatprep.mubr.msk.f32.mxu0 %vm201_vm2, %v15999_v42 }
0x14e1   :  { %11511 = vmatprep.subr.mxu0 %v16093_v45 }
0x14e2   :  { %11512 = vmatpush3.msra.mxu0 %v16093_v45 }
0x14e3   :  { %11513 = vmatprep.subr.mxu0 %v16087_v28  ;;  %11473 = vmatmul.mubr.msk.f32.gmra.mxu0 %vm201_vm2, %v16005_v41 }
0x14e4   :  { %11514 = vmatpush3.msra.mxu0 %v16087_v28  ;;  %11475 = vmatprep.mubr.msk.f32.mxu0 %vm201_vm2, %v16081_v26 }
0x14e5   :  { %11515 = vmatprep.subr.mxu0 %v16081_v26 }
0x14e6   :  { %11516 = vmatpush3.msra.mxu0 %v16081_v26 }
0x14e7   :  { %11517 = vmatprep.subr.mxu0 %v16005_v41  ;;  %11476 = vmatmul.mubr.msk.f32.gmra.mxu0 %vm201_vm2, %v16087_v28 }
0x14e8   :  { %11518 = vmatpush3.msra.mxu0 %v16005_v41  ;;  %11478 = vmatprep.mubr.msk.f32.mxu0 %vm201_vm2, %v16093_v45 }
0x14e9   :  { %11519 = vmatprep.subr.mxu0 %v15999_v42 }
0x14ea   :  { %11520 = vmatpush3.msra.mxu0 %v15999_v42 }
0x14eb   :  { %11521 = vmatprep.subr.mxu0 %v15993_v59  ;;  %11479 = vmatmul.mubr.msk.f32.gmra.mxu0 %vm201_vm2, %v16099_v30 }
0x14ec   :  { %11522 = vmatpush3.msra.mxu0 %v15993_v59  ;;  %11525 = vmatprep.mubr.msk.f32.mxu0 %vm5552_vm8, %v10209_v48  ;;  %v10231_v48 = vld [vmem:[%s17508_s12 + $0x148] sm:$0x3] }
0x14ed   :  { %11523 = vmatprep.subr.mxu0 %v15955_v44 }
0x14ee   :  { %11524 = vmatpush3.msra.mxu0 %v15955_v44 }
0x14ef   :  { %11526 = vmatmul.mubr.msk.f32.vlgmr.msra.gmra.mxu0 %vm5552_vm8, %v10210_v52  ;;  %v10195_v52 = vld [vmem:[%s17509_s13 + $0xd0] sm:$0xff] }
0x14f0   :  { %11528 = vmatprep.mubr.msk.f32.mxu0 %vm5552_vm8, %v10211_v14  ;;  %v10230_v14 = vld [vmem:[%s17508_s12 + $0x140] sm:$0xff] }
0x14f3   :  { %11529 = vmatmul.mubr.msk.f32.gmra.mxu0 %vm5552_vm8, %v10212_v32  ;;  %v10196_v32 = vld [vmem:[%s17509_s13 + $0xd8] sm:$0xff] }
0x14f4   :  { %11531 = vmatprep.mubr.msk.f32.mxu0 %vm5552_vm8, %v10213_v25  ;;  %v10229_v25 = vld [vmem:[%s17508_s12 + $0x138] sm:$0xff] }
0x14f7   :  { %11532 = vmatmul.mubr.msk.f32.gmra.mxu0 %vm5552_vm8, %v10214_v31  ;;  %v10197_v31 = vld [vmem:[%s17509_s13 + $0xe0] sm:$0xff] }
0x14f8   :  { %11534 = vmatprep.mubr.msk.f32.mxu0 %vm5552_vm8, %v10215_v20  ;;  %v10228_v20 = vld [vmem:[%s17508_s12 + $0x130] sm:$0xff] }
0x14fb   :  { %11535 = vmatmul.mubr.msk.f32.gmra.mxu0 %vm5552_vm8, %v10216_v33  ;;  %v10198_v33 = vld [vmem:[%s17509_s13 + $0xe8] sm:$0xff] }
0x157f   :  { %v11363_v34 = vpop.f32.mrf.mxu0  ;;  %v11391_v35 = vpop.f32.mrf.mxu1 }
0x1580   :  { %v16299_v36 = vadd.f32 %v11391_v35, %v11363_v34  ;;  %v10227_v34 = vld [vmem:[%s17508_s12 + $0x128] sm:$0xff]  ;;  %v10199_v35 = vld [vmem:[%s17509_s13 + $0xf0] sm:$0xff] }
0x1581   :  { %v16301_v37 = vpop.f32.mrf.mxu0  ;;  %v16303_v38 = vpop.f32.mrf.mxu1 }
0x1583   :  { %v11366_v55 = vpop.f32.mrf.mxu0  ;;  %v11394_v40 = vpop.f32.mrf.mxu1 }
0x1584   :  { %v16305_v58 = vadd.f32 %v11394_v40, %v11366_v55  ;;  %v10226_v55 = vld [vmem:[%s17508_s12 + $0x120] sm:$0xff]  ;;  %v10200_v40 = vld [vmem:[%s17509_s13 + $0xf8] sm:$0xff] }
0x1585   :  { %v16307_v54 = vpop.f32.mrf.mxu0  ;;  %v16309_v56 = vpop.f32.mrf.mxu1 }
0x1587   :  { %v11369_v51 = vpop.f32.mrf.mxu0 }
0x1588   :  { %v11397_v53 = vpop.f32.mrf.mxu1 }
0x1589   :  { %v16311_v3 = vadd.f32 %v11397_v53, %v11369_v51  ;;  %v16313_v60 = vpop.f32.mrf.mxu0  ;;  %v10225_v51 = vld [vmem:[%s17508_s12 + $0x118] sm:$0xff]  ;;  %v10263_v53 = vld [vmem:[%s17508_s12 + $0x180] sm:$0x3] }
0x158a   :  { %v16315_v62 = vpop.f32.mrf.mxu1 }
0x158b   :  { %v11372_v39 = vpop.f32.mrf.mxu0 }
0x158c   :  { %v11400_v61 = vpop.f32.mrf.mxu1 }
0x158d   :  { %v16317_v49 = vadd.f32 %v11400_v61, %v11372_v39  ;;  %v16319_v57 = vpop.f32.mrf.mxu0  ;;  %v10262_v39 = vld [vmem:[%s17508_s12 + $0x178] sm:$0xff]  ;;  %v10261_v61 = vld [vmem:[%s17508_s12 + $0x170] sm:$0xff] }
0x158f   :  { %v11417_v46 = vpop.f32.mrf.mxu0 }
0x1591   :  { %v5888_v43 = vpop.f32.mrf.mxu0 }
0x1593   :  { %v11420_v63 = vpop.f32.mrf.mxu0 }
0x1595   :  { %v5898_v0 = vpop.f32.mrf.mxu0 }
0x1597   :  { %v11423_v1 = vpop.f32.mrf.mxu0 }
0x1599   :  { %v5908_v10 = vpop.f32.mrf.mxu0 }
0x159b   :  { %v11426_v23 = vpop.f32.mrf.mxu0 }
0x159c   :  { %11427 = vmatprep.subr.mxu1 %v11426_v23 }
0x159d   :  { %v5918_v21 = vpop.f32.mrf.mxu0  ;;  %11428 = vmatpush3.msra.mxu1 %v11426_v23  ;;  %v10293_v23 = vld [vmem:[%s17508_s12 + $0x1a8] sm:$0xff] }
0x159e   :  { %11429 = vmatprep.subr.mxu1 %v5918_v21 }
0x159f   :  { %11430 = vmatpush3.msra.mxu1 %v5918_v21  ;;  %v11471_v13 = vpop.f32.mrf.mxu0  ;;  %v10292_v21 = vld [vmem:[%s17508_s12 + $0x1a0] sm:$0xff] }
0x15a0   :  { %11431 = vmatprep.subr.mxu1 %v11423_v1 }
0x15a1   :  { %11432 = vmatpush3.msra.mxu1 %v11423_v1  ;;  %v6150_v47 = vpop.f32.mrf.mxu0  ;;  %v10295_v1 = vld [vmem:[%s17508_s12 + $0x1b8] sm:$0x3] }
0x15a2   :  { %11433 = vmatprep.subr.mxu1 %v5908_v10 }
0x15a3   :  { %11434 = vmatpush3.msra.mxu1 %v5908_v10  ;;  %v11474_v6 = vpop.f32.mrf.mxu0  ;;  %v10294_v10 = vld [vmem:[%s17508_s12 + $0x1b0] sm:$0xff] }
0x15a4   :  { %11435 = vmatprep.subr.mxu1 %v11420_v63 }
0x15a5   :  { %11436 = vmatpush3.msra.mxu1 %v11420_v63  ;;  %v6160_v16 = vpop.f32.mrf.mxu0  ;;  %v10258_v63 = vld [vmem:[%s17508_s12 + $0x158] sm:$0xff] }
0x15a6   :  { %11437 = vmatprep.subr.mxu1 %v5898_v0 }
0x15a7   :  { %11438 = vmatpush3.msra.mxu1 %v5898_v0  ;;  %v11477_v9 = vpop.f32.mrf.mxu0  ;;  %v10257_v0 = vld [vmem:[%s17508_s12 + $0x150] sm:$0xff] }
0x15a8   :  { %11439 = vmatprep.subr.mxu1 %v11417_v46 }
0x15a9   :  { %11440 = vmatpush3.msra.mxu1 %v11417_v46  ;;  %v6170_v24 = vpop.f32.mrf.mxu0  ;;  %v10260_v46 = vld [vmem:[%s17508_s12 + $0x168] sm:$0xff] }
0x15aa   :  { %11441 = vmatprep.subr.mxu1 %v5888_v43 }
0x15ab   :  { %11442 = vmatpush3.msra.mxu1 %v5888_v43  ;;  %v11480_v2 = vpop.f32.mrf.mxu0  ;;  %v10259_v43 = vld [vmem:[%s17508_s12 + $0x160] sm:$0xff] }
0x15ac   :  { %11444 = vmatmul.mubr.msk.f32.vlgmr.msra.gmra.mxu1 %vm5552_vm8, %v10162_v12  ;;  %11481 = vmatprep.subr.mxu1 %v11480_v2  ;;  %v10324_v12 = vld [vmem:[%s17508_s12 + $0x1d8] sm:$0xff] }
0x15ad   :  { %v6180_v11 = vpop.f32.mrf.mxu0  ;;  %11482 = vmatpush3.msra.mxu1 %v11480_v2  ;;  %11446 = vmatprep.mubr.msk.f32.mxu1 %vm5552_vm8, %v10163_v22  ;;  %v10323_v22 = vld [vmem:[%s17508_s12 + $0x1d0] sm:$0xff]  ;;  %v10322_v2 = vld [vmem:[%s17508_s12 + $0x1c8] sm:$0xff] }
0x15ae   :  { %11483 = vmatprep.subr.mxu1 %v6180_v11 }
0x15af   :  { %11484 = vmatpush3.msra.mxu1 %v6180_v11  ;;  %v10321_v11 = vld [vmem:[%s17508_s12 + $0x1c0] sm:$0xff] }
0x15b0   :  { %11447 = vmatmul.mubr.msk.f32.gmra.mxu1 %vm5552_vm8, %v10164_v4  ;;  %11485 = vmatprep.subr.mxu1 %v11477_v9  ;;  %v12544_v4 = vld [vmem:[%s17508_s12 + $0x30] sm:$0x3] }
0x15b1   :  { %11486 = vmatpush3.msra.mxu1 %v11477_v9  ;;  %11449 = vmatprep.mubr.msk.f32.mxu1 %vm5552_vm8, %v10165_v18  ;;  %v10326_v9 = vld [vmem:[%s17508_s12 + $0x1e8] sm:$0xff] }
0x15b2   :  { %11487 = vmatprep.subr.mxu1 %v6170_v24  ;;  %v12545_v18 = vld [vmem:[%s17508_s12 + $0x28] sm:$0xff] }
0x15b3   :  { %11488 = vmatpush3.msra.mxu1 %v6170_v24  ;;  %v10325_v24 = vld [vmem:[%s17508_s12 + $0x1e0] sm:$0xff] }
0x15b4   :  { %11450 = vmatmul.mubr.msk.f32.gmra.mxu1 %vm5552_vm8, %v10166_v7  ;;  %11489 = vmatprep.subr.mxu1 %v11474_v6 }
0x15b5   :  { %11490 = vmatpush3.msra.mxu1 %v11474_v6  ;;  %11452 = vmatprep.mubr.msk.f32.mxu1 %vm5552_vm8, %v10167_v8  ;;  %v10289_v6 = vld [vmem:[%s17508_s12 + $0x188] sm:$0xff] }
0x15b6   :  { %11491 = vmatprep.subr.mxu1 %v6160_v16 }
0x15b7   :  { %11492 = vmatpush3.msra.mxu1 %v6160_v16  ;;  %v10327_v16 = vld [vmem:[%s17508_s12 + $0x1f0] sm:$0x3] }
0x15b8   :  { %11453 = vmatmul.mubr.msk.f32.gmra.mxu1 %vm5552_vm8, %v10168_v17  ;;  %11493 = vmatprep.subr.mxu1 %v11471_v13 }
0x15b9   :  { %11494 = vmatpush3.msra.mxu1 %v11471_v13  ;;  %11497 = vmatprep.mubr.msk.f32.mxu1 %vm5552_vm8, %v10193_v15  ;;  %v10291_v13 = vld [vmem:[%s17508_s12 + $0x198] sm:$0xff] }
0x15ba   :  { %11495 = vmatprep.subr.mxu1 %v6150_v47 }
0x15bb   :  { %11496 = vmatpush3.msra.mxu1 %v6150_v47  ;;  %v10290_v47 = vld [vmem:[%s17508_s12 + $0x190] sm:$0xff] }
0x15bc   :  { %11498 = vmatmul.mubr.msk.f32.vlgmr.msra.gmra.mxu1 %vm5552_vm8, %v10194_v5  ;;  %11537 = vmatprep.subr.msk.mxu1 %vm5310_vm5, %v10231_v48 }
0x15bd   :  { %11538 = vmatpush3.msk.msra.mxu1 %vm5310_vm5, %v10231_v48  ;;  %11500 = vmatprep.mubr.msk.f32.mxu1 %vm5552_vm8, %v10195_v52 }
0x15be   :  { %11539 = vmatprep.subr.mxu1 %v10230_v14 }
0x15bf   :  { %11540 = vmatpush3.msra.mxu1 %v10230_v14 }
0x15c0   :  { %11501 = vmatmul.mubr.msk.f32.gmra.mxu1 %vm5552_vm8, %v10196_v32  ;;  %11541 = vmatprep.subr.mxu1 %v10229_v25 }
0x15c1   :  { %11542 = vmatpush3.msra.mxu1 %v10229_v25  ;;  %11503 = vmatprep.mubr.msk.f32.mxu1 %vm5552_vm8, %v10197_v31 }
0x15c2   :  { %11543 = vmatprep.subr.mxu1 %v10228_v20 }
0x15c3   :  { %11544 = vmatpush3.msra.mxu1 %v10228_v20 }
0x15c4   :  { %11504 = vmatmul.mubr.msk.f32.gmra.mxu1 %vm5552_vm8, %v10198_v33  ;;  %11545 = vmatprep.subr.mxu1 %v10227_v34 }
0x15c5   :  { %11506 = vmatprep.mubr.msk.f32.mxu1 %vm5552_vm8, %v10199_v35  ;;  %11546 = vmatpush3.msra.mxu1 %v10227_v34 }
0x15c6   :  { %11547 = vmatprep.subr.mxu1 %v10226_v55 }
0x15c7   :  { %11548 = vmatpush3.msra.mxu1 %v10226_v55 }
0x15c8   :  { %11507 = vmatmul.mubr.msk.f32.gmra.mxu1 %vm5552_vm8, %v10200_v40  ;;  %11549 = vmatprep.subr.mxu1 %v10225_v51 }
0x15c9   :  { %11551 = vmatprep.mubr.msk.f32.mxu1 %vm201_vm2, %v15955_v44  ;;  %11550 = vmatpush3.msra.mxu1 %v10225_v51 }
0x15ca   :  { %11591 = vmatprep.subr.msk.mxu1 %vm5310_vm5, %v10263_v53 }
0x15cc   :  { %11552 = vmatmul.mubr.msk.f32.vlgmr.msra.gmra.mxu1 %vm201_vm2, %v15993_v59 }
0x15cd   :  { %11554 = vmatprep.mubr.msk.f32.mxu1 %vm201_vm2, %v15999_v42  ;;  %11592 = vmatpush3.msk.msra.mxu1 %vm5310_vm5, %v10263_v53 }
0x15ce   :  { %11593 = vmatprep.subr.mxu1 %v10262_v39 }
0x15cf   :  { %11594 = vmatpush3.msra.mxu1 %v10262_v39 }
0x15d0   :  { %11555 = vmatmul.mubr.msk.f32.gmra.mxu1 %vm201_vm2, %v16005_v41  ;;  %11595 = vmatprep.subr.mxu1 %v10261_v61 }
0x15d1   :  { %11557 = vmatprep.mubr.msk.f32.mxu1 %vm201_vm2, %v16081_v26  ;;  %11596 = vmatpush3.msra.mxu1 %v10261_v61 }
0x15d2   :  { %11597 = vmatprep.subr.mxu1 %v10260_v46 }
0x15d3   :  { %11598 = vmatpush3.msra.mxu1 %v10260_v46 }
0x15d4   :  { %11558 = vmatmul.mubr.msk.f32.gmra.mxu1 %vm201_vm2, %v16087_v28  ;;  %11599 = vmatprep.subr.mxu1 %v10259_v43 }
0x15d5   :  { %11560 = vmatprep.mubr.msk.f32.mxu1 %vm201_vm2, %v16093_v45  ;;  %11600 = vmatpush3.msra.mxu1 %v10259_v43 }
0x15d6   :  { %11601 = vmatprep.subr.mxu1 %v10258_v63 }
0x15d7   :  { %11602 = vmatpush3.msra.mxu1 %v10258_v63 }
0x15d8   :  { %11561 = vmatmul.mubr.msk.f32.gmra.mxu1 %vm201_vm2, %v16099_v30  ;;  %11603 = vmatprep.subr.mxu1 %v10257_v0 }
0x15d9   :  { %11605 = vmatprep.mubr.msk.f32.mxu1 %vm201_vm2, %v15955_v44  ;;  %11604 = vmatpush3.msra.mxu1 %v10257_v0 }
0x15da   :  { %11645 = vmatprep.subr.msk.mxu1 %vm5310_vm5, %v10295_v1 }
0x15dc   :  { %11606 = vmatmul.mubr.msk.f32.vlgmr.msra.gmra.mxu1 %vm201_vm2, %v15993_v59 }
0x15dd   :  { %11608 = vmatprep.mubr.msk.f32.mxu1 %vm201_vm2, %v15999_v42  ;;  %11646 = vmatpush3.msk.msra.mxu1 %vm5310_vm5, %v10295_v1 }
0x15de   :  { %11647 = vmatprep.subr.mxu1 %v10294_v10 }
0x15df   :  { %11648 = vmatpush3.msra.mxu1 %v10294_v10  ;;  %v10242_v10 = vld [vmem:[%s17509_s13 + $0x148] sm:$0xff] }
0x15e0   :  { %11609 = vmatmul.mubr.msk.f32.gmra.mxu1 %vm201_vm2, %v16005_v41  ;;  %11649 = vmatprep.subr.mxu1 %v10293_v23 }
0x15e1   :  { %11611 = vmatprep.mubr.msk.f32.mxu1 %vm201_vm2, %v16081_v26  ;;  %11650 = vmatpush3.msra.mxu1 %v10293_v23  ;;  %v10243_v23 = vld [vmem:[%s17509_s13 + $0x150] sm:$0xff] }
0x15e2   :  { %11651 = vmatprep.subr.mxu1 %v10292_v21 }
0x15e3   :  { %11652 = vmatpush3.msra.mxu1 %v10292_v21 }
0x15e4   :  { %11612 = vmatmul.mubr.msk.f32.gmra.mxu1 %vm201_vm2, %v16087_v28  ;;  %11653 = vmatprep.subr.mxu1 %v10291_v13 }
0x15e5   :  { %11614 = vmatprep.mubr.msk.f32.mxu1 %vm201_vm2, %v16093_v45  ;;  %11654 = vmatpush3.msra.mxu1 %v10291_v13 }
0x15e6   :  { %11655 = vmatprep.subr.mxu1 %v10290_v47 }
0x15e7   :  { %11656 = vmatpush3.msra.mxu1 %v10290_v47  ;;  %v10244_v47 = vld [vmem:[%s17509_s13 + $0x158] sm:$0xff] }
0x15e8   :  { %11615 = vmatmul.mubr.msk.f32.gmra.mxu1 %vm201_vm2, %v16099_v30  ;;  %11657 = vmatprep.subr.mxu1 %v10289_v6 }
0x15e9   :  { %11659 = vmatprep.mubr.msk.f32.mxu1 %vm201_vm2, %v15955_v44  ;;  %11658 = vmatpush3.msra.mxu1 %v10289_v6  ;;  %v10245_v6 = vld [vmem:[%s17509_s13 + $0x160] sm:$0xff] }
0x15ea   :  { %11699 = vmatprep.subr.msk.mxu1 %vm5310_vm5, %v10327_v16 }
0x15ec   :  { %11660 = vmatmul.mubr.msk.f32.vlgmr.msra.gmra.mxu1 %vm201_vm2, %v15993_v59 }
0x15ed   :  { %11662 = vmatprep.mubr.msk.f32.mxu1 %vm201_vm2, %v15999_v42  ;;  %11700 = vmatpush3.msk.msra.mxu1 %vm5310_vm5, %v10327_v16 }
0x15ee   :  { %11701 = vmatprep.subr.mxu1 %v10326_v9 }
0x15ef   :  { %11702 = vmatpush3.msra.mxu1 %v10326_v9 }
0x15f0   :  { %11663 = vmatmul.mubr.msk.f32.gmra.mxu1 %vm201_vm2, %v16005_v41  ;;  %11703 = vmatprep.subr.mxu1 %v10325_v24 }
0x15f1   :  { %11665 = vmatprep.mubr.msk.f32.mxu1 %vm201_vm2, %v16081_v26  ;;  %11704 = vmatpush3.msra.mxu1 %v10325_v24  ;;  %v10246_v24 = vld [vmem:[%s17509_s13 + $0x168] sm:$0xff] }
0x15f2   :  { %11705 = vmatprep.subr.mxu1 %v10324_v12 }
0x15f3   :  { %11706 = vmatpush3.msra.mxu1 %v10324_v12  ;;  %v10247_v12 = vld [vmem:[%s17509_s13 + $0x170] sm:$0xff] }
0x15f4   :  { %11666 = vmatmul.mubr.msk.f32.gmra.mxu1 %vm201_vm2, %v16087_v28  ;;  %11707 = vmatprep.subr.mxu1 %v10323_v22 }
0x15f5   :  { %11668 = vmatprep.mubr.msk.f32.mxu1 %vm201_vm2, %v16093_v45  ;;  %11708 = vmatpush3.msra.mxu1 %v10323_v22 }
0x15f6   :  { %11709 = vmatprep.subr.mxu1 %v10322_v2 }
0x15f7   :  { %11710 = vmatpush3.msra.mxu1 %v10322_v2 }
0x15f8   :  { %11669 = vmatmul.mubr.msk.f32.gmra.mxu1 %vm201_vm2, %v16099_v30  ;;  %11711 = vmatprep.subr.mxu1 %v10321_v11 }
0x15f9   :  { %11713 = vmatprep.mubr.msk.f32.mxu1 %vm201_vm2, %v15955_v44  ;;  %11712 = vmatpush3.msra.mxu1 %v10321_v11  ;;  %v12546_v44 = vld [vmem:[%s17508_s12 + $0x20] sm:$0xff]  ;;  %v10248_v11 = vld [vmem:[%s17509_s13 + $0x178] sm:$0xff] }
0x15fa   :  { %11753 = vmatprep.subr.msk.mxu1 %vm5310_vm5, %v12544_v4 }
0x15fc   :  { %11714 = vmatmul.mubr.msk.f32.vlgmr.msra.gmra.mxu1 %vm201_vm2, %v15993_v59  ;;  %v12547_v59 = vld [vmem:[%s17508_s12 + $0x18] sm:$0xff] }
0x15fd   :  { %11716 = vmatprep.mubr.msk.f32.mxu1 %vm201_vm2, %v15999_v42  ;;  %11754 = vmatpush3.msk.msra.mxu1 %vm5310_vm5, %v12544_v4  ;;  %v16562_v42 = vpop.f32.mrf.mxu1  ;;  %v10273_v4 = vld [vmem:[%s17509_s13 + $0x180] sm:$0xff] }
0x15fe   :  { %11755 = vmatprep.subr.mxu1 %v12545_v18 }
0x15ff   :  { %11756 = vmatpush3.msra.mxu1 %v12545_v18 }
0x1600   :  { %11717 = vmatmul.mubr.msk.f32.gmra.mxu1 %vm201_vm2, %v16005_v41  ;;  %11757 = vmatprep.subr.mxu1 %v12546_v44 }
0x1601   :  { %11719 = vmatprep.mubr.msk.f32.mxu1 %vm201_vm2, %v16081_v26  ;;  %11758 = vmatpush3.msra.mxu1 %v12546_v44 }
0x1602   :  { %11759 = vmatprep.subr.mxu1 %v15948_v50  ;;  %v10241_v50 = vld [vmem:[%s17509_s13 + $0x140] sm:$0xff] }
0x1603   :  { %11760 = vmatpush3.msra.mxu1 %v12547_v59  ;;  %11579 = vmatprep.mubr.msk.f32.mxu0 %vm5552_vm8, %v10241_v50  ;;  %v10274_v59 = vld [vmem:[%s17509_s13 + $0x188] sm:$0xff]  ;;  %v10275_v50 = vld [vmem:[%s17509_s13 + $0x190] sm:$0xff] }
0x1604   :  { %11720 = vmatmul.mubr.msk.f32.gmra.mxu1 %vm201_vm2, %v16087_v28  ;;  %11761 = vmatprep.subr.mxu1 %v15963_v19 }
0x1605   :  { %11722 = vmatprep.mubr.msk.f32.mxu1 %vm201_vm2, %v16093_v45  ;;  %11762 = vmatpush3.msra.mxu1 %v15963_v19 }
0x1606   :  { %11763 = vmatprep.subr.mxu1 %v15974_v27 }
0x1607   :  { %11764 = vmatpush3.msra.mxu1 %v15974_v27 }
0x1608   :  { %11723 = vmatmul.mubr.msk.f32.gmra.mxu1 %vm201_vm2, %v16099_v30  ;;  %11765 = vmatprep.subr.mxu1 %v15984_v29 }
0x1609   :  { %11766 = vmatpush3.msra.mxu1 %v15984_v29 }
0x166c   :  { %v11445_v19 = vpop.f32.mrf.mxu1 }
0x166d   :  { %v6066_v41 = vadd.f32 %v11445_v19, %v16299_v36 }
0x166e   :  { %v16565_v26 = vpop.f32.mrf.mxu1 }
0x1670   :  { %v11448_v27 = vpop.f32.mrf.mxu1 }
0x1671   :  { %v6068_v28 = vadd.f32 %v11448_v27, %v16305_v58  ;;  %v10276_v27 = vld [vmem:[%s17509_s13 + $0x198] sm:$0xff] }
0x1672   :  { %v16568_v45 = vpop.f32.mrf.mxu1 }
0x1674   :  { %v11451_v30 = vpop.f32.mrf.mxu1 }
0x1675   :  { %v6070_v29 = vadd.f32 %v11451_v30, %v16311_v3 }
0x1676   :  { %v16571_v7 = vpop.f32.mrf.mxu1 }
0x1678   :  { %v11454_v8 = vpop.f32.mrf.mxu1 }
0x1679   :  { %v6072_v17 = vadd.f32 %v11454_v8, %v16317_v49  ;;  %v10278_v8 = vld [vmem:[%s17509_s13 + $0x1a8] sm:$0xff] }
0x167a   :  { %v16574_v15 = vpop.f32.mrf.mxu1 }
0x167c   :  { %v11499_v5 = vpop.f32.mrf.mxu1 }
0x167d   :  { %v16576_v48 = vadd.f32 %v11499_v5, %v6066_v41 }
0x167e   :  { %v16578_v36 = vpop.f32.mrf.mxu1 }
0x1680   :  { %v11502_v52 = vpop.f32.mrf.mxu1 }
0x1681   :  { %v16580_v14 = vadd.f32 %v11502_v52, %v6068_v28  ;;  %v10277_v28 = vld [vmem:[%s17509_s13 + $0x1a0] sm:$0xff] }
0x1682   :  { %v16582_v58 = vpop.f32.mrf.mxu1 }
0x1684   :  { %v11505_v32 = vpop.f32.mrf.mxu1 }
0x1685   :  { %v16584_v25 = vadd.f32 %v11505_v32, %v6070_v29  ;;  %v10280_v32 = vld [vmem:[%s17509_s13 + $0x1b8] sm:$0xff] }
0x1686   :  { %v16586_v3 = vpop.f32.mrf.mxu1 }
0x1688   :  { %v11508_v31 = vpop.f32.mrf.mxu1 }
0x1689   :  { %v16588_v20 = vadd.f32 %v11508_v31, %v6072_v17  ;;  %v10279_v17 = vld [vmem:[%s17509_s13 + $0x1b0] sm:$0xff]  ;;  %v10305_v31 = vld [vmem:[%s17509_s13 + $0x1c0] sm:$0xff] }
0x168a   :  { %v16590_v49 = vpop.f32.mrf.mxu1 }
0x168c   :  { %v11553_v33 = vpop.f32.mrf.mxu1 }
0x168e   :  { %v6558_v34 = vpop.f32.mrf.mxu1 }
0x1690   :  { %v11556_v35 = vpop.f32.mrf.mxu1 }
0x1692   :  { %v6568_v55 = vpop.f32.mrf.mxu1 }
0x1694   :  { %v11559_v40 = vpop.f32.mrf.mxu1 }
0x1696   :  { %v6578_v51 = vpop.f32.mrf.mxu1 }
0x1698   :  { %v11562_v53 = vpop.f32.mrf.mxu1 }
0x1699   :  { %11563 = vmatprep.subr.mxu0 %v11562_v53 }
0x169a   :  { %v6588_v39 = vpop.f32.mrf.mxu1  ;;  %11564 = vmatpush3.msra.mxu0 %v11562_v53  ;;  %v10308_v53 = vld [vmem:[%s17509_s13 + $0x1d8] sm:$0xff] }
0x169b   :  { %11565 = vmatprep.subr.mxu0 %v6588_v39 }
0x169c   :  { %11566 = vmatpush3.msra.mxu0 %v6588_v39  ;;  %v11607_v61 = vpop.f32.mrf.mxu1  ;;  %v10309_v39 = vld [vmem:[%s17509_s13 + $0x1e0] sm:$0xff] }
0x169d   :  { %11567 = vmatprep.subr.mxu0 %v11559_v40 }
0x169e   :  { %11568 = vmatpush3.msra.mxu0 %v11559_v40  ;;  %v6820_v46 = vpop.f32.mrf.mxu1 }
0x169f   :  { %11569 = vmatprep.subr.mxu0 %v6578_v51 }
0x16a0   :  { %11570 = vmatpush3.msra.mxu0 %v6578_v51  ;;  %v11610_v43 = vpop.f32.mrf.mxu1 }
0x16a1   :  { %11571 = vmatprep.subr.mxu0 %v11556_v35 }
0x16a2   :  { %11572 = vmatpush3.msra.mxu0 %v11556_v35  ;;  %v6830_v63 = vpop.f32.mrf.mxu1  ;;  %v10306_v35 = vld [vmem:[%s17509_s13 + $0x1c8] sm:$0xff] }
0x16a3   :  { %11573 = vmatprep.subr.mxu0 %v6568_v55 }
0x16a4   :  { %11574 = vmatpush3.msra.mxu0 %v6568_v55  ;;  %v11613_v0 = vpop.f32.mrf.mxu1  ;;  %v10307_v55 = vld [vmem:[%s17509_s13 + $0x1d0] sm:$0xff] }
0x16a5   :  { %11575 = vmatprep.subr.mxu0 %v11553_v33 }
0x16a6   :  { %11576 = vmatpush3.msra.mxu0 %v11553_v33  ;;  %v6840_v1 = vpop.f32.mrf.mxu1 }
0x16a7   :  { %11577 = vmatprep.subr.mxu0 %v6558_v34 }
0x16a8   :  { %11578 = vmatpush3.msra.mxu0 %v6558_v34  ;;  %v11616_v21 = vpop.f32.mrf.mxu1 }
0x16a9   :  { %11580 = vmatmul.mubr.msk.f32.vlgmr.msra.gmra.mxu0 %vm5552_vm8, %v10242_v10  ;;  %11617 = vmatprep.subr.mxu0 %v11616_v21  ;;  %v12548_v10 = vld [vmem:[%s17508_s12 + $0x68] sm:$0x3] }
0x16aa   :  { %v6850_v13 = vpop.f32.mrf.mxu1  ;;  %11618 = vmatpush3.msra.mxu0 %v11616_v21  ;;  %11582 = vmatprep.mubr.msk.f32.mxu0 %vm5552_vm8, %v10243_v23  ;;  %v10340_v23 = vld [vmem:[%s17509_s13 + $0x218] sm:$0xff]  ;;  %v10341_v21 = vld [vmem:[%s17509_s13 + $0x220] sm:$0xff] }
0x16ab   :  { %11619 = vmatprep.subr.mxu0 %v6850_v13 }
0x16ac   :  { %11620 = vmatpush3.msra.mxu0 %v6850_v13  ;;  %v11661_v16 = vpop.f32.mrf.mxu1  ;;  %v12549_v13 = vld [vmem:[%s17508_s12 + $0x60] sm:$0xff] }
0x16ad   :  { %11583 = vmatmul.mubr.msk.f32.gmra.mxu0 %vm5552_vm8, %v10244_v47  ;;  %11621 = vmatprep.subr.mxu0 %v11613_v0  ;;  %v12550_v47 = vld [vmem:[%s17508_s12 + $0x58] sm:$0xff] }
0x16ae   :  { %11622 = vmatpush3.msra.mxu0 %v11613_v0  ;;  %v16607_v9 = vpop.f32.mrf.mxu1  ;;  %11585 = vmatprep.mubr.msk.f32.mxu0 %vm5552_vm8, %v10245_v6  ;;  %v10338_v0 = vld [vmem:[%s17509_s13 + $0x208] sm:$0xff] }
0x16af   :  { %11623 = vmatprep.subr.mxu0 %v6840_v1  ;;  %v10342_v6 = vld [vmem:[%s17509_s13 + $0x228] sm:$0xff] }
0x16b0   :  { %11624 = vmatpush3.msra.mxu0 %v6840_v1  ;;  %v11664_v22 = vpop.f32.mrf.mxu1  ;;  %v10339_v1 = vld [vmem:[%s17509_s13 + $0x210] sm:$0xff] }
0x16b1   :  { %11586 = vmatmul.mubr.msk.f32.gmra.mxu0 %vm5552_vm8, %v10246_v24  ;;  %11625 = vmatprep.subr.mxu0 %v11610_v43  ;;  %v12552_v24 = vld [vmem:[%s17508_s12 + $0x48] sm:$0xff] }
0x16b2   :  { %11626 = vmatpush3.msra.mxu0 %v11610_v43  ;;  %v7092_v2 = vpop.f32.mrf.mxu1  ;;  %11588 = vmatprep.mubr.msk.f32.mxu0 %vm5552_vm8, %v10247_v12  ;;  %v10312_v43 = vld [vmem:[%s17509_s13 + $0x1f8] sm:$0xff] }
0x16b3   :  { %11627 = vmatprep.subr.mxu0 %v6830_v63  ;;  %v10344_v12 = vld [vmem:[%s17509_s13 + $0x238] sm:$0xff] }
0x16b4   :  { %11628 = vmatpush3.msra.mxu0 %v6830_v63  ;;  %v11667_v18 = vpop.f32.mrf.mxu1  ;;  %v10337_v63 = vld [vmem:[%s17509_s13 + $0x200] sm:$0xff] }
0x16b5   :  { %11589 = vmatmul.mubr.msk.f32.gmra.mxu0 %vm5552_vm8, %v10248_v11  ;;  %11629 = vmatprep.subr.mxu0 %v11607_v61  ;;  %v11527_v11 = vpop.f32.mrf.mxu0 }
0x16b6   :  { %11630 = vmatpush3.msra.mxu0 %v11607_v61  ;;  %v7102_v44 = vpop.f32.mrf.mxu1  ;;  %11633 = vmatprep.mubr.msk.f32.mxu0 %vm5552_vm8, %v10273_v4  ;;  %v10310_v61 = vld [vmem:[%s17509_s13 + $0x1e8] sm:$0xff] }
0x16b7   :  { %11631 = vmatprep.subr.mxu0 %v6820_v46  ;;  %v6434_v4 = vpop.f32.mrf.mxu0 }
0x16b8   :  { %11632 = vmatpush3.msra.mxu0 %v6820_v46  ;;  %v11670_v19 = vpop.f32.mrf.mxu1  ;;  %v10311_v46 = vld [vmem:[%s17509_s13 + $0x1f0] sm:$0xff] }
0x16b9   :  { %11634 = vmatmul.mubr.msk.f32.vlgmr.msra.gmra.mxu0 %vm5552_vm8, %v10274_v59  ;;  %11671 = vmatprep.subr.mxu0 %v11670_v19 }
0x16ba   :  { %v7112_v41 = vpop.f32.mrf.mxu1  ;;  %11672 = vmatpush3.msra.mxu0 %v11670_v19  ;;  %11636 = vmatprep.mubr.msk.f32.mxu0 %vm5552_vm8, %v10275_v50 }
0x16bb   :  { %11673 = vmatprep.subr.mxu0 %v7112_v41 }
0x16bc   :  { %11674 = vmatpush3.msra.mxu0 %v7112_v41  ;;  %v11715_v30 = vpop.f32.mrf.mxu1 }
0x16bd   :  { %11637 = vmatmul.mubr.msk.f32.gmra.mxu0 %vm5552_vm8, %v10276_v27  ;;  %11675 = vmatprep.subr.mxu0 %v11667_v18 }
0x16be   :  { %11676 = vmatpush3.msra.mxu0 %v11667_v18  ;;  %v7344_v29 = vpop.f32.mrf.mxu1  ;;  %11639 = vmatprep.mubr.msk.f32.mxu0 %vm5552_vm8, %v10277_v28  ;;  %v11530_v18 = vpop.f32.mrf.mxu0 }
0x16bf   :  { %11677 = vmatprep.subr.mxu0 %v7102_v44 }
0x16c0   :  { %11678 = vmatpush3.msra.mxu0 %v7102_v44  ;;  %v11718_v5 = vpop.f32.mrf.mxu1  ;;  %v6444_v44 = vpop.f32.mrf.mxu0 }
0x16c1   :  { %11640 = vmatmul.mubr.msk.f32.gmra.mxu0 %vm5552_vm8, %v10278_v8  ;;  %11679 = vmatprep.subr.mxu0 %v11664_v22 }
0x16c2   :  { %11680 = vmatpush3.msra.mxu0 %v11664_v22  ;;  %v7354_v52 = vpop.f32.mrf.mxu1  ;;  %11642 = vmatprep.mubr.msk.f32.mxu0 %vm5552_vm8, %v10279_v17  ;;  %v12553_v22 = vld [vmem:[%s17508_s12 + $0x40] sm:$0xff]  ;;  %v11533_v59 = vpop.f32.mrf.mxu0 }
0x16c3   :  { %11681 = vmatprep.subr.mxu0 %v7092_v2 }
0x16c4   :  { %11682 = vmatpush3.msra.mxu0 %v7092_v2  ;;  %v11721_v33 = vpop.f32.mrf.mxu1  ;;  %v12554_v2 = vld [vmem:[%s17508_s12 + $0x38] sm:$0xff]  ;;  %v6454_v50 = vpop.f32.mrf.mxu0 }
0x16c5   :  { %11643 = vmatmul.mubr.msk.f32.gmra.mxu0 %vm5552_vm8, %v10280_v32  ;;  %11683 = vmatprep.subr.mxu0 %v11661_v16 }
0x16c6   :  { %11684 = vmatpush3.msra.mxu0 %v11661_v16  ;;  %v7364_v34 = vpop.f32.mrf.mxu1  ;;  %11687 = vmatprep.mubr.msk.f32.mxu0 %vm5552_vm8, %v10305_v31  ;;  %v10343_v16 = vld [vmem:[%s17509_s13 + $0x230] sm:$0xff]  ;;  %v16743_v19 = vpop.f32.mrf.mxu0 }
0x16c7   :  { %11685 = vmatprep.subr.mxu0 %v16607_v9 }
0x16c8   :  { %11686 = vmatpush3.msra.mxu0 %v16607_v9  ;;  %v11724_v40 = vpop.f32.mrf.mxu1  ;;  %v12551_v9 = vld [vmem:[%s17508_s12 + $0x50] sm:$0xff]  ;;  %v16745_v41 = vpop.f32.mrf.mxu0 }
0x16c9   :  { %11688 = vmatmul.mubr.msk.f32.vlgmr.msra.gmra.mxu0 %vm5552_vm8, %v10306_v35  ;;  %11725 = vmatprep.subr.mxu0 %v11724_v40 }
0x16ca   :  { %v7374_v51 = vpop.f32.mrf.mxu1  ;;  %11726 = vmatpush3.msra.mxu0 %v11724_v40  ;;  %11690 = vmatprep.mubr.msk.f32.mxu0 %vm5552_vm8, %v10307_v55 }
0x16cb   :  { %11727 = vmatprep.subr.mxu0 %v7374_v51 }
0x16cc   :  { %11728 = vmatpush3.msra.mxu0 %v7374_v51 }
0x16cd   :  { %11691 = vmatmul.mubr.msk.f32.gmra.mxu0 %vm5552_vm8, %v10308_v53  ;;  %11729 = vmatprep.subr.mxu0 %v11721_v33 }
0x16ce   :  { %11730 = vmatpush3.msra.mxu0 %v11721_v33  ;;  %11693 = vmatprep.mubr.msk.f32.mxu0 %vm5552_vm8, %v10309_v39 }
0x16cf   :  { %11731 = vmatprep.subr.mxu0 %v7364_v34 }
0x16d0   :  { %11732 = vmatpush3.msra.mxu0 %v7364_v34 }
0x16d1   :  { %11694 = vmatmul.mubr.msk.f32.gmra.mxu0 %vm5552_vm8, %v10310_v61  ;;  %11733 = vmatprep.subr.mxu0 %v11718_v5  ;;  %v5773_v61 = vadd.f32 %v16303_v38, %v16301_v37 }
0x16d2   :  { %11734 = vmatpush3.msra.mxu0 %v11718_v5  ;;  %11696 = vmatprep.mubr.msk.f32.mxu0 %vm5552_vm8, %v10311_v46 }
0x16d3   :  { %11735 = vmatprep.subr.mxu0 %v7354_v52 }
0x16d4   :  { %11736 = vmatpush3.msra.mxu0 %v7354_v52 }
0x16d5   :  { %11697 = vmatmul.mubr.msk.f32.gmra.mxu0 %vm5552_vm8, %v10312_v43  ;;  %11737 = vmatprep.subr.mxu0 %v11715_v30  ;;  %v6065_v43 = vadd.f32 %v16565_v26, %v5773_v61  ;;  %v7545_v26 = vpop.permute.xlu1 %7544 }
0x16d6   :  { %11738 = vmatpush3.msra.mxu0 %v11715_v30  ;;  %11741 = vmatprep.mubr.msk.f32.mxu0 %vm5552_vm8, %v10337_v63 }
0x16d7   :  { %11739 = vmatprep.subr.mxu0 %v7344_v29 }
0x16d8   :  { %11740 = vmatpush3.msra.mxu0 %v7344_v29 }
0x16d9   :  { %11742 = vmatmul.mubr.msk.f32.vlgmr.msra.gmra.mxu0 %vm5552_vm8, %v10338_v0  ;;  %11779 = vmatprep.subr.msk.mxu0 %vm5310_vm5, %v12548_v10  ;;  %v5783_v0 = vadd.f32 %v16309_v56, %v16307_v54  ;;  %v6476_v54 = vadd.f32 %v11530_v18, %v16580_v14 }
0x16da   :  { %11744 = vmatprep.mubr.msk.f32.mxu0 %vm5552_vm8, %v10339_v1  ;;  %11780 = vmatpush3.msk.msra.mxu0 %vm5310_vm5, %v12548_v10  ;;  %v6327_v1 = vadd.f32 %v16578_v36, %v6065_v43 }
0x16db   :  { %11781 = vmatprep.subr.mxu0 %v12549_v13 }
0x16dc   :  { %11782 = vmatpush3.msra.mxu0 %v12549_v13  ;;  %v5793_v13 = vadd.f32 %v16315_v62, %v16313_v60 }
0x16dd   :  { %11745 = vmatmul.mubr.msk.f32.gmra.mxu0 %vm5552_vm8, %v10340_v23  ;;  %11783 = vmatprep.subr.mxu0 %v12550_v47  ;;  %v6067_v23 = vadd.f32 %v16568_v45, %v5783_v0  ;;  %v5803_v45 = vadd.f32 %v16562_v42, %v16319_v57  ;;  %v12555_v0 = vld [vmem:[#allocation3 + $0x8] sm:$0xff] }
0x16de   :  { %11747 = vmatprep.mubr.msk.f32.mxu0 %vm5552_vm8, %v10341_v21  ;;  %11784 = vmatpush3.msra.mxu0 %v12550_v47  ;;  %v6474_v21 = vadd.f32 %v11527_v11, %v16576_v48 }
0x16df   :  { %11785 = vmatprep.subr.mxu0 %v12551_v9  ;;  %v6329_v37 = vadd.f32 %v16582_v58, %v6067_v23  ;;  %v12556_v23 = vld [vmem:[#allocation3] sm:$0xff] }
0x16e0   :  { %11786 = vmatpush3.msra.mxu0 %v12551_v9 }
0x16e1   :  { %11748 = vmatmul.mubr.msk.f32.gmra.mxu0 %vm5552_vm8, %v10342_v6  ;;  %11787 = vmatprep.subr.mxu0 %v12552_v24  ;;  %v6473_v6 = vadd.f32 %v6434_v4, %v6327_v1  ;;  %v6475_v62 = vadd.f32 %v6444_v44, %v6329_v37 }
0x16e2   :  { %11750 = vmatprep.mubr.msk.f32.mxu0 %vm5552_vm8, %v10343_v16  ;;  %11788 = vmatpush3.msra.mxu0 %v12552_v24  ;;  %v6069_v16 = vadd.f32 %v16571_v7, %v5793_v13  ;;  %v7540_v24 = vpop.permute.xlu0 %7539  ;;  %v6478_v7 = vadd.f32 %v11533_v59, %v16584_v25 }
0x16e3   :  { %11789 = vmatprep.subr.mxu0 %v12553_v22 }
0x16e4   :  { %11790 = vmatpush3.msra.mxu0 %v12553_v22  ;;  %v6331_v48 = vadd.f32 %v16586_v3, %v6069_v16  ;;  %v12557_v16 = vld [vmem:[#allocation3 + $0x18] sm:$0xff] }
0x16e5   :  { %11751 = vmatmul.mubr.msk.f32.gmra.mxu0 %vm5552_vm8, %v10344_v12  ;;  %11791 = vmatprep.subr.mxu0 %v12554_v2 }
0x16e6   :  { %11792 = vmatpush3.msra.mxu0 %v12554_v2  ;;  %v6071_v2 = vadd.f32 %v16574_v15, %v5803_v45  ;;  %v6480_v15 = vadd.f32 %v16743_v19, %v16588_v20 }
0x16e8   :  { %v6333_v57 = vadd.f32 %v16590_v49, %v6071_v2 }
0x1769   :  { %v11581_v27 = vpop.f32.mrf.mxu0 }
0x176a   :  { %v6736_v38 = vadd.f32 %v11581_v27, %v6474_v21 }
0x176b   :  { %v6696_v28 = vpop.f32.mrf.mxu0 }
0x176c   :  { %v6735_v56 = vadd.f32 %v6696_v28, %v6473_v6  ;;  %v7555_v28 = vpop.permute.xlu1 %7554 }
0x176d   :  { %v11584_v30 = vpop.f32.mrf.mxu0 }
0x176e   :  { %v6738_v12 = vadd.f32 %v11584_v30, %v6476_v54 }
0x176f   :  { %v6706_v29 = vpop.f32.mrf.mxu0 }
0x1770   :  { %v6737_v14 = vadd.f32 %v6706_v29, %v6475_v62  ;;  %v7565_v20 = vpop.permute.xlu1 %7564 }
0x1771   :  { %v11587_v8 = vpop.f32.mrf.mxu0 }
0x1772   :  { %v6740_v42 = vadd.f32 %v11587_v8, %v6478_v7  ;;  %v12560_v7 = vld [vmem:[#allocation3 + $0x20] sm:$0xff] }
0x1773   :  { %v6716_v17 = vpop.f32.mrf.mxu0 }
0x1774   :  { %v7575_v62 = vpop.permute.xlu1 %7574 }
0x1775   :  { %v16747_v5 = vpop.f32.mrf.mxu0 }
0x1776   :  { %v6742_v49 = vadd.f32 %v16747_v5, %v6480_v15 }
0x1777   :  { %v16749_v52 = vpop.f32.mrf.mxu0 }
0x1779   :  { %v11635_v32 = vpop.f32.mrf.mxu0 }
0x177a   :  { %v6998_v36 = vadd.f32 %v11635_v32, %v6736_v38  ;;  %v6477_v32 = vadd.f32 %v6454_v50, %v6331_v48  ;;  %v6479_v50 = vadd.f32 %v16745_v41, %v6333_v57 }
0x177b   :  { %v6958_v31 = vpop.f32.mrf.mxu0 }
0x177c   :  { %v6997_v58 = vadd.f32 %v6958_v31, %v6735_v56  ;;  %v6739_v25 = vadd.f32 %v6716_v17, %v6477_v32  ;;  %v6741_v19 = vadd.f32 %v16749_v52, %v6479_v50  ;;  %v12561_v32 = vld [vmem:[#allocation3 + $0x38] sm:$0xff] }
0x177d   :  { %v11638_v33 = vpop.f32.mrf.mxu0 }
0x177e   :  { %v7000_v4 = vadd.f32 %v11638_v33, %v6738_v12 }
0x177f   :  { %v6968_v34 = vpop.f32.mrf.mxu0 }
0x1780   :  { %v6999_v61 = vadd.f32 %v6968_v34, %v6737_v14 }
0x1781   :  { %v11641_v35 = vpop.f32.mrf.mxu0 }
0x1782   :  { %v7002_v29 = vadd.f32 %v11641_v35, %v6740_v42  ;;  %v12562_v42 = vld [vmem:[#allocation3 + $0x30] sm:$0xff] }
0x1783   :  { %v6978_v55 = vpop.f32.mrf.mxu0 }
0x1784   :  { %v7001_v8 = vadd.f32 %v6978_v55, %v6739_v25 }
0x1785   :  { %v16751_v40 = vpop.f32.mrf.mxu0 }
0x1786   :  { %v7004_v17 = vadd.f32 %v16751_v40, %v6742_v49 }
0x1787   :  { %v16753_v51 = vpop.f32.mrf.mxu0 }
0x1788   :  { %v7003_v38 = vadd.f32 %v16753_v51, %v6741_v19  ;;  %v12563_v19 = vld [vmem:[%s17508_s12 + $0xa0] sm:$0x3] }
0x1789   :  { %v11689_v53 = vpop.f32.mrf.mxu0 }
0x178a   :  { %v7260_v22 = vadd.f32 %v11689_v53, %v6998_v36  ;;  %v7550_v53 = vpop.permute.xlu0 %7549  ;;  %v12558_v36 = vld [vmem:[#allocation3 + $0x10] sm:$0xff] }
0x178b   :  { %v7220_v39 = vpop.f32.mrf.mxu0 }
0x178c   :  { %v7259_v18 = vadd.f32 %v7220_v39, %v6997_v58  ;;  %v12559_v58 = vld [vmem:[#allocation3 + $0x28] sm:$0xff] }
0x178d   :  { %v11692_v46 = vpop.f32.mrf.mxu0 }
0x178e   :  { %v7262_v44 = vadd.f32 %v11692_v46, %v7000_v4  ;;  %v7560_v55 = vpop.permute.xlu0 %7559 }
0x178f   :  { %v7230_v63 = vpop.f32.mrf.mxu0 }
0x1790   :  { %v7261_v33 = vadd.f32 %v7230_v63, %v6999_v61 }
0x1791   :  { %v11695_v10 = vpop.f32.mrf.mxu0 }
0x1792   :  { %v7264_v1 = vadd.f32 %v11695_v10, %v7002_v29 }
0x1793   :  { %v7240_v47 = vpop.f32.mrf.mxu0 }
0x1794   :  { %v7263_v63 = vadd.f32 %v7240_v47, %v7001_v8 }
0x1795   :  { %v11698_v9 = vpop.f32.mrf.mxu0 }
0x1797   :  { %v16771_v60 = vpop.f32.mrf.mxu0 }
0x1798   :  { %v7265_v51 = vadd.f32 %v16771_v60, %v7003_v38  ;;  %v7570_v60 = vpop.permute.xlu0 %7569  ;;  %v12565_v38 = vld [vmem:[%s17508_s12 + $0x90] sm:$0xff] }
0x1799   :  { %v11743_v11 = vpop.f32.mrf.mxu0 }
0x179a   :  { %v7522_v27 = vadd.f32 %v11743_v11, %v7260_v22 }
0x179b   :  { %v7482_v3 = vpop.f32.mrf.mxu0 }
0x179c   :  { %v7578_v30 = vadd.f32 %v7545_v26, %v7522_v27  ;;  %v7521_v31 = vadd.f32 %v7482_v3, %v7259_v18  ;;  %v7266_v26 = vadd.f32 %v11698_v9, %v7004_v17  ;;  %v10374_v17 = vld [vmem:[%s18084_s0 + $0x58] sm:$0xff] }
0x179d   :  { %v11746_v59 = vpop.f32.mrf.mxu0 }
0x179e   :  { %v7577_v39 = vadd.f32 %v7540_v24, %v7521_v31  ;;  %v7524_v43 = vadd.f32 %v11746_v59, %v7262_v44  ;;  %v7586_v34 = vadd.f32 %v12555_v0, %v7578_v30  ;;  %v10371_v30 = vld [vmem:[%s18084_s0 + $0x40] sm:$0xff] }
0x179f   :  { %v7492_v46 = vpop.f32.mrf.mxu0  ;;  %v7730_v31 = vld [vmem:[%s18084_s0] sm:$0xff] }
0x17a0   :  { %v7585_v21 = vadd.f32 %v12556_v23, %v7577_v39  ;;  %v7580_v13 = vadd.f32 %v7555_v28, %v7524_v43  ;;  %v7523_v6 = vadd.f32 %v7492_v46, %v7261_v33  ;;  %v16785_v10 = vmax.f32 %v7586_v34, 0.0 }
0x17a1   :  { %v11749_v35 = vpop.f32.mrf.mxu0 }
0x17a2   :  { %v16782_v37 = vmax.f32 %v7585_v21, 0.0  ;;  %v7579_v41 = vadd.f32 %v7550_v53, %v7523_v6  ;;  %v7526_v5 = vadd.f32 %v11749_v35, %v7264_v1  ;;  %v7588_v54 = vadd.f32 %v12557_v16, %v7580_v13  ;;  %v10372_v21 = vld [vmem:[%s18084_s0 + $0x48] sm:$0xff]  ;;  %v10373_v6 = vld [vmem:[%s18084_s0 + $0x50] sm:$0xff]  ;;  %v7733_v35 = vld [vmem:[%s18084_s0 + $0x18] sm:$0xff] }
0x17a3   :  { %v7502_v56 = vpop.f32.mrf.mxu0  ;;  %v7731_v13 = vld [vmem:[%s18084_s0 + $0x8] sm:$0xff]  ;;  %v10377_v16 = vld [vmem:[%s18084_s0 + $0x70] sm:$0xff] }
0x17a4   :  { %v7587_v24 = vadd.f32 %v12558_v36, %v7579_v41  ;;  %v7582_v52 = vadd.f32 %v7565_v20, %v7526_v5  ;;  %v7525_v45 = vadd.f32 %v7502_v56, %v7263_v63  ;;  %11767 = vmatprep.mubr.msk.f32.mxu1 %vm201_vm2, %v16782_v37  ;;  %11793 = vmatprep.mubr.msk.f32.mxu0 %vm201_vm2, %v16782_v37  ;;  %v16798_v12 = vmax.f32 %v7588_v54, 0.0  ;;  %v7732_v20 = vld [vmem:[%s18084_s0 + $0x10] sm:$0xff]  ;;  %v10375_v63 = vld [vmem:[%s18084_s0 + $0x60] sm:$0xff]  ;;  %v12564_v41 = vld [vmem:[%s17508_s12 + $0x98] sm:$0xff] }
0x17a5   :  { %v11752_v40 = vpop.f32.mrf.mxu0  ;;  %11768 = vmatmul.mubr.msk.f32.vlgmr.msra.gmra.mxu1 %vm201_vm2, %v16785_v10  ;;  %11794 = vmatmul.mubr.msk.f32.vlgmr.msra.gmra.mxu0 %vm201_vm2, %v16785_v10  ;;  %v7734_v5 = vld [vmem:[%s18084_s0 + $0x20] sm:$0xff]  ;;  %v12566_v54 = vld [vmem:[%s17508_s12 + $0x88] sm:$0xff]  ;;  %v7736_v56 = vld [vmem:[%s18084_s0 + $0x30] sm:$0xff] }
0x17a6   :  { %v16796_v47 = vmax.f32 %v7587_v24, 0.0  ;;  %v7581_v9 = vadd.f32 %v7560_v55, %v7525_v45  ;;  %v7528_v48 = vadd.f32 %v11752_v40, %v7266_v26  ;;  %v7590_v22 = vadd.f32 %v12559_v58, %v7582_v52  ;;  %v10376_v55 = vld [vmem:[%s18084_s0 + $0x68] sm:$0xff]  ;;  %v10378_v36 = vld [vmem:[%s18084_s0 + $0x78] sm:$0xff]  ;;  %v12567_v24 = vld [vmem:[%s17508_s12 + $0x80] sm:$0xff] }
0x17a7   :  { %v7512_v2 = vpop.f32.mrf.mxu0  ;;  %v7735_v26 = vld [vmem:[%s18084_s0 + $0x28] sm:$0xff]  ;;  %v7737_v52 = vld [vmem:[%s18084_s0 + $0x38] sm:$0xff]  ;;  %v12569_v40 = vld [vmem:[%s17508_s12 + $0x70] sm:$0xff] }
0x17a8   :  { %v7589_v11 = vadd.f32 %v12560_v7, %v7581_v9  ;;  %v7584_v14 = vadd.f32 %v7575_v62, %v7528_v48  ;;  %v7527_v4 = vadd.f32 %v7512_v2, %v7265_v51  ;;  %11770 = vmatprep.mubr.msk.f32.mxu1 %vm201_vm2, %v16796_v47  ;;  %11796 = vmatprep.mubr.msk.f32.mxu0 %vm201_vm2, %v16796_v47  ;;  %v16810_v28 = vmax.f32 %v7590_v22, 0.0  ;;  %v12568_v45 = vld [vmem:[%s17508_s12 + $0x78] sm:$0xff]  ;;  %v12571_v9 = vld [vmem:[%s17508_s12 + $0xd0] sm:$0xff]  ;;  %v12572_v48 = vld [vmem:[%s17508_s12 + $0xc8] sm:$0xff] }
0x17a9   :  { %11771 = vmatmul.mubr.msk.f32.gmra.mxu1 %vm201_vm2, %v16798_v12  ;;  %11797 = vmatmul.mubr.msk.f32.gmra.mxu0 %vm201_vm2, %v16798_v12  ;;  %v12570_v51 = vld [vmem:[%s17508_s12 + $0xd8] sm:$0x3]  ;;  %v12573_v62 = vld [vmem:[%s17508_s12 + $0xc0] sm:$0xff]  ;;  %v12575_v22 = vld [vmem:[%s17508_s12 + $0xb0] sm:$0xff] }
0x17aa   :  { %v16808_v18 = vmax.f32 %v7589_v11, 0.0  ;;  %v7583_v27 = vadd.f32 %v7570_v60, %v7527_v4  ;;  %v7592_v57 = vadd.f32 %v12561_v32, %v7584_v14  ;;  %v12574_v58 = vld [vmem:[%s17508_s12 + $0xb8] sm:$0xff]  ;;  %v12576_v2 = vld [vmem:[%s17508_s12 + $0xa8] sm:$0xff]  ;;  %v10404_v7 = vld [vmem:[%s18084_s0 + $0x80] sm:$0xff] }
0x17ab   :  { %v10445_v11 = vld [vmem:[%s18084_s0 + $0x100] sm:$0xff]  ;;  %v10446_v14 = vld [vmem:[%s18084_s0 + $0x108] sm:$0xff]  ;;  %v10447_v4 = vld [vmem:[%s18084_s0 + $0x110] sm:$0xff] }
0x17ac   :  { %v7591_v3 = vadd.f32 %v12562_v42, %v7583_v27  ;;  %11773 = vmatprep.mubr.msk.f32.mxu1 %vm201_vm2, %v16808_v18  ;;  %11799 = vmatprep.mubr.msk.f32.mxu0 %vm201_vm2, %v16808_v18  ;;  %v16822_v44 = vmax.f32 %v7592_v57, 0.0  ;;  %v10448_v60 = vld [vmem:[%s18084_s0 + $0x118] sm:$0xff]  ;;  %v10449_v27 = vld [vmem:[%s18084_s0 + $0x120] sm:$0xff]  ;;  %v10450_v32 = vld [vmem:[%s18084_s0 + $0x128] sm:$0xff] }
0x17ad   :  { %11774 = vmatmul.mubr.msk.f32.gmra.mxu1 %vm201_vm2, %v16810_v28  ;;  %11800 = vmatmul.mubr.msk.f32.gmra.mxu0 %vm201_vm2, %v16810_v28  ;;  %v10451_v57 = vld [vmem:[%s18084_s0 + $0x130] sm:$0xff]  ;;  %v10452_v42 = vld [vmem:[%s18084_s0 + $0x138] sm:$0xff] }
0x17ae   :  { %v16820_v61 = vmax.f32 %v7591_v3, 0.0 }
0x17b0   :  { %11776 = vmatprep.mubr.msk.f32.mxu1 %vm201_vm2, %v16820_v61  ;;  %11802 = vmatprep.mubr.msk.f32.mxu0 %vm201_vm2, %v16820_v61 }
0x17b1   :  { %11777 = vmatmul.mubr.msk.f32.gmra.mxu1 %vm201_vm2, %v16822_v44  ;;  %11803 = vmatmul.mubr.msk.f32.gmra.mxu0 %vm201_vm2, %v16822_v44 }
0x17b2   :  { %11821 = vmatprep.mubr.msk.f32.mxu1 %vm5552_vm8, %v10371_v30  ;;  %11849 = vmatprep.mubr.msk.f32.mxu0 %vm5552_vm8, %v7730_v31 }
0x1865   :  { %v11769_v53 = vpop.f32.mrf.mxu1  ;;  %v11795_v15 = vpop.f32.mrf.mxu0 }
0x1867   :  { %v7691_v25 = vpop.f32.mrf.mxu1  ;;  %v7804_v59 = vpop.f32.mrf.mxu0 }
0x1869   :  { %v11772_v29 = vpop.f32.mrf.mxu1  ;;  %v11798_v33 = vpop.f32.mrf.mxu0 }
0x186b   :  { %v7701_v39 = vpop.f32.mrf.mxu1  ;;  %v7814_v43 = vpop.f32.mrf.mxu0 }
0x186d   :  { %v11775_v50 = vpop.f32.mrf.mxu1  ;;  %v11801_v49 = vpop.f32.mrf.mxu0 }
0x186f   :  { %v7711_v8 = vpop.f32.mrf.mxu1  ;;  %v7824_v0 = vpop.f32.mrf.mxu0 }
0x1871   :  { %v11778_v34 = vpop.f32.mrf.mxu1  ;;  %v11804_v46 = vpop.f32.mrf.mxu0 }
0x1872   :  { %11805 = vmatprep.subr.mxu1 %v11804_v46  ;;  %11833 = vmatprep.subr.mxu0 %v11778_v34 }
0x1873   :  { %v7721_v1 = vpop.f32.mrf.mxu1  ;;  %v7834_v23 = vpop.f32.mrf.mxu0  ;;  %11806 = vmatpush3.msra.mxu1 %v11804_v46  ;;  %11834 = vmatpush3.msra.mxu0 %v11778_v34 }
0x1874   :  { %11807 = vmatprep.subr.mxu1 %v7834_v23  ;;  %11835 = vmatprep.subr.mxu0 %v7721_v1 }
0x1875   :  { %11808 = vmatpush3.msra.mxu1 %v7834_v23  ;;  %11836 = vmatpush3.msra.mxu0 %v7721_v1 }
0x1876   :  { %11809 = vmatprep.subr.mxu1 %v11801_v49  ;;  %11837 = vmatprep.subr.mxu0 %v11775_v50 }
0x1877   :  { %11810 = vmatpush3.msra.mxu1 %v11801_v49  ;;  %11838 = vmatpush3.msra.mxu0 %v11775_v50 }
0x1878   :  { %11811 = vmatprep.subr.mxu1 %v7824_v0  ;;  %11839 = vmatprep.subr.mxu0 %v7711_v8 }
0x1879   :  { %11812 = vmatpush3.msra.mxu1 %v7824_v0  ;;  %11840 = vmatpush3.msra.mxu0 %v7711_v8 }
0x187a   :  { %11813 = vmatprep.subr.mxu1 %v11798_v33  ;;  %11841 = vmatprep.subr.mxu0 %v11772_v29 }
0x187b   :  { %11814 = vmatpush3.msra.mxu1 %v11798_v33  ;;  %11842 = vmatpush3.msra.mxu0 %v11772_v29 }
0x187c   :  { %11815 = vmatprep.subr.mxu1 %v7814_v43  ;;  %11843 = vmatprep.subr.mxu0 %v7701_v39 }
0x187d   :  { %11816 = vmatpush3.msra.mxu1 %v7814_v43  ;;  %11844 = vmatpush3.msra.mxu0 %v7701_v39 }
0x187e   :  { %11817 = vmatprep.subr.mxu1 %v11795_v15  ;;  %11845 = vmatprep.subr.mxu0 %v11769_v53 }
0x187f   :  { %11818 = vmatpush3.msra.mxu1 %v11795_v15  ;;  %11846 = vmatpush3.msra.mxu0 %v11769_v53 }
0x1880   :  { %11819 = vmatprep.subr.mxu1 %v7804_v59  ;;  %11847 = vmatprep.subr.mxu0 %v7691_v25 }
0x1881   :  { %11820 = vmatpush3.msra.mxu1 %v7804_v59  ;;  %11848 = vmatpush3.msra.mxu0 %v7691_v25 }
0x1882   :  { %11822 = vmatmul.mubr.msk.f32.vlgmr.msra.gmra.mxu1 %vm5552_vm8, %v10372_v21  ;;  %11850 = vmatmul.mubr.msk.f32.vlgmr.msra.gmra.mxu0 %vm5552_vm8, %v7731_v13 }
0x1883   :  { %11861 = vmatprep.subr.msk.mxu1 %vm5310_vm5, %v12563_v19  ;;  %11824 = vmatprep.mubr.msk.f32.mxu1 %vm5552_vm8, %v10373_v6 }
0x1884   :  { %11862 = vmatpush3.msk.msra.mxu1 %vm5310_vm5, %v12563_v19  ;;  %11852 = vmatprep.mubr.msk.f32.mxu0 %vm5552_vm8, %v7732_v20 }
0x1885   :  { %11863 = vmatprep.subr.mxu1 %v12564_v41 }
0x1886   :  { %11825 = vmatmul.mubr.msk.f32.gmra.mxu1 %vm5552_vm8, %v10374_v17  ;;  %11853 = vmatmul.mubr.msk.f32.gmra.mxu0 %vm5552_vm8, %v7733_v35 }
0x1887   :  { %11864 = vmatpush3.msra.mxu1 %v12564_v41  ;;  %11827 = vmatprep.mubr.msk.f32.mxu1 %vm5552_vm8, %v10375_v63 }
0x1888   :  { %11865 = vmatprep.subr.mxu1 %v12565_v38  ;;  %11855 = vmatprep.mubr.msk.f32.mxu0 %vm5552_vm8, %v7734_v5 }
0x1889   :  { %11866 = vmatpush3.msra.mxu1 %v12565_v38 }
0x188a   :  { %11867 = vmatprep.subr.mxu1 %v12566_v54  ;;  %11828 = vmatmul.mubr.msk.f32.gmra.mxu1 %vm5552_vm8, %v10376_v55 }
0x188b   :  { %11856 = vmatmul.mubr.msk.f32.gmra.mxu0 %vm5552_vm8, %v7735_v26  ;;  %11868 = vmatpush3.msra.mxu1 %v12566_v54 }
0x188c   :  { %11869 = vmatprep.subr.mxu1 %v12567_v24  ;;  %11830 = vmatprep.mubr.msk.f32.mxu1 %vm5552_vm8, %v10377_v16 }
0x188d   :  { %11870 = vmatpush3.msra.mxu1 %v12567_v24  ;;  %11858 = vmatprep.mubr.msk.f32.mxu0 %vm5552_vm8, %v7736_v56  ;;  %v10405_v24 = vld [vmem:[%s18084_s0 + $0x88] sm:$0xff] }
0x188e   :  { %11871 = vmatprep.subr.mxu1 %v12568_v45  ;;  %11831 = vmatmul.mubr.msk.f32.gmra.mxu1 %vm5552_vm8, %v10378_v36 }
0x188f   :  { %11859 = vmatmul.mubr.msk.f32.gmra.mxu0 %vm5552_vm8, %v7737_v52  ;;  %11872 = vmatpush3.msra.mxu1 %v12568_v45  ;;  %v10406_v52 = vld [vmem:[%s18084_s0 + $0x90] sm:$0xff] }
0x1890   :  { %11873 = vmatprep.subr.mxu1 %v12569_v40  ;;  %11875 = vmatprep.mubr.msk.f32.mxu1 %vm201_vm2, %v16782_v37 }
0x1891   :  { %11874 = vmatpush3.msra.mxu1 %v12569_v40  ;;  %11903 = vmatprep.mubr.msk.f32.mxu0 %vm5552_vm8, %v10404_v7  ;;  %v10431_v7 = vld [vmem:[%s18084_s0 + $0xd0] sm:$0xff] }
0x1892   :  { %11915 = vmatprep.subr.msk.mxu1 %vm5310_vm5, %v12570_v51  ;;  %11876 = vmatmul.mubr.msk.f32.vlgmr.msra.gmra.mxu1 %vm201_vm2, %v16785_v10 }
0x1893   :  { %11916 = vmatpush3.msk.msra.mxu1 %vm5310_vm5, %v12570_v51  ;;  %11878 = vmatprep.mubr.msk.f32.mxu1 %vm201_vm2, %v16796_v47  ;;  %v10407_v51 = vld [vmem:[%s18084_s0 + $0x98] sm:$0xff] }
0x1894   :  { %11917 = vmatprep.subr.mxu1 %v12571_v9 }
0x1895   :  { %11918 = vmatpush3.msra.mxu1 %v12571_v9  ;;  %v10408_v9 = vld [vmem:[%s18084_s0 + $0xa0] sm:$0xff] }
0x1896   :  { %11919 = vmatprep.subr.mxu1 %v12572_v48  ;;  %11879 = vmatmul.mubr.msk.f32.gmra.mxu1 %vm201_vm2, %v16798_v12 }
0x1897   :  { %11920 = vmatpush3.msra.mxu1 %v12572_v48  ;;  %11881 = vmatprep.mubr.msk.f32.mxu1 %vm201_vm2, %v16808_v18  ;;  %v10409_v48 = vld [vmem:[%s18084_s0 + $0xa8] sm:$0xff] }
0x1898   :  { %11921 = vmatprep.subr.mxu1 %v12573_v62 }
0x1899   :  { %11922 = vmatpush3.msra.mxu1 %v12573_v62  ;;  %v10410_v62 = vld [vmem:[%s18084_s0 + $0xb0] sm:$0xff] }
0x189a   :  { %11923 = vmatprep.subr.mxu1 %v12574_v58  ;;  %11882 = vmatmul.mubr.msk.f32.gmra.mxu1 %vm201_vm2, %v16810_v28 }
0x189b   :  { %11924 = vmatpush3.msra.mxu1 %v12574_v58  ;;  %11884 = vmatprep.mubr.msk.f32.mxu1 %vm201_vm2, %v16820_v61  ;;  %v10411_v58 = vld [vmem:[%s18084_s0 + $0xb8] sm:$0xff] }
0x189c   :  { %11925 = vmatprep.subr.mxu1 %v12575_v22 }
0x189d   :  { %11926 = vmatpush3.msra.mxu1 %v12575_v22  ;;  %v10429_v22 = vld [vmem:[%s18084_s0 + $0xc0] sm:$0xff] }
0x189e   :  { %11927 = vmatprep.subr.mxu1 %v12576_v2  ;;  %11885 = vmatmul.mubr.msk.f32.gmra.mxu1 %vm201_vm2, %v16822_v44 }
0x189f   :  { %11928 = vmatpush3.msra.mxu1 %v12576_v2  ;;  %11929 = vmatprep.mubr.msk.f32.mxu1 %vm201_vm2, %v16782_v37  ;;  %v10430_v2 = vld [vmem:[%s18084_s0 + $0xc8] sm:$0xff] }
0x18a0   :  { %11969 = vmatprep.subr.mxu1 %v16822_v44 }
0x18a2   :  { %11930 = vmatmul.mubr.msk.f32.vlgmr.msra.gmra.mxu1 %vm201_vm2, %v16785_v10 }
0x18a3   :  { %11970 = vmatpush3.msra.mxu1 %v16822_v44  ;;  %11932 = vmatprep.mubr.msk.f32.mxu1 %vm201_vm2, %v16796_v47 }
0x18a4   :  { %11971 = vmatprep.subr.mxu1 %v16820_v61 }
0x18a5   :  { %11972 = vmatpush3.msra.mxu1 %v16820_v61 }
0x18a6   :  { %11973 = vmatprep.subr.mxu1 %v16810_v28  ;;  %11933 = vmatmul.mubr.msk.f32.gmra.mxu1 %vm201_vm2, %v16798_v12 }
0x18a7   :  { %11974 = vmatpush3.msra.mxu1 %v16810_v28  ;;  %11935 = vmatprep.mubr.msk.f32.mxu1 %vm201_vm2, %v16808_v18 }
0x18a8   :  { %11975 = vmatprep.subr.mxu1 %v16808_v18 }
0x18a9   :  { %11976 = vmatpush3.msra.mxu1 %v16808_v18 }
0x18aa   :  { %11977 = vmatprep.subr.mxu1 %v16798_v12  ;;  %11936 = vmatmul.mubr.msk.f32.gmra.mxu1 %vm201_vm2, %v16810_v28 }
0x18ab   :  { %11978 = vmatpush3.msra.mxu1 %v16798_v12  ;;  %11938 = vmatprep.mubr.msk.f32.mxu1 %vm201_vm2, %v16820_v61 }
0x18ac   :  { %11979 = vmatprep.subr.mxu1 %v16796_v47 }
0x18ad   :  { %11980 = vmatpush3.msra.mxu1 %v16796_v47 }
0x18ae   :  { %11981 = vmatprep.subr.mxu1 %v16785_v10  ;;  %11939 = vmatmul.mubr.msk.f32.gmra.mxu1 %vm201_vm2, %v16822_v44 }
0x18af   :  { %11982 = vmatpush3.msra.mxu1 %v16785_v10  ;;  %11985 = vmatprep.mubr.msk.f32.mxu1 %vm5552_vm8, %v10445_v11  ;;  %v12577_v11 = vld [vmem:[%s17508_s12 + $0x148] sm:$0x3] }
0x18b0   :  { %11983 = vmatprep.subr.mxu1 %v16782_v37 }
0x18b1   :  { %11984 = vmatpush3.msra.mxu1 %v16782_v37 }
0x18b2   :  { %11986 = vmatmul.mubr.msk.f32.vlgmr.msra.gmra.mxu1 %vm5552_vm8, %v10446_v14  ;;  %v10432_v14 = vld [vmem:[%s18084_s0 + $0xd8] sm:$0xff] }
0x18b3   :  { %11988 = vmatprep.mubr.msk.f32.mxu1 %vm5552_vm8, %v10447_v4  ;;  %v12578_v4 = vld [vmem:[%s17508_s12 + $0x140] sm:$0xff] }
0x18b6   :  { %11989 = vmatmul.mubr.msk.f32.gmra.mxu1 %vm5552_vm8, %v10448_v60  ;;  %v10433_v60 = vld [vmem:[%s18084_s0 + $0xe0] sm:$0xff] }
0x18b7   :  { %11991 = vmatprep.mubr.msk.f32.mxu1 %vm5552_vm8, %v10449_v27  ;;  %v12579_v27 = vld [vmem:[%s17508_s12 + $0x138] sm:$0xff] }
0x18ba   :  { %11992 = vmatmul.mubr.msk.f32.gmra.mxu1 %vm5552_vm8, %v10450_v32  ;;  %v10434_v32 = vld [vmem:[%s18084_s0 + $0xe8] sm:$0xff] }
0x18bb   :  { %11994 = vmatprep.mubr.msk.f32.mxu1 %vm5552_vm8, %v10451_v57  ;;  %v12580_v57 = vld [vmem:[%s17508_s12 + $0x130] sm:$0xff] }
0x18be   :  { %11995 = vmatmul.mubr.msk.f32.gmra.mxu1 %vm5552_vm8, %v10452_v42  ;;  %v10435_v42 = vld [vmem:[%s18084_s0 + $0xf0] sm:$0xff] }
0x1942   :  { %v11823_v3 = vpop.f32.mrf.mxu1  ;;  %v11851_v30 = vpop.f32.mrf.mxu0 }
0x1943   :  { %v17026_v31 = vadd.f32 %v11851_v30, %v11823_v3  ;;  %v12581_v3 = vld [vmem:[%s17508_s12 + $0x128] sm:$0xff]  ;;  %v10436_v30 = vld [vmem:[%s18084_s0 + $0xf8] sm:$0xff] }
0x1944   :  { %v7942_v53 = vpop.f32.mrf.mxu1  ;;  %v8071_v15 = vpop.f32.mrf.mxu0 }
0x1945   :  { %v17028_v25 = vadd.f32 %v8071_v15, %v7942_v53  ;;  %v12582_v53 = vld [vmem:[%s17508_s12 + $0x120] sm:$0xff]  ;;  %v12583_v15 = vld [vmem:[%s17508_s12 + $0x118] sm:$0xff] }
0x1946   :  { %v11826_v59 = vpop.f32.mrf.mxu1  ;;  %v11854_v29 = vpop.f32.mrf.mxu0 }
0x1947   :  { %v17030_v33 = vadd.f32 %v11854_v29, %v11826_v59  ;;  %v12584_v59 = vld [vmem:[%s17508_s12 + $0x180] sm:$0x3]  ;;  %v12585_v29 = vld [vmem:[%s17508_s12 + $0x178] sm:$0xff] }
0x1948   :  { %v7952_v39 = vpop.f32.mrf.mxu1  ;;  %v8081_v43 = vpop.f32.mrf.mxu0 }
0x1949   :  { %v17032_v50 = vadd.f32 %v8081_v43, %v7952_v39  ;;  %v12586_v39 = vld [vmem:[%s17508_s12 + $0x170] sm:$0xff]  ;;  %v12587_v43 = vld [vmem:[%s17508_s12 + $0x168] sm:$0xff] }
0x194a   :  { %v11829_v49 = vpop.f32.mrf.mxu1 }
0x194b   :  { %v11857_v8 = vpop.f32.mrf.mxu0 }
0x194c   :  { %v17034_v0 = vadd.f32 %v11857_v8, %v11829_v49  ;;  %v7962_v34 = vpop.f32.mrf.mxu1  ;;  %v12588_v49 = vld [vmem:[%s17508_s12 + $0x160] sm:$0xff]  ;;  %v12589_v8 = vld [vmem:[%s17508_s12 + $0x158] sm:$0xff] }
0x194d   :  { %v8091_v46 = vpop.f32.mrf.mxu0 }
0x194e   :  { %v17036_v1 = vadd.f32 %v8091_v46, %v7962_v34  ;;  %v11832_v23 = vpop.f32.mrf.mxu1  ;;  %v12590_v34 = vld [vmem:[%s17508_s12 + $0x150] sm:$0xff]  ;;  %v12591_v46 = vld [vmem:[%s17508_s12 + $0x1b8] sm:$0x3] }
0x194f   :  { %v11860_v21 = vpop.f32.mrf.mxu0 }
0x1950   :  { %v17038_v13 = vadd.f32 %v11860_v21, %v11832_v23  ;;  %v17040_v6 = vpop.f32.mrf.mxu1  ;;  %v12592_v23 = vld [vmem:[%s17508_s12 + $0x1b0] sm:$0xff]  ;;  %v12593_v21 = vld [vmem:[%s17508_s12 + $0x1a8] sm:$0xff] }
0x1952   :  { %v11877_v20 = vpop.f32.mrf.mxu1 }
0x1954   :  { %v8176_v19 = vpop.f32.mrf.mxu1 }
0x1956   :  { %v11880_v17 = vpop.f32.mrf.mxu1 }
0x1958   :  { %v8186_v35 = vpop.f32.mrf.mxu1 }
0x195a   :  { %v11883_v63 = vpop.f32.mrf.mxu1 }
0x195c   :  { %v8196_v41 = vpop.f32.mrf.mxu1 }
0x195e   :  { %v11886_v5 = vpop.f32.mrf.mxu1 }
0x195f   :  { %11887 = vmatprep.subr.mxu0 %v11886_v5 }
0x1960   :  { %v8206_v55 = vpop.f32.mrf.mxu1  ;;  %11888 = vmatpush3.msra.mxu0 %v11886_v5  ;;  %v12600_v5 = vld [vmem:[%s17508_s12 + $0x1e0] sm:$0xff] }
0x1961   :  { %11889 = vmatprep.subr.mxu0 %v8206_v55 }
0x1962   :  { %11890 = vmatpush3.msra.mxu0 %v8206_v55  ;;  %v11931_v38 = vpop.f32.mrf.mxu1  ;;  %v12601_v55 = vld [vmem:[%s17508_s12 + $0x1d8] sm:$0xff] }
0x1963   :  { %11891 = vmatprep.subr.mxu0 %v11883_v63 }
0x1964   :  { %11892 = vmatpush3.msra.mxu0 %v11883_v63  ;;  %v8427_v26 = vpop.f32.mrf.mxu1  ;;  %v12598_v63 = vld [vmem:[%s17508_s12 + $0x1f0] sm:$0x3] }
0x1965   :  { %11893 = vmatprep.subr.mxu0 %v8196_v41 }
0x1966   :  { %11894 = vmatpush3.msra.mxu0 %v8196_v41  ;;  %v11934_v16 = vpop.f32.mrf.mxu1  ;;  %v12599_v41 = vld [vmem:[%s17508_s12 + $0x1e8] sm:$0xff] }
0x1967   :  { %11895 = vmatprep.subr.mxu0 %v11880_v17 }
0x1968   :  { %11896 = vmatpush3.msra.mxu0 %v11880_v17  ;;  %v8437_v54 = vpop.f32.mrf.mxu1  ;;  %v12596_v17 = vld [vmem:[%s17508_s12 + $0x190] sm:$0xff] }
0x1969   :  { %11897 = vmatprep.subr.mxu0 %v8186_v35 }
0x196a   :  { %11898 = vmatpush3.msra.mxu0 %v8186_v35  ;;  %v11937_v56 = vpop.f32.mrf.mxu1  ;;  %v12597_v35 = vld [vmem:[%s17508_s12 + $0x188] sm:$0xff] }
0x196b   :  { %11899 = vmatprep.subr.mxu0 %v11877_v20 }
0x196c   :  { %11900 = vmatpush3.msra.mxu0 %v11877_v20  ;;  %v8447_v36 = vpop.f32.mrf.mxu1  ;;  %v12594_v20 = vld [vmem:[%s17508_s12 + $0x1a0] sm:$0xff] }
0x196d   :  { %11901 = vmatprep.subr.mxu0 %v8176_v19 }
0x196e   :  { %11902 = vmatpush3.msra.mxu0 %v8176_v19  ;;  %v11940_v45 = vpop.f32.mrf.mxu1  ;;  %v12595_v19 = vld [vmem:[%s17508_s12 + $0x198] sm:$0xff] }
0x196f   :  { %11904 = vmatmul.mubr.msk.f32.vlgmr.msra.gmra.mxu0 %vm5552_vm8, %v10405_v24  ;;  %11941 = vmatprep.subr.mxu0 %v11940_v45 }
0x1970   :  { %v8457_v40 = vpop.f32.mrf.mxu1  ;;  %11942 = vmatpush3.msra.mxu0 %v11940_v45  ;;  %11906 = vmatprep.mubr.msk.f32.mxu0 %vm5552_vm8, %v10406_v52 }
0x1971   :  { %11943 = vmatprep.subr.mxu0 %v8457_v40 }
0x1972   :  { %11944 = vmatpush3.msra.mxu0 %v8457_v40 }
0x1973   :  { %11907 = vmatmul.mubr.msk.f32.gmra.mxu0 %vm5552_vm8, %v10407_v51  ;;  %11945 = vmatprep.subr.mxu0 %v11937_v56 }
0x1974   :  { %11946 = vmatpush3.msra.mxu0 %v11937_v56  ;;  %11909 = vmatprep.mubr.msk.f32.mxu0 %vm5552_vm8, %v10408_v9  ;;  %v8101_v56 = vpop.f32.mrf.mxu0 }
0x1975   :  { %11947 = vmatprep.subr.mxu0 %v8447_v36 }
0x1976   :  { %11948 = vmatpush3.msra.mxu0 %v8447_v36 }
0x1977   :  { %11910 = vmatmul.mubr.msk.f32.gmra.mxu0 %vm5552_vm8, %v10409_v48  ;;  %11949 = vmatprep.subr.mxu0 %v11934_v16  ;;  %v17265_v48 = vpop.f32.mrf.mxu1 }
0x1978   :  { %11950 = vmatpush3.msra.mxu0 %v11934_v16  ;;  %11912 = vmatprep.mubr.msk.f32.mxu0 %vm5552_vm8, %v10410_v62  ;;  %v12604_v16 = vld [vmem:[%s17508_s12 + $0x1c0] sm:$0xff] }
0x1979   :  { %11951 = vmatprep.subr.mxu0 %v8437_v54 }
0x197a   :  { %11952 = vmatpush3.msra.mxu0 %v8437_v54  ;;  %v10470_v54 = vld [vmem:[%s18084_s0 + $0x140] sm:$0xff] }
0x197b   :  { %11913 = vmatmul.mubr.msk.f32.gmra.mxu0 %vm5552_vm8, %v10411_v58  ;;  %11953 = vmatprep.subr.mxu0 %v11931_v38 }
0x197c   :  { %11954 = vmatpush3.msra.mxu0 %v11931_v38  ;;  %11957 = vmatprep.mubr.msk.f32.mxu0 %vm5552_vm8, %v10429_v22  ;;  %v12602_v38 = vld [vmem:[%s17508_s12 + $0x1d0] sm:$0xff] }
0x197d   :  { %11955 = vmatprep.subr.mxu0 %v8427_v26  ;;  %12039 = vmatprep.mubr.msk.f32.mxu1 %vm5552_vm8, %v10470_v54 }
0x197e   :  { %11956 = vmatpush3.msra.mxu0 %v8427_v26  ;;  %v12603_v26 = vld [vmem:[%s17508_s12 + $0x1c8] sm:$0xff] }
0x197f   :  { %11958 = vmatmul.mubr.msk.f32.vlgmr.msra.gmra.mxu0 %vm5552_vm8, %v10430_v2  ;;  %11997 = vmatprep.subr.msk.mxu0 %vm5310_vm5, %v12577_v11 }
0x1980   :  { %11998 = vmatpush3.msk.msra.mxu0 %vm5310_vm5, %v12577_v11  ;;  %11960 = vmatprep.mubr.msk.f32.mxu0 %vm5552_vm8, %v10431_v7  ;;  %v17269_v7 = vpop.f32.mrf.mxu1 }
0x1981   :  { %11999 = vmatprep.subr.mxu0 %v12578_v4 }
0x1982   :  { %12000 = vmatpush3.msra.mxu0 %v12578_v4 }
0x1983   :  { %11961 = vmatmul.mubr.msk.f32.gmra.mxu0 %vm5552_vm8, %v10432_v14  ;;  %12001 = vmatprep.subr.mxu0 %v12579_v27  ;;  %v8102_v14 = vadd.f32 %v8101_v56, %v17040_v6  ;;  %v10471_v56 = vld [vmem:[%s18084_s0 + $0x148] sm:$0xff] }
0x1984   :  { %12002 = vmatpush3.msra.mxu0 %v12579_v27  ;;  %11963 = vmatprep.mubr.msk.f32.mxu0 %vm5552_vm8, %v10433_v60 }
0x1985   :  { %12003 = vmatprep.subr.mxu0 %v12580_v57 }
0x1986   :  { %12004 = vmatpush3.msra.mxu0 %v12580_v57 }
0x1987   :  { %11964 = vmatmul.mubr.msk.f32.gmra.mxu0 %vm5552_vm8, %v10434_v32  ;;  %12005 = vmatprep.subr.mxu0 %v12581_v3 }
0x1988   :  { %11966 = vmatprep.mubr.msk.f32.mxu0 %vm5552_vm8, %v10435_v42  ;;  %12006 = vmatpush3.msra.mxu0 %v12581_v3 }
0x1989   :  { %12007 = vmatprep.subr.mxu0 %v12582_v53 }
0x198a   :  { %12008 = vmatpush3.msra.mxu0 %v12582_v53 }
0x198b   :  { %11967 = vmatmul.mubr.msk.f32.gmra.mxu0 %vm5552_vm8, %v10436_v30  ;;  %12009 = vmatprep.subr.mxu0 %v12583_v15 }
0x198c   :  { %12011 = vmatprep.mubr.msk.f32.mxu0 %vm201_vm2, %v16782_v37  ;;  %12010 = vmatpush3.msra.mxu0 %v12583_v15 }
0x198d   :  { %12051 = vmatprep.subr.msk.mxu0 %vm5310_vm5, %v12584_v59 }
0x198f   :  { %12012 = vmatmul.mubr.msk.f32.vlgmr.msra.gmra.mxu0 %vm201_vm2, %v16785_v10 }
0x1990   :  { %12014 = vmatprep.mubr.msk.f32.mxu0 %vm201_vm2, %v16796_v47  ;;  %12052 = vmatpush3.msk.msra.mxu0 %vm5310_vm5, %v12584_v59 }
0x1991   :  { %12053 = vmatprep.subr.mxu0 %v12585_v29 }
0x1992   :  { %12054 = vmatpush3.msra.mxu0 %v12585_v29 }
0x1993   :  { %12015 = vmatmul.mubr.msk.f32.gmra.mxu0 %vm201_vm2, %v16798_v12  ;;  %12055 = vmatprep.subr.mxu0 %v12586_v39 }
0x1994   :  { %12017 = vmatprep.mubr.msk.f32.mxu0 %vm201_vm2, %v16808_v18  ;;  %12056 = vmatpush3.msra.mxu0 %v12586_v39 }
0x1995   :  { %12057 = vmatprep.subr.mxu0 %v12587_v43 }
0x1996   :  { %12058 = vmatpush3.msra.mxu0 %v12587_v43 }
0x1997   :  { %12018 = vmatmul.mubr.msk.f32.gmra.mxu0 %vm201_vm2, %v16810_v28  ;;  %12059 = vmatprep.subr.mxu0 %v12588_v49 }
0x1998   :  { %12020 = vmatprep.mubr.msk.f32.mxu0 %vm201_vm2, %v16820_v61  ;;  %12060 = vmatpush3.msra.mxu0 %v12588_v49 }
0x1999   :  { %12061 = vmatprep.subr.mxu0 %v12589_v8 }
0x199a   :  { %12062 = vmatpush3.msra.mxu0 %v12589_v8 }
0x199b   :  { %12021 = vmatmul.mubr.msk.f32.gmra.mxu0 %vm201_vm2, %v16822_v44  ;;  %12063 = vmatprep.subr.mxu0 %v12590_v34 }
0x199c   :  { %12065 = vmatprep.mubr.msk.f32.mxu0 %vm201_vm2, %v16782_v37  ;;  %12064 = vmatpush3.msra.mxu0 %v12590_v34 }
0x199d   :  { %12105 = vmatprep.subr.msk.mxu0 %vm5310_vm5, %v12591_v46 }
0x199f   :  { %12066 = vmatmul.mubr.msk.f32.vlgmr.msra.gmra.mxu0 %vm201_vm2, %v16785_v10 }
0x19a0   :  { %12068 = vmatprep.mubr.msk.f32.mxu0 %vm201_vm2, %v16796_v47  ;;  %12106 = vmatpush3.msk.msra.mxu0 %vm5310_vm5, %v12591_v46 }
0x19a1   :  { %12107 = vmatprep.subr.mxu0 %v12592_v23 }
0x19a2   :  { %12108 = vmatpush3.msra.mxu0 %v12592_v23 }
0x19a3   :  { %12069 = vmatmul.mubr.msk.f32.gmra.mxu0 %vm201_vm2, %v16798_v12  ;;  %12109 = vmatprep.subr.mxu0 %v12593_v21 }
0x19a4   :  { %12071 = vmatprep.mubr.msk.f32.mxu0 %vm201_vm2, %v16808_v18  ;;  %12110 = vmatpush3.msra.mxu0 %v12593_v21 }
0x19a5   :  { %12111 = vmatprep.subr.mxu0 %v12594_v20 }
0x19a6   :  { %12112 = vmatpush3.msra.mxu0 %v12594_v20 }
0x19a7   :  { %12072 = vmatmul.mubr.msk.f32.gmra.mxu0 %vm201_vm2, %v16810_v28  ;;  %12113 = vmatprep.subr.mxu0 %v12595_v19 }
0x19a8   :  { %12074 = vmatprep.mubr.msk.f32.mxu0 %vm201_vm2, %v16820_v61  ;;  %12114 = vmatpush3.msra.mxu0 %v12595_v19 }
0x19a9   :  { %12115 = vmatprep.subr.mxu0 %v12596_v17 }
0x19aa   :  { %12116 = vmatpush3.msra.mxu0 %v12596_v17 }
0x19ab   :  { %12075 = vmatmul.mubr.msk.f32.gmra.mxu0 %vm201_vm2, %v16822_v44  ;;  %12117 = vmatprep.subr.mxu0 %v12597_v35 }
0x19ac   :  { %12119 = vmatprep.mubr.msk.f32.mxu0 %vm201_vm2, %v16782_v37  ;;  %12118 = vmatpush3.msra.mxu0 %v12597_v35 }
0x19ad   :  { %12159 = vmatprep.subr.msk.mxu0 %vm5310_vm5, %v12598_v63 }
0x19af   :  { %12120 = vmatmul.mubr.msk.f32.vlgmr.msra.gmra.mxu0 %vm201_vm2, %v16785_v10 }
0x19b0   :  { %12122 = vmatprep.mubr.msk.f32.mxu0 %vm201_vm2, %v16796_v47  ;;  %12160 = vmatpush3.msk.msra.mxu0 %vm5310_vm5, %v12598_v63 }
0x19b1   :  { %12161 = vmatprep.subr.mxu0 %v12599_v41 }
0x19b2   :  { %12162 = vmatpush3.msra.mxu0 %v12599_v41 }
0x19b3   :  { %12123 = vmatmul.mubr.msk.f32.gmra.mxu0 %vm201_vm2, %v16798_v12  ;;  %12163 = vmatprep.subr.mxu0 %v12600_v5 }
0x19b4   :  { %12125 = vmatprep.mubr.msk.f32.mxu0 %vm201_vm2, %v16808_v18  ;;  %12164 = vmatpush3.msra.mxu0 %v12600_v5 }
0x19b5   :  { %12165 = vmatprep.subr.mxu0 %v12601_v55 }
0x19b6   :  { %12166 = vmatpush3.msra.mxu0 %v12601_v55 }
0x19b7   :  { %12126 = vmatmul.mubr.msk.f32.gmra.mxu0 %vm201_vm2, %v16810_v28  ;;  %12167 = vmatprep.subr.mxu0 %v12602_v38 }
0x19b8   :  { %12128 = vmatprep.mubr.msk.f32.mxu0 %vm201_vm2, %v16820_v61  ;;  %12168 = vmatpush3.msra.mxu0 %v12602_v38 }
0x19b9   :  { %12169 = vmatprep.subr.mxu0 %v12603_v26 }
0x19ba   :  { %12170 = vmatpush3.msra.mxu0 %v12603_v26 }
0x19bb   :  { %12129 = vmatmul.mubr.msk.f32.gmra.mxu0 %vm201_vm2, %v16822_v44  ;;  %12171 = vmatprep.subr.mxu0 %v12604_v16 }
0x19bc   :  { %12173 = vmatprep.mubr.msk.f32.mxu0 %vm201_vm2, %v16782_v37  ;;  %12172 = vmatpush3.msra.mxu0 %v12604_v16 }
0x19bf   :  { %12174 = vmatmul.mubr.msk.f32.vlgmr.msra.gmra.mxu0 %vm201_vm2, %v16785_v10 }
0x19c0   :  { %12176 = vmatprep.mubr.msk.f32.mxu0 %vm201_vm2, %v16796_v47 }
0x19c3   :  { %12177 = vmatmul.mubr.msk.f32.gmra.mxu0 %vm201_vm2, %v16798_v12 }
0x19c4   :  { %12179 = vmatprep.mubr.msk.f32.mxu0 %vm201_vm2, %v16808_v18 }
0x19c7   :  { %12180 = vmatmul.mubr.msk.f32.gmra.mxu0 %vm201_vm2, %v16810_v28 }
0x19c8   :  { %12182 = vmatprep.mubr.msk.f32.mxu0 %vm201_vm2, %v16820_v61 }
0x19cb   :  { %12183 = vmatmul.mubr.msk.f32.gmra.mxu0 %vm201_vm2, %v16822_v44 }
0x1a2f   :  { %v11905_v36 = vpop.f32.mrf.mxu0 }
0x1a30   :  { %v8354_v24 = vadd.f32 %v11905_v36, %v17026_v31  ;;  %v10472_v36 = vld [vmem:[%s18084_s0 + $0x150] sm:$0xff] }
0x1a31   :  { %v8314_v52 = vpop.f32.mrf.mxu0 }
0x1a32   :  { %v8353_v45 = vadd.f32 %v8314_v52, %v17028_v25 }
0x1a33   :  { %v11908_v40 = vpop.f32.mrf.mxu0 }
0x1a34   :  { %v8356_v51 = vadd.f32 %v11908_v40, %v17030_v33  ;;  %v17274_v33 = vpop.f32.mrf.mxu1  ;;  %v10474_v40 = vld [vmem:[%s18084_s0 + $0x160] sm:$0xff] }
0x1a35   :  { %v8324_v9 = vpop.f32.mrf.mxu0 }
0x1a36   :  { %v8355_v62 = vadd.f32 %v8324_v9, %v17032_v50  ;;  %v17278_v57 = vpop.f32.mrf.mxu1 }
0x1a37   :  { %v11911_v58 = vpop.f32.mrf.mxu0 }
0x1a38   :  { %v8358_v22 = vadd.f32 %v11911_v58, %v17034_v0  ;;  %v11993_v30 = vpop.f32.mrf.mxu1  ;;  %v10476_v58 = vld [vmem:[%s18084_s0 + $0x170] sm:$0xff] }
0x1a39   :  { %v8334_v2 = vpop.f32.mrf.mxu0 }
0x1a3a   :  { %v8357_v11 = vadd.f32 %v8334_v2, %v17036_v1  ;;  %v8731_v59 = vpop.f32.mrf.mxu1 }
0x1a3b   :  { %v11914_v31 = vpop.f32.mrf.mxu0 }
0x1a3c   :  { %v8360_v25 = vadd.f32 %v11914_v31, %v17038_v13  ;;  %v10495_v31 = vld [vmem:[%s18084_s0 + $0x180] sm:$0xff] }
0x1a3d   :  { %v8344_v4 = vpop.f32.mrf.mxu0 }
0x1a3e   :  { %v8359_v60 = vadd.f32 %v8344_v4, %v8102_v14  ;;  %v10496_v4 = vld [vmem:[%s18084_s0 + $0x188] sm:$0xff] }
0x1a3f   :  { %v11959_v27 = vpop.f32.mrf.mxu0 }
0x1a40   :  { %v17276_v32 = vadd.f32 %v11959_v27, %v8354_v24 }
0x1a41   :  { %v8565_v50 = vpop.f32.mrf.mxu0 }
0x1a42   :  { %v17280_v0 = vadd.f32 %v8565_v50, %v8353_v45  ;;  %v10473_v45 = vld [vmem:[%s18084_s0 + $0x158] sm:$0xff] }
0x1a43   :  { %v11962_v42 = vpop.f32.mrf.mxu0 }
0x1a44   :  { %v17282_v3 = vadd.f32 %v11962_v42, %v8356_v51  ;;  %v10498_v42 = vld [vmem:[%s18084_s0 + $0x198] sm:$0xff] }
0x1a45   :  { %v8575_v1 = vpop.f32.mrf.mxu0 }
0x1a46   :  { %v17284_v6 = vadd.f32 %v8575_v1, %v8355_v62  ;;  %v10475_v62 = vld [vmem:[%s18084_s0 + $0x168] sm:$0xff]  ;;  %v10499_v1 = vld [vmem:[%s18084_s0 + $0x1a0] sm:$0xff] }
0x1a47   :  { %v11965_v13 = vpop.f32.mrf.mxu0 }
0x1a48   :  { %v8609_v53 = vadd.f32 %v11965_v13, %v8358_v22 }
0x1a49   :  { %v8585_v15 = vpop.f32.mrf.mxu0 }
0x1a4a   :  { %v8608_v29 = vadd.f32 %v8585_v15, %v8357_v11  ;;  %v17286_v39 = vadd.f32 %v11993_v30, %v8609_v53  ;;  %v10477_v11 = vld [vmem:[%s18084_s0 + $0x178] sm:$0xff]  ;;  %v10500_v53 = vld [vmem:[%s18084_s0 + $0x1a8] sm:$0xff]  ;;  %v10501_v15 = vld [vmem:[%s18084_s0 + $0x1b0] sm:$0xff] }
0x1a4b   :  { %v11968_v43 = vpop.f32.mrf.mxu0 }
0x1a4c   :  { %v17288_v49 = vadd.f32 %v11968_v43, %v8360_v25  ;;  %v17290_v8 = vadd.f32 %v8731_v59, %v8608_v29  ;;  %v10502_v43 = vld [vmem:[%s18084_s0 + $0x1b8] sm:$0xff] }
0x1a4d   :  { %v8595_v34 = vpop.f32.mrf.mxu0 }
0x1a4e   :  { %v17292_v46 = vadd.f32 %v8595_v34, %v8359_v60  ;;  %v10497_v60 = vld [vmem:[%s18084_s0 + $0x190] sm:$0xff]  ;;  %v10520_v34 = vld [vmem:[%s18084_s0 + $0x1c0] sm:$0xff] }
0x1a4f   :  { %v12013_v23 = vpop.f32.mrf.mxu0 }
0x1a51   :  { %v8824_v21 = vpop.f32.mrf.mxu0 }
0x1a53   :  { %v12016_v20 = vpop.f32.mrf.mxu0 }
0x1a55   :  { %v8834_v19 = vpop.f32.mrf.mxu0 }
0x1a57   :  { %v12019_v17 = vpop.f32.mrf.mxu0 }
0x1a59   :  { %v8844_v35 = vpop.f32.mrf.mxu0 }
0x1a5b   :  { %v12022_v63 = vpop.f32.mrf.mxu0 }
0x1a5c   :  { %12023 = vmatprep.subr.mxu1 %v12022_v63 }
0x1a5d   :  { %v8854_v41 = vpop.f32.mrf.mxu0  ;;  %12024 = vmatpush3.msra.mxu1 %v12022_v63  ;;  %v10523_v63 = vld [vmem:[%s18084_s0 + $0x1d8] sm:$0xff] }
0x1a5e   :  { %12025 = vmatprep.subr.mxu1 %v8854_v41 }
0x1a5f   :  { %12026 = vmatpush3.msra.mxu1 %v8854_v41  ;;  %v12067_v5 = vpop.f32.mrf.mxu0  ;;  %v10524_v41 = vld [vmem:[%s18084_s0 + $0x1e0] sm:$0xff] }
0x1a60   :  { %12027 = vmatprep.subr.mxu1 %v12019_v17 }
0x1a61   :  { %12028 = vmatpush3.msra.mxu1 %v12019_v17  ;;  %v9075_v55 = vpop.f32.mrf.mxu0 }
0x1a62   :  { %12029 = vmatprep.subr.mxu1 %v8844_v35 }
0x1a63   :  { %12030 = vmatpush3.msra.mxu1 %v8844_v35  ;;  %v12070_v38 = vpop.f32.mrf.mxu0 }
0x1a64   :  { %12031 = vmatprep.subr.mxu1 %v12016_v20 }
0x1a65   :  { %12032 = vmatpush3.msra.mxu1 %v12016_v20  ;;  %v9085_v26 = vpop.f32.mrf.mxu0  ;;  %v10521_v20 = vld [vmem:[%s18084_s0 + $0x1c8] sm:$0xff] }
0x1a66   :  { %12033 = vmatprep.subr.mxu1 %v8834_v19 }
0x1a67   :  { %12034 = vmatpush3.msra.mxu1 %v8834_v19  ;;  %v12073_v16 = vpop.f32.mrf.mxu0  ;;  %v10522_v19 = vld [vmem:[%s18084_s0 + $0x1d0] sm:$0xff] }
0x1a68   :  { %12035 = vmatprep.subr.mxu1 %v12013_v23 }
0x1a69   :  { %12036 = vmatpush3.msra.mxu1 %v12013_v23  ;;  %v9095_v54 = vpop.f32.mrf.mxu0 }
0x1a6a   :  { %12037 = vmatprep.subr.mxu1 %v8824_v21 }
0x1a6b   :  { %12038 = vmatpush3.msra.mxu1 %v8824_v21  ;;  %v12076_v24 = vpop.f32.mrf.mxu0 }
0x1a6c   :  { %12040 = vmatmul.mubr.msk.f32.vlgmr.msra.gmra.mxu1 %vm5552_vm8, %v10471_v56  ;;  %12077 = vmatprep.subr.mxu1 %v12076_v24  ;;  %v10548_v56 = vld [vmem:[%s18084_s0 + $0x218] sm:$0xff] }
0x1a6d   :  { %v9105_v52 = vpop.f32.mrf.mxu0  ;;  %12078 = vmatpush3.msra.mxu1 %v12076_v24  ;;  %12042 = vmatprep.mubr.msk.f32.mxu1 %vm5552_vm8, %v10472_v36  ;;  %v10549_v36 = vld [vmem:[%s18084_s0 + $0x220] sm:$0xff]  ;;  %v10550_v24 = vld [vmem:[%s18084_s0 + $0x228] sm:$0xff] }
0x1a6e   :  { %12079 = vmatprep.subr.mxu1 %v9105_v52 }
0x1a6f   :  { %12080 = vmatpush3.msra.mxu1 %v9105_v52  ;;  %v12121_v51 = vpop.f32.mrf.mxu0  ;;  %v10551_v52 = vld [vmem:[%s18084_s0 + $0x230] sm:$0xff] }
0x1a70   :  { %12043 = vmatmul.mubr.msk.f32.gmra.mxu1 %vm5552_vm8, %v10473_v45  ;;  %12081 = vmatprep.subr.mxu1 %v12073_v16  ;;  %v10552_v45 = vld [vmem:[%s18084_s0 + $0x238] sm:$0xff] }
0x1a71   :  { %12082 = vmatpush3.msra.mxu1 %v12073_v16  ;;  %v17309_v9 = vpop.f32.mrf.mxu0  ;;  %12045 = vmatprep.mubr.msk.f32.mxu1 %vm5552_vm8, %v10474_v40  ;;  %v10546_v16 = vld [vmem:[%s18084_s0 + $0x208] sm:$0xff]  ;;  %v9834_v40 = vld [vmem:[%s17513_s17] sm:$0xff] }
0x1a72   :  { %12083 = vmatprep.subr.mxu1 %v9095_v54  ;;  %12229 = vmatprep.mubr.msk.f32.mxu0 %vm5552_vm8, %v9834_v40 }
0x1a73   :  { %12084 = vmatpush3.msra.mxu1 %v9095_v54  ;;  %v12124_v22 = vpop.f32.mrf.mxu0  ;;  %v10547_v54 = vld [vmem:[%s18084_s0 + $0x210] sm:$0xff] }
0x1a74   :  { %12046 = vmatmul.mubr.msk.f32.gmra.mxu1 %vm5552_vm8, %v10475_v62  ;;  %12085 = vmatprep.subr.mxu1 %v12070_v38  ;;  %v8751_v62 = vadd.f32 %v17265_v48, %v17276_v32 }
0x1a75   :  { %12086 = vmatpush3.msra.mxu1 %v12070_v38  ;;  %v9336_v2 = vpop.f32.mrf.mxu0  ;;  %12048 = vmatprep.mubr.msk.f32.mxu1 %vm5552_vm8, %v10476_v58  ;;  %v10527_v38 = vld [vmem:[%s18084_s0 + $0x1f8] sm:$0xff] }
0x1a76   :  { %12087 = vmatprep.subr.mxu1 %v9085_v26 }
0x1a77   :  { %12088 = vmatpush3.msra.mxu1 %v9085_v26  ;;  %v12127_v14 = vpop.f32.mrf.mxu0  ;;  %v10545_v26 = vld [vmem:[%s18084_s0 + $0x200] sm:$0xff] }
0x1a78   :  { %12049 = vmatmul.mubr.msk.f32.gmra.mxu1 %vm5552_vm8, %v10477_v11  ;;  %12089 = vmatprep.subr.mxu1 %v12067_v5 }
0x1a79   :  { %12090 = vmatpush3.msra.mxu1 %v12067_v5  ;;  %v9346_v25 = vpop.f32.mrf.mxu0  ;;  %12093 = vmatprep.mubr.msk.f32.mxu1 %vm5552_vm8, %v10495_v31  ;;  %v10525_v5 = vld [vmem:[%s18084_s0 + $0x1e8] sm:$0xff] }
0x1a7a   :  { %12091 = vmatprep.subr.mxu1 %v9075_v55 }
0x1a7b   :  { %12092 = vmatpush3.msra.mxu1 %v9075_v55  ;;  %v12130_v27 = vpop.f32.mrf.mxu0  ;;  %v10526_v55 = vld [vmem:[%s18084_s0 + $0x1f0] sm:$0xff] }
0x1a7c   :  { %12094 = vmatmul.mubr.msk.f32.vlgmr.msra.gmra.mxu1 %vm5552_vm8, %v10496_v4  ;;  %12131 = vmatprep.subr.mxu1 %v12130_v27 }
0x1a7d   :  { %v9356_v50 = vpop.f32.mrf.mxu0  ;;  %12132 = vmatpush3.msra.mxu1 %v12130_v27  ;;  %12096 = vmatprep.mubr.msk.f32.mxu1 %vm5552_vm8, %v10497_v60 }
0x1a7e   :  { %12133 = vmatprep.subr.mxu1 %v9356_v50 }
0x1a7f   :  { %12134 = vmatpush3.msra.mxu1 %v9356_v50  ;;  %v12175_v30 = vpop.f32.mrf.mxu0 }
0x1a80   :  { %12097 = vmatmul.mubr.msk.f32.gmra.mxu1 %vm5552_vm8, %v10498_v42  ;;  %12135 = vmatprep.subr.mxu1 %v12127_v14 }
0x1a81   :  { %12136 = vmatpush3.msra.mxu1 %v12127_v14  ;;  %v9577_v13 = vpop.f32.mrf.mxu0  ;;  %12099 = vmatprep.mubr.msk.f32.mxu1 %vm5552_vm8, %v10499_v1 }
0x1a82   :  { %12137 = vmatprep.subr.mxu1 %v9346_v25 }
0x1a83   :  { %12138 = vmatpush3.msra.mxu1 %v9346_v25  ;;  %v12178_v59 = vpop.f32.mrf.mxu0 }
0x1a84   :  { %12100 = vmatmul.mubr.msk.f32.gmra.mxu1 %vm5552_vm8, %v10500_v53  ;;  %12139 = vmatprep.subr.mxu1 %v12124_v22 }
0x1a85   :  { %12140 = vmatpush3.msra.mxu1 %v12124_v22  ;;  %v9587_v29 = vpop.f32.mrf.mxu0  ;;  %12102 = vmatprep.mubr.msk.f32.mxu1 %vm5552_vm8, %v10501_v15  ;;  %v8750_v22 = vadd.f32 %v17269_v7, %v17280_v0 }
0x1a86   :  { %12141 = vmatprep.subr.mxu1 %v9336_v2 }
0x1a87   :  { %12142 = vmatpush3.msra.mxu1 %v9336_v2  ;;  %v12181_v23 = vpop.f32.mrf.mxu0 }
0x1a88   :  { %12103 = vmatmul.mubr.msk.f32.gmra.mxu1 %vm5552_vm8, %v10502_v43  ;;  %12143 = vmatprep.subr.mxu1 %v12121_v51 }
0x1a89   :  { %12144 = vmatpush3.msra.mxu1 %v12121_v51  ;;  %v9597_v21 = vpop.f32.mrf.mxu0  ;;  %12147 = vmatprep.mubr.msk.f32.mxu1 %vm5552_vm8, %v10520_v34  ;;  %v11996_v51 = vpop.f32.mrf.mxu1 }
0x1a8a   :  { %12145 = vmatprep.subr.mxu1 %v17309_v9 }
0x1a8b   :  { %12146 = vmatpush3.msra.mxu1 %v17309_v9  ;;  %v12184_v17 = vpop.f32.mrf.mxu0  ;;  %v8741_v9 = vpop.f32.mrf.mxu1 }
0x1a8c   :  { %12148 = vmatmul.mubr.msk.f32.vlgmr.msra.gmra.mxu1 %vm5552_vm8, %v10521_v20  ;;  %12185 = vmatprep.subr.mxu1 %v12184_v17 }
0x1a8d   :  { %v9607_v35 = vpop.f32.mrf.mxu0  ;;  %12186 = vmatpush3.msra.mxu1 %v12184_v17  ;;  %12150 = vmatprep.mubr.msk.f32.mxu1 %vm5552_vm8, %v10522_v19  ;;  %v9808_v17 = vpop.permute.xlu0 %9807 }
0x1a8e   :  { %12187 = vmatprep.subr.mxu1 %v9607_v35 }
0x1a8f   :  { %12188 = vmatpush3.msra.mxu1 %v9607_v35 }
0x1a90   :  { %12151 = vmatmul.mubr.msk.f32.gmra.mxu1 %vm5552_vm8, %v10523_v63  ;;  %12189 = vmatprep.subr.mxu1 %v12181_v23  ;;  %v8757_v63 = vadd.f32 %v11996_v51, %v17288_v49 }
0x1a91   :  { %12190 = vmatpush3.msra.mxu1 %v12181_v23  ;;  %12153 = vmatprep.mubr.msk.f32.mxu1 %vm5552_vm8, %v10524_v41  ;;  %v9798_v51 = vpop.permute.xlu0 %9797 }
0x1a92   :  { %12191 = vmatprep.subr.mxu1 %v9597_v21 }
0x1a93   :  { %12192 = vmatpush3.msra.mxu1 %v9597_v21 }
0x1a94   :  { %12154 = vmatmul.mubr.msk.f32.gmra.mxu1 %vm5552_vm8, %v10525_v5  ;;  %12193 = vmatprep.subr.mxu1 %v12178_v59  ;;  %v9803_v5 = vpop.permute.xlu1 %9802 }
0x1a95   :  { %12194 = vmatpush3.msra.mxu1 %v12178_v59  ;;  %12156 = vmatprep.mubr.msk.f32.mxu1 %vm5552_vm8, %v10526_v55  ;;  %v8753_v55 = vadd.f32 %v17274_v33, %v17282_v3 }
0x1a96   :  { %12195 = vmatprep.subr.mxu1 %v9587_v29 }
0x1a97   :  { %12196 = vmatpush3.msra.mxu1 %v9587_v29 }
0x1a98   :  { %12157 = vmatmul.mubr.msk.f32.gmra.mxu1 %vm5552_vm8, %v10527_v38  ;;  %12197 = vmatprep.subr.mxu1 %v12175_v30 }
0x1a99   :  { %12198 = vmatpush3.msra.mxu1 %v12175_v30  ;;  %12201 = vmatprep.mubr.msk.f32.mxu1 %vm5552_vm8, %v10545_v26  ;;  %v8756_v26 = vadd.f32 %v8741_v9, %v17292_v46 }
0x1a9a   :  { %12199 = vmatprep.subr.mxu1 %v9577_v13 }
0x1a9b   :  { %12200 = vmatpush3.msra.mxu1 %v9577_v13 }
0x1a9c   :  { %12202 = vmatmul.mubr.msk.f32.vlgmr.msra.gmra.mxu1 %vm5552_vm8, %v10546_v16 }
0x1a9d   :  { %12204 = vmatprep.mubr.msk.f32.mxu1 %vm5552_vm8, %v10547_v54 }
0x1aa0   :  { %12205 = vmatmul.mubr.msk.f32.gmra.mxu1 %vm5552_vm8, %v10548_v56 }
0x1aa1   :  { %12207 = vmatprep.mubr.msk.f32.mxu1 %vm5552_vm8, %v10549_v36  ;;  %v8752_v36 = vadd.f32 %v17278_v57, %v17284_v6 }
0x1aa4   :  { %12208 = vmatmul.mubr.msk.f32.gmra.mxu1 %vm5552_vm8, %v10550_v24 }
0x1aa5   :  { %12210 = vmatprep.mubr.msk.f32.mxu1 %vm5552_vm8, %v10551_v52 }
0x1aa8   :  { %12211 = vmatmul.mubr.msk.f32.gmra.mxu1 %vm5552_vm8, %v10552_v45 }
0x1b2c   :  { %v12041_v58 = vpop.f32.mrf.mxu1 }
0x1b2d   :  { %v9002_v2 = vadd.f32 %v12041_v58, %v8751_v62 }
0x1b2e   :  { %v8962_v11 = vpop.f32.mrf.mxu1 }
0x1b2f   :  { %v17430_v31 = vadd.f32 %v8962_v11, %v8750_v22 }
0x1b30   :  { %v12044_v14 = vpop.f32.mrf.mxu1 }
0x1b31   :  { %v9004_v24 = vadd.f32 %v12044_v14, %v8753_v55 }
0x1b32   :  { %v8972_v25 = vpop.f32.mrf.mxu1 }
0x1b33   :  { %v9003_v62 = vadd.f32 %v8972_v25, %v8752_v36  ;;  %v9838_v36 = vld [vmem:[%s17513_s17 + $0x20] sm:$0xff] }
0x1b34   :  { %v12047_v4 = vpop.f32.mrf.mxu1 }
0x1b35   :  { %v9006_v41 = vadd.f32 %v12047_v4, %v17286_v39 }
0x1b36   :  { %v8982_v60 = vpop.f32.mrf.mxu1 }
0x1b37   :  { %v9005_v16 = vadd.f32 %v8982_v60, %v17290_v8  ;;  %v9793_v8 = vpop.permute.xlu1 %9792 }
0x1b38   :  { %v12050_v27 = vpop.f32.mrf.mxu1 }
0x1b39   :  { %v9008_v54 = vadd.f32 %v12050_v27, %v8757_v63 }
0x1b3a   :  { %v8992_v50 = vpop.f32.mrf.mxu1 }
0x1b3b   :  { %v9007_v45 = vadd.f32 %v8992_v50, %v8756_v26 }
0x1b3c   :  { %v12095_v42 = vpop.f32.mrf.mxu1 }
0x1b3d   :  { %v9253_v14 = vadd.f32 %v12095_v42, %v9002_v2 }
0x1b3e   :  { %v9213_v1 = vpop.f32.mrf.mxu1 }
0x1b40   :  { %v12098_v30 = vpop.f32.mrf.mxu1 }
0x1b41   :  { %v9255_v58 = vadd.f32 %v12098_v30, %v9004_v24  ;;  %v9788_v30 = vpop.permute.xlu0 %9787  ;;  %v9839_v24 = vld [vmem:[%s17513_s17 + $0x28] sm:$0xff] }
0x1b42   :  { %v9223_v13 = vpop.f32.mrf.mxu1 }
0x1b43   :  { %v9254_v11 = vadd.f32 %v9223_v13, %v9003_v62 }
0x1b44   :  { %v12101_v53 = vpop.f32.mrf.mxu1 }
0x1b45   :  { %v9257_v56 = vadd.f32 %v12101_v53, %v9006_v41 }
0x1b46   :  { %v9233_v48 = vpop.f32.mrf.mxu1 }
0x1b47   :  { %v9256_v49 = vadd.f32 %v9233_v48, %v9005_v16 }
0x1b48   :  { %v12104_v32 = vpop.f32.mrf.mxu1 }
0x1b49   :  { %v9259_v40 = vadd.f32 %v12104_v32, %v9008_v54 }
0x1b4a   :  { %v9243_v15 = vpop.f32.mrf.mxu1 }
0x1b4b   :  { %v9258_v3 = vadd.f32 %v9243_v15, %v9007_v45  ;;  %v9252_v15 = vadd.f32 %v9213_v1, %v17430_v31  ;;  %v9778_v1 = vpop.permute.xlu0 %9777 }
0x1b4c   :  { %v12149_v59 = vpop.f32.mrf.mxu1 }
0x1b4e   :  { %v9464_v7 = vpop.f32.mrf.mxu1 }
0x1b50   :  { %v12152_v0 = vpop.f32.mrf.mxu1 }
0x1b51   :  { %v9506_v60 = vadd.f32 %v12152_v0, %v9255_v58  ;;  %v9783_v0 = vpop.permute.xlu1 %9782 }
0x1b52   :  { %v9474_v29 = vpop.f32.mrf.mxu1 }
0x1b53   :  { %v9505_v50 = vadd.f32 %v9474_v29, %v9254_v11 }
0x1b54   :  { %v12155_v43 = vpop.f32.mrf.mxu1 }
0x1b55   :  { %v9508_v39 = vadd.f32 %v12155_v43, %v9257_v56 }
0x1b56   :  { %v9484_v34 = vpop.f32.mrf.mxu1 }
0x1b57   :  { %v9507_v22 = vadd.f32 %v9484_v34, %v9256_v49  ;;  %v9504_v34 = vadd.f32 %v12149_v59, %v9253_v14 }
0x1b58   :  { %v12158_v23 = vpop.f32.mrf.mxu1 }
0x1b59   :  { %v9510_v46 = vadd.f32 %v12158_v23, %v9259_v40 }
0x1b5a   :  { %v9494_v21 = vpop.f32.mrf.mxu1 }
0x1b5b   :  { %v9509_v27 = vadd.f32 %v9494_v21, %v9258_v3  ;;  %v9503_v21 = vadd.f32 %v9464_v7, %v9252_v15 }
0x1b5c   :  { %v12203_v20 = vpop.f32.mrf.mxu1 }
0x1b5d   :  { %v9755_v55 = vadd.f32 %v12203_v20, %v9504_v34  ;;  %v9773_v20 = vpop.permute.xlu1 %9772 }
0x1b5e   :  { %v9715_v19 = vpop.f32.mrf.mxu1 }
0x1b5f   :  { %v9811_v59 = vadd.f32 %v9778_v1, %v9755_v55 }
0x1b60   :  { %v12206_v35 = vpop.f32.mrf.mxu1 }
0x1b61   :  { %v9757_v48 = vadd.f32 %v12206_v35, %v9506_v60 }
0x1b62   :  { %v9725_v38 = vpop.f32.mrf.mxu1 }
0x1b63   :  { %v9756_v23 = vadd.f32 %v9725_v38, %v9505_v50  ;;  %v9813_v26 = vadd.f32 %v9788_v30, %v9757_v48  ;;  %v9819_v38 = vadd.f32 %v9811_v59, %v16785_v10  ;;  %v9836_v10 = vld [vmem:[%s17513_s17 + $0x10] sm:$0xff] }
0x1b64   :  { %v12209_v52 = vpop.f32.mrf.mxu1 }
0x1b65   :  { %v9759_v9 = vadd.f32 %v12209_v52, %v9508_v39  ;;  %v9812_v35 = vadd.f32 %v9783_v0, %v9756_v23  ;;  %v9821_v7 = vadd.f32 %v9813_v26, %v16798_v12  ;;  %v9827_v12 = vmax.f32 %v9819_v38, 0.0 }
0x1b66   :  { %v9735_v33 = vpop.f32.mrf.mxu1 }
0x1b67   :  { %v9758_v57 = vadd.f32 %v9735_v33, %v9507_v22  ;;  %v9815_v32 = vadd.f32 %v9798_v51, %v9759_v9 }
0x1b68   :  { %v12212_v4 = vpop.f32.mrf.mxu1 }
0x1b69   :  { %v9761_v6 = vadd.f32 %v12212_v4, %v9510_v46  ;;  %v9814_v63 = vadd.f32 %v9793_v8, %v9758_v57  ;;  %v9823_v29 = vadd.f32 %v9815_v32, %v16810_v28  ;;  %v9820_v28 = vadd.f32 %v9812_v35, %v16796_v47  ;;  %v9835_v47 = vld [vmem:[%s17513_s17 + $0x8] sm:$0xff] }
0x1b6a   :  { %v9745_v53 = vpop.f32.mrf.mxu1 }
0x1b6b   :  { %v9817_v43 = vadd.f32 %v9808_v17, %v9761_v6  ;;  %v9760_v25 = vadd.f32 %v9745_v53, %v9509_v27  ;;  %v9754_v17 = vadd.f32 %v9715_v19, %v9503_v21  ;;  %v9822_v31 = vadd.f32 %v9814_v63, %v16808_v18 }
0x1b6c   :  { %v9829_v19 = vmax.f32 %v9821_v7, 0.0  ;;  %v9828_v18 = vmax.f32 %v9820_v28, 0.0 }
0x1b6d   :  { %v9816_v41 = vadd.f32 %v9803_v5, %v9760_v25  ;;  %v9825_v13 = vadd.f32 %v9817_v43, %v16822_v44  ;;  %v9831_v44 = vmax.f32 %v9823_v29, 0.0  ;;  %v9810_v5 = vadd.f32 %v9773_v20, %v9754_v17 }
0x1b6f   :  { %v9833_v2 = vmax.f32 %v9825_v13, 0.0  ;;  %v9824_v42 = vadd.f32 %v9816_v41, %v16820_v61  ;;  %v9830_v61 = vmax.f32 %v9822_v31, 0.0  ;;  %v9818_v54 = vadd.f32 %v9810_v5, %v16782_v37  ;;  %v9837_v37 = vld [vmem:[%s17513_s17 + $0x18] sm:$0xff] }
0x1b71   :  { %12213 = vmatprep.subr.mxu0 %v9833_v2  ;;  %v9832_v16 = vmax.f32 %v9824_v42, 0.0  ;;  %v9826_v56 = vmax.f32 %v9818_v54, 0.0 }
0x1b72   :  { %12214 = vmatpush3.msra.mxu0 %v9833_v2 }
0x1b73   :  { %12215 = vmatprep.subr.mxu0 %v9832_v16 }
0x1b74   :  { %12216 = vmatpush3.msra.mxu0 %v9832_v16 }
0x1b75   :  { %12217 = vmatprep.subr.mxu0 %v9831_v44 }
0x1b76   :  { %12218 = vmatpush3.msra.mxu0 %v9831_v44 }
0x1b77   :  { %12219 = vmatprep.subr.mxu0 %v9830_v61 }
0x1b78   :  { %12220 = vmatpush3.msra.mxu0 %v9830_v61 }
0x1b79   :  { %12221 = vmatprep.subr.mxu0 %v9829_v19 }
0x1b7a   :  { %12222 = vmatpush3.msra.mxu0 %v9829_v19 }
0x1b7b   :  { %12223 = vmatprep.subr.mxu0 %v9828_v18 }
0x1b7c   :  { %12224 = vmatpush3.msra.mxu0 %v9828_v18 }
0x1b7d   :  { %12225 = vmatprep.subr.mxu0 %v9827_v12 }
0x1b7e   :  { %12226 = vmatpush3.msra.mxu0 %v9827_v12 }
0x1b7f   :  { %12227 = vmatprep.subr.mxu0 %v9826_v56 }
0x1b80   :  { %12228 = vmatpush3.msra.mxu0 %v9826_v56 }
0x1b81   :  { %12230 = vmatmul.mubr.msk.f32.vlgmr.msra.gmra.mxu0 %vm5552_vm8, %v9835_v47 }
0x1b82   :  { %12232 = vmatprep.mubr.msk.f32.mxu0 %vm5552_vm8, %v9836_v10 }
0x1b85   :  { %12233 = vmatmul.mubr.msk.f32.gmra.mxu0 %vm5552_vm8, %v9837_v37 }
0x1b86   :  { %12235 = vmatprep.mubr.msk.f32.mxu0 %vm5552_vm8, %v9838_v36 }
0x1b89   :  { %12236 = vmatmul.mubr.msk.f32.gmra.mxu0 %vm5552_vm8, %v9839_v24 }
0x1b8a   :  { %12616 = shalt.err (!%p12613_p4)
}
0x1b8b   :  { %s12633_s10 = smov 128   ;;  %s12634_s16 = smov 8   ;;  %v9854_v52 = vpop.permute.xlu1 %9853  ;;  %v9849_v45 = vpop.permute.xlu0 %9848 }
0x1b8c   :  { %10012 = dma.vmem_to_hbm [thread:$0]  %s10007_s24, 256, %s17515_s19, [#allocation5], %s12633_s10, %s12633_s10, %s12634_s16  }
0x1b8f   :  { %v9864_v39 = vpop.permute.xlu1 %9863  ;;  %v9859_v58 = vpop.permute.xlu0 %9858 }
0x1b93   :  { %v9874_v9 = vpop.permute.xlu1 %9873  ;;  %v9869_v4 = vpop.permute.xlu0 %9868 }
0x1c41   :  { %v12231_v49 = vpop.f32.mrf.mxu0 }
0x1c42   :  { %v9966_v40 = vadd.f32 %v12231_v49, %v9854_v52 }
0x1c43   :  { %v9960_v51 = vpop.f32.mrf.mxu0 }
0x1c44   :  { %12528 = vtanh.f32 %v9966_v40  ;;  %v9961_v62 = vadd.f32 %v9960_v51, %v9849_v45 }
0x1c45   :  { %v12234_v33 = vpop.f32.mrf.mxu0 }
0x1c46   :  { %12530 = vtanh.f32 %v9961_v62  ;;  %v9976_v3 = vadd.f32 %v12234_v33, %v9864_v39 }
0x1c47   :  { %v9970_v22 = vpop.f32.mrf.mxu0 }
0x1c48   :  { %12532 = vtanh.f32 %v9976_v3  ;;  %v9971_v46 = vadd.f32 %v9970_v22, %v9859_v58 }
0x1c49   :  { %v12237_v8 = vpop.f32.mrf.mxu0 }
0x1c4a   :  { %12534 = vtanh.f32 %v9971_v46  ;;  %v9986_v11 = vadd.f32 %v12237_v8, %v9874_v9 }
0x1c4b   :  { %v9980_v60 = vpop.f32.mrf.mxu0 }
0x1c4c   :  { %12536 = vtanh.f32 %v9986_v11  ;;  %v9981_v27 = vadd.f32 %v9980_v60, %v9869_v4 }
0x1c4e   :  { %12538 = vtanh.f32 %v9981_v27 }
0x1c51   :  { %v12529_v57 = vpop.eup %12528 }
0x1c52   :  { %9996 = vst.msk [vmem:[%s17516_s20 + $0x8] sm:$0xff] %vm201_vm2, %v12529_v57 }
0x1c53   :  { %v12531_v6 = vpop.eup %12530 }
0x1c54   :  { %9995 = vst.msk [vmem:[%s17516_s20] sm:$0xff] %vm201_vm2, %v12531_v6 }
0x1c55   :  { %v12533_v14 = vpop.eup %12532 }
0x1c56   :  { %9998 = vst.msk [vmem:[%s17516_s20 + $0x18] sm:$0xff] %vm201_vm2, %v12533_v14 }
0x1c57   :  { %v12535_v50 = vpop.eup %12534 }
0x1c58   :  { %9997 = vst.msk [vmem:[%s17516_s20 + $0x10] sm:$0xff] %vm201_vm2, %v12535_v50 }
0x1c59   :  { %v12537_v53 = vpop.eup %12536 }
0x1c5a   :  { %10000 = vst.msk [vmem:[%s17516_s20 + $0x28] sm:$0xff] %vm201_vm2, %v12537_v53 }
0x1c5b   :  { %v12539_v48 = vpop.eup %12538 }
0x1c5c   :  { %9999 = vst.msk [vmem:[%s17516_s20 + $0x20] sm:$0xff] %vm201_vm2, %v12539_v48 }
0x1c5d   :  { %12625 = dma.done.wait [#allocation5], 256  }
0x1c5e   :  { %12626 = vsyncadd [#allocation5], 4294967040 }
0x1c5f   :  { %10020 = vsyncpa [#allocation5], 1 }

</bundles_post_ra>
